<compile_context>
chip_gen: v7x
topology: tpu7x:2x2x1
jax: 0.10.0
libtpu: 0.0.40
codegen_flags: <defaults>
</compile_context>

<pallas_src>
import functools
import math

import jax
import jax.numpy as jnp
from jax.experimental import pallas as pl
from jax.experimental.pallas import tpu as pltpu

EPS = 1e-5          # nn.LayerNorm default eps
NEG_INF = -1e30     # additive mask for padded K rows


# ---------------------------------------------------------------------------
# small helpers
# ---------------------------------------------------------------------------
def _layernorm(x, gamma, beta):
    mu = jnp.mean(x, axis=-1, keepdims=True)
    xc = x - mu
    var = jnp.mean(xc * xc, axis=-1, keepdims=True)
    return xc * jax.lax.rsqrt(var + EPS) * gamma + beta


def _gelu_exact(x):
    # exact (erf) GELU; erf via Abramowitz-Stegun 7.1.26 rational approx, |err| < 1.5e-7.
    # divide goes through the EUP (pl.reciprocal approx, ~2^-12 rel err << bf16 cast).
    z = x * 0.7071067811865476
    az = jnp.abs(z)
    t = pl.reciprocal(1.0 + 0.3275911 * az, approx=True)
    poly = t * (0.254829592 + t * (-0.284496736 + t * (1.421413741
               + t * (-1.453152027 + t * 1.061405429))))
    erf_abs = 1.0 - poly * jnp.exp(-az * az)
    erf_z = jnp.where(z >= 0, erf_abs, -erf_abs)
    return 0.5 * x * (1.0 + erf_z)


def _p2d(v):
    return v.reshape(1, -1)


def _pad_tokens(x, n_pad):
    n = x.shape[1]
    if n_pad == n:
        return x
    return jnp.pad(x, ((0, 0), (0, n_pad - n), (0, 0)))


def _row_strip(h):
    # smallest divisor of h that is >= 7 (PVTv2 stages: H in {56, 28, 14, 7} -> TH = 7)
    for t in range(7, h + 1):
        if h % t == 0:
            return t
    return h


# ---------------------------------------------------------------------------
# Kernel 1: q, k, v = split(LayerNorm1(x) @ W_qkv)        (merged QKV matmul, bf16 out)
#   q/k/v are emitted as three separate (B, N_pad, C) arrays so downstream BlockSpecs stay
#   full-last-dim (lane-dense); the two lane slices of the merged (TN, 3C) result happen once
#   per token tile only.
# ---------------------------------------------------------------------------
def _ln_qkv_kernel(x_ref, g1_ref, b1_ref, wqkv_ref, q_ref, k_ref, v_ref):
    x = x_ref[0]                                                   # (TN, C) f32
    C = x.shape[-1]
    xn = _layernorm(x, g1_ref[...], b1_ref[...]).astype(jnp.bfloat16)
    qkv = jnp.dot(xn, wqkv_ref[...], preferred_element_type=jnp.float32)   # (TN, 3C)
    q_ref[0] = qkv[:, :C].astype(jnp.bfloat16)
    k_ref[0] = qkv[:, C:2 * C].astype(jnp.bfloat16)
    v_ref[0] = qkv[:, 2 * C:].astype(jnp.bfloat16)


def ln1_qkv(x, g1, b1, wqkv, tile):
    B, Np, C = x.shape
    out_sd = jax.ShapeDtypeStruct((B, Np, C), jnp.bfloat16)
    return pl.pallas_call(
        _ln_qkv_kernel,
        out_shape=(out_sd, out_sd, out_sd),
        grid=(B, Np // tile),
        in_specs=[
            pl.BlockSpec((1, tile, C), lambda b, i: (b, i, 0)),
            pl.BlockSpec((1, C), lambda b, i: (0, 0)),
            pl.BlockSpec((1, C), lambda b, i: (0, 0)),
            pl.BlockSpec((C, 3 * C), lambda b, i: (0, 0)),
        ],
        out_specs=(
            pl.BlockSpec((1, tile, C), lambda b, i: (b, i, 0)),
            pl.BlockSpec((1, tile, C), lambda b, i: (b, i, 0)),
            pl.BlockSpec((1, tile, C), lambda b, i: (b, i, 0)),
        ),
        compiler_params=pltpu.CompilerParams(
            dimension_semantics=("parallel", "parallel")),
    )(x, _p2d(g1), _p2d(b1), wqkv)


# ---------------------------------------------------------------------------
# Kernel 2: attention (full-K per Q tile) + output projection + bias + residual
#   grid = (B, N_pad/TQ).  K/V BlockSpecs are constant in the Q axis -> fetched once per
#   batch.  Exact per-head softmax over the whole (masked) K row; padded K columns masked
#   to -inf; output projection accumulated over heads via sublane row-slices of Wp.
# ---------------------------------------------------------------------------
def _attn_kernel(x_ref, q_ref, k_ref, v_ref, wp_ref, bp_ref, o_ref,
                 *, num_heads, scale, n_valid):
    q = q_ref[0]                                                   # (TQ, C)  bf16
    k = k_ref[0]                                                   # (Np, C)  bf16
    v = v_ref[0]                                                   # (Np, C)  bf16
    x = x_ref[0]                                                   # (TQ, C)  f32
    wp = wp_ref[...]                                               # (C, C)   bf16
    TQ, C = q.shape
    Np = k.shape[0]
    dh = C // num_heads

    if Np > n_valid:  # static: only mask when the wrapper actually padded tokens
        col = jax.lax.broadcasted_iota(jnp.int32, (1, Np), 1)
        kmask = col < n_valid
    else:
        kmask = None

    out = jnp.zeros((TQ, C), jnp.float32)
    for h in range(num_heads):
        hs, he = h * dh, (h + 1) * dh
        s = jax.lax.dot_general(q[:, hs:he], k[:, hs:he],
                                (((1,), (1,)), ((), ())),
                                preferred_element_type=jnp.float32) * scale   # (TQ, Np)
        if kmask is not None:
            s = jnp.where(kmask, s, NEG_INF)
        m = jnp.max(s, axis=-1, keepdims=True)
        p = jnp.exp(s - m)
        l = jnp.sum(p, axis=-1, keepdims=True)
        o_h = jnp.dot(p.astype(jnp.bfloat16), v[:, hs:he],
                      preferred_element_type=jnp.float32)                     # (TQ, dh)
        o_h = o_h * pl.reciprocal(l, approx=True)   # softmax denom, ~2^-12 rel err
        out = out + jnp.dot(o_h.astype(jnp.bfloat16), wp[hs:he, :],
                            preferred_element_type=jnp.float32)               # (TQ, C)

    o_ref[0] = x + out + bp_ref[...]


def attn_proj_residual(x, q, k, v, wp, bp, *, num_heads, n_valid, tile):
    B, Np, C = x.shape
    dh = C // num_heads
    scale = dh ** -0.5
    kern = functools.partial(_attn_kernel, num_heads=num_heads, scale=scale,
                             n_valid=n_valid)
    return pl.pallas_call(
        kern,
        out_shape=jax.ShapeDtypeStruct((B, Np, C), jnp.float32),
        grid=(B, Np // tile),
        in_specs=[
            pl.BlockSpec((1, tile, C), lambda b, i: (b, i, 0)),   # x (residual)
            pl.BlockSpec((1, tile, C), lambda b, i: (b, i, 0)),   # q rows
            pl.BlockSpec((1, Np, C), lambda b, i: (b, 0, 0)),     # full K (reused over i)
            pl.BlockSpec((1, Np, C), lambda b, i: (b, 0, 0)),     # full V (reused over i)
            pl.BlockSpec((C, C), lambda b, i: (0, 0)),            # Wp (bf16)
            pl.BlockSpec((1, C), lambda b, i: (0, 0)),            # bp
        ],
        out_specs=pl.BlockSpec((1, tile, C), lambda b, i: (b, i, 0)),
        compiler_params=pltpu.CompilerParams(
            dimension_semantics=("parallel", "parallel"),
            vmem_limit_bytes=32 * 1024 * 1024),
    )(x, q, k, v, wp, _p2d(bp))


# ---------------------------------------------------------------------------
# Kernel 3: h = LayerNorm2(y) @ W_fc1 + b_fc1            (bf16 out)
# ---------------------------------------------------------------------------
def _ln_fc1_kernel(y_ref, g2_ref, b2_ref, w1_ref, bfc1_ref, h_ref):
    yn = _layernorm(y_ref[0], g2_ref[...], b2_ref[...]).astype(jnp.bfloat16)
    h = jnp.dot(yn, w1_ref[...], preferred_element_type=jnp.float32) + bfc1_ref[...]
    h_ref[0] = h.astype(jnp.bfloat16)


def ln2_fc1(y, g2, b2, w1, bfc1, tile):
    B, Np, C = y.shape
    HID = w1.shape[1]
    return pl.pallas_call(
        _ln_fc1_kernel,
        out_shape=jax.ShapeDtypeStruct((B, Np, HID), jnp.bfloat16),
        grid=(B, Np // tile),
        in_specs=[
            pl.BlockSpec((1, tile, C), lambda b, i: (b, i, 0)),
            pl.BlockSpec((1, C), lambda b, i: (0, 0)),
            pl.BlockSpec((1, C), lambda b, i: (0, 0)),
            pl.BlockSpec((C, HID), lambda b, i: (0, 0)),
            pl.BlockSpec((1, HID), lambda b, i: (0, 0)),
        ],
        out_specs=pl.BlockSpec((1, tile, HID), lambda b, i: (b, i, 0)),
        compiler_params=pltpu.CompilerParams(
            dimension_semantics=("parallel", "parallel")),
    )(y, _p2d(g2), _p2d(b2), w1, _p2d(bfc1))


# ---------------------------------------------------------------------------
# Kernel 4: depthwise 3x3 conv, stride 1, padding 1 (NHWC, groups = channels)
#   strip-tiled over H with 1-row halos; bf16 staging; f32 tap accumulation.
# ---------------------------------------------------------------------------
def _dwconv_kernel(c_ref, t_ref, bo_ref, w_ref, b_ref, o_ref, xp_ref, *, th, w_out):
    i = pl.program_id(1)
    n_strip = pl.num_programs(1)
    Ch = c_ref.shape[-1]
    zrow = jnp.zeros((1, w_out + 2, Ch), jnp.bfloat16)

    # assemble the (th+2, W+2, Ch) padded strip: gated halos + interior (all rows overwritten)
    xp_ref[0:1] = jnp.where(i > 0, t_ref[0], zrow)
    xp_ref[1:th + 1] = c_ref[0]
    xp_ref[th + 1:th + 2] = jnp.where(i < n_strip - 1, bo_ref[0], zrow)

    xp = xp_ref[...]                                               # (th+2, W+2, Ch) bf16
    w = w_ref[...]                                                 # (3, 3, Ch) f32
    acc = jnp.zeros((th, w_out, Ch), jnp.float32)
    for kh in range(3):
        for kw in range(3):
            tap = jax.lax.slice(xp, (kh, kw, 0), (kh + th, kw + w_out, Ch))
            acc = acc + tap * w[kh, kw]          # bf16 * f32 -> f32 accumulation
    o_ref[0] = (acc + b_ref[...]).astype(o_ref.dtype)


def dwconv3x3(h_img, dw_w, dw_b):
    B, H, W, Ch = h_img.shape
    th = _row_strip(H)
    n_strip = H // th
    hw = jnp.pad(h_img, ((0, 0), (0, 0), (1, 1), (0, 0)))          # zero W halo (bf16)
    kern = functools.partial(_dwconv_kernel, th=th, w_out=W)
    return pl.pallas_call(
        kern,
        out_shape=jax.ShapeDtypeStruct((B, H, W, Ch), jnp.bfloat16),
        grid=(B, n_strip),
        in_specs=[
            # interior rows of the strip
            pl.BlockSpec((1, th, W + 2, Ch), lambda b, i: (b, i, 0, 0)),
            # halo row above (gated to zero in-kernel for i == 0)
            pl.BlockSpec((1, 1, W + 2, Ch),
                         lambda b, i: (b, jnp.maximum(i * th - 1, 0), 0, 0)),
            # halo row below (gated to zero in-kernel for the last strip)
            pl.BlockSpec((1, 1, W + 2, Ch),
                         lambda b, i: (b, jnp.minimum((i + 1) * th, H - 1), 0, 0)),
            pl.BlockSpec((3, 3, Ch), lambda b, i: (0, 0, 0)),
            pl.BlockSpec((1, 1, Ch), lambda b, i: (0, 0, 0)),
        ],
        out_specs=pl.BlockSpec((1, th, W, Ch), lambda b, i: (b, i, 0, 0)),
        scratch_shapes=[pltpu.VMEM((th + 2, W + 2, Ch), jnp.bfloat16)],
        compiler_params=pltpu.CompilerParams(
            dimension_semantics=("parallel", "parallel")),
    )(hw, hw, hw, dw_w, dw_b.reshape(1, 1, Ch))


# ---------------------------------------------------------------------------
# Kernel 5: out = y + GELU(conv_out) @ W_fc2 + b_fc2      (GELU fused, bf16 matmul)
# ---------------------------------------------------------------------------
def _gelu_fc2_res_kernel(a_ref, y_ref, w2_ref, bfc2_ref, o_ref):
    a = a_ref[0].astype(jnp.float32)                               # (TN, HID)
    g = _gelu_exact(a).astype(jnp.bfloat16)
    o_ref[0] = y_ref[0] + jnp.dot(g, w2_ref[...],
                                  preferred_element_type=jnp.float32) + bfc2_ref[...]


def gelu_fc2_residual(a, y, w2, bfc2, tile):
    B, Np, HID = a.shape
    C = w2.shape[1]
    return pl.pallas_call(
        _gelu_fc2_res_kernel,
        out_shape=jax.ShapeDtypeStruct((B, Np, C), jnp.float32),
        grid=(B, Np // tile),
        in_specs=[
            pl.BlockSpec((1, tile, HID), lambda b, i: (b, i, 0)),
            pl.BlockSpec((1, tile, C), lambda b, i: (b, i, 0)),
            pl.BlockSpec((HID, C), lambda b, i: (0, 0)),
            pl.BlockSpec((1, C), lambda b, i: (0, 0)),
        ],
        out_specs=pl.BlockSpec((1, tile, C), lambda b, i: (b, i, 0)),
        compiler_params=pltpu.CompilerParams(
            dimension_semantics=("parallel", "parallel")),
    )(a, y, w2, _p2d(bfc2))


# ---------------------------------------------------------------------------
# Block forward (glue)
# ---------------------------------------------------------------------------
def block_forward(x, H, W, p, num_heads):
    B, N, C = x.shape
    assert N == H * W
    bf16 = jnp.bfloat16

    # token tile: 256-row tiles (full MXU width on v6e/v7x) for large N, 128 otherwise;
    # N is padded to a tile multiple so every kernel pipelines with multi-step grids.
    tile = 256 if N >= 1024 else 128
    n_pad = ((N + tile - 1) // tile) * tile
    x_pad = _pad_tokens(x, n_pad)

    wqkv = jnp.concatenate([p["wq"], p["wkv"]], axis=1).astype(bf16)   # (C, 3C)

    # x = x + proj(attn(norm1(x)))
    q, k, v = ln1_qkv(x_pad, p["g1"], p["b1"], wqkv, tile)
    y_pad = attn_proj_residual(x_pad, q, k, v, p["wp"].astype(bf16), p["bp"],
                               num_heads=num_heads, n_valid=N, tile=tile)

    # x = y + fc2(gelu(dwconv(fc1(norm2(y)))))
    h_pad = ln2_fc1(y_pad, p["g2"], p["b2"], p["w1"].astype(bf16), p["bfc1"], tile)
    HID = h_pad.shape[-1]
    h_img = h_pad[:, :N].reshape(B, H, W, HID)                     # drop padded tokens
    hc = dwconv3x3(h_img, p["dw_w"], p["dw_b"])                    # (B, H, W, HID) bf16
    hc_pad = _pad_tokens(hc.reshape(B, N, HID), n_pad)
    out_pad = gelu_fc2_residual(hc_pad, y_pad, p["w2"].astype(bf16), p["bfc2"], tile)
    return out_pad[:, :N]


# ---------------------------------------------------------------------------
# Pure-JAX reference (f32, exact erf GELU) for a sanity check
# ---------------------------------------------------------------------------
def reference_block(x, H, W, p, num_heads):
    def ln(t, g, b):
        mu = t.mean(-1, keepdims=True)
        var = ((t - mu) ** 2).mean(-1, keepdims=True)
        return (t - mu) / jnp.sqrt(var + EPS) * g + b

    B, N, C = x.shape
    dh = C // num_heads
    scale = dh ** -0.5
    xn = ln(x, p["g1"], p["b1"])
    q = xn @ p["wq"]
    kv = xn @ p["wkv"]
    k, v = kv[..., :C], kv[..., C:]

    def split(t):
        return t.reshape(B, N, num_heads, dh).transpose(0, 2, 1, 3)

    qh, kh, vh = split(q), split(k), split(v)
    attn = jax.nn.softmax(jnp.einsum("bhqd,bhkd->bhqk", qh, kh) * scale, axis=-1)
    o = jnp.einsum("bhqk,bhkd->bhqd", attn, vh).transpose(0, 2, 1, 3).reshape(B, N, C)
    y = x + o @ p["wp"] + p["bp"]

    h = ln(y, p["g2"], p["b2"]) @ p["w1"] + p["bfc1"]
    HID = h.shape[-1]
    hc = h.reshape(B, H, W, HID)
    conv = jax.lax.conv_general_dilated(
        hc, p["dw_w"].reshape(3, 3, 1, HID), window_strides=(1, 1), padding="SAME",
        dimension_numbers=("NHWC", "HWIO", "NHWC"), feature_group_count=HID)
    conv = conv + p["dw_b"]
    h_act = jax.nn.gelu(conv.reshape(B, N, HID), approximate=False)
    return y + h_act @ p["w2"] + p["bfc2"]


if __name__ == "__main__":
    # Small but representative shapes: dim=32, num_heads=4, H=W=14 (N=196, NOT a multiple of
    # 128 -> exercises token padding + K masking + multi-tile Q grid + 2-strip conv halos).
    B, C, H, W = 2, 32, 14, 14
    N = H * W
    num_heads = 4
    HID = int(C * 4.0)

    key = jax.random.PRNGKey(0)
    ks = jax.random.split(key, 12)
    f32 = jnp.float32
    params = {
        "g1": jnp.ones((C,), f32), "b1": jnp.zeros((C,), f32),
        "wq": (0.02 * jax.random.normal(ks[0], (C, C))).astype(f32),
        "wkv": (0.02 * jax.random.normal(ks[1], (C, 2 * C))).astype(f32),
        "wp": (0.02 * jax.random.normal(ks[2], (C, C))).astype(f32),
        "bp": (0.01 * jax.random.normal(ks[3], (C,))).astype(f32),
        "g2": jnp.ones((C,), f32), "b2": jnp.zeros((C,), f32),
        "w1": (0.02 * jax.random.normal(ks[4], (C, HID))).astype(f32),
        "bfc1": (0.01 * jax.random.normal(ks[5], (HID,))).astype(f32),
        "dw_w": (math.sqrt(2.0 / 9.0) * jax.random.normal(ks[6], (3, 3, HID))).astype(f32),
        "dw_b": (0.01 * jax.random.normal(ks[7], (HID,))).astype(f32),
        "w2": (0.02 * jax.random.normal(ks[8], (HID, C))).astype(f32),
        "bfc2": (0.01 * jax.random.normal(ks[9], (C,))).astype(f32),
    }
    x = jax.random.normal(ks[10], (B, N, C), dtype=f32)

    fwd = jax.jit(block_forward, static_argnums=(1, 2, 4))
    out = jax.block_until_ready(fwd(x, H, W, params, num_heads))

    ref = reference_block(x, H, W, params, num_heads)
    assert out.shape == (B, N, C)
    if not bool(jnp.allclose(out, ref, atol=2e-2, rtol=2e-2)):
        raise AssertionError("Pallas Block output does not match JAX reference")

    print("KERNEL_OK")
</pallas_src>

<mosaic_0001>
module attributes {stable_mosaic.version = 11 : i64} {
  func.func @_ln_qkv_kernel(%arg0: i32, %arg1: i32, %arg2: memref<1x128x32xf32, #tpu.memory_space<vmem>>, %arg3: memref<1x32xf32, #tpu.memory_space<vmem>>, %arg4: memref<1x32xf32, #tpu.memory_space<vmem>>, %arg5: memref<32x96xbf16, #tpu.memory_space<vmem>>, %arg6: memref<1x128x32xbf16, #tpu.memory_space<vmem>>, %arg7: memref<1x128x32xbf16, #tpu.memory_space<vmem>>, %arg8: memref<1x128x32xbf16, #tpu.memory_space<vmem>>) attributes {dimension_semantics = [#tpu.dimension_semantics<parallel>, #tpu.dimension_semantics<parallel>], iteration_bounds = array<i64: 2, 2>, scalar_prefetch = 0 : i64, scratch_operands = 0 : i64, tpu.core_type = #tpu.core_type<tc>, window_params = [{transform_indices = @transform_0, window_bounds = array<i64: 1, 128, 32>}, {pipeline_mode = #tpu.pipeline_mode<synchronous>, transform_indices = @transform_1, window_bounds = array<i64: 1, 32>}, {pipeline_mode = #tpu.pipeline_mode<synchronous>, transform_indices = @transform_2, window_bounds = array<i64: 1, 32>}, {pipeline_mode = #tpu.pipeline_mode<synchronous>, transform_indices = @transform_3, window_bounds = array<i64: 32, 96>}, {transform_indices = @transform_4, window_bounds = array<i64: 1, 128, 32>}, {transform_indices = @transform_5, window_bounds = array<i64: 1, 128, 32>}, {transform_indices = @transform_6, window_bounds = array<i64: 1, 128, 32>}]} {
    %c0 = arith.constant 0 : index
    %c0_0 = arith.constant 0 : index
    %c0_1 = arith.constant 0 : index
    %0 = vector.load %arg2[%c0, %c0_0, %c0_1] : memref<1x128x32xf32, #tpu.memory_space<vmem>>, vector<1x128x32xf32>
    %1 = vector.shape_cast %0 : vector<1x128x32xf32> to vector<128x32xf32>
    %c0_2 = arith.constant 0 : index
    %c0_3 = arith.constant 0 : index
    %2 = vector.load %arg3[%c0_2, %c0_3] : memref<1x32xf32, #tpu.memory_space<vmem>>, vector<1x32xf32>
    %c0_4 = arith.constant 0 : index
    %c0_5 = arith.constant 0 : index
    %3 = vector.load %arg4[%c0_4, %c0_5] : memref<1x32xf32, #tpu.memory_space<vmem>>, vector<1x32xf32>
    %cst = arith.constant dense<0.000000e+00> : vector<128xf32>
    %4 = vector.multi_reduction <add>, %1, %cst [1] : vector<128x32xf32> to vector<128xf32>
    %5 = vector.shape_cast %4 : vector<128xf32> to vector<128x1xf32>
    %cst_6 = arith.constant 3.200000e+01 : f32
    %6 = vector.broadcast %cst_6 : f32 to vector<128x1xf32>
    %7 = arith.divf %5, %6 : vector<128x1xf32>
    %8 = vector.broadcast %7 : vector<128x1xf32> to vector<128x32xf32>
    %9 = arith.subf %1, %8 : vector<128x32xf32>
    %10 = arith.mulf %9, %9 : vector<128x32xf32>
    %cst_7 = arith.constant dense<0.000000e+00> : vector<128xf32>
    %11 = vector.multi_reduction <add>, %10, %cst_7 [1] : vector<128x32xf32> to vector<128xf32>
    %12 = vector.shape_cast %11 : vector<128xf32> to vector<128x1xf32>
    %cst_8 = arith.constant 3.200000e+01 : f32
    %13 = vector.broadcast %cst_8 : f32 to vector<128x1xf32>
    %14 = arith.divf %12, %13 : vector<128x1xf32>
    %cst_9 = arith.constant 9.99999974E-6 : f32
    %15 = vector.broadcast %cst_9 : f32 to vector<128x1xf32>
    %16 = arith.addf %14, %15 : vector<128x1xf32>
    %17 = math.rsqrt %16 : vector<128x1xf32>
    %18 = vector.broadcast %17 : vector<128x1xf32> to vector<128x32xf32>
    %19 = arith.mulf %9, %18 : vector<128x32xf32>
    %20 = vector.broadcast %2 : vector<1x32xf32> to vector<128x32xf32>
    %21 = arith.mulf %19, %20 : vector<128x32xf32>
    %22 = vector.broadcast %3 : vector<1x32xf32> to vector<128x32xf32>
    %23 = arith.addf %21, %22 : vector<128x32xf32>
    %24 = arith.truncf %23 : vector<128x32xf32> to vector<128x32xbf16>
    %c0_10 = arith.constant 0 : index
    %c0_11 = arith.constant 0 : index
    %25 = vector.load %arg5[%c0_10, %c0_11] : memref<32x96xbf16, #tpu.memory_space<vmem>>, vector<32x96xbf16>
    %cst_12 = arith.constant dense<0.000000e+00> : vector<128x96xf32>
    %26 = tpu.matmul %24, %25, %cst_12 {dimension_numbers = #tpu.dot_dimension_numbers<[1], [0], [0], [1], [0, 0, 1, 1], [], []>} : vector<128x32xbf16>, vector<32x96xbf16>, vector<128x96xf32> -> vector<128x96xf32>
    %27 = vector.extract_strided_slice %26 {offsets = [0, 0], sizes = [128, 32], strides = [1, 1]} : vector<128x96xf32> to vector<128x32xf32>
    %28 = arith.truncf %27 : vector<128x32xf32> to vector<128x32xbf16>
    %c0_13 = arith.constant 0 : index
    %c0_14 = arith.constant 0 : index
    %c0_15 = arith.constant 0 : index
    %29 = vector.load %arg6[%c0_13, %c0_14, %c0_15] : memref<1x128x32xbf16, #tpu.memory_space<vmem>>, vector<1x128x32xbf16>
    %30 = vector.shape_cast %29 : vector<1x128x32xbf16> to vector<128x32xbf16>
    %31 = vector.shape_cast %28 : vector<128x32xbf16> to vector<1x128x32xbf16>
    tpu.vector_store %arg6[%c0_13, %c0_14, %c0_15], %31 {strides = array<i32>} : memref<1x128x32xbf16, #tpu.memory_space<vmem>>, vector<1x128x32xbf16>,
    %32 = vector.extract_strided_slice %26 {offsets = [0, 32], sizes = [128, 32], strides = [1, 1]} : vector<128x96xf32> to vector<128x32xf32>
    %33 = arith.truncf %32 : vector<128x32xf32> to vector<128x32xbf16>
    %c0_16 = arith.constant 0 : index
    %c0_17 = arith.constant 0 : index
    %c0_18 = arith.constant 0 : index
    %34 = vector.load %arg7[%c0_16, %c0_17, %c0_18] : memref<1x128x32xbf16, #tpu.memory_space<vmem>>, vector<1x128x32xbf16>
    %35 = vector.shape_cast %34 : vector<1x128x32xbf16> to vector<128x32xbf16>
    %36 = vector.shape_cast %33 : vector<128x32xbf16> to vector<1x128x32xbf16>
    tpu.vector_store %arg7[%c0_16, %c0_17, %c0_18], %36 {strides = array<i32>} : memref<1x128x32xbf16, #tpu.memory_space<vmem>>, vector<1x128x32xbf16>,
    %37 = vector.extract_strided_slice %26 {offsets = [0, 64], sizes = [128, 32], strides = [1, 1]} : vector<128x96xf32> to vector<128x32xf32>
    %38 = arith.truncf %37 : vector<128x32xf32> to vector<128x32xbf16>
    %c0_19 = arith.constant 0 : index
    %c0_20 = arith.constant 0 : index
    %c0_21 = arith.constant 0 : index
    %39 = vector.load %arg8[%c0_19, %c0_20, %c0_21] : memref<1x128x32xbf16, #tpu.memory_space<vmem>>, vector<1x128x32xbf16>
    %40 = vector.shape_cast %39 : vector<1x128x32xbf16> to vector<128x32xbf16>
    %41 = vector.shape_cast %38 : vector<128x32xbf16> to vector<1x128x32xbf16>
    tpu.vector_store %arg8[%c0_19, %c0_20, %c0_21], %41 {strides = array<i32>} : memref<1x128x32xbf16, #tpu.memory_space<vmem>>, vector<1x128x32xbf16>,
    return
  }
  func.func @transform_0(%arg0: i32, %arg1: i32) -> (i32, i32, i32) {
    %c0_i32 = arith.constant 0 : i32
    %c0_i32_0 = arith.constant 0 : i32
    return %arg0, %arg1, %c0_i32 : i32, i32, i32
  }
  func.func @transform_1(%arg0: i32, %arg1: i32) -> (i32, i32) {
    %c0_i32 = arith.constant 0 : i32
    %c0_i32_0 = arith.constant 0 : i32
    %c0_i32_1 = arith.constant 0 : i32
    return %c0_i32, %c0_i32_0 : i32, i32
  }
  func.func @transform_2(%arg0: i32, %arg1: i32) -> (i32, i32) {
    %c0_i32 = arith.constant 0 : i32
    %c0_i32_0 = arith.constant 0 : i32
    %c0_i32_1 = arith.constant 0 : i32
    return %c0_i32, %c0_i32_0 : i32, i32
  }
  func.func @transform_3(%arg0: i32, %arg1: i32) -> (i32, i32) {
    %c0_i32 = arith.constant 0 : i32
    %c0_i32_0 = arith.constant 0 : i32
    %c0_i32_1 = arith.constant 0 : i32
    return %c0_i32, %c0_i32_0 : i32, i32
  }
  func.func @transform_4(%arg0: i32, %arg1: i32) -> (i32, i32, i32) {
    %c0_i32 = arith.constant 0 : i32
    %c0_i32_0 = arith.constant 0 : i32
    return %arg0, %arg1, %c0_i32 : i32, i32, i32
  }
  func.func @transform_5(%arg0: i32, %arg1: i32) -> (i32, i32, i32) {
    %c0_i32 = arith.constant 0 : i32
    %c0_i32_0 = arith.constant 0 : i32
    return %arg0, %arg1, %c0_i32 : i32, i32, i32
  }
  func.func @transform_6(%arg0: i32, %arg1: i32) -> (i32, i32, i32) {
    %c0_i32 = arith.constant 0 : i32
    %c0_i32_0 = arith.constant 0 : i32
    return %arg0, %arg1, %c0_i32 : i32, i32, i32
  }
}

module attributes {stable_mosaic.version = 11 : i64} {
  func.func @_attn_kernel(%arg0: i32, %arg1: i32, %arg2: memref<1x128x32xf32, #tpu.memory_space<vmem>>, %arg3: memref<1x128x32xbf16, #tpu.memory_space<vmem>>, %arg4: memref<1x256x32xbf16, #tpu.memory_space<vmem>>, %arg5: memref<1x256x32xbf16, #tpu.memory_space<vmem>>, %arg6: memref<32x32xbf16, #tpu.memory_space<vmem>>, %arg7: memref<1x32xf32, #tpu.memory_space<vmem>>, %arg8: memref<1x128x32xf32, #tpu.memory_space<vmem>>) attributes {dimension_semantics = [#tpu.dimension_semantics<parallel>, #tpu.dimension_semantics<parallel>], iteration_bounds = array<i64: 2, 2>, scalar_prefetch = 0 : i64, scratch_operands = 0 : i64, tpu.core_type = #tpu.core_type<tc>, window_params = [{transform_indices = @transform_0, window_bounds = array<i64: 1, 128, 32>}, {transform_indices = @transform_1, window_bounds = array<i64: 1, 128, 32>}, {transform_indices = @transform_2, window_bounds = array<i64: 1, 256, 32>}, {transform_indices = @transform_3, window_bounds = array<i64: 1, 256, 32>}, {pipeline_mode = #tpu.pipeline_mode<synchronous>, transform_indices = @transform_4, window_bounds = array<i64: 32, 32>}, {pipeline_mode = #tpu.pipeline_mode<synchronous>, transform_indices = @transform_5, window_bounds = array<i64: 1, 32>}, {transform_indices = @transform_6, window_bounds = array<i64: 1, 128, 32>}]} {
    %c0 = arith.constant 0 : index
    %c0_0 = arith.constant 0 : index
    %c0_1 = arith.constant 0 : index
    %0 = vector.load %arg3[%c0, %c0_0, %c0_1] : memref<1x128x32xbf16, #tpu.memory_space<vmem>>, vector<1x128x32xbf16>
    %1 = vector.shape_cast %0 : vector<1x128x32xbf16> to vector<128x32xbf16>
    %c0_2 = arith.constant 0 : index
    %c0_3 = arith.constant 0 : index
    %c0_4 = arith.constant 0 : index
    %2 = vector.load %arg4[%c0_2, %c0_3, %c0_4] : memref<1x256x32xbf16, #tpu.memory_space<vmem>>, vector<1x256x32xbf16>
    %3 = vector.shape_cast %2 : vector<1x256x32xbf16> to vector<256x32xbf16>
    %c0_5 = arith.constant 0 : index
    %c0_6 = arith.constant 0 : index
    %c0_7 = arith.constant 0 : index
    %4 = vector.load %arg5[%c0_5, %c0_6, %c0_7] : memref<1x256x32xbf16, #tpu.memory_space<vmem>>, vector<1x256x32xbf16>
    %5 = vector.shape_cast %4 : vector<1x256x32xbf16> to vector<256x32xbf16>
    %c0_8 = arith.constant 0 : index
    %c0_9 = arith.constant 0 : index
    %c0_10 = arith.constant 0 : index
    %6 = vector.load %arg2[%c0_8, %c0_9, %c0_10] : memref<1x128x32xf32, #tpu.memory_space<vmem>>, vector<1x128x32xf32>
    %7 = vector.shape_cast %6 : vector<1x128x32xf32> to vector<128x32xf32>
    %c0_11 = arith.constant 0 : index
    %c0_12 = arith.constant 0 : index
    %8 = vector.load %arg6[%c0_11, %c0_12] : memref<32x32xbf16, #tpu.memory_space<vmem>>, vector<32x32xbf16>
    %9 = tpu.iota {dimensions = array<i32: 1>} : vector<1x256xi32>
    %c196_i32 = arith.constant 196 : i32
    %10 = vector.broadcast %c196_i32 : i32 to vector<1x256xi32>
    %11 = arith.cmpi slt, %9, %10 : vector<1x256xi32>
    %cst = arith.constant 0.000000e+00 : f32
    %12 = vector.broadcast %cst : f32 to vector<128x32xf32>
    %13 = vector.extract_strided_slice %1 {offsets = [0, 0], sizes = [128, 8], strides = [1, 1]} : vector<128x32xbf16> to vector<128x8xbf16>
    %14 = vector.extract_strided_slice %3 {offsets = [0, 0], sizes = [256, 8], strides = [1, 1]} : vector<256x32xbf16> to vector<256x8xbf16>
    %cst_13 = arith.constant dense<0.000000e+00> : vector<128x256xf32>
    %15 = tpu.matmul %13, %14, %cst_13 {dimension_numbers = #tpu.dot_dimension_numbers<[1], [1], [0], [0], [0, 0, 1, 0], [], []>} : vector<128x8xbf16>, vector<256x8xbf16>, vector<128x256xf32> -> vector<128x256xf32>
    %cst_14 = arith.constant 0.353553385 : f32
    %16 = vector.broadcast %cst_14 : f32 to vector<128x256xf32>
    %17 = arith.mulf %15, %16 : vector<128x256xf32>
    %cst_15 = arith.constant -1.000000e+30 : f32
    %18 = vector.shape_cast %11 : vector<1x256xi1> to vector<1x256xi1>
    %19 = vector.broadcast %18 : vector<1x256xi1> to vector<128x256xi1>
    %20 = vector.broadcast %cst_15 : f32 to vector<128x256xf32>
    %21 = arith.select %19, %17, %20 : vector<128x256xi1>, vector<128x256xf32>
    %cst_16 = arith.constant dense<0xFF800000> : vector<128xf32>
    %22 = vector.multi_reduction <maximumf>, %21, %cst_16 [1] : vector<128x256xf32> to vector<128xf32>
    %23 = vector.shape_cast %22 : vector<128xf32> to vector<128x1xf32>
    %24 = vector.broadcast %23 : vector<128x1xf32> to vector<128x256xf32>
    %25 = arith.subf %21, %24 : vector<128x256xf32>
    %26 = math.exp %25 : vector<128x256xf32>
    %cst_17 = arith.constant dense<0.000000e+00> : vector<128xf32>
    %27 = vector.multi_reduction <add>, %26, %cst_17 [1] : vector<128x256xf32> to vector<128xf32>
    %28 = vector.shape_cast %27 : vector<128xf32> to vector<128x1xf32>
    %29 = arith.truncf %26 : vector<128x256xf32> to vector<128x256xbf16>
    %30 = vector.extract_strided_slice %5 {offsets = [0, 0], sizes = [256, 8], strides = [1, 1]} : vector<256x32xbf16> to vector<256x8xbf16>
    %cst_18 = arith.constant dense<0.000000e+00> : vector<128x8xf32>
    %31 = tpu.matmul %29, %30, %cst_18 {dimension_numbers = #tpu.dot_dimension_numbers<[1], [0], [0], [1], [0, 0, 1, 1], [], []>} : vector<128x256xbf16>, vector<256x8xbf16>, vector<128x8xf32> -> vector<128x8xf32>
    %32 = tpu.reciprocal %28 {approx = true} : vector<128x1xf32> -> vector<128x1xf32>
    %33 = vector.broadcast %32 : vector<128x1xf32> to vector<128x8xf32>
    %34 = arith.mulf %31, %33 : vector<128x8xf32>
    %35 = arith.truncf %34 : vector<128x8xf32> to vector<128x8xbf16>
    %36 = vector.extract_strided_slice %8 {offsets = [0, 0], sizes = [8, 32], strides = [1, 1]} : vector<32x32xbf16> to vector<8x32xbf16>
    %cst_19 = arith.constant dense<0.000000e+00> : vector<128x32xf32>
    %37 = tpu.matmul %35, %36, %cst_19 {dimension_numbers = #tpu.dot_dimension_numbers<[1], [0], [0], [1], [0, 0, 1, 1], [], []>} : vector<128x8xbf16>, vector<8x32xbf16>, vector<128x32xf32> -> vector<128x32xf32>
    %38 = arith.addf %12, %37 : vector<128x32xf32>
    %39 = vector.extract_strided_slice %1 {offsets = [0, 8], sizes = [128, 8], strides = [1, 1]} : vector<128x32xbf16> to vector<128x8xbf16>
    %40 = vector.extract_strided_slice %3 {offsets = [0, 8], sizes = [256, 8], strides = [1, 1]} : vector<256x32xbf16> to vector<256x8xbf16>
    %cst_20 = arith.constant dense<0.000000e+00> : vector<128x256xf32>
    %41 = tpu.matmul %39, %40, %cst_20 {dimension_numbers = #tpu.dot_dimension_numbers<[1], [1], [0], [0], [0, 0, 1, 0], [], []>} : vector<128x8xbf16>, vector<256x8xbf16>, vector<128x256xf32> -> vector<128x256xf32>
    %cst_21 = arith.constant 0.353553385 : f32
    %42 = vector.broadcast %cst_21 : f32 to vector<128x256xf32>
    %43 = arith.mulf %41, %42 : vector<128x256xf32>
    %cst_22 = arith.constant -1.000000e+30 : f32
    %44 = vector.shape_cast %11 : vector<1x256xi1> to vector<1x256xi1>
    %45 = vector.broadcast %44 : vector<1x256xi1> to vector<128x256xi1>
    %46 = vector.broadcast %cst_22 : f32 to vector<128x256xf32>
    %47 = arith.select %45, %43, %46 : vector<128x256xi1>, vector<128x256xf32>
    %cst_23 = arith.constant dense<0xFF800000> : vector<128xf32>
    %48 = vector.multi_reduction <maximumf>, %47, %cst_23 [1] : vector<128x256xf32> to vector<128xf32>
    %49 = vector.shape_cast %48 : vector<128xf32> to vector<128x1xf32>
    %50 = vector.broadcast %49 : vector<128x1xf32> to vector<128x256xf32>
    %51 = arith.subf %47, %50 : vector<128x256xf32>
    %52 = math.exp %51 : vector<128x256xf32>
    %cst_24 = arith.constant dense<0.000000e+00> : vector<128xf32>
    %53 = vector.multi_reduction <add>, %52, %cst_24 [1] : vector<128x256xf32> to vector<128xf32>
    %54 = vector.shape_cast %53 : vector<128xf32> to vector<128x1xf32>
    %55 = arith.truncf %52 : vector<128x256xf32> to vector<128x256xbf16>
    %56 = vector.extract_strided_slice %5 {offsets = [0, 8], sizes = [256, 8], strides = [1, 1]} : vector<256x32xbf16> to vector<256x8xbf16>
    %cst_25 = arith.constant dense<0.000000e+00> : vector<128x8xf32>
    %57 = tpu.matmul %55, %56, %cst_25 {dimension_numbers = #tpu.dot_dimension_numbers<[1], [0], [0], [1], [0, 0, 1, 1], [], []>} : vector<128x256xbf16>, vector<256x8xbf16>, vector<128x8xf32> -> vector<128x8xf32>
    %58 = tpu.reciprocal %54 {approx = true} : vector<128x1xf32> -> vector<128x1xf32>
    %59 = vector.broadcast %58 : vector<128x1xf32> to vector<128x8xf32>
    %60 = arith.mulf %57, %59 : vector<128x8xf32>
    %61 = arith.truncf %60 : vector<128x8xf32> to vector<128x8xbf16>
    %62 = vector.extract_strided_slice %8 {offsets = [8, 0], sizes = [8, 32], strides = [1, 1]} : vector<32x32xbf16> to vector<8x32xbf16>
    %cst_26 = arith.constant dense<0.000000e+00> : vector<128x32xf32>
    %63 = tpu.matmul %61, %62, %cst_26 {dimension_numbers = #tpu.dot_dimension_numbers<[1], [0], [0], [1], [0, 0, 1, 1], [], []>} : vector<128x8xbf16>, vector<8x32xbf16>, vector<128x32xf32> -> vector<128x32xf32>
    %64 = arith.addf %38, %63 : vector<128x32xf32>
    %65 = vector.extract_strided_slice %1 {offsets = [0, 16], sizes = [128, 8], strides = [1, 1]} : vector<128x32xbf16> to vector<128x8xbf16>
    %66 = vector.extract_strided_slice %3 {offsets = [0, 16], sizes = [256, 8], strides = [1, 1]} : vector<256x32xbf16> to vector<256x8xbf16>
    %cst_27 = arith.constant dense<0.000000e+00> : vector<128x256xf32>
    %67 = tpu.matmul %65, %66, %cst_27 {dimension_numbers = #tpu.dot_dimension_numbers<[1], [1], [0], [0], [0, 0, 1, 0], [], []>} : vector<128x8xbf16>, vector<256x8xbf16>, vector<128x256xf32> -> vector<128x256xf32>
    %cst_28 = arith.constant 0.353553385 : f32
    %68 = vector.broadcast %cst_28 : f32 to vector<128x256xf32>
    %69 = arith.mulf %67, %68 : vector<128x256xf32>
    %cst_29 = arith.constant -1.000000e+30 : f32
    %70 = vector.shape_cast %11 : vector<1x256xi1> to vector<1x256xi1>
    %71 = vector.broadcast %70 : vector<1x256xi1> to vector<128x256xi1>
    %72 = vector.broadcast %cst_29 : f32 to vector<128x256xf32>
    %73 = arith.select %71, %69, %72 : vector<128x256xi1>, vector<128x256xf32>
    %cst_30 = arith.constant dense<0xFF800000> : vector<128xf32>
    %74 = vector.multi_reduction <maximumf>, %73, %cst_30 [1] : vector<128x256xf32> to vector<128xf32>
    %75 = vector.shape_cast %74 : vector<128xf32> to vector<128x1xf32>
    %76 = vector.broadcast %75 : vector<128x1xf32> to vector<128x256xf32>
    %77 = arith.subf %73, %76 : vector<128x256xf32>
    %78 = math.exp %77 : vector<128x256xf32>
    %cst_31 = arith.constant dense<0.000000e+00> : vector<128xf32>
    %79 = vector.multi_reduction <add>, %78, %cst_31 [1] : vector<128x256xf32> to vector<128xf32>
    %80 = vector.shape_cast %79 : vector<128xf32> to vector<128x1xf32>
    %81 = arith.truncf %78 : vector<128x256xf32> to vector<128x256xbf16>
    %82 = vector.extract_strided_slice %5 {offsets = [0, 16], sizes = [256, 8], strides = [1, 1]} : vector<256x32xbf16> to vector<256x8xbf16>
    %cst_32 = arith.constant dense<0.000000e+00> : vector<128x8xf32>
    %83 = tpu.matmul %81, %82, %cst_32 {dimension_numbers = #tpu.dot_dimension_numbers<[1], [0], [0], [1], [0, 0, 1, 1], [], []>} : vector<128x256xbf16>, vector<256x8xbf16>, vector<128x8xf32> -> vector<128x8xf32>
    %84 = tpu.reciprocal %80 {approx = true} : vector<128x1xf32> -> vector<128x1xf32>
    %85 = vector.broadcast %84 : vector<128x1xf32> to vector<128x8xf32>
    %86 = arith.mulf %83, %85 : vector<128x8xf32>
    %87 = arith.truncf %86 : vector<128x8xf32> to vector<128x8xbf16>
    %88 = vector.extract_strided_slice %8 {offsets = [16, 0], sizes = [8, 32], strides = [1, 1]} : vector<32x32xbf16> to vector<8x32xbf16>
    %cst_33 = arith.constant dense<0.000000e+00> : vector<128x32xf32>
    %89 = tpu.matmul %87, %88, %cst_33 {dimension_numbers = #tpu.dot_dimension_numbers<[1], [0], [0], [1], [0, 0, 1, 1], [], []>} : vector<128x8xbf16>, vector<8x32xbf16>, vector<128x32xf32> -> vector<128x32xf32>
    %90 = arith.addf %64, %89 : vector<128x32xf32>
    %91 = vector.extract_strided_slice %1 {offsets = [0, 24], sizes = [128, 8], strides = [1, 1]} : vector<128x32xbf16> to vector<128x8xbf16>
    %92 = vector.extract_strided_slice %3 {offsets = [0, 24], sizes = [256, 8], strides = [1, 1]} : vector<256x32xbf16> to vector<256x8xbf16>
    %cst_34 = arith.constant dense<0.000000e+00> : vector<128x256xf32>
    %93 = tpu.matmul %91, %92, %cst_34 {dimension_numbers = #tpu.dot_dimension_numbers<[1], [1], [0], [0], [0, 0, 1, 0], [], []>} : vector<128x8xbf16>, vector<256x8xbf16>, vector<128x256xf32> -> vector<128x256xf32>
    %cst_35 = arith.constant 0.353553385 : f32
    %94 = vector.broadcast %cst_35 : f32 to vector<128x256xf32>
    %95 = arith.mulf %93, %94 : vector<128x256xf32>
    %cst_36 = arith.constant -1.000000e+30 : f32
    %96 = vector.shape_cast %11 : vector<1x256xi1> to vector<1x256xi1>
    %97 = vector.broadcast %96 : vector<1x256xi1> to vector<128x256xi1>
    %98 = vector.broadcast %cst_36 : f32 to vector<128x256xf32>
    %99 = arith.select %97, %95, %98 : vector<128x256xi1>, vector<128x256xf32>
    %cst_37 = arith.constant dense<0xFF800000> : vector<128xf32>
    %100 = vector.multi_reduction <maximumf>, %99, %cst_37 [1] : vector<128x256xf32> to vector<128xf32>
    %101 = vector.shape_cast %100 : vector<128xf32> to vector<128x1xf32>
    %102 = vector.broadcast %101 : vector<128x1xf32> to vector<128x256xf32>
    %103 = arith.subf %99, %102 : vector<128x256xf32>
    %104 = math.exp %103 : vector<128x256xf32>
    %cst_38 = arith.constant dense<0.000000e+00> : vector<128xf32>
    %105 = vector.multi_reduction <add>, %104, %cst_38 [1] : vector<128x256xf32> to vector<128xf32>
    %106 = vector.shape_cast %105 : vector<128xf32> to vector<128x1xf32>
    %107 = arith.truncf %104 : vector<128x256xf32> to vector<128x256xbf16>
    %108 = vector.extract_strided_slice %5 {offsets = [0, 24], sizes = [256, 8], strides = [1, 1]} : vector<256x32xbf16> to vector<256x8xbf16>
    %cst_39 = arith.constant dense<0.000000e+00> : vector<128x8xf32>
    %109 = tpu.matmul %107, %108, %cst_39 {dimension_numbers = #tpu.dot_dimension_numbers<[1], [0], [0], [1], [0, 0, 1, 1], [], []>} : vector<128x256xbf16>, vector<256x8xbf16>, vector<128x8xf32> -> vector<128x8xf32>
    %110 = tpu.reciprocal %106 {approx = true} : vector<128x1xf32> -> vector<128x1xf32>
    %111 = vector.broadcast %110 : vector<128x1xf32> to vector<128x8xf32>
    %112 = arith.mulf %109, %111 : vector<128x8xf32>
    %113 = arith.truncf %112 : vector<128x8xf32> to vector<128x8xbf16>
    %114 = vector.extract_strided_slice %8 {offsets = [24, 0], sizes = [8, 32], strides = [1, 1]} : vector<32x32xbf16> to vector<8x32xbf16>
    %cst_40 = arith.constant dense<0.000000e+00> : vector<128x32xf32>
    %115 = tpu.matmul %113, %114, %cst_40 {dimension_numbers = #tpu.dot_dimension_numbers<[1], [0], [0], [1], [0, 0, 1, 1], [], []>} : vector<128x8xbf16>, vector<8x32xbf16>, vector<128x32xf32> -> vector<128x32xf32>
    %116 = arith.addf %90, %115 : vector<128x32xf32>
    %117 = arith.addf %7, %116 : vector<128x32xf32>
    %c0_41 = arith.constant 0 : index
    %c0_42 = arith.constant 0 : index
    %118 = vector.load %arg7[%c0_41, %c0_42] : memref<1x32xf32, #tpu.memory_space<vmem>>, vector<1x32xf32>
    %119 = vector.broadcast %118 : vector<1x32xf32> to vector<128x32xf32>
    %120 = arith.addf %117, %119 : vector<128x32xf32>
    %c0_43 = arith.constant 0 : index
    %c0_44 = arith.constant 0 : index
    %c0_45 = arith.constant 0 : index
    %121 = vector.load %arg8[%c0_43, %c0_44, %c0_45] : memref<1x128x32xf32, #tpu.memory_space<vmem>>, vector<1x128x32xf32>
    %122 = vector.shape_cast %121 : vector<1x128x32xf32> to vector<128x32xf32>
    %123 = vector.shape_cast %120 : vector<128x32xf32> to vector<1x128x32xf32>
    tpu.vector_store %arg8[%c0_43, %c0_44, %c0_45], %123 {strides = array<i32>} : memref<1x128x32xf32, #tpu.memory_space<vmem>>, vector<1x128x32xf32>,
    return
  }
  func.func @transform_0(%arg0: i32, %arg1: i32) -> (i32, i32, i32) {
    %c0_i32 = arith.constant 0 : i32
    %c0_i32_0 = arith.constant 0 : i32
    return %arg0, %arg1, %c0_i32 : i32, i32, i32
  }
  func.func @transform_1(%arg0: i32, %arg1: i32) -> (i32, i32, i32) {
    %c0_i32 = arith.constant 0 : i32
    %c0_i32_0 = arith.constant 0 : i32
    return %arg0, %arg1, %c0_i32 : i32, i32, i32
  }
  func.func @transform_2(%arg0: i32, %arg1: i32) -> (i32, i32, i32) {
    %c0_i32 = arith.constant 0 : i32
    %c0_i32_0 = arith.constant 0 : i32
    %c0_i32_1 = arith.constant 0 : i32
    return %arg0, %c0_i32, %c0_i32_0 : i32, i32, i32
  }
  func.func @transform_3(%arg0: i32, %arg1: i32) -> (i32, i32, i32) {
    %c0_i32 = arith.constant 0 : i32
    %c0_i32_0 = arith.constant 0 : i32
    %c0_i32_1 = arith.constant 0 : i32
    return %arg0, %c0_i32, %c0_i32_0 : i32, i32, i32
  }
  func.func @transform_4(%arg0: i32, %arg1: i32) -> (i32, i32) {
    %c0_i32 = arith.constant 0 : i32
    %c0_i32_0 = arith.constant 0 : i32
    %c0_i32_1 = arith.constant 0 : i32
    return %c0_i32, %c0_i32_0 : i32, i32
  }
  func.func @transform_5(%arg0: i32, %arg1: i32) -> (i32, i32) {
    %c0_i32 = arith.constant 0 : i32
    %c0_i32_0 = arith.constant 0 : i32
    %c0_i32_1 = arith.constant 0 : i32
    return %c0_i32, %c0_i32_0 : i32, i32
  }
  func.func @transform_6(%arg0: i32, %arg1: i32) -> (i32, i32, i32) {
    %c0_i32 = arith.constant 0 : i32
    %c0_i32_0 = arith.constant 0 : i32
    return %arg0, %arg1, %c0_i32 : i32, i32, i32
  }
}

module attributes {stable_mosaic.version = 11 : i64} {
  func.func @_ln_fc1_kernel(%arg0: i32, %arg1: i32, %arg2: memref<1x128x32xf32, #tpu.memory_space<vmem>>, %arg3: memref<1x32xf32, #tpu.memory_space<vmem>>, %arg4: memref<1x32xf32, #tpu.memory_space<vmem>>, %arg5: memref<32x128xbf16, #tpu.memory_space<vmem>>, %arg6: memref<1x128xf32, #tpu.memory_space<vmem>>, %arg7: memref<1x128x128xbf16, #tpu.memory_space<vmem>>) attributes {dimension_semantics = [#tpu.dimension_semantics<parallel>, #tpu.dimension_semantics<parallel>], iteration_bounds = array<i64: 2, 2>, scalar_prefetch = 0 : i64, scratch_operands = 0 : i64, tpu.core_type = #tpu.core_type<tc>, window_params = [{transform_indices = @transform_0, window_bounds = array<i64: 1, 128, 32>}, {pipeline_mode = #tpu.pipeline_mode<synchronous>, transform_indices = @transform_1, window_bounds = array<i64: 1, 32>}, {pipeline_mode = #tpu.pipeline_mode<synchronous>, transform_indices = @transform_2, window_bounds = array<i64: 1, 32>}, {pipeline_mode = #tpu.pipeline_mode<synchronous>, transform_indices = @transform_3, window_bounds = array<i64: 32, 128>}, {pipeline_mode = #tpu.pipeline_mode<synchronous>, transform_indices = @transform_4, window_bounds = array<i64: 1, 128>}, {transform_indices = @transform_5, window_bounds = array<i64: 1, 128, 128>}]} {
    %c0 = arith.constant 0 : index
    %c0_0 = arith.constant 0 : index
    %c0_1 = arith.constant 0 : index
    %0 = vector.load %arg2[%c0, %c0_0, %c0_1] : memref<1x128x32xf32, #tpu.memory_space<vmem>>, vector<1x128x32xf32>
    %1 = vector.shape_cast %0 : vector<1x128x32xf32> to vector<128x32xf32>
    %c0_2 = arith.constant 0 : index
    %c0_3 = arith.constant 0 : index
    %2 = vector.load %arg3[%c0_2, %c0_3] : memref<1x32xf32, #tpu.memory_space<vmem>>, vector<1x32xf32>
    %c0_4 = arith.constant 0 : index
    %c0_5 = arith.constant 0 : index
    %3 = vector.load %arg4[%c0_4, %c0_5] : memref<1x32xf32, #tpu.memory_space<vmem>>, vector<1x32xf32>
    %cst = arith.constant dense<0.000000e+00> : vector<128xf32>
    %4 = vector.multi_reduction <add>, %1, %cst [1] : vector<128x32xf32> to vector<128xf32>
    %5 = vector.shape_cast %4 : vector<128xf32> to vector<128x1xf32>
    %cst_6 = arith.constant 3.200000e+01 : f32
    %6 = vector.broadcast %cst_6 : f32 to vector<128x1xf32>
    %7 = arith.divf %5, %6 : vector<128x1xf32>
    %8 = vector.broadcast %7 : vector<128x1xf32> to vector<128x32xf32>
    %9 = arith.subf %1, %8 : vector<128x32xf32>
    %10 = arith.mulf %9, %9 : vector<128x32xf32>
    %cst_7 = arith.constant dense<0.000000e+00> : vector<128xf32>
    %11 = vector.multi_reduction <add>, %10, %cst_7 [1] : vector<128x32xf32> to vector<128xf32>
    %12 = vector.shape_cast %11 : vector<128xf32> to vector<128x1xf32>
    %cst_8 = arith.constant 3.200000e+01 : f32
    %13 = vector.broadcast %cst_8 : f32 to vector<128x1xf32>
    %14 = arith.divf %12, %13 : vector<128x1xf32>
    %cst_9 = arith.constant 9.99999974E-6 : f32
    %15 = vector.broadcast %cst_9 : f32 to vector<128x1xf32>
    %16 = arith.addf %14, %15 : vector<128x1xf32>
    %17 = math.rsqrt %16 : vector<128x1xf32>
    %18 = vector.broadcast %17 : vector<128x1xf32> to vector<128x32xf32>
    %19 = arith.mulf %9, %18 : vector<128x32xf32>
    %20 = vector.broadcast %2 : vector<1x32xf32> to vector<128x32xf32>
    %21 = arith.mulf %19, %20 : vector<128x32xf32>
    %22 = vector.broadcast %3 : vector<1x32xf32> to vector<128x32xf32>
    %23 = arith.addf %21, %22 : vector<128x32xf32>
    %24 = arith.truncf %23 : vector<128x32xf32> to vector<128x32xbf16>
    %c0_10 = arith.constant 0 : index
    %c0_11 = arith.constant 0 : index
    %25 = vector.load %arg5[%c0_10, %c0_11] : memref<32x128xbf16, #tpu.memory_space<vmem>>, vector<32x128xbf16>
    %cst_12 = arith.constant dense<0.000000e+00> : vector<128x128xf32>
    %26 = tpu.matmul %24, %25, %cst_12 {dimension_numbers = #tpu.dot_dimension_numbers<[1], [0], [0], [1], [0, 0, 1, 1], [], []>} : vector<128x32xbf16>, vector<32x128xbf16>, vector<128x128xf32> -> vector<128x128xf32>
    %c0_13 = arith.constant 0 : index
    %c0_14 = arith.constant 0 : index
    %27 = vector.load %arg6[%c0_13, %c0_14] : memref<1x128xf32, #tpu.memory_space<vmem>>, vector<1x128xf32>
    %28 = vector.broadcast %27 : vector<1x128xf32> to vector<128x128xf32>
    %29 = arith.addf %26, %28 : vector<128x128xf32>
    %30 = arith.truncf %29 : vector<128x128xf32> to vector<128x128xbf16>
    %c0_15 = arith.constant 0 : index
    %c0_16 = arith.constant 0 : index
    %c0_17 = arith.constant 0 : index
    %31 = vector.load %arg7[%c0_15, %c0_16, %c0_17] : memref<1x128x128xbf16, #tpu.memory_space<vmem>>, vector<1x128x128xbf16>
    %32 = vector.shape_cast %31 : vector<1x128x128xbf16> to vector<128x128xbf16>
    %33 = vector.shape_cast %30 : vector<128x128xbf16> to vector<1x128x128xbf16>
    tpu.vector_store %arg7[%c0_15, %c0_16, %c0_17], %33 {strides = array<i32>} : memref<1x128x128xbf16, #tpu.memory_space<vmem>>, vector<1x128x128xbf16>,
    return
  }
  func.func @transform_0(%arg0: i32, %arg1: i32) -> (i32, i32, i32) {
    %c0_i32 = arith.constant 0 : i32
    %c0_i32_0 = arith.constant 0 : i32
    return %arg0, %arg1, %c0_i32 : i32, i32, i32
  }
  func.func @transform_1(%arg0: i32, %arg1: i32) -> (i32, i32) {
    %c0_i32 = arith.constant 0 : i32
    %c0_i32_0 = arith.constant 0 : i32
    %c0_i32_1 = arith.constant 0 : i32
    return %c0_i32, %c0_i32_0 : i32, i32
  }
  func.func @transform_2(%arg0: i32, %arg1: i32) -> (i32, i32) {
    %c0_i32 = arith.constant 0 : i32
    %c0_i32_0 = arith.constant 0 : i32
    %c0_i32_1 = arith.constant 0 : i32
    return %c0_i32, %c0_i32_0 : i32, i32
  }
  func.func @transform_3(%arg0: i32, %arg1: i32) -> (i32, i32) {
    %c0_i32 = arith.constant 0 : i32
    %c0_i32_0 = arith.constant 0 : i32
    %c0_i32_1 = arith.constant 0 : i32
    return %c0_i32, %c0_i32_0 : i32, i32
  }
  func.func @transform_4(%arg0: i32, %arg1: i32) -> (i32, i32) {
    %c0_i32 = arith.constant 0 : i32
    %c0_i32_0 = arith.constant 0 : i32
    %c0_i32_1 = arith.constant 0 : i32
    return %c0_i32, %c0_i32_0 : i32, i32
  }
  func.func @transform_5(%arg0: i32, %arg1: i32) -> (i32, i32, i32) {
    %c0_i32 = arith.constant 0 : i32
    %c0_i32_0 = arith.constant 0 : i32
    return %arg0, %arg1, %c0_i32 : i32, i32, i32
  }
}

module attributes {stable_mosaic.version = 11 : i64} {
  func.func @_dwconv_kernel(%arg0: i32, %arg1: i32, %arg2: memref<1x7x16x128xbf16, #tpu.memory_space<vmem>>, %arg3: memref<1x1x16x128xbf16, #tpu.memory_space<vmem>>, %arg4: memref<1x1x16x128xbf16, #tpu.memory_space<vmem>>, %arg5: memref<3x3x128xf32, #tpu.memory_space<vmem>>, %arg6: memref<1x1x128xf32, #tpu.memory_space<vmem>>, %arg7: memref<1x7x14x128xbf16, #tpu.memory_space<vmem>>, %arg8: memref<9x16x128xbf16, #tpu.memory_space<vmem>>) attributes {dimension_semantics = [#tpu.dimension_semantics<parallel>, #tpu.dimension_semantics<parallel>], iteration_bounds = array<i64: 2, 2>, scalar_prefetch = 0 : i64, scratch_operands = 1 : i64, tpu.core_type = #tpu.core_type<tc>, window_params = [{transform_indices = @transform_0, window_bounds = array<i64: 1, 7, 16, 128>}, {transform_indices = @transform_1, window_bounds = array<i64: 1, 1, 16, 128>}, {transform_indices = @transform_2, window_bounds = array<i64: 1, 1, 16, 128>}, {pipeline_mode = #tpu.pipeline_mode<synchronous>, transform_indices = @transform_3, window_bounds = array<i64: 3, 3, 128>}, {pipeline_mode = #tpu.pipeline_mode<synchronous>, transform_indices = @transform_4, window_bounds = array<i64: 1, 1, 128>}, {transform_indices = @transform_5, window_bounds = array<i64: 1, 7, 14, 128>}]} {
    %cst = arith.constant 0.000000e+00 : bf16
    %0 = vector.broadcast %cst : bf16 to vector<1x16x128xbf16>
    %c0_i32 = arith.constant 0 : i32
    %1 = arith.cmpi sgt, %arg1, %c0_i32 : i32
    %c0 = arith.constant 0 : index
    %c0_0 = arith.constant 0 : index
    %c0_1 = arith.constant 0 : index
    %c0_2 = arith.constant 0 : index
    %2 = vector.load %arg3[%c0, %c0_0, %c0_1, %c0_2] : memref<1x1x16x128xbf16, #tpu.memory_space<vmem>>, vector<1x1x16x128xbf16>
    %3 = vector.shape_cast %2 : vector<1x1x16x128xbf16> to vector<1x16x128xbf16>
    %4 = arith.select %1, %3, %0 : vector<1x16x128xbf16>
    %c0_3 = arith.constant 0 : index
    %c0_4 = arith.constant 0 : index
    %c0_5 = arith.constant 0 : index
    %5 = vector.load %arg8[%c0_3, %c0_4, %c0_5] : memref<9x16x128xbf16, #tpu.memory_space<vmem>>, vector<1x16x128xbf16>
    tpu.vector_store %arg8[%c0_3, %c0_4, %c0_5], %4 {strides = array<i32>} : memref<9x16x128xbf16, #tpu.memory_space<vmem>>, vector<1x16x128xbf16>,
    %c0_6 = arith.constant 0 : index
    %c0_7 = arith.constant 0 : index
    %c0_8 = arith.constant 0 : index
    %c0_9 = arith.constant 0 : index
    %6 = vector.load %arg2[%c0_6, %c0_7, %c0_8, %c0_9] : memref<1x7x16x128xbf16, #tpu.memory_space<vmem>>, vector<1x7x16x128xbf16>
    %7 = vector.shape_cast %6 : vector<1x7x16x128xbf16> to vector<7x16x128xbf16>
    %c1 = arith.constant 1 : index
    %c0_10 = arith.constant 0 : index
    %c0_11 = arith.constant 0 : index
    %8 = vector.load %arg8[%c1, %c0_10, %c0_11] : memref<9x16x128xbf16, #tpu.memory_space<vmem>>, vector<7x16x128xbf16>
    tpu.vector_store %arg8[%c1, %c0_10, %c0_11], %7 {strides = array<i32>} : memref<9x16x128xbf16, #tpu.memory_space<vmem>>, vector<7x16x128xbf16>,
    %c1_i32 = arith.constant 1 : i32
    %9 = arith.cmpi slt, %arg1, %c1_i32 : i32
    %c0_12 = arith.constant 0 : index
    %c0_13 = arith.constant 0 : index
    %c0_14 = arith.constant 0 : index
    %c0_15 = arith.constant 0 : index
    %10 = vector.load %arg4[%c0_12, %c0_13, %c0_14, %c0_15] : memref<1x1x16x128xbf16, #tpu.memory_space<vmem>>, vector<1x1x16x128xbf16>
    %11 = vector.shape_cast %10 : vector<1x1x16x128xbf16> to vector<1x16x128xbf16>
    %12 = arith.select %9, %11, %0 : vector<1x16x128xbf16>
    %c8 = arith.constant 8 : index
    %c0_16 = arith.constant 0 : index
    %c0_17 = arith.constant 0 : index
    %13 = vector.load %arg8[%c8, %c0_16, %c0_17] : memref<9x16x128xbf16, #tpu.memory_space<vmem>>, vector<1x16x128xbf16>
    tpu.vector_store %arg8[%c8, %c0_16, %c0_17], %12 {strides = array<i32>} : memref<9x16x128xbf16, #tpu.memory_space<vmem>>, vector<1x16x128xbf16>,
    %c0_18 = arith.constant 0 : index
    %c0_19 = arith.constant 0 : index
    %c0_20 = arith.constant 0 : index
    %14 = vector.load %arg8[%c0_18, %c0_19, %c0_20] : memref<9x16x128xbf16, #tpu.memory_space<vmem>>, vector<9x16x128xbf16>
    %c0_21 = arith.constant 0 : index
    %c0_22 = arith.constant 0 : index
    %c0_23 = arith.constant 0 : index
    %15 = vector.load %arg5[%c0_21, %c0_22, %c0_23] : memref<3x3x128xf32, #tpu.memory_space<vmem>>, vector<3x3x128xf32>
    %cst_24 = arith.constant 0.000000e+00 : f32
    %16 = vector.broadcast %cst_24 : f32 to vector<7x14x128xf32>
    %17 = vector.extract_strided_slice %14 {offsets = [0, 0, 0], sizes = [7, 14, 128], strides = [1, 1, 1]} : vector<9x16x128xbf16> to vector<7x14x128xbf16>
    %18 = vector.extract_strided_slice %15 {offsets = [0, 0, 0], sizes = [1, 1, 128], strides = [1, 1, 1]} : vector<3x3x128xf32> to vector<1x1x128xf32>
    %19 = vector.shape_cast %18 : vector<1x1x128xf32> to vector<128xf32>
    %20 = arith.extf %17 : vector<7x14x128xbf16> to vector<7x14x128xf32>
    %21 = vector.shape_cast %19 : vector<128xf32> to vector<1x1x128xf32>
    %22 = vector.broadcast %21 : vector<1x1x128xf32> to vector<7x14x128xf32>
    %23 = arith.mulf %20, %22 : vector<7x14x128xf32>
    %24 = arith.addf %16, %23 : vector<7x14x128xf32>
    %25 = vector.extract_strided_slice %14 {offsets = [0, 1, 0], sizes = [7, 14, 128], strides = [1, 1, 1]} : vector<9x16x128xbf16> to vector<7x14x128xbf16>
    %26 = vector.extract_strided_slice %15 {offsets = [0, 1, 0], sizes = [1, 1, 128], strides = [1, 1, 1]} : vector<3x3x128xf32> to vector<1x1x128xf32>
    %27 = vector.shape_cast %26 : vector<1x1x128xf32> to vector<128xf32>
    %28 = arith.extf %25 : vector<7x14x128xbf16> to vector<7x14x128xf32>
    %29 = vector.shape_cast %27 : vector<128xf32> to vector<1x1x128xf32>
    %30 = vector.broadcast %29 : vector<1x1x128xf32> to vector<7x14x128xf32>
    %31 = arith.mulf %28, %30 : vector<7x14x128xf32>
    %32 = arith.addf %24, %31 : vector<7x14x128xf32>
    %33 = vector.extract_strided_slice %14 {offsets = [0, 2, 0], sizes = [7, 14, 128], strides = [1, 1, 1]} : vector<9x16x128xbf16> to vector<7x14x128xbf16>
    %34 = vector.extract_strided_slice %15 {offsets = [0, 2, 0], sizes = [1, 1, 128], strides = [1, 1, 1]} : vector<3x3x128xf32> to vector<1x1x128xf32>
    %35 = vector.shape_cast %34 : vector<1x1x128xf32> to vector<128xf32>
    %36 = arith.extf %33 : vector<7x14x128xbf16> to vector<7x14x128xf32>
    %37 = vector.shape_cast %35 : vector<128xf32> to vector<1x1x128xf32>
    %38 = vector.broadcast %37 : vector<1x1x128xf32> to vector<7x14x128xf32>
    %39 = arith.mulf %36, %38 : vector<7x14x128xf32>
    %40 = arith.addf %32, %39 : vector<7x14x128xf32>
    %41 = vector.extract_strided_slice %14 {offsets = [1, 0, 0], sizes = [7, 14, 128], strides = [1, 1, 1]} : vector<9x16x128xbf16> to vector<7x14x128xbf16>
    %42 = vector.extract_strided_slice %15 {offsets = [1, 0, 0], sizes = [1, 1, 128], strides = [1, 1, 1]} : vector<3x3x128xf32> to vector<1x1x128xf32>
    %43 = vector.shape_cast %42 : vector<1x1x128xf32> to vector<128xf32>
    %44 = arith.extf %41 : vector<7x14x128xbf16> to vector<7x14x128xf32>
    %45 = vector.shape_cast %43 : vector<128xf32> to vector<1x1x128xf32>
    %46 = vector.broadcast %45 : vector<1x1x128xf32> to vector<7x14x128xf32>
    %47 = arith.mulf %44, %46 : vector<7x14x128xf32>
    %48 = arith.addf %40, %47 : vector<7x14x128xf32>
    %49 = vector.extract_strided_slice %14 {offsets = [1, 1, 0], sizes = [7, 14, 128], strides = [1, 1, 1]} : vector<9x16x128xbf16> to vector<7x14x128xbf16>
    %50 = vector.extract_strided_slice %15 {offsets = [1, 1, 0], sizes = [1, 1, 128], strides = [1, 1, 1]} : vector<3x3x128xf32> to vector<1x1x128xf32>
    %51 = vector.shape_cast %50 : vector<1x1x128xf32> to vector<128xf32>
    %52 = arith.extf %49 : vector<7x14x128xbf16> to vector<7x14x128xf32>
    %53 = vector.shape_cast %51 : vector<128xf32> to vector<1x1x128xf32>
    %54 = vector.broadcast %53 : vector<1x1x128xf32> to vector<7x14x128xf32>
    %55 = arith.mulf %52, %54 : vector<7x14x128xf32>
    %56 = arith.addf %48, %55 : vector<7x14x128xf32>
    %57 = vector.extract_strided_slice %14 {offsets = [1, 2, 0], sizes = [7, 14, 128], strides = [1, 1, 1]} : vector<9x16x128xbf16> to vector<7x14x128xbf16>
    %58 = vector.extract_strided_slice %15 {offsets = [1, 2, 0], sizes = [1, 1, 128], strides = [1, 1, 1]} : vector<3x3x128xf32> to vector<1x1x128xf32>
    %59 = vector.shape_cast %58 : vector<1x1x128xf32> to vector<128xf32>
    %60 = arith.extf %57 : vector<7x14x128xbf16> to vector<7x14x128xf32>
    %61 = vector.shape_cast %59 : vector<128xf32> to vector<1x1x128xf32>
    %62 = vector.broadcast %61 : vector<1x1x128xf32> to vector<7x14x128xf32>
    %63 = arith.mulf %60, %62 : vector<7x14x128xf32>
    %64 = arith.addf %56, %63 : vector<7x14x128xf32>
    %65 = vector.extract_strided_slice %14 {offsets = [2, 0, 0], sizes = [7, 14, 128], strides = [1, 1, 1]} : vector<9x16x128xbf16> to vector<7x14x128xbf16>
    %66 = vector.extract_strided_slice %15 {offsets = [2, 0, 0], sizes = [1, 1, 128], strides = [1, 1, 1]} : vector<3x3x128xf32> to vector<1x1x128xf32>
    %67 = vector.shape_cast %66 : vector<1x1x128xf32> to vector<128xf32>
    %68 = arith.extf %65 : vector<7x14x128xbf16> to vector<7x14x128xf32>
    %69 = vector.shape_cast %67 : vector<128xf32> to vector<1x1x128xf32>
    %70 = vector.broadcast %69 : vector<1x1x128xf32> to vector<7x14x128xf32>
    %71 = arith.mulf %68, %70 : vector<7x14x128xf32>
    %72 = arith.addf %64, %71 : vector<7x14x128xf32>
    %73 = vector.extract_strided_slice %14 {offsets = [2, 1, 0], sizes = [7, 14, 128], strides = [1, 1, 1]} : vector<9x16x128xbf16> to vector<7x14x128xbf16>
    %74 = vector.extract_strided_slice %15 {offsets = [2, 1, 0], sizes = [1, 1, 128], strides = [1, 1, 1]} : vector<3x3x128xf32> to vector<1x1x128xf32>
    %75 = vector.shape_cast %74 : vector<1x1x128xf32> to vector<128xf32>
    %76 = arith.extf %73 : vector<7x14x128xbf16> to vector<7x14x128xf32>
    %77 = vector.shape_cast %75 : vector<128xf32> to vector<1x1x128xf32>
    %78 = vector.broadcast %77 : vector<1x1x128xf32> to vector<7x14x128xf32>
    %79 = arith.mulf %76, %78 : vector<7x14x128xf32>
    %80 = arith.addf %72, %79 : vector<7x14x128xf32>
    %81 = vector.extract_strided_slice %14 {offsets = [2, 2, 0], sizes = [7, 14, 128], strides = [1, 1, 1]} : vector<9x16x128xbf16> to vector<7x14x128xbf16>
    %82 = vector.extract_strided_slice %15 {offsets = [2, 2, 0], sizes = [1, 1, 128], strides = [1, 1, 1]} : vector<3x3x128xf32> to vector<1x1x128xf32>
    %83 = vector.shape_cast %82 : vector<1x1x128xf32> to vector<128xf32>
    %84 = arith.extf %81 : vector<7x14x128xbf16> to vector<7x14x128xf32>
    %85 = vector.shape_cast %83 : vector<128xf32> to vector<1x1x128xf32>
    %86 = vector.broadcast %85 : vector<1x1x128xf32> to vector<7x14x128xf32>
    %87 = arith.mulf %84, %86 : vector<7x14x128xf32>
    %88 = arith.addf %80, %87 : vector<7x14x128xf32>
    %c0_25 = arith.constant 0 : index
    %c0_26 = arith.constant 0 : index
    %c0_27 = arith.constant 0 : index
    %89 = vector.load %arg6[%c0_25, %c0_26, %c0_27] : memref<1x1x128xf32, #tpu.memory_space<vmem>>, vector<1x1x128xf32>
    %90 = vector.broadcast %89 : vector<1x1x128xf32> to vector<7x14x128xf32>
    %91 = arith.addf %88, %90 : vector<7x14x128xf32>
    %92 = arith.truncf %91 : vector<7x14x128xf32> to vector<7x14x128xbf16>
    %c0_28 = arith.constant 0 : index
    %c0_29 = arith.constant 0 : index
    %c0_30 = arith.constant 0 : index
    %c0_31 = arith.constant 0 : index
    %93 = vector.load %arg7[%c0_28, %c0_29, %c0_30, %c0_31] : memref<1x7x14x128xbf16, #tpu.memory_space<vmem>>, vector<1x7x14x128xbf16>
    %94 = vector.shape_cast %93 : vector<1x7x14x128xbf16> to vector<7x14x128xbf16>
    %95 = vector.shape_cast %92 : vector<7x14x128xbf16> to vector<1x7x14x128xbf16>
    tpu.vector_store %arg7[%c0_28, %c0_29, %c0_30, %c0_31], %95 {strides = array<i32>} : memref<1x7x14x128xbf16, #tpu.memory_space<vmem>>, vector<1x7x14x128xbf16>,
    return
  }
  func.func @transform_0(%arg0: i32, %arg1: i32) -> (i32, i32, i32, i32) {
    %c0_i32 = arith.constant 0 : i32
    %c0_i32_0 = arith.constant 0 : i32
    %c0_i32_1 = arith.constant 0 : i32
    return %arg0, %arg1, %c0_i32, %c0_i32_0 : i32, i32, i32, i32
  }
  func.func @transform_1(%arg0: i32, %arg1: i32) -> (i32, i32, i32, i32) {
    %c7_i32 = arith.constant 7 : i32
    %0 = arith.muli %arg1, %c7_i32 : i32
    %c1_i32 = arith.constant 1 : i32
    %1 = arith.subi %0, %c1_i32 : i32
    %c0_i32 = arith.constant 0 : i32
    %2 = arith.maxsi %1, %c0_i32 : i32
    %c0_i32_0 = arith.constant 0 : i32
    %c0_i32_1 = arith.constant 0 : i32
    %c0_i32_2 = arith.constant 0 : i32
    return %arg0, %2, %c0_i32_0, %c0_i32_1 : i32, i32, i32, i32
  }
  func.func @transform_2(%arg0: i32, %arg1: i32) -> (i32, i32, i32, i32) {
    %c1_i32 = arith.constant 1 : i32
    %0 = arith.addi %arg1, %c1_i32 : i32
    %c7_i32 = arith.constant 7 : i32
    %1 = arith.muli %0, %c7_i32 : i32
    %c13_i32 = arith.constant 13 : i32
    %2 = arith.minsi %1, %c13_i32 : i32
    %c0_i32 = arith.constant 0 : i32
    %c0_i32_0 = arith.constant 0 : i32
    %c0_i32_1 = arith.constant 0 : i32
    return %arg0, %2, %c0_i32, %c0_i32_0 : i32, i32, i32, i32
  }
  func.func @transform_3(%arg0: i32, %arg1: i32) -> (i32, i32, i32) {
    %c0_i32 = arith.constant 0 : i32
    %c0_i32_0 = arith.constant 0 : i32
    %c0_i32_1 = arith.constant 0 : i32
    %c0_i32_2 = arith.constant 0 : i32
    return %c0_i32, %c0_i32_0, %c0_i32_1 : i32, i32, i32
  }
  func.func @transform_4(%arg0: i32, %arg1: i32) -> (i32, i32, i32) {
    %c0_i32 = arith.constant 0 : i32
    %c0_i32_0 = arith.constant 0 : i32
    %c0_i32_1 = arith.constant 0 : i32
    %c0_i32_2 = arith.constant 0 : i32
    return %c0_i32, %c0_i32_0, %c0_i32_1 : i32, i32, i32
  }
  func.func @transform_5(%arg0: i32, %arg1: i32) -> (i32, i32, i32, i32) {
    %c0_i32 = arith.constant 0 : i32
    %c0_i32_0 = arith.constant 0 : i32
    %c0_i32_1 = arith.constant 0 : i32
    return %arg0, %arg1, %c0_i32, %c0_i32_0 : i32, i32, i32, i32
  }
}

module attributes {stable_mosaic.version = 11 : i64} {
  func.func @_gelu_fc2_res_kernel(%arg0: i32, %arg1: i32, %arg2: memref<1x128x128xbf16, #tpu.memory_space<vmem>>, %arg3: memref<1x128x32xf32, #tpu.memory_space<vmem>>, %arg4: memref<128x32xbf16, #tpu.memory_space<vmem>>, %arg5: memref<1x32xf32, #tpu.memory_space<vmem>>, %arg6: memref<1x128x32xf32, #tpu.memory_space<vmem>>) attributes {dimension_semantics = [#tpu.dimension_semantics<parallel>, #tpu.dimension_semantics<parallel>], iteration_bounds = array<i64: 2, 2>, scalar_prefetch = 0 : i64, scratch_operands = 0 : i64, tpu.core_type = #tpu.core_type<tc>, window_params = [{transform_indices = @transform_0, window_bounds = array<i64: 1, 128, 128>}, {transform_indices = @transform_1, window_bounds = array<i64: 1, 128, 32>}, {pipeline_mode = #tpu.pipeline_mode<synchronous>, transform_indices = @transform_2, window_bounds = array<i64: 128, 32>}, {pipeline_mode = #tpu.pipeline_mode<synchronous>, transform_indices = @transform_3, window_bounds = array<i64: 1, 32>}, {transform_indices = @transform_4, window_bounds = array<i64: 1, 128, 32>}]} {
    %c0 = arith.constant 0 : index
    %c0_0 = arith.constant 0 : index
    %c0_1 = arith.constant 0 : index
    %0 = vector.load %arg2[%c0, %c0_0, %c0_1] : memref<1x128x128xbf16, #tpu.memory_space<vmem>>, vector<1x128x128xbf16>
    %1 = vector.shape_cast %0 : vector<1x128x128xbf16> to vector<128x128xbf16>
    %2 = arith.extf %1 : vector<128x128xbf16> to vector<128x128xf32>
    %cst = arith.constant 0.707106769 : f32
    %3 = vector.broadcast %cst : f32 to vector<128x128xf32>
    %4 = arith.mulf %2, %3 : vector<128x128xf32>
    %5 = math.absf %4 : vector<128x128xf32>
    %cst_2 = arith.constant 0.327591091 : f32
    %6 = vector.broadcast %cst_2 : f32 to vector<128x128xf32>
    %7 = arith.mulf %6, %5 : vector<128x128xf32>
    %cst_3 = arith.constant 1.000000e+00 : f32
    %8 = vector.broadcast %cst_3 : f32 to vector<128x128xf32>
    %9 = arith.addf %8, %7 : vector<128x128xf32>
    %10 = tpu.reciprocal %9 {approx = true} : vector<128x128xf32> -> vector<128x128xf32>
    %cst_4 = arith.constant 1.06140542 : f32
    %11 = vector.broadcast %cst_4 : f32 to vector<128x128xf32>
    %12 = arith.mulf %10, %11 : vector<128x128xf32>
    %cst_5 = arith.constant -1.45315206 : f32
    %13 = vector.broadcast %cst_5 : f32 to vector<128x128xf32>
    %14 = arith.addf %13, %12 : vector<128x128xf32>
    %15 = arith.mulf %10, %14 : vector<128x128xf32>
    %cst_6 = arith.constant 1.42141378 : f32
    %16 = vector.broadcast %cst_6 : f32 to vector<128x128xf32>
    %17 = arith.addf %16, %15 : vector<128x128xf32>
    %18 = arith.mulf %10, %17 : vector<128x128xf32>
    %cst_7 = arith.constant -0.284496725 : f32
    %19 = vector.broadcast %cst_7 : f32 to vector<128x128xf32>
    %20 = arith.addf %19, %18 : vector<128x128xf32>
    %21 = arith.mulf %10, %20 : vector<128x128xf32>
    %cst_8 = arith.constant 0.254829586 : f32
    %22 = vector.broadcast %cst_8 : f32 to vector<128x128xf32>
    %23 = arith.addf %22, %21 : vector<128x128xf32>
    %24 = arith.mulf %10, %23 : vector<128x128xf32>
    %cst_9 = arith.constant 0.000000e+00 : f32
    %25 = vector.broadcast %cst_9 : f32 to vector<128x128xf32>
    %26 = arith.subf %25, %5 : vector<128x128xf32>
    %27 = arith.mulf %26, %5 : vector<128x128xf32>
    %28 = math.exp %27 : vector<128x128xf32>
    %29 = arith.mulf %24, %28 : vector<128x128xf32>
    %cst_10 = arith.constant 1.000000e+00 : f32
    %30 = vector.broadcast %cst_10 : f32 to vector<128x128xf32>
    %31 = arith.subf %30, %29 : vector<128x128xf32>
    %cst_11 = arith.constant 0.000000e+00 : f32
    %32 = vector.broadcast %cst_11 : f32 to vector<128x128xf32>
    %33 = arith.cmpf oge, %4, %32 : vector<128x128xf32>
    %cst_12 = arith.constant 0.000000e+00 : f32
    %34 = vector.broadcast %cst_12 : f32 to vector<128x128xf32>
    %35 = arith.subf %34, %31 : vector<128x128xf32>
    %36 = arith.select %33, %31, %35 : vector<128x128xi1>, vector<128x128xf32>
    %cst_13 = arith.constant 5.000000e-01 : f32
    %37 = vector.broadcast %cst_13 : f32 to vector<128x128xf32>
    %38 = arith.mulf %37, %2 : vector<128x128xf32>
    %cst_14 = arith.constant 1.000000e+00 : f32
    %39 = vector.broadcast %cst_14 : f32 to vector<128x128xf32>
    %40 = arith.addf %39, %36 : vector<128x128xf32>
    %41 = arith.mulf %38, %40 : vector<128x128xf32>
    %42 = arith.truncf %41 : vector<128x128xf32> to vector<128x128xbf16>
    %c0_15 = arith.constant 0 : index
    %c0_16 = arith.constant 0 : index
    %c0_17 = arith.constant 0 : index
    %43 = vector.load %arg3[%c0_15, %c0_16, %c0_17] : memref<1x128x32xf32, #tpu.memory_space<vmem>>, vector<1x128x32xf32>
    %44 = vector.shape_cast %43 : vector<1x128x32xf32> to vector<128x32xf32>
    %c0_18 = arith.constant 0 : index
    %c0_19 = arith.constant 0 : index
    %45 = vector.load %arg4[%c0_18, %c0_19] : memref<128x32xbf16, #tpu.memory_space<vmem>>, vector<128x32xbf16>
    %cst_20 = arith.constant dense<0.000000e+00> : vector<128x32xf32>
    %46 = tpu.matmul %42, %45, %cst_20 {dimension_numbers = #tpu.dot_dimension_numbers<[1], [0], [0], [1], [0, 0, 1, 1], [], []>} : vector<128x128xbf16>, vector<128x32xbf16>, vector<128x32xf32> -> vector<128x32xf32>
    %47 = arith.addf %44, %46 : vector<128x32xf32>
    %c0_21 = arith.constant 0 : index
    %c0_22 = arith.constant 0 : index
    %48 = vector.load %arg5[%c0_21, %c0_22] : memref<1x32xf32, #tpu.memory_space<vmem>>, vector<1x32xf32>
    %49 = vector.broadcast %48 : vector<1x32xf32> to vector<128x32xf32>
    %50 = arith.addf %47, %49 : vector<128x32xf32>
    %c0_23 = arith.constant 0 : index
    %c0_24 = arith.constant 0 : index
    %c0_25 = arith.constant 0 : index
    %51 = vector.load %arg6[%c0_23, %c0_24, %c0_25] : memref<1x128x32xf32, #tpu.memory_space<vmem>>, vector<1x128x32xf32>
    %52 = vector.shape_cast %51 : vector<1x128x32xf32> to vector<128x32xf32>
    %53 = vector.shape_cast %50 : vector<128x32xf32> to vector<1x128x32xf32>
    tpu.vector_store %arg6[%c0_23, %c0_24, %c0_25], %53 {strides = array<i32>} : memref<1x128x32xf32, #tpu.memory_space<vmem>>, vector<1x128x32xf32>,
    return
  }
  func.func @transform_0(%arg0: i32, %arg1: i32) -> (i32, i32, i32) {
    %c0_i32 = arith.constant 0 : i32
    %c0_i32_0 = arith.constant 0 : i32
    return %arg0, %arg1, %c0_i32 : i32, i32, i32
  }
  func.func @transform_1(%arg0: i32, %arg1: i32) -> (i32, i32, i32) {
    %c0_i32 = arith.constant 0 : i32
    %c0_i32_0 = arith.constant 0 : i32
    return %arg0, %arg1, %c0_i32 : i32, i32, i32
  }
  func.func @transform_2(%arg0: i32, %arg1: i32) -> (i32, i32) {
    %c0_i32 = arith.constant 0 : i32
    %c0_i32_0 = arith.constant 0 : i32
    %c0_i32_1 = arith.constant 0 : i32
    return %c0_i32, %c0_i32_0 : i32, i32
  }
  func.func @transform_3(%arg0: i32, %arg1: i32) -> (i32, i32) {
    %c0_i32 = arith.constant 0 : i32
    %c0_i32_0 = arith.constant 0 : i32
    %c0_i32_1 = arith.constant 0 : i32
    return %c0_i32, %c0_i32_0 : i32, i32
  }
  func.func @transform_4(%arg0: i32, %arg1: i32) -> (i32, i32, i32) {
    %c0_i32 = arith.constant 0 : i32
    %c0_i32_0 = arith.constant 0 : i32
    return %arg0, %arg1, %c0_i32 : i32, i32, i32
  }
}

</mosaic_0001>

<bundles_post_ra>
// kernel: block_forward.7
= control target key start
LH: loop header
LB: loop body
LE: loop exit
PB: predicated region body
PF: predicated region fallthrough
CT: control target
= control target key end

     0   :  { %s1142_s18 = smov 0   ;;  %s1144_s19 = smov 0   ;;  %s1436_s0 = inlined_call_operand.vmem [shape: f32[2,256,32], index: 0, kind: input, shape index: {}]   ;;  %s1437_s1 = inlined_call_operand.vmem [shape: f32[1,32], index: 1, kind: input, shape index: {}]   ;;  %s1438_s2 = inlined_call_operand.vmem [shape: f32[1,32], index: 2, kind: input, shape index: {}]   ;;  %s1439_s3 = inlined_call_operand.vmem [shape: bf16[32,128], index: 3, kind: input, shape index: {}]   ;;  %s1440_s4 = inlined_call_operand.vmem [shape: f32[1,128], index: 4, kind: input, shape index: {}]   ;;  %s1441_s5 = inlined_call_operand.vmem [shape: bf16[2,256,128], index: 5, kind: output, shape index: {}]  }
   0x1   :  { %s1146_s20 = smov 0   ;;  %s1148_s21 = smov 0  }
   0x2   :  { %s1150_s22 = smov 0  }
   0x3 LB: > { %s24_s23 = sadd.s32 1, %s1102_s20  ;;  %s27_s24 = sadd.s32 1, %s1106_s21  ;;  %s1110_s22 = sphi %s1150_s22, %s15_s22   ;;  %s1106_s21 = sphi %s1148_s21, %s1445_s21   ;;  %s1102_s20 = sphi %s1146_s20, %s1444_s20   ;;  %s1098_s19 = sphi %s1144_s19, %s1443_s19   ;;  %s1094_s18 = sphi %s1142_s18, %s1442_s18  }
   0x4   : > { %p25_p0 = scmp.ge.s32.totalorder %s24_s23, 2  ;;  %p863_p1 = scmp.ge.s32.totalorder %s1110_s22, 1 }
   0x5   : > { %p208_p2 = scmp.lt.s32.totalorder %s1110_s22, 5 }
   0x6   : > { %s1447_s23 = smov (%p25_p0, %s24_s23), 0  ;;  %s1449_s24 = smov (!%p25_p0, %s27_s24), %s1106_s21 }
   0x7   : > { %p209_p3 = pnand %p863_p1, %p208_p2  ;;  %p29_p4 = scmp.ge.s32.totalorder %s1449_s24, 2 }
   0x8   : > { %s864_s25 = sshll.u32 (!%p209_p3), %s1094_s18, 4  ;;  %p245_p5 = scmp.lt.s32.totalorder (!%p209_p3), %s1098_s19, 1  ;;  %vm283_vm0 = vcmask (!%p209_p3), 261120  }
   0x9   : > { %s1451_s24 = smov (%p29_p4, %s1449_s24), 0  ;;  %212 = sbr.rel (%p209_p3) target bundleno = 589 (0x24d), region = 40 }
   0xa   : > { %p247_p6 = scmp.lt.s32.totalorder (!%p209_p3), %s864_s25, 31 }
  0x10   : > { %s1453_s19 = smov (!%p245_p5, %s1098_s19), 1  ;;  %s1455_s25 = smov (!%p247_p6, %s864_s25), 31 }
  0x11   : > { %s865_s26 = sshll.u32 %s1453_s19, 5 }
  0x12   : > { %s1172_s27 = sadd.s32 %s865_s26, %s1455_s25 }
  0x13   : > { %s866_s28 = sshll.u32 %s1172_s27, 3  ;;  %s869_s17 = sshll.u32 %s1172_s27, 2 }
  0x14   : > { %s1178_s6 = scalar_lea.vmem %s1436_s0, %s866_s28  ;;  %s1411_s25 = scalar_lea.vmem %s1441_s5, %s869_s17 }
  0x15   : > { %v265_v0 = vld [vmem:[%s1178_s6] sm:$0xff]  ;;  %v266_v2 = vld [vmem:[%s1178_s6 + $0x8] sm:$0xff]  ;;  %v267_v8 = vld [vmem:[%s1178_s6 + $0x10] sm:$0xff] }
  0x16   : > { %v273_v1 = vld [vmem:[%s1178_s6 + $0x40] sm:$0xff]  ;;  %v284_v3 = vsel %vm283_vm0, %v265_v0, 0.0  ;;  %v274_v5 = vld [vmem:[%s1178_s6 + $0x48] sm:$0xff]  ;;  %v287_v6 = vsel %vm283_vm0, %v266_v2, 0.0  ;;  %v268_v9 = vld [vmem:[%s1178_s6 + $0x18] sm:$0xff]  ;;  %v290_v10 = vsel %vm283_vm0, %v267_v8, 0.0 }
  0x17   : > { %v308_v4 = vsel %vm283_vm0, %v273_v1, 0.0  ;;  %285 = vadd.xlane.f32.xlu0 %v284_v3  ;;  %v311_v7 = vsel %vm283_vm0, %v274_v5, 0.0  ;;  %v293_v11 = vsel %vm283_vm0, %v268_v9, 0.0  ;;  %v1193_v12 = vld [vmem:[%s1178_s6 + $0x50] sm:$0xff]  ;;  %v1196_v13 = vld [vmem:[%s1178_s6 + $0x58] sm:$0xff]  ;;  %v1203_v16 = vld [vmem:[%s1178_s6 + $0x20] sm:$0xff] }
  0x18   : > { %309 = vadd.xlane.f32.xlu1 %v308_v4  ;;  %v314_v14 = vsel %vm283_vm0, %v1193_v12, 0.0  ;;  %v317_v15 = vsel %vm283_vm0, %v1196_v13, 0.0  ;;  %v1206_v17 = vld [vmem:[%s1178_s6 + $0x28] sm:$0xff]  ;;  %v296_v18 = vsel %vm283_vm0, %v1203_v16, 0.0  ;;  %v1213_v20 = vld [vmem:[%s1178_s6 + $0x60] sm:$0xff]  ;;  %v1223_v24 = vld [vmem:[%s1178_s6 + $0x30] sm:$0xff] }
  0x19   : > { %v299_v19 = vsel %vm283_vm0, %v1206_v17, 0.0  ;;  %v1216_v21 = vld [vmem:[%s1178_s6 + $0x68] sm:$0xff]  ;;  %v320_v22 = vsel %vm283_vm0, %v1213_v20, 0.0  ;;  %v1226_v25 = vld [vmem:[%s1178_s6 + $0x38] sm:$0xff]  ;;  %v302_v26 = vsel %vm283_vm0, %v1223_v24, 0.0  ;;  %v1233_v28 = vld [vmem:[%s1178_s6 + $0x70] sm:$0xff] }
  0x1a   : > { %v323_v23 = vsel %vm283_vm0, %v1216_v21, 0.0  ;;  %v305_v27 = vsel %vm283_vm0, %v1226_v25, 0.0  ;;  %v1236_v29 = vld [vmem:[%s1178_s6 + $0x78] sm:$0xff]  ;;  %v326_v30 = vsel %vm283_vm0, %v1233_v28, 0.0 }
  0x1b   : > { %288 = vadd.xlane.f32.xlu0 %v287_v6  ;;  %v329_v31 = vsel %vm283_vm0, %v1236_v29, 0.0 }
  0x1c   : > { %312 = vadd.xlane.f32.xlu1 %v311_v7 }
  0x1f   : > { %291 = vadd.xlane.f32.xlu0 %v290_v10 }
  0x20   : > { %294 = vadd.xlane.f32.xlu1 %v293_v11 }
  0x23   : > { %315 = vadd.xlane.f32.xlu0 %v314_v14 }
  0x24   : > { %318 = vadd.xlane.f32.xlu1 %v317_v15 }
  0x27   : > { %297 = vadd.xlane.f32.xlu0 %v296_v18 }
  0x28   : > { %300 = vadd.xlane.f32.xlu1 %v299_v19 }
  0x2b   : > { %321 = vadd.xlane.f32.xlu0 %v320_v22 }
  0x2c   : > { %324 = vadd.xlane.f32.xlu1 %v323_v23 }
  0x2f   : > { %303 = vadd.xlane.f32.xlu0 %v302_v26 }
  0x30   : > { %306 = vadd.xlane.f32.xlu1 %v305_v27 }
  0x33   : > { %327 = vadd.xlane.f32.xlu0 %v326_v30 }
  0x34   : > { %330 = vadd.xlane.f32.xlu1 %v329_v31 }
  0xa4   : > { %v286_v32 = vpop.xlane.xlu0 %285 }
  0xa5   : > { %v310_v33 = vpop.xlane.xlu1 %309  ;;  %v333_v34 = vmul.f32 0.03125, %v286_v32 }
  0xa6   : > { %v341_v35 = vmul.f32 0.03125, %v310_v33 }
  0xa7   : > { %v1242_v36 = vsub.f32 %v265_v0, %v333_v34 }
  0xa8   : > { %v1244_v37 = vsub.f32 %v273_v1, %v341_v35  ;;  %v289_v38 = vpop.xlane.xlu0 %288 }
  0xa9   : > { %v313_v39 = vpop.xlane.xlu1 %312  ;;  %v334_v40 = vmul.f32 0.03125, %v289_v38  ;;  %v365_v42 = vmul.f32 %v1242_v36, %v1242_v36 }
  0xaa   : > { %v342_v41 = vmul.f32 0.03125, %v313_v39  ;;  %v373_v43 = vmul.f32 %v1244_v37, %v1244_v37 }
  0xab   : > { %v1250_v44 = vsub.f32 %v266_v2, %v334_v40  ;;  %v381_v46 = vsel %vm283_vm0, %v365_v42, 0.0 }
  0xac   : > { %v1252_v45 = vsub.f32 %v274_v5, %v342_v41  ;;  %382 = vadd.xlane.f32.xlu0 %v381_v46  ;;  %v292_v47 = vpop.xlane.xlu0 %291  ;;  %v405_v49 = vsel %vm283_vm0, %v373_v43, 0.0 }
  0xad   : > { %v295_v48 = vpop.xlane.xlu1 %294  ;;  %v335_v50 = vmul.f32 0.03125, %v292_v47  ;;  %v366_v52 = vmul.f32 %v1250_v44, %v1250_v44 }
  0xae   : > { %v336_v51 = vmul.f32 0.03125, %v295_v48  ;;  %v374_v53 = vmul.f32 %v1252_v45, %v1252_v45 }
  0xaf   : > { %v1260_v54 = vsub.f32 %v267_v8, %v335_v50  ;;  %v384_v56 = vsel %vm283_vm0, %v366_v52, 0.0 }
  0xb0   : > { %v1262_v55 = vsub.f32 %v268_v9, %v336_v51  ;;  %406 = vadd.xlane.f32.xlu0 %v405_v49  ;;  %385 = vadd.xlane.f32.xlu1 %v384_v56  ;;  %v316_v57 = vpop.xlane.xlu0 %315  ;;  %v408_v59 = vsel %vm283_vm0, %v374_v53, 0.0  ;;  %v1039_v53 = vld [vmem:[%s1439_s3 + $0x8] sm:$0xff]  }
  0xb1   : > { %v319_v58 = vpop.xlane.xlu1 %318  ;;  %v343_v60 = vmul.f32 0.03125, %v316_v57  ;;  %v367_v62 = vmul.f32 %v1260_v54, %v1260_v54 }
  0xb2   : > { %v344_v61 = vmul.f32 0.03125, %v319_v58  ;;  %v368_v63 = vmul.f32 %v1262_v55, %v1262_v55 }
  0xb3   : > { %v1271_v0 = vsub.f32 %v1193_v12, %v343_v60  ;;  %v387_v2 = vsel %vm283_vm0, %v367_v62, 0.0 }
  0xb4   : > { %v1274_v1 = vsub.f32 %v1196_v13, %v344_v61  ;;  %409 = vadd.xlane.f32.xlu1 %v408_v59  ;;  %388 = vadd.xlane.f32.xlu0 %v387_v2  ;;  %v298_v3 = vpop.xlane.xlu0 %297  ;;  %v390_v5 = vsel %vm283_vm0, %v368_v63, 0.0 }
  0xb5   : > { %v301_v4 = vpop.xlane.xlu1 %300  ;;  %v337_v6 = vmul.f32 0.03125, %v298_v3  ;;  %v375_v8 = vmul.f32 %v1271_v0, %v1271_v0 }
  0xb6   : > { %v338_v7 = vmul.f32 0.03125, %v301_v4  ;;  %v376_v9 = vmul.f32 %v1274_v1, %v1274_v1 }
  0xb7   : > { %v1283_v10 = vsub.f32 %v1203_v16, %v337_v6  ;;  %v411_v12 = vsel %vm283_vm0, %v375_v8, 0.0 }
  0xb8   : > { %v1286_v11 = vsub.f32 %v1206_v17, %v338_v7  ;;  %391 = vadd.xlane.f32.xlu1 %v390_v5  ;;  %412 = vadd.xlane.f32.xlu0 %v411_v12  ;;  %v322_v13 = vpop.xlane.xlu0 %321  ;;  %v414_v15 = vsel %vm283_vm0, %v376_v9, 0.0 }
  0xb9   : > { %v325_v14 = vpop.xlane.xlu1 %324  ;;  %v345_v18 = vmul.f32 0.03125, %v322_v13  ;;  %v369_v22 = vmul.f32 %v1283_v10, %v1283_v10 }
  0xba   : > { %v346_v19 = vmul.f32 0.03125, %v325_v14  ;;  %v370_v16 = vmul.f32 %v1286_v11, %v1286_v11 }
  0xbb   : > { %v1295_v23 = vsub.f32 %v1213_v20, %v345_v18  ;;  %v393_v26 = vsel %vm283_vm0, %v369_v22, 0.0 }
  0xbc   : > { %v1298_v17 = vsub.f32 %v1216_v21, %v346_v19  ;;  %415 = vadd.xlane.f32.xlu1 %v414_v15  ;;  %394 = vadd.xlane.f32.xlu0 %v393_v26  ;;  %v304_v27 = vpop.xlane.xlu0 %303  ;;  %v396_v31 = vsel %vm283_vm0, %v370_v16, 0.0 }
  0xbd   : > { %v307_v30 = vpop.xlane.xlu1 %306  ;;  %v339_v32 = vmul.f32 0.03125, %v304_v27  ;;  %v377_v34 = vmul.f32 %v1295_v23, %v1295_v23 }
  0xbe   : > { %v340_v33 = vmul.f32 0.03125, %v307_v30  ;;  %v378_v20 = vmul.f32 %v1298_v17, %v1298_v17 }
  0xbf   : > { %v1307_v35 = vsub.f32 %v1223_v24, %v339_v32  ;;  %v417_v38 = vsel %vm283_vm0, %v377_v34, 0.0 }
  0xc0   : > { %v1310_v21 = vsub.f32 %v1226_v25, %v340_v33  ;;  %397 = vadd.xlane.f32.xlu1 %v396_v31  ;;  %418 = vadd.xlane.f32.xlu0 %v417_v38  ;;  %v328_v39 = vpop.xlane.xlu0 %327  ;;  %v420_v41 = vsel %vm283_vm0, %v378_v20, 0.0  ;;  %v1342_v31 = vld [vmem:[%s1437_s1] ss:$0 sm:$0xff] }
  0xc1   : > { %v331_v40 = vpop.xlane.xlu1 %330  ;;  %v347_v42 = vmul.f32 0.03125, %v328_v39  ;;  %v371_v46 = vmul.f32 %v1307_v35, %v1307_v35 }
  0xc2   : > { %v348_v43 = vmul.f32 0.03125, %v331_v40  ;;  %v372_v24 = vmul.f32 %v1310_v21, %v1310_v21 }
  0xc3   : > { %v1319_v47 = vsub.f32 %v1233_v28, %v347_v42  ;;  %v399_v48 = vsel %vm283_vm0, %v371_v46, 0.0 }
  0xc4   : > { %v1322_v25 = vsub.f32 %v1236_v29, %v348_v43  ;;  %421 = vadd.xlane.f32.xlu1 %v420_v41  ;;  %400 = vadd.xlane.f32.xlu0 %v399_v48  ;;  %v402_v49 = vsel %vm283_vm0, %v372_v24, 0.0  ;;  %v1038_v29 = vld [vmem:[%s1439_s3] sm:$0xff]  }
  0xc5   : > { %v379_v50 = vmul.f32 %v1319_v47, %v1319_v47  ;;  %974 = vmatprep.subr.bf16.mxu0 %v1038_v29  ;;  %994 = vmatprep.subr.bf16.mxu1 %v1038_v29  ;;  %v1349_v43 = vld [vmem:[%s1438_s2] ss:$0 sm:$0xff] }
  0xc6   : > { %v380_v51 = vmul.f32 %v1322_v25, %v1322_v25  ;;  %975 = vmatpush3.bf16.msra.mxu0 %v1038_v29  ;;  %996 = vmatpush3.bf16.msra.mxu1 %v1038_v29 }
  0xc7   : > { %v423_v52 = vsel %vm283_vm0, %v379_v50, 0.0  ;;  %976 = vmatprep.subr.bf16.mxu0 %v1039_v53  ;;  %995 = vmatprep.subr.bf16.mxu1 %v1039_v53 }
  0xc8   : > { %403 = vadd.xlane.f32.xlu1 %v402_v49  ;;  %424 = vadd.xlane.f32.xlu0 %v423_v52  ;;  %v426_v28 = vsel %vm283_vm0, %v380_v51, 0.0 }
  0xca   : > { %977 = vmatpush3.bf16.msra.mxu0 %v1039_v53  ;;  %997 = vmatpush3.bf16.msra.mxu1 %v1039_v53 }
  0xcc   : > { %427 = vadd.xlane.f32.xlu1 %v426_v28 }
 0x139   : > { %v383_v56 = vpop.xlane.xlu0 %382 }
 0x13a   : > { %v429_v57 = vmul.f32 0.03125, %v383_v56 }
 0x13c   : > { %v445_v58 = vadd.f32 1e-05, %v429_v57 }
 0x13d   : > { %v386_v59 = vpop.xlane.xlu1 %385  ;;  %v407_v60 = vpop.xlane.xlu0 %406 }
 0x13e   : > { %1040 = vrsqrt.f32 %v445_v58  ;;  %v430_v61 = vmul.f32 0.03125, %v386_v59  ;;  %v437_v62 = vmul.f32 0.03125, %v407_v60 }
 0x140   : > { %v446_v63 = vadd.f32 1e-05, %v430_v61  ;;  %v453_v2 = vadd.f32 1e-05, %v437_v62 }
 0x141   : > { %v410_v3 = vpop.xlane.xlu1 %409  ;;  %v389_v4 = vpop.xlane.xlu0 %388 }
 0x142   : > { %1042 = vrsqrt.f32 %v446_v63  ;;  %v438_v5 = vmul.f32 0.03125, %v410_v3  ;;  %v431_v6 = vmul.f32 0.03125, %v389_v4 }
 0x143   : > { %1044 = vrsqrt.f32 %v453_v2 }
 0x144   : > { %v454_v7 = vadd.f32 1e-05, %v438_v5  ;;  %v447_v8 = vadd.f32 1e-05, %v431_v6 }
 0x145   : > { %v392_v9 = vpop.xlane.xlu1 %391  ;;  %v413_v12 = vpop.xlane.xlu0 %412 }
 0x146   : > { %1046 = vrsqrt.f32 %v454_v7  ;;  %v432_v13 = vmul.f32 0.03125, %v392_v9  ;;  %v439_v14 = vmul.f32 0.03125, %v413_v12 }
 0x147   : > { %1048 = vrsqrt.f32 %v447_v8 }
 0x148   : > { %v1041_v15 = vpop.eup %1040  ;;  %v448_v18 = vadd.f32 1e-05, %v432_v13  ;;  %v455_v19 = vadd.f32 1e-05, %v439_v14 }
 0x149   : > { %v416_v22 = vpop.xlane.xlu1 %415  ;;  %v395_v16 = vpop.xlane.xlu0 %394  ;;  %v477_v26 = vmul.f32 %v1041_v15, %v1242_v36 }
 0x14a   : > { %1050 = vrsqrt.f32 %v448_v18  ;;  %v440_v27 = vmul.f32 0.03125, %v416_v22  ;;  %v433_v30 = vmul.f32 0.03125, %v395_v16 }
 0x14b   : > { %1052 = vrsqrt.f32 %v455_v19  ;;  %v499_v41 = vmul.f32 %v1342_v31, %v477_v26 }
 0x14c   : > { %v1043_v32 = vpop.eup %1042  ;;  %v456_v33 = vadd.f32 1e-05, %v440_v27  ;;  %v449_v34 = vadd.f32 1e-05, %v433_v30 }
 0x14d   : > { %v1045_v20 = vpop.eup %1044  ;;  %v398_v38 = vpop.xlane.xlu1 %397  ;;  %v478_v40 = vmul.f32 %v1043_v32, %v1250_v44  ;;  %v521_v28 = vadd.f32 %v1349_v43, %v499_v41 }
 0x14e   : > { %v419_v39 = vpop.xlane.xlu0 %418  ;;  %1054 = vrsqrt.f32 %v456_v33  ;;  %v434_v36 = vmul.f32 0.03125, %v398_v38  ;;  %v485_v46 = vmul.f32 %v1045_v20, %v1244_v37 }
 0x14f   : > { %v441_v42 = vmul.f32 0.03125, %v419_v39  ;;  %1056 = vrsqrt.f32 %v449_v34  ;;  %v500_v24 = vmul.f32 %v1342_v31, %v478_v40 }
 0x150   : > { %v1047_v48 = vpop.eup %1046  ;;  %v450_v49 = vadd.f32 1e-05, %v434_v36  ;;  %v507_v56 = vmul.f32 %v1342_v31, %v485_v46 }
 0x151   : > { %v457_v50 = vadd.f32 1e-05, %v441_v42  ;;  %v1049_v51 = vpop.eup %1048  ;;  %v422_v44 = vpop.xlane.xlu1 %421  ;;  %v522_v29 = vadd.f32 %v1349_v43, %v500_v24  ;;  %v486_v53 = vmul.f32 %v1047_v48, %v1252_v45 }
 0x152   : > { %v401_v52 = vpop.xlane.xlu0 %400  ;;  %v479_v57 = vmul.f32 %v1049_v51, %v1260_v54  ;;  %1058 = vrsqrt.f32 %v450_v49  ;;  %v442_v37 = vmul.f32 0.03125, %v422_v44  ;;  %v529_v5 = vadd.f32 %v1349_v43, %v507_v56 }
 0x153   : > { %v435_v58 = vmul.f32 0.03125, %v401_v52  ;;  %1060 = vrsqrt.f32 %v457_v50  ;;  %v537_v59 = vpack.c.bf16 %v522_v29, %v521_v28  ;;  %v508_v60 = vmul.f32 %v1342_v31, %v486_v53 }
 0x154   : > { %v1051_v61 = vpop.eup %1050  ;;  %v458_v62 = vadd.f32 1e-05, %v442_v37  ;;  %v501_v6 = vmul.f32 %v1342_v31, %v479_v57 }
 0x155   : > { %v451_v63 = vadd.f32 1e-05, %v435_v58  ;;  %v1053_v2 = vpop.eup %1052  ;;  %v480_v3 = vmul.f32 %v1051_v61, %v1262_v55  ;;  %v404_v4 = vpop.xlane.xlu1 %403  ;;  %978 = vmatprep.mubr.msk.bf16.mxu0 %vm283_vm0, %v537_v59  ;;  %v530_v54 = vadd.f32 %v1349_v43, %v508_v60 }
 0x156   : > { %v425_v45 = vpop.xlane.xlu0 %424  ;;  %v487_v7 = vmul.f32 %v1053_v2, %v1271_v0  ;;  %1062 = vrsqrt.f32 %v458_v62  ;;  %v436_v8 = vmul.f32 0.03125, %v404_v4  ;;  %v523_v16 = vadd.f32 %v1349_v43, %v501_v6  ;;  %v872_v4 = vld [vmem:[%s1440_s4] ss:$0 sm:$0xff] }
 0x157   : > { %v443_v9 = vmul.f32 0.03125, %v425_v45  ;;  %1064 = vrsqrt.f32 %v451_v63  ;;  %v541_v12 = vpack.c.bf16 %v530_v54, %v529_v5  ;;  %v502_v13 = vmul.f32 %v1342_v31, %v480_v3 }
 0x158   : > { %v1055_v55 = vpop.eup %1054  ;;  %v452_v14 = vadd.f32 1e-05, %v436_v8  ;;  %v509_v26 = vmul.f32 %v1342_v31, %v487_v7 }
 0x159   : > { %v459_v15 = vadd.f32 1e-05, %v443_v9  ;;  %v1057_v18 = vpop.eup %1056  ;;  %v488_v19 = vmul.f32 %v1055_v55, %v1274_v1  ;;  %v428_v22 = vpop.xlane.xlu1 %427  ;;  %986 = vmatprep.mubr.msk.bf16.mxu1 %vm283_vm0, %v541_v12  ;;  %v524_v0 = vadd.f32 %v1349_v43, %v502_v13 }
 0x15a   : > { %v481_v27 = vmul.f32 %v1057_v18, %v1283_v10  ;;  %1066 = vrsqrt.f32 %v452_v14  ;;  %v444_v30 = vmul.f32 0.03125, %v428_v22  ;;  %v531_v39 = vadd.f32 %v1349_v43, %v509_v26 }
 0x15b   : > { %1068 = vrsqrt.f32 %v459_v15  ;;  %v538_v32 = vpack.c.bf16 %v524_v0, %v523_v16  ;;  %v510_v33 = vmul.f32 %v1342_v31, %v488_v19 }
 0x15c   : > { %v1059_v34 = vpop.eup %1058  ;;  %v460_v20 = vadd.f32 1e-05, %v444_v30  ;;  %v503_v41 = vmul.f32 %v1342_v31, %v481_v27 }
 0x15d   : > { %v1061_v1 = vpop.eup %1060  ;;  %v482_v38 = vmul.f32 %v1059_v34, %v1286_v11  ;;  %979 = vmatmul.mubr.msk.bf16.vlgmr.msra.gmra.mrb[0].mxu0 %vm283_vm0, %v538_v32  ;;  %v532_v40 = vadd.f32 %v1349_v43, %v510_v33 }
 0x15e   : > { %v489_v10 = vmul.f32 %v1061_v1, %v1295_v23  ;;  %1070 = vrsqrt.f32 %v460_v20  ;;  %v525_v11 = vadd.f32 %v1349_v43, %v503_v41 }
 0x15f   : > { %v542_v36 = vpack.c.bf16 %v532_v40, %v531_v39  ;;  %v504_v42 = vmul.f32 %v1342_v31, %v482_v38 }
 0x160   : > { %v1063_v46 = vpop.eup %1062  ;;  %v511_v50 = vmul.f32 %v1342_v31, %v489_v10 }
 0x161   : > { %v1065_v24 = vpop.eup %1064  ;;  %v490_v48 = vmul.f32 %v1063_v46, %v1298_v17  ;;  %987 = vmatmul.mubr.msk.bf16.vlgmr.msra.gmra.mrb[0].mxu1 %vm283_vm0, %v542_v36  ;;  %v526_v49 = vadd.f32 %v1349_v43, %v504_v42 }
 0x162   : > { %v483_v51 = vmul.f32 %v1065_v24, %v1307_v35  ;;  %v533_v17 = vadd.f32 %v1349_v43, %v511_v50 }
 0x163   : > { %v539_v44 = vpack.c.bf16 %v526_v49, %v525_v11  ;;  %v512_v23 = vmul.f32 %v1342_v31, %v490_v48 }
 0x164   : > { %v1067_v52 = vpop.eup %1066  ;;  %v505_v56 = vmul.f32 %v1342_v31, %v483_v51 }
 0x165   : > { %v1069_v28 = vpop.eup %1068  ;;  %v484_v29 = vmul.f32 %v1067_v52, %v1310_v21  ;;  %982 = vmatprep.mubr.msk.bf16.mxu0 %vm283_vm0, %v539_v44  ;;  %v534_v53 = vadd.f32 %v1349_v43, %v512_v23 }
 0x166   : > { %v491_v57 = vmul.f32 %v1069_v28, %v1319_v47  ;;  %v527_v21 = vadd.f32 %v1349_v43, %v505_v56 }
 0x167   : > { %v543_v37 = vpack.c.bf16 %v534_v53, %v533_v17  ;;  %v506_v35 = vmul.f32 %v1342_v31, %v484_v29 }
 0x168   : > { %v1071_v58 = vpop.eup %1070  ;;  %v513_v61 = vmul.f32 %v1342_v31, %v491_v57 }
 0x169   : > { %v492_v59 = vmul.f32 %v1071_v58, %v1322_v25  ;;  %990 = vmatprep.mubr.msk.bf16.mxu1 %vm283_vm0, %v543_v37  ;;  %v528_v60 = vadd.f32 %v1349_v43, %v506_v35 }
 0x16a   : > { %v535_v47 = vadd.f32 %v1349_v43, %v513_v61 }
 0x16b   : > { %v540_v62 = vpack.c.bf16 %v528_v60, %v527_v21  ;;  %v514_v63 = vmul.f32 %v1342_v31, %v492_v59 }
 0x16d   : > { %983 = vmatmul.mubr.msk.bf16.gmra.mrb[4].mxu0 %vm283_vm0, %v540_v62  ;;  %v536_v2 = vadd.f32 %v1349_v43, %v514_v63 }
 0x16f   : > { %v544_v3 = vpack.c.bf16 %v536_v2, %v535_v47 }
 0x171   : > { %991 = vmatmul.mubr.msk.bf16.gmra.mrb[4].mxu1 %vm283_vm0, %v544_v3 }
 0x230   : > { %v980_v25 = vpop.f32.mrb[0].mxu0 }
 0x231   : > { %v626_v45 = vpop.f32.mrb[1].mxu0  ;;  %v635_v54 = vadd.f32 %v980_v25, %v872_v4 }
 0x232   : > { %v981_v5 = vpop.f32.mrb[2].mxu0  ;;  %v627_v7 = vadd.f32 %v872_v4, %v626_v45 }
 0x233   : > { %v638_v6 = vadd.f32 %v981_v5, %v872_v4  ;;  %v629_v31 = vpop.f32.mrb[3].mxu0 }
 0x234   : > { %v630_v43 = vadd.f32 %v872_v4, %v629_v31  ;;  %v988_v8 = vpop.f32.mrb[0].mxu1 }
 0x235   : > { %v925_v9 = vpack.c.bf16 %v638_v6, %v635_v54  ;;  %v658_v12 = vpop.f32.mrb[1].mxu1  ;;  %v667_v14 = vadd.f32 %v988_v8, %v872_v4 }
 0x236   : > { %v920_v13 = vpack.c.bf16 %v630_v43, %v627_v7  ;;  %v989_v55 = vpop.f32.mrb[2].mxu1  ;;  %v659_v19 = vadd.f32 %v872_v4, %v658_v12 }
 0x237   : > { %957 = vst [vmem:[%s1411_s25 + $0x8] sm:$0xff] %v925_v9   ;;  %v670_v15 = vadd.f32 %v989_v55, %v872_v4  ;;  %v661_v18 = vpop.f32.mrb[3].mxu1 }
 0x238   : > { %921 = vst [vmem:[%s1411_s25] sm:$0xff] %v920_v13   ;;  %v662_v22 = vadd.f32 %v872_v4, %v661_v18 }
 0x239   : > { %v945_v16 = vpack.c.bf16 %v670_v15, %v667_v14 }
 0x23a   : > { %v940_v0 = vpack.c.bf16 %v662_v22, %v659_v19 }
 0x23b   : > { %961 = vst [vmem:[%s1411_s25 + $0x28] sm:$0xff] %v945_v16  }
 0x23c   : > { %960 = vst [vmem:[%s1411_s25 + $0x20] sm:$0xff] %v940_v0  }
 0x240   : > { %v984_v26 = vpop.f32.mrb[4].mxu0 }
 0x241   : > { %v642_v27 = vpop.f32.mrb[5].mxu0  ;;  %v651_v32 = vadd.f32 %v984_v26, %v872_v4 }
 0x242   : > { %v985_v30 = vpop.f32.mrb[6].mxu0  ;;  %v643_v20 = vadd.f32 %v872_v4, %v642_v27 }
 0x243   : > { %v654_v33 = vadd.f32 %v985_v30, %v872_v4  ;;  %v645_v34 = vpop.f32.mrb[7].mxu0 }
 0x244   : > { %v646_v1 = vadd.f32 %v872_v4, %v645_v34  ;;  %v992_v38 = vpop.f32.mrb[4].mxu1 }
 0x245   : > { %v935_v39 = vpack.c.bf16 %v654_v33, %v651_v32  ;;  %v674_v40 = vpop.f32.mrb[5].mxu1  ;;  %v683_v36 = vadd.f32 %v992_v38, %v872_v4 }
 0x246   : > { %v930_v41 = vpack.c.bf16 %v646_v1, %v643_v20  ;;  %v993_v10 = vpop.f32.mrb[6].mxu1  ;;  %v675_v24 = vadd.f32 %v872_v4, %v674_v40 }
 0x247   : > { %959 = vst [vmem:[%s1411_s25 + $0x18] sm:$0xff] %v935_v39   ;;  %v686_v42 = vadd.f32 %v993_v10, %v872_v4  ;;  %v677_v46 = vpop.f32.mrb[7].mxu1 }
 0x248   : > { %958 = vst [vmem:[%s1411_s25 + $0x10] sm:$0xff] %v930_v41   ;;  %v678_v48 = vadd.f32 %v872_v4, %v677_v46 }
 0x249   : > { %v955_v11 = vpack.c.bf16 %v686_v42, %v683_v36 }
 0x24a   : > { %v950_v49 = vpack.c.bf16 %v678_v48, %v675_v24 }
 0x24b   : > { %963 = vst [vmem:[%s1411_s25 + $0x38] sm:$0xff] %v955_v11  }
 0x24c   : > { %962 = vst [vmem:[%s1411_s25 + $0x30] sm:$0xff] %v950_v49  }
 0x24d PF: > { %s15_s22 = sadd.s32 1, %s1110_s22   ;;  %s1442_s18 = smov %s1102_s20 }
 0x24e   : > { %p12_p7 = scmp.ge.s32.totalorder %s15_s22, 6   ;;  %s1443_s19 = smov %s1106_s21 }
 0x24f   : > { %s1444_s20 = smov %s1447_s23  ;;  %s1445_s21 = smov %s1451_s24 }
 0x250   :  { %14 = sbr.rel (!%p12_p7) target bundleno = 3 (0x3), region = 70 }

// kernel: block_forward.5
= control target key start
LH: loop header
LB: loop body
LE: loop exit
PB: predicated region body
PF: predicated region fallthrough
CT: control target
= control target key end

     0   :  { %s1405_s21 = smov 0   ;;  %s1407_s22 = smov 0   ;;  %s1831_s0 = inlined_call_operand.vmem [shape: f32[2,256,32], index: 0, kind: input, shape index: {}]   ;;  %s1832_s1 = inlined_call_operand.vmem [shape: f32[1,32], index: 1, kind: input, shape index: {}]   ;;  %s1833_s2 = inlined_call_operand.vmem [shape: f32[1,32], index: 2, kind: input, shape index: {}]   ;;  %s1834_s3 = inlined_call_operand.vmem [shape: bf16[32,96], index: 3, kind: input, shape index: {}]   ;;  %s1835_s4 = inlined_call_operand.vmem [shape: bf16[2,256,32], index: 4, kind: output, shape index: {0}]   ;;  %s1836_s5 = inlined_call_operand.vmem [shape: bf16[2,256,32], index: 5, kind: output, shape index: {1}]   ;;  %s1837_s6 = inlined_call_operand.vmem [shape: bf16[2,256,32], index: 6, kind: output, shape index: {2}]  }
   0x1   :  { %s1409_s23 = smov 0   ;;  %s1411_s24 = smov 0  }
   0x2   :  { %s1413_s25 = smov 0  }
   0x3 LB: > { %s26_s26 = sadd.s32 1, %s1358_s23  ;;  %s29_s27 = sadd.s32 1, %s1362_s24  ;;  %s1366_s25 = sphi %s1413_s25, %s17_s25   ;;  %s1362_s24 = sphi %s1411_s24, %s1841_s24   ;;  %s1358_s23 = sphi %s1409_s23, %s1840_s23   ;;  %s1354_s22 = sphi %s1407_s22, %s1839_s22   ;;  %s1350_s21 = sphi %s1405_s21, %s1838_s21  }
   0x4   : > { %p27_p0 = scmp.ge.s32.totalorder %s26_s26, 2  ;;  %p1159_p1 = scmp.ge.s32.totalorder %s1366_s25, 1 }
   0x5   : > { %p242_p2 = scmp.lt.s32.totalorder %s1366_s25, 5 }
   0x6   : > { %s1843_s26 = smov (%p27_p0, %s26_s26), 0  ;;  %s1845_s27 = smov (!%p27_p0, %s29_s27), %s1362_s24 }
   0x7   : > { %p243_p3 = pnand %p1159_p1, %p242_p2  ;;  %p31_p4 = scmp.ge.s32.totalorder %s1845_s27, 2 }
   0x8   : > { %s1160_s28 = sshll.u32 (!%p243_p3), %s1350_s21, 4  ;;  %p299_p5 = scmp.lt.s32.totalorder (!%p243_p3), %s1354_s22, 1  ;;  %vm357_vm0 = vcmask (!%p243_p3), 261120   ;;  %vm820_vm1 = vcmask (!%p243_p3), 257024  }
   0x9   : > { %s1847_s27 = smov (%p31_p4, %s1845_s27), 0  ;;  %246 = sbr.rel (%p243_p3) target bundleno = 743 (0x2e7), region = 36 }
   0xa   : > { %p301_p6 = scmp.lt.s32.totalorder (!%p243_p3), %s1160_s28, 31 }
  0x10   : > { %s1849_s22 = smov (!%p299_p5, %s1354_s22), 1  ;;  %s1851_s28 = smov (!%p301_p6, %s1160_s28), 31 }
  0x11   : > { %s1161_s29 = sshll.u32 %s1849_s22, 5 }
  0x12   : > { %s1435_s30 = sadd.s32 %s1161_s29, %s1851_s28  ;;  %s1368_s28 = smov 96  }
  0x13   : > { %s1162_s7 = sshll.u32 %s1435_s30, 3  ;;  %s1668_s19 = sshll.u32 %s1435_s30, 2 }
  0x14   : > { %s1441_s10 = scalar_lea.vmem %s1831_s0, %s1162_s7  ;;  %s1674_s22 = scalar_lea.vmem %s1835_s4, %s1668_s19 }
  0x15   : > { %v339_v0 = vld [vmem:[%s1441_s10] sm:$0xff]  ;;  %v340_v2 = vld [vmem:[%s1441_s10 + $0x8] sm:$0xff]  ;;  %v341_v8 = vld [vmem:[%s1441_s10 + $0x10] sm:$0xff]  ;;  %s1369_s29 = smov 64   ;;  %s1744_s8 = scalar_lea.vmem %s1836_s5, %s1668_s19 }
  0x16   : > { %v347_v1 = vld [vmem:[%s1441_s10 + $0x40] sm:$0xff]  ;;  %v358_v3 = vsel %vm357_vm0, %v339_v0, 0.0  ;;  %v348_v5 = vld [vmem:[%s1441_s10 + $0x48] sm:$0xff]  ;;  %v361_v6 = vsel %vm357_vm0, %v340_v2, 0.0  ;;  %v342_v9 = vld [vmem:[%s1441_s10 + $0x18] sm:$0xff]  ;;  %v364_v10 = vsel %vm357_vm0, %v341_v8, 0.0  ;;  %s1756_s11 = scalar_lea.vmem %s1837_s6, %s1668_s19 }
  0x17   : > { %v382_v4 = vsel %vm357_vm0, %v347_v1, 0.0  ;;  %359 = vadd.xlane.f32.xlu0 %v358_v3  ;;  %v385_v7 = vsel %vm357_vm0, %v348_v5, 0.0  ;;  %v367_v11 = vsel %vm357_vm0, %v342_v9, 0.0  ;;  %v1456_v12 = vld [vmem:[%s1441_s10 + $0x50] sm:$0xff]  ;;  %v1459_v13 = vld [vmem:[%s1441_s10 + $0x58] sm:$0xff]  ;;  %v1466_v16 = vld [vmem:[%s1441_s10 + $0x20] sm:$0xff] }
  0x18   : > { %383 = vadd.xlane.f32.xlu1 %v382_v4  ;;  %v388_v14 = vsel %vm357_vm0, %v1456_v12, 0.0  ;;  %v391_v15 = vsel %vm357_vm0, %v1459_v13, 0.0  ;;  %v1469_v17 = vld [vmem:[%s1441_s10 + $0x28] sm:$0xff]  ;;  %v370_v18 = vsel %vm357_vm0, %v1466_v16, 0.0  ;;  %v1476_v20 = vld [vmem:[%s1441_s10 + $0x60] sm:$0xff]  ;;  %v1486_v24 = vld [vmem:[%s1441_s10 + $0x30] sm:$0xff] }
  0x19   : > { %v373_v19 = vsel %vm357_vm0, %v1469_v17, 0.0  ;;  %v1479_v21 = vld [vmem:[%s1441_s10 + $0x68] sm:$0xff]  ;;  %v394_v22 = vsel %vm357_vm0, %v1476_v20, 0.0  ;;  %v1489_v25 = vld [vmem:[%s1441_s10 + $0x38] sm:$0xff]  ;;  %v376_v26 = vsel %vm357_vm0, %v1486_v24, 0.0  ;;  %v1496_v28 = vld [vmem:[%s1441_s10 + $0x70] sm:$0xff] }
  0x1a   : > { %v397_v23 = vsel %vm357_vm0, %v1479_v21, 0.0  ;;  %v379_v27 = vsel %vm357_vm0, %v1489_v25, 0.0  ;;  %v1499_v29 = vld [vmem:[%s1441_s10 + $0x78] sm:$0xff]  ;;  %v400_v30 = vsel %vm357_vm0, %v1496_v28, 0.0 }
  0x1b   : > { %362 = vadd.xlane.f32.xlu0 %v361_v6  ;;  %v403_v31 = vsel %vm357_vm0, %v1499_v29, 0.0 }
  0x1c   : > { %386 = vadd.xlane.f32.xlu1 %v385_v7 }
  0x1f   : > { %365 = vadd.xlane.f32.xlu0 %v364_v10 }
  0x20   : > { %368 = vadd.xlane.f32.xlu1 %v367_v11 }
  0x23   : > { %389 = vadd.xlane.f32.xlu0 %v388_v14 }
  0x24   : > { %392 = vadd.xlane.f32.xlu1 %v391_v15 }
  0x27   : > { %371 = vadd.xlane.f32.xlu0 %v370_v18 }
  0x28   : > { %374 = vadd.xlane.f32.xlu1 %v373_v19 }
  0x2b   : > { %395 = vadd.xlane.f32.xlu0 %v394_v22 }
  0x2c   : > { %398 = vadd.xlane.f32.xlu1 %v397_v23 }
  0x2f   : > { %377 = vadd.xlane.f32.xlu0 %v376_v26 }
  0x30   : > { %380 = vadd.xlane.f32.xlu1 %v379_v27 }
  0x33   : > { %401 = vadd.xlane.f32.xlu0 %v400_v30 }
  0x34   : > { %404 = vadd.xlane.f32.xlu1 %v403_v31 }
  0xa4   : > { %v360_v32 = vpop.xlane.xlu0 %359 }
  0xa5   : > { %v384_v33 = vpop.xlane.xlu1 %383  ;;  %v407_v34 = vmul.f32 0.03125, %v360_v32 }
  0xa6   : > { %v415_v35 = vmul.f32 0.03125, %v384_v33 }
  0xa7   : > { %v1505_v36 = vsub.f32 %v339_v0, %v407_v34 }
  0xa8   : > { %v1507_v37 = vsub.f32 %v347_v1, %v415_v35  ;;  %v363_v38 = vpop.xlane.xlu0 %362 }
  0xa9   : > { %v387_v39 = vpop.xlane.xlu1 %386  ;;  %v408_v40 = vmul.f32 0.03125, %v363_v38  ;;  %v439_v42 = vmul.f32 %v1505_v36, %v1505_v36 }
  0xaa   : > { %v416_v41 = vmul.f32 0.03125, %v387_v39  ;;  %v447_v43 = vmul.f32 %v1507_v37, %v1507_v37 }
  0xab   : > { %v1513_v44 = vsub.f32 %v340_v2, %v408_v40  ;;  %v455_v46 = vsel %vm357_vm0, %v439_v42, 0.0 }
  0xac   : > { %v1515_v45 = vsub.f32 %v348_v5, %v416_v41  ;;  %456 = vadd.xlane.f32.xlu0 %v455_v46  ;;  %v366_v47 = vpop.xlane.xlu0 %365  ;;  %v479_v49 = vsel %vm357_vm0, %v447_v43, 0.0 }
  0xad   : > { %v369_v48 = vpop.xlane.xlu1 %368  ;;  %v409_v50 = vmul.f32 0.03125, %v366_v47  ;;  %v440_v52 = vmul.f32 %v1513_v44, %v1513_v44 }
  0xae   : > { %v410_v51 = vmul.f32 0.03125, %v369_v48  ;;  %v448_v53 = vmul.f32 %v1515_v45, %v1515_v45 }
  0xaf   : > { %v1523_v54 = vsub.f32 %v341_v8, %v409_v50  ;;  %v458_v56 = vsel %vm357_vm0, %v440_v52, 0.0 }
  0xb0   : > { %v1525_v55 = vsub.f32 %v342_v9, %v410_v51  ;;  %480 = vadd.xlane.f32.xlu0 %v479_v49  ;;  %459 = vadd.xlane.f32.xlu1 %v458_v56  ;;  %v390_v57 = vpop.xlane.xlu0 %389  ;;  %v482_v59 = vsel %vm357_vm0, %v448_v53, 0.0  ;;  %v1295_v53 = vld [vmem:[%s1834_s3 + $0x8] sm:$0xff]  }
  0xb1   : > { %v393_v58 = vpop.xlane.xlu1 %392  ;;  %v417_v60 = vmul.f32 0.03125, %v390_v57  ;;  %v441_v62 = vmul.f32 %v1523_v54, %v1523_v54 }
  0xb2   : > { %v418_v61 = vmul.f32 0.03125, %v393_v58  ;;  %v442_v63 = vmul.f32 %v1525_v55, %v1525_v55 }
  0xb3   : > { %v1534_v0 = vsub.f32 %v1456_v12, %v417_v60  ;;  %v461_v2 = vsel %vm357_vm0, %v441_v62, 0.0 }
  0xb4   : > { %v1537_v1 = vsub.f32 %v1459_v13, %v418_v61  ;;  %483 = vadd.xlane.f32.xlu1 %v482_v59  ;;  %462 = vadd.xlane.f32.xlu0 %v461_v2  ;;  %v372_v3 = vpop.xlane.xlu0 %371  ;;  %v464_v5 = vsel %vm357_vm0, %v442_v63, 0.0 }
  0xb5   : > { %v375_v4 = vpop.xlane.xlu1 %374  ;;  %v411_v6 = vmul.f32 0.03125, %v372_v3  ;;  %v449_v8 = vmul.f32 %v1534_v0, %v1534_v0 }
  0xb6   : > { %v412_v7 = vmul.f32 0.03125, %v375_v4  ;;  %v450_v9 = vmul.f32 %v1537_v1, %v1537_v1 }
  0xb7   : > { %v1546_v10 = vsub.f32 %v1466_v16, %v411_v6  ;;  %v485_v12 = vsel %vm357_vm0, %v449_v8, 0.0 }
  0xb8   : > { %v1549_v11 = vsub.f32 %v1469_v17, %v412_v7  ;;  %465 = vadd.xlane.f32.xlu1 %v464_v5  ;;  %486 = vadd.xlane.f32.xlu0 %v485_v12  ;;  %v396_v13 = vpop.xlane.xlu0 %395  ;;  %v488_v15 = vsel %vm357_vm0, %v450_v9, 0.0 }
  0xb9   : > { %v399_v14 = vpop.xlane.xlu1 %398  ;;  %v419_v18 = vmul.f32 0.03125, %v396_v13  ;;  %v443_v22 = vmul.f32 %v1546_v10, %v1546_v10 }
  0xba   : > { %v420_v19 = vmul.f32 0.03125, %v399_v14  ;;  %v444_v16 = vmul.f32 %v1549_v11, %v1549_v11 }
  0xbb   : > { %v1558_v23 = vsub.f32 %v1476_v20, %v419_v18  ;;  %v467_v26 = vsel %vm357_vm0, %v443_v22, 0.0 }
  0xbc   : > { %v1561_v17 = vsub.f32 %v1479_v21, %v420_v19  ;;  %489 = vadd.xlane.f32.xlu1 %v488_v15  ;;  %468 = vadd.xlane.f32.xlu0 %v467_v26  ;;  %v378_v27 = vpop.xlane.xlu0 %377  ;;  %v470_v31 = vsel %vm357_vm0, %v444_v16, 0.0 }
  0xbd   : > { %v381_v30 = vpop.xlane.xlu1 %380  ;;  %v413_v32 = vmul.f32 0.03125, %v378_v27  ;;  %v451_v34 = vmul.f32 %v1558_v23, %v1558_v23 }
  0xbe   : > { %v414_v33 = vmul.f32 0.03125, %v381_v30  ;;  %v452_v20 = vmul.f32 %v1561_v17, %v1561_v17 }
  0xbf   : > { %v1570_v35 = vsub.f32 %v1486_v24, %v413_v32  ;;  %v491_v38 = vsel %vm357_vm0, %v451_v34, 0.0 }
  0xc0   : > { %v1573_v21 = vsub.f32 %v1489_v25, %v414_v33  ;;  %471 = vadd.xlane.f32.xlu1 %v470_v31  ;;  %492 = vadd.xlane.f32.xlu0 %v491_v38  ;;  %v402_v39 = vpop.xlane.xlu0 %401  ;;  %v494_v41 = vsel %vm357_vm0, %v452_v20, 0.0  ;;  %v1605_v31 = vld [vmem:[%s1832_s1] ss:$0 sm:$0xff] }
  0xc1   : > { %v405_v40 = vpop.xlane.xlu1 %404  ;;  %v421_v42 = vmul.f32 0.03125, %v402_v39  ;;  %v445_v46 = vmul.f32 %v1570_v35, %v1570_v35 }
  0xc2   : > { %v422_v43 = vmul.f32 0.03125, %v405_v40  ;;  %v446_v24 = vmul.f32 %v1573_v21, %v1573_v21 }
  0xc3   : > { %v1582_v47 = vsub.f32 %v1496_v28, %v421_v42  ;;  %v473_v48 = vsel %vm357_vm0, %v445_v46, 0.0 }
  0xc4   : > { %v1585_v25 = vsub.f32 %v1499_v29, %v422_v43  ;;  %495 = vadd.xlane.f32.xlu1 %v494_v41  ;;  %474 = vadd.xlane.f32.xlu0 %v473_v48  ;;  %v476_v49 = vsel %vm357_vm0, %v446_v24, 0.0  ;;  %v1294_v29 = vld [vmem:[%s1834_s3] sm:$0xff]  }
  0xc5   : > { %v453_v50 = vmul.f32 %v1582_v47, %v1582_v47  ;;  %1228 = vmatprep.subr.bf16.mxu0 %v1294_v29  ;;  %1248 = vmatprep.subr.bf16.mxu1 %v1294_v29  ;;  %v1612_v43 = vld [vmem:[%s1833_s2] ss:$0 sm:$0xff] }
  0xc6   : > { %v454_v51 = vmul.f32 %v1585_v25, %v1585_v25  ;;  %1229 = vmatpush3.bf16.msra.mxu0 %v1294_v29  ;;  %1250 = vmatpush3.bf16.msra.mxu1 %v1294_v29 }
  0xc7   : > { %v497_v52 = vsel %vm357_vm0, %v453_v50, 0.0  ;;  %1230 = vmatprep.subr.bf16.mxu0 %v1295_v53  ;;  %1249 = vmatprep.subr.bf16.mxu1 %v1295_v53 }
  0xc8   : > { %477 = vadd.xlane.f32.xlu1 %v476_v49  ;;  %498 = vadd.xlane.f32.xlu0 %v497_v52  ;;  %v500_v28 = vsel %vm357_vm0, %v454_v51, 0.0 }
  0xca   : > { %1231 = vmatpush3.bf16.msra.mxu0 %v1295_v53  ;;  %1251 = vmatpush3.bf16.msra.mxu1 %v1295_v53 }
  0xcc   : > { %501 = vadd.xlane.f32.xlu1 %v500_v28 }
 0x139   : > { %v457_v56 = vpop.xlane.xlu0 %456 }
 0x13a   : > { %v503_v57 = vmul.f32 0.03125, %v457_v56 }
 0x13c   : > { %v519_v58 = vadd.f32 1e-05, %v503_v57 }
 0x13d   : > { %v460_v59 = vpop.xlane.xlu1 %459  ;;  %v481_v60 = vpop.xlane.xlu0 %480 }
 0x13e   : > { %1296 = vrsqrt.f32 %v519_v58  ;;  %v504_v61 = vmul.f32 0.03125, %v460_v59  ;;  %v511_v62 = vmul.f32 0.03125, %v481_v60 }
 0x140   : > { %v520_v63 = vadd.f32 1e-05, %v504_v61  ;;  %v527_v2 = vadd.f32 1e-05, %v511_v62 }
 0x141   : > { %v484_v3 = vpop.xlane.xlu1 %483  ;;  %v463_v4 = vpop.xlane.xlu0 %462 }
 0x142   : > { %1298 = vrsqrt.f32 %v520_v63  ;;  %v512_v5 = vmul.f32 0.03125, %v484_v3  ;;  %v505_v6 = vmul.f32 0.03125, %v463_v4 }
 0x143   : > { %1300 = vrsqrt.f32 %v527_v2 }
 0x144   : > { %v528_v7 = vadd.f32 1e-05, %v512_v5  ;;  %v521_v8 = vadd.f32 1e-05, %v505_v6 }
 0x145   : > { %v466_v9 = vpop.xlane.xlu1 %465  ;;  %v487_v12 = vpop.xlane.xlu0 %486 }
 0x146   : > { %1302 = vrsqrt.f32 %v528_v7  ;;  %v506_v13 = vmul.f32 0.03125, %v466_v9  ;;  %v513_v14 = vmul.f32 0.03125, %v487_v12 }
 0x147   : > { %1304 = vrsqrt.f32 %v521_v8 }
 0x148   : > { %v1297_v15 = vpop.eup %1296  ;;  %v522_v18 = vadd.f32 1e-05, %v506_v13  ;;  %v529_v19 = vadd.f32 1e-05, %v513_v14 }
 0x149   : > { %v490_v22 = vpop.xlane.xlu1 %489  ;;  %v469_v16 = vpop.xlane.xlu0 %468  ;;  %v551_v26 = vmul.f32 %v1297_v15, %v1505_v36 }
 0x14a   : > { %1306 = vrsqrt.f32 %v522_v18  ;;  %v514_v27 = vmul.f32 0.03125, %v490_v22  ;;  %v507_v30 = vmul.f32 0.03125, %v469_v16 }
 0x14b   : > { %1308 = vrsqrt.f32 %v529_v19  ;;  %v573_v41 = vmul.f32 %v1605_v31, %v551_v26 }
 0x14c   : > { %v1299_v32 = vpop.eup %1298  ;;  %v530_v33 = vadd.f32 1e-05, %v514_v27  ;;  %v523_v34 = vadd.f32 1e-05, %v507_v30 }
 0x14d   : > { %v1301_v20 = vpop.eup %1300  ;;  %v472_v38 = vpop.xlane.xlu1 %471  ;;  %v552_v40 = vmul.f32 %v1299_v32, %v1513_v44  ;;  %v595_v28 = vadd.f32 %v1612_v43, %v573_v41 }
 0x14e   : > { %v493_v39 = vpop.xlane.xlu0 %492  ;;  %1310 = vrsqrt.f32 %v530_v33  ;;  %v508_v36 = vmul.f32 0.03125, %v472_v38  ;;  %v559_v46 = vmul.f32 %v1301_v20, %v1507_v37 }
 0x14f   : > { %v515_v42 = vmul.f32 0.03125, %v493_v39  ;;  %1312 = vrsqrt.f32 %v523_v34  ;;  %v574_v24 = vmul.f32 %v1605_v31, %v552_v40 }
 0x150   : > { %v1303_v48 = vpop.eup %1302  ;;  %v524_v49 = vadd.f32 1e-05, %v508_v36  ;;  %v581_v56 = vmul.f32 %v1605_v31, %v559_v46 }
 0x151   : > { %v531_v50 = vadd.f32 1e-05, %v515_v42  ;;  %v1305_v51 = vpop.eup %1304  ;;  %v496_v44 = vpop.xlane.xlu1 %495  ;;  %v596_v29 = vadd.f32 %v1612_v43, %v574_v24  ;;  %v560_v53 = vmul.f32 %v1303_v48, %v1515_v45 }
 0x152   : > { %v475_v52 = vpop.xlane.xlu0 %474  ;;  %v553_v57 = vmul.f32 %v1305_v51, %v1523_v54  ;;  %1314 = vrsqrt.f32 %v524_v49  ;;  %v516_v37 = vmul.f32 0.03125, %v496_v44  ;;  %v603_v5 = vadd.f32 %v1612_v43, %v581_v56 }
 0x153   : > { %v509_v58 = vmul.f32 0.03125, %v475_v52  ;;  %1316 = vrsqrt.f32 %v531_v50  ;;  %v611_v59 = vpack.c.bf16 %v596_v29, %v595_v28  ;;  %v582_v60 = vmul.f32 %v1605_v31, %v560_v53 }
 0x154   : > { %v1307_v61 = vpop.eup %1306  ;;  %v532_v62 = vadd.f32 1e-05, %v516_v37  ;;  %v575_v6 = vmul.f32 %v1605_v31, %v553_v57 }
 0x155   : > { %v525_v63 = vadd.f32 1e-05, %v509_v58  ;;  %v1309_v2 = vpop.eup %1308  ;;  %v554_v3 = vmul.f32 %v1307_v61, %v1525_v55  ;;  %v478_v4 = vpop.xlane.xlu1 %477  ;;  %1232 = vmatprep.mubr.msk.bf16.mxu0 %vm357_vm0, %v611_v59  ;;  %v604_v54 = vadd.f32 %v1612_v43, %v582_v60 }
 0x156   : > { %v499_v45 = vpop.xlane.xlu0 %498  ;;  %v561_v7 = vmul.f32 %v1309_v2, %v1534_v0  ;;  %1318 = vrsqrt.f32 %v532_v62  ;;  %v510_v8 = vmul.f32 0.03125, %v478_v4  ;;  %v597_v16 = vadd.f32 %v1612_v43, %v575_v6 }
 0x157   : > { %v517_v9 = vmul.f32 0.03125, %v499_v45  ;;  %1320 = vrsqrt.f32 %v525_v63  ;;  %v615_v12 = vpack.c.bf16 %v604_v54, %v603_v5  ;;  %v576_v13 = vmul.f32 %v1605_v31, %v554_v3 }
 0x158   : > { %v1311_v55 = vpop.eup %1310  ;;  %v526_v14 = vadd.f32 1e-05, %v510_v8  ;;  %v583_v26 = vmul.f32 %v1605_v31, %v561_v7 }
 0x159   : > { %v533_v15 = vadd.f32 1e-05, %v517_v9  ;;  %v1313_v18 = vpop.eup %1312  ;;  %v562_v19 = vmul.f32 %v1311_v55, %v1537_v1  ;;  %v502_v22 = vpop.xlane.xlu1 %501  ;;  %1240 = vmatprep.mubr.msk.bf16.mxu1 %vm357_vm0, %v615_v12  ;;  %v598_v0 = vadd.f32 %v1612_v43, %v576_v13 }
 0x15a   : > { %v555_v27 = vmul.f32 %v1313_v18, %v1546_v10  ;;  %1322 = vrsqrt.f32 %v526_v14  ;;  %v518_v30 = vmul.f32 0.03125, %v502_v22  ;;  %v605_v39 = vadd.f32 %v1612_v43, %v583_v26 }
 0x15b   : > { %1324 = vrsqrt.f32 %v533_v15  ;;  %v612_v32 = vpack.c.bf16 %v598_v0, %v597_v16  ;;  %v584_v33 = vmul.f32 %v1605_v31, %v562_v19 }
 0x15c   : > { %v1315_v34 = vpop.eup %1314  ;;  %v534_v20 = vadd.f32 1e-05, %v518_v30  ;;  %v577_v41 = vmul.f32 %v1605_v31, %v555_v27 }
 0x15d   : > { %v1317_v1 = vpop.eup %1316  ;;  %v556_v38 = vmul.f32 %v1315_v34, %v1549_v11  ;;  %1233 = vmatmul.mubr.msk.bf16.vlgmr.msra.gmra.mrb[0].mxu0 %vm357_vm0, %v612_v32  ;;  %v606_v40 = vadd.f32 %v1612_v43, %v584_v33 }
 0x15e   : > { %v563_v10 = vmul.f32 %v1317_v1, %v1558_v23  ;;  %1326 = vrsqrt.f32 %v534_v20  ;;  %v599_v11 = vadd.f32 %v1612_v43, %v577_v41 }
 0x15f   : > { %v616_v36 = vpack.c.bf16 %v606_v40, %v605_v39  ;;  %v578_v42 = vmul.f32 %v1605_v31, %v556_v38 }
 0x160   : > { %v1319_v46 = vpop.eup %1318  ;;  %v585_v50 = vmul.f32 %v1605_v31, %v563_v10 }
 0x161   : > { %v1321_v24 = vpop.eup %1320  ;;  %v564_v48 = vmul.f32 %v1319_v46, %v1561_v17  ;;  %1241 = vmatmul.mubr.msk.bf16.vlgmr.msra.gmra.mrb[0].mxu1 %vm357_vm0, %v616_v36  ;;  %v600_v49 = vadd.f32 %v1612_v43, %v578_v42 }
 0x162   : > { %v557_v51 = vmul.f32 %v1321_v24, %v1570_v35  ;;  %v607_v17 = vadd.f32 %v1612_v43, %v585_v50 }
 0x163   : > { %v613_v44 = vpack.c.bf16 %v600_v49, %v599_v11  ;;  %v586_v23 = vmul.f32 %v1605_v31, %v564_v48 }
 0x164   : > { %v1323_v52 = vpop.eup %1322  ;;  %v579_v56 = vmul.f32 %v1605_v31, %v557_v51 }
 0x165   : > { %v1325_v28 = vpop.eup %1324  ;;  %v558_v29 = vmul.f32 %v1323_v52, %v1573_v21  ;;  %1236 = vmatprep.mubr.msk.bf16.mxu0 %vm357_vm0, %v613_v44  ;;  %v608_v53 = vadd.f32 %v1612_v43, %v586_v23 }
 0x166   : > { %v565_v57 = vmul.f32 %v1325_v28, %v1582_v47  ;;  %v601_v21 = vadd.f32 %v1612_v43, %v579_v56 }
 0x167   : > { %v617_v37 = vpack.c.bf16 %v608_v53, %v607_v17  ;;  %v580_v35 = vmul.f32 %v1605_v31, %v558_v29 }
 0x168   : > { %v1327_v58 = vpop.eup %1326  ;;  %v587_v61 = vmul.f32 %v1605_v31, %v565_v57 }
 0x169   : > { %v566_v59 = vmul.f32 %v1327_v58, %v1585_v25  ;;  %1244 = vmatprep.mubr.msk.bf16.mxu1 %vm357_vm0, %v617_v37  ;;  %v602_v60 = vadd.f32 %v1612_v43, %v580_v35 }
 0x16a   : > { %v609_v47 = vadd.f32 %v1612_v43, %v587_v61 }
 0x16b   : > { %v614_v62 = vpack.c.bf16 %v602_v60, %v601_v21  ;;  %v588_v63 = vmul.f32 %v1605_v31, %v566_v59 }
 0x16d   : > { %1237 = vmatmul.mubr.msk.bf16.gmra.mrb[4].mxu0 %vm357_vm0, %v614_v62  ;;  %v610_v2 = vadd.f32 %v1612_v43, %v588_v63 }
 0x16f   : > { %v618_v3 = vpack.c.bf16 %v610_v2, %v609_v47 }
 0x171   : > { %1245 = vmatmul.mubr.msk.bf16.gmra.mrb[4].mxu1 %vm357_vm0, %v618_v3 }
 0x230   : > { %v1234_v25 = vpop.f32.mrb[0].mxu0 }
 0x231   : > { %v1204_v31 = vpack.c.bf16 %v1234_v25, %v1234_v25  ;;  %v693_v4 = vpop.f32.mrb[1].mxu0 }
 0x232   : > { %v1202_v43 = vpack.c.bf16 %v693_v4, %v693_v4  ;;  %v1235_v45 = vpop.f32.mrb[2].mxu0 }
 0x233   : > { %823 = vst.msk [vmem:[%s1674_s22 + $0x8] sm:$0xf] %vm820_vm1, %v1204_v31  ;;  %v1205_v5 = vpack.c.bf16 %v1235_v45, %v1235_v45  ;;  %841 = vrot.lane.b32.xlu1 %v1204_v31, %s1368_s28  ;;  %v696_v54 = vpop.f32.mrb[3].mxu0 }
 0x234   : > { %821 = vst.msk [vmem:[%s1674_s22] sm:$0xf] %vm820_vm1, %v1202_v43  ;;  %v1203_v6 = vpack.c.bf16 %v696_v54, %v696_v54  ;;  %v1242_v7 = vpop.f32.mrb[0].mxu1 }
 0x235   : > { %824 = vst.msk [vmem:[%s1674_s22 + $0xc] sm:$0xf] %vm820_vm1, %v1205_v5  ;;  %v1212_v8 = vpack.c.bf16 %v1242_v7, %v1242_v7  ;;  %v725_v9 = vpop.f32.mrb[1].mxu1 }
 0x236   : > { %822 = vst.msk [vmem:[%s1674_s22 + $0x4] sm:$0xf] %vm820_vm1, %v1203_v6  ;;  %v1210_v12 = vpack.c.bf16 %v725_v9, %v725_v9  ;;  %v1243_v13 = vpop.f32.mrb[2].mxu1 }
 0x237   : > { %831 = vst.msk [vmem:[%s1674_s22 + $0x28] sm:$0xf] %vm820_vm1, %v1212_v8  ;;  %v1213_v55 = vpack.c.bf16 %v1243_v13, %v1243_v13  ;;  %843 = vrot.lane.b32.xlu1 %v1205_v5, %s1368_s28  ;;  %857 = vrot.lane.b32.xlu0 %v1212_v8, %s1368_s28  ;;  %v728_v14 = vpop.f32.mrb[3].mxu1 }
 0x238   : > { %829 = vst.msk [vmem:[%s1674_s22 + $0x20] sm:$0xf] %vm820_vm1, %v1210_v12  ;;  %v1211_v15 = vpack.c.bf16 %v728_v14, %v728_v14 }
 0x239   : > { %832 = vst.msk [vmem:[%s1674_s22 + $0x2c] sm:$0xf] %vm820_vm1, %v1213_v55 }
 0x23a   : > { %830 = vst.msk [vmem:[%s1674_s22 + $0x24] sm:$0xf] %vm820_vm1, %v1211_v15 }
 0x23b   : > { %905 = vrot.lane.b32.xlu0 %v1204_v31, %s1369_s29  ;;  %859 = vrot.lane.b32.xlu1 %v1213_v55, %s1368_s28 }
 0x23f   : > { %921 = vrot.lane.b32.xlu0 %v1212_v8, %s1369_s29  ;;  %907 = vrot.lane.b32.xlu1 %v1205_v5, %s1369_s29 }
 0x240   : > { %v1238_v18 = vpop.f32.mrb[4].mxu0 }
 0x241   : > { %v1208_v19 = vpack.c.bf16 %v1238_v18, %v1238_v18  ;;  %v709_v22 = vpop.f32.mrb[5].mxu0 }
 0x242   : > { %v1206_v16 = vpack.c.bf16 %v709_v22, %v709_v22  ;;  %v1239_v0 = vpop.f32.mrb[6].mxu0 }
 0x243   : > { %827 = vst.msk [vmem:[%s1674_s22 + $0x18] sm:$0xf] %vm820_vm1, %v1208_v19  ;;  %v1209_v26 = vpack.c.bf16 %v1239_v0, %v1239_v0  ;;  %837 = vrot.lane.b32.xlu0 %v1202_v43, %s1368_s28  ;;  %923 = vrot.lane.b32.xlu1 %v1213_v55, %s1369_s29  ;;  %v712_v27 = vpop.f32.mrb[7].mxu0 }
 0x244   : > { %825 = vst.msk [vmem:[%s1674_s22 + $0x10] sm:$0xf] %vm820_vm1, %v1206_v16  ;;  %v1207_v30 = vpack.c.bf16 %v712_v27, %v712_v27  ;;  %v1246_v32 = vpop.f32.mrb[4].mxu1 }
 0x245   : > { %828 = vst.msk [vmem:[%s1674_s22 + $0x1c] sm:$0xf] %vm820_vm1, %v1209_v26  ;;  %v1216_v33 = vpack.c.bf16 %v1246_v32, %v1246_v32  ;;  %v741_v34 = vpop.f32.mrb[5].mxu1 }
 0x246   : > { %826 = vst.msk [vmem:[%s1674_s22 + $0x14] sm:$0xf] %vm820_vm1, %v1207_v30  ;;  %v1214_v20 = vpack.c.bf16 %v741_v34, %v741_v34  ;;  %v1247_v1 = vpop.f32.mrb[6].mxu1 }
 0x247   : > { %835 = vst.msk [vmem:[%s1674_s22 + $0x38] sm:$0xf] %vm820_vm1, %v1216_v33  ;;  %v1217_v38 = vpack.c.bf16 %v1247_v1, %v1247_v1  ;;  %853 = vrot.lane.b32.xlu0 %v1210_v12, %s1368_s28  ;;  %839 = vrot.lane.b32.xlu1 %v1203_v6, %s1368_s28  ;;  %v744_v39 = vpop.f32.mrb[7].mxu1 }
 0x248   : > { %833 = vst.msk [vmem:[%s1674_s22 + $0x30] sm:$0xf] %vm820_vm1, %v1214_v20  ;;  %v1215_v40 = vpack.c.bf16 %v744_v39, %v744_v39 }
 0x249   : > { %836 = vst.msk [vmem:[%s1674_s22 + $0x3c] sm:$0xf] %vm820_vm1, %v1217_v38 }
 0x24a   : > { %834 = vst.msk [vmem:[%s1674_s22 + $0x34] sm:$0xf] %vm820_vm1, %v1215_v40 }
 0x24b   : > { %901 = vrot.lane.b32.xlu0 %v1202_v43, %s1369_s29  ;;  %855 = vrot.lane.b32.xlu1 %v1211_v15, %s1368_s28 }
 0x24f   : > { %917 = vrot.lane.b32.xlu0 %v1210_v12, %s1369_s29  ;;  %903 = vrot.lane.b32.xlu1 %v1203_v6, %s1369_s29 }
 0x253   : > { %919 = vrot.lane.b32.xlu1 %v1211_v15, %s1369_s29  ;;  %849 = vrot.lane.b32.xlu0 %v1208_v19, %s1368_s28 }
 0x257   : > { %851 = vrot.lane.b32.xlu1 %v1209_v26, %s1368_s28  ;;  %865 = vrot.lane.b32.xlu0 %v1216_v33, %s1368_s28 }
 0x25b   : > { %913 = vrot.lane.b32.xlu0 %v1208_v19, %s1369_s29  ;;  %867 = vrot.lane.b32.xlu1 %v1217_v38, %s1368_s28 }
 0x25f   : > { %845 = vrot.lane.b32.xlu0 %v1206_v16, %s1368_s28  ;;  %915 = vrot.lane.b32.xlu1 %v1209_v26, %s1369_s29 }
 0x263   : > { %861 = vrot.lane.b32.xlu0 %v1214_v20, %s1368_s28  ;;  %847 = vrot.lane.b32.xlu1 %v1207_v30, %s1368_s28 }
 0x267   : > { %909 = vrot.lane.b32.xlu0 %v1206_v16, %s1369_s29  ;;  %863 = vrot.lane.b32.xlu1 %v1215_v40, %s1368_s28 }
 0x26b   : > { %925 = vrot.lane.b32.xlu0 %v1214_v20, %s1369_s29  ;;  %911 = vrot.lane.b32.xlu1 %v1207_v30, %s1369_s29 }
 0x26f   : > { %929 = vrot.lane.b32.xlu0 %v1216_v33, %s1369_s29  ;;  %927 = vrot.lane.b32.xlu1 %v1215_v40, %s1369_s29 }
 0x273   : > { %931 = vrot.lane.b32.xlu1 %v1217_v38, %s1369_s29 }
 0x2a5   : > { %v842_v41 = vpop.permute.xlu1 %841 }
 0x2a6   : > { %887 = vst.msk [vmem:[%s1744_s8 + $0x8] sm:$0xf] %vm820_vm1, %v842_v41 }
 0x2a9   : > { %v844_v10 = vpop.permute.xlu1 %843  ;;  %v858_v36 = vpop.permute.xlu0 %857 }
 0x2aa   : > { %888 = vst.msk [vmem:[%s1744_s8 + $0xc] sm:$0xf] %vm820_vm1, %v844_v10  ;;  %895 = vst.msk [vmem:[%s1744_s8 + $0x28] sm:$0xf] %vm820_vm1, %v858_v36 }
 0x2ad   : > { %v860_v42 = vpop.permute.xlu1 %859  ;;  %v906_v46 = vpop.permute.xlu0 %905 }
 0x2ae   : > { %896 = vst.msk [vmem:[%s1744_s8 + $0x2c] sm:$0xf] %vm820_vm1, %v860_v42  ;;  %951 = vst.msk [vmem:[%s1756_s11 + $0x8] sm:$0xf] %vm820_vm1, %v906_v46 }
 0x2b1   : > { %v908_v24 = vpop.permute.xlu1 %907  ;;  %v922_v48 = vpop.permute.xlu0 %921 }
 0x2b2   : > { %952 = vst.msk [vmem:[%s1756_s11 + $0xc] sm:$0xf] %vm820_vm1, %v908_v24  ;;  %959 = vst.msk [vmem:[%s1756_s11 + $0x28] sm:$0xf] %vm820_vm1, %v922_v48 }
 0x2b5   : > { %v924_v11 = vpop.permute.xlu1 %923  ;;  %v838_v49 = vpop.permute.xlu0 %837 }
 0x2b6   : > { %960 = vst.msk [vmem:[%s1756_s11 + $0x2c] sm:$0xf] %vm820_vm1, %v924_v11  ;;  %885 = vst.msk [vmem:[%s1744_s8] sm:$0xf] %vm820_vm1, %v838_v49 }
 0x2b9   : > { %v840_v50 = vpop.permute.xlu1 %839  ;;  %v854_v51 = vpop.permute.xlu0 %853 }
 0x2ba   : > { %886 = vst.msk [vmem:[%s1744_s8 + $0x4] sm:$0xf] %vm820_vm1, %v840_v50  ;;  %893 = vst.msk [vmem:[%s1744_s8 + $0x20] sm:$0xf] %vm820_vm1, %v854_v51 }
 0x2bd   : > { %v856_v44 = vpop.permute.xlu1 %855  ;;  %v902_v23 = vpop.permute.xlu0 %901 }
 0x2be   : > { %894 = vst.msk [vmem:[%s1744_s8 + $0x24] sm:$0xf] %vm820_vm1, %v856_v44  ;;  %949 = vst.msk [vmem:[%s1756_s11] sm:$0xf] %vm820_vm1, %v902_v23 }
 0x2c1   : > { %v904_v52 = vpop.permute.xlu1 %903  ;;  %v918_v28 = vpop.permute.xlu0 %917 }
 0x2c2   : > { %950 = vst.msk [vmem:[%s1756_s11 + $0x4] sm:$0xf] %vm820_vm1, %v904_v52  ;;  %957 = vst.msk [vmem:[%s1756_s11 + $0x20] sm:$0xf] %vm820_vm1, %v918_v28 }
 0x2c5   : > { %v920_v29 = vpop.permute.xlu1 %919  ;;  %v850_v17 = vpop.permute.xlu0 %849 }
 0x2c6   : > { %958 = vst.msk [vmem:[%s1756_s11 + $0x24] sm:$0xf] %vm820_vm1, %v920_v29  ;;  %891 = vst.msk [vmem:[%s1744_s8 + $0x18] sm:$0xf] %vm820_vm1, %v850_v17 }
 0x2c9   : > { %v852_v53 = vpop.permute.xlu1 %851  ;;  %v866_v56 = vpop.permute.xlu0 %865 }
 0x2ca   : > { %892 = vst.msk [vmem:[%s1744_s8 + $0x1c] sm:$0xf] %vm820_vm1, %v852_v53  ;;  %899 = vst.msk [vmem:[%s1744_s8 + $0x38] sm:$0xf] %vm820_vm1, %v866_v56 }
 0x2cd   : > { %v868_v57 = vpop.permute.xlu1 %867  ;;  %v914_v37 = vpop.permute.xlu0 %913 }
 0x2ce   : > { %900 = vst.msk [vmem:[%s1744_s8 + $0x3c] sm:$0xf] %vm820_vm1, %v868_v57  ;;  %955 = vst.msk [vmem:[%s1756_s11 + $0x18] sm:$0xf] %vm820_vm1, %v914_v37 }
 0x2d1   : > { %v916_v35 = vpop.permute.xlu1 %915  ;;  %v846_v58 = vpop.permute.xlu0 %845 }
 0x2d2   : > { %956 = vst.msk [vmem:[%s1756_s11 + $0x1c] sm:$0xf] %vm820_vm1, %v916_v35  ;;  %889 = vst.msk [vmem:[%s1744_s8 + $0x10] sm:$0xf] %vm820_vm1, %v846_v58 }
 0x2d5   : > { %v848_v59 = vpop.permute.xlu1 %847  ;;  %v862_v21 = vpop.permute.xlu0 %861 }
 0x2d6   : > { %890 = vst.msk [vmem:[%s1744_s8 + $0x14] sm:$0xf] %vm820_vm1, %v848_v59  ;;  %897 = vst.msk [vmem:[%s1744_s8 + $0x30] sm:$0xf] %vm820_vm1, %v862_v21 }
 0x2d9   : > { %v864_v60 = vpop.permute.xlu1 %863  ;;  %v910_v61 = vpop.permute.xlu0 %909 }
 0x2da   : > { %898 = vst.msk [vmem:[%s1744_s8 + $0x34] sm:$0xf] %vm820_vm1, %v864_v60  ;;  %953 = vst.msk [vmem:[%s1756_s11 + $0x10] sm:$0xf] %vm820_vm1, %v910_v61 }
 0x2dd   : > { %v912_v62 = vpop.permute.xlu1 %911  ;;  %v926_v63 = vpop.permute.xlu0 %925 }
 0x2de   : > { %954 = vst.msk [vmem:[%s1756_s11 + $0x14] sm:$0xf] %vm820_vm1, %v912_v62  ;;  %961 = vst.msk [vmem:[%s1756_s11 + $0x30] sm:$0xf] %vm820_vm1, %v926_v63 }
 0x2e1   : > { %v928_v47 = vpop.permute.xlu1 %927  ;;  %v930_v2 = vpop.permute.xlu0 %929 }
 0x2e2   : > { %962 = vst.msk [vmem:[%s1756_s11 + $0x34] sm:$0xf] %vm820_vm1, %v928_v47  ;;  %963 = vst.msk [vmem:[%s1756_s11 + $0x38] sm:$0xf] %vm820_vm1, %v930_v2 }
 0x2e5   : > { %v932_v3 = vpop.permute.xlu1 %931 }
 0x2e6   : > { %964 = vst.msk [vmem:[%s1756_s11 + $0x3c] sm:$0xf] %vm820_vm1, %v932_v3 }
 0x2e7 PF: > { %s17_s25 = sadd.s32 1, %s1366_s25   ;;  %s1838_s21 = smov %s1358_s23 }
 0x2e8   : > { %p14_p7 = scmp.ge.s32.totalorder %s17_s25, 6   ;;  %s1839_s22 = smov %s1362_s24 }
 0x2e9   : > { %s1840_s23 = smov %s1843_s26  ;;  %s1841_s24 = smov %s1847_s27 }
 0x2ea   :  { %16 = sbr.rel (!%p14_p7) target bundleno = 3 (0x3), region = 90 }

// kernel: block_forward.6
= control target key start
LH: loop header
LB: loop body
LE: loop exit
PB: predicated region body
PF: predicated region fallthrough
CT: control target
= control target key end

     0   :  { %s5389_s21 = smov 0   ;;  %s5391_s22 = smov 0   ;;  %s7361_s0 = inlined_call_operand.vmem [shape: f32[2,256,32], index: 0, kind: input, shape index: {}]   ;;  %s7362_s1 = inlined_call_operand.vmem [shape: bf16[2,256,32], index: 1, kind: input, shape index: {}]   ;;  %s7363_s2 = inlined_call_operand.vmem [shape: bf16[2,256,32], index: 2, kind: input, shape index: {}]   ;;  %s7364_s3 = inlined_call_operand.vmem [shape: bf16[2,256,32], index: 3, kind: input, shape index: {}]   ;;  %s7365_s4 = inlined_call_operand.vmem [shape: bf16[32,32], index: 4, kind: input, shape index: {}]   ;;  %s7366_s5 = inlined_call_operand.vmem [shape: f32[1,32], index: 5, kind: input, shape index: {}]   ;;  %s7367_s6 = inlined_call_operand.vmem [shape: f32[2,256,32], index: 6, kind: output, shape index: {}]  }
   0x1   :  { %s5393_s23 = smov 0   ;;  %s5395_s24 = smov 0  }
   0x2   :  { %s5397_s25 = smov 0  }
   0x3 LB: > { %s25_s26 = sadd.s32 1, %s5341_s23  ;;  %s28_s27 = sadd.s32 1, %s5345_s24  ;;  %s5349_s25 = sphi %s5397_s25, %s16_s25   ;;  %s5345_s24 = sphi %s5395_s24, %s7528_s24   ;;  %s5341_s23 = sphi %s5393_s23, %s7527_s23   ;;  %s5337_s22 = sphi %s5391_s22, %s7526_s22   ;;  %s5333_s21 = sphi %s5389_s21, %s7525_s21  }
   0x4   : > { %p26_p0 = scmp.ge.s32.totalorder %s25_s26, 2  ;;  %p4079_p1 = scmp.ge.s32.totalorder %s5349_s25, 1 }
   0x5   : > { %p270_p2 = scmp.lt.s32.totalorder %s5349_s25, 5 }
   0x6   : > { %s7530_s26 = smov (%p26_p0, %s25_s26), 0  ;;  %s7532_s27 = smov (!%p26_p0, %s28_s27), %s5345_s24 }
   0x7   : > { %p271_p3 = pnand %p4079_p1, %p270_p2  ;;  %p30_p4 = scmp.ge.s32.totalorder %s7532_s27, 2 }
   0x9   : > { %s7534_s27 = smov (%p30_p4, %s7532_s27), 0  ;;  %274 = sbr.rel (%p271_p3) target bundleno = 2378 (0x94a), region = 44 }
  0x10   : > { %p328_p5 = scmp.lt.s32.totalorder %s5337_s22, 1  ;;  %s4080_s28 = sshll.u32 %s5333_s21, 4  ;;  %vm593_vm0 = vcmask 64512   ;;  %v468_v49 = vlaneseq  ;;  %vm2002_vm2 = vcmask 1043456   ;;  %vm3926_vm3 = vcmask 261120  }
  0x11   : > { %p330_p6 = scmp.lt.s32.totalorder %s4080_s28, 31  ;;  %s5351_s9 = smov 120  }
  0x12   : > { %s7536_s22 = smov (!%p328_p5, %s5337_s22), 1  ;;  %v469_v50 = vand.u32 127, %v468_v49  ;;  %s5352_s19 = smov 112  }
  0x13   : > { %s4200_s29 = sshll.u32 %s7536_s22, 7  ;;  %s7538_s28 = smov (!%p330_p6, %s4080_s28), 31 }
  0x14   : > { %s5430_s8 = scalar_lea.vmem %s7363_s2, %s4200_s29  ;;  %s4081_s10 = sshll.u32 %s7536_s22, 5  ;;  %v5633_v51 = vadd.s32 128, %v469_v50 }
  0x15   : > { %v4837_v0 = vld [vmem:[%s5430_s8 + $0x40] sm:$0xff]   ;;  %v4839_v2 = vld [vmem:[%s5430_s8 + $0x48] sm:$0xff]   ;;  %s5443_s11 = sadd.s32 %s4081_s10, %s7538_s28  ;;  %v4841_v5 = vld [vmem:[%s5430_s8 + $0x50] sm:$0xff]   ;;  %s5566_s18 = scalar_lea.vmem %s7364_s3, %s4200_s29 }
  0x16   : > { %v4838_v1 = vld [vmem:[%s5430_s8] sm:$0xff]   ;;  %4758 = vmatprep.subr.msk.bf16.mxu0 %vm593_vm0, %v4837_v0  ;;  %1320 = vrot.lane.b32.xlu1 %v4837_v0, %s5351_s9  ;;  %v4840_v4 = vld [vmem:[%s5430_s8 + $0x8] sm:$0xff]   ;;  %v4842_v7 = vld [vmem:[%s5430_s8 + $0x10] sm:$0xff]   ;;  %s4085_s12 = sshll.u32 %s5443_s11, 2  ;;  %7400 = vst [vmem:[#allocation10_spill] sm:$0xff] %v5633_v51  ;;  %vm472_vm1 = vcmp.lt.s32.totalorder %v5633_v51, 196 }
  0x17   : > { %v619_v3 = vsel %vm593_vm0, %v4838_v1, 0  ;;  %1304 = vrot.lane.b32.xlu0 %v4838_v1, %s5351_s9  ;;  %v622_v6 = vsel %vm593_vm0, %v4840_v4, 0  ;;  %v4843_v8 = vld [vmem:[%s5430_s8 + $0x58] sm:$0xff]   ;;  %s5458_s15 = scalar_lea.vmem %s7362_s1, %s4085_s12  ;;  %v4846_v10 = vld [vmem:[%s5430_s8 + $0x20] sm:$0xff]   ;;  %v625_v12 = vsel %vm593_vm0, %v4842_v7, 0  ;;  %v5481_v16 = vld [vmem:[%s5430_s8 + $0x68] sm:$0xff]  }
  0x18   : > { %4203 = vmatpush3.bf16.xpose.msra.mxu0 %v619_v3  ;;  %v4844_v9 = vld [vmem:[%s5430_s8 + $0x18] sm:$0xff]   ;;  %v5464_v11 = vld [vmem:[%s5458_s15] sm:$0xff]   ;;  %v631_v15 = vsel %vm593_vm0, %v4846_v10, 0  ;;  %7393 = vst [vmem:[#allocation3_spill] sm:$0xff] %v5481_v16  ;;  %v5486_v17 = vld [vmem:[%s5430_s8 + $0x28] sm:$0xff]   ;;  %s5353_s20 = smov 104  }
  0x19   : > { %4759 = vmatprep.subr.msk.bf16.mxu0 %vm593_vm0, %v4839_v2  ;;  %4218 = vmatprep.mubr.msk.bf16.mxu0 %vm593_vm0, %v5464_v11  ;;  %v5471_v13 = vld [vmem:[%s5430_s8 + $0x60] sm:$0xff]   ;;  %v628_v14 = vsel %vm593_vm0, %v4844_v9, 0  ;;  %v634_v18 = vsel %vm593_vm0, %v5486_v17, 0  ;;  %v5491_v19 = vld [vmem:[%s5430_s8 + $0x70] sm:$0xff]   ;;  %v5501_v22 = vld [vmem:[%s5430_s8 + $0x78] sm:$0xff]   ;;  %s4082_s10 = sshll.u32 %s5443_s11, 3 }
  0x1a   : > { %1322 = vrot.lane.b32.xlu1 %v4839_v2, %s5351_s9  ;;  %7392 = vst [vmem:[#allocation2_spill] sm:$0xff] %v5471_v13  ;;  %v5496_v20 = vld [vmem:[%s5430_s8 + $0x30] sm:$0xff]   ;;  %v5506_v23 = vld [vmem:[%s5430_s8 + $0x38] sm:$0xff]   ;;  %v5511_v25 = vld [vmem:[%s5458_s15 + $0x8] sm:$0xff]   ;;  %s7270_s14 = scalar_lea.vmem %s7361_s0, %s4082_s10 }
  0x1b   : > { %1306 = vrot.lane.b32.xlu0 %v4840_v4, %s5351_s9  ;;  %v637_v21 = vsel %vm593_vm0, %v5496_v20, 0  ;;  %v640_v24 = vsel %vm593_vm0, %v5506_v23, 0  ;;  %v5518_v26 = vld [vmem:[%s5458_s15 + $0x10] sm:$0xff]   ;;  %v5525_v27 = vld [vmem:[%s5458_s15 + $0x18] sm:$0xff]   ;;  %v5532_v28 = vld [vmem:[%s5458_s15 + $0x20] sm:$0xff]  }
  0x1c   : > { %7394 = vst [vmem:[#allocation4_spill] sm:$0xff] %v5518_v26  ;;  %7395 = vst [vmem:[#allocation5_spill] sm:$0xff] %v5532_v28  ;;  %v5539_v29 = vld [vmem:[%s5458_s15 + $0x28] sm:$0xff]   ;;  %v5546_v30 = vld [vmem:[%s5458_s15 + $0x30] sm:$0xff]  }
  0x1d   : > { %7396 = vst [vmem:[#allocation6_spill] sm:$0xff] %v5539_v29  ;;  %7397 = vst [vmem:[#allocation7_spill] sm:$0xff] %v5546_v30  ;;  %v5553_v31 = vld [vmem:[%s5458_s15 + $0x38] sm:$0xff]   ;;  %v5569_v32 = vld [vmem:[%s5566_s18 + $0x40] sm:$0xff]  }
  0x1e   : > { %1324 = vrot.lane.b32.xlu1 %v4841_v5, %s5351_s9  ;;  %7398 = vst [vmem:[#allocation8_spill] sm:$0xff] %v5553_v31  ;;  %v5572_v33 = vld [vmem:[%s5566_s18] sm:$0xff]   ;;  %4234 = vmatprep.subr.bf16.mxu1 %v5569_v32  ;;  %v5576_v34 = vld [vmem:[%s5566_s18 + $0x48] sm:$0xff]   ;;  %v5585_v36 = vld [vmem:[%s5566_s18 + $0x50] sm:$0xff]  }
  0x1f   : > { %1308 = vrot.lane.b32.xlu0 %v4842_v7, %s5351_s9  ;;  %4235 = vmatpush3.bf16.msra.mxu1 %v5572_v33  ;;  %v5580_v35 = vld [vmem:[%s5566_s18 + $0x8] sm:$0xff]   ;;  %v5588_v37 = vld [vmem:[%s5566_s18 + $0x10] sm:$0xff]   ;;  %v5591_v38 = vld [vmem:[%s5566_s18 + $0x58] sm:$0xff]  }
  0x20   : > { %4205 = vmatpush3.bf16.xpose.msra.mxu0 %v622_v6  ;;  %4236 = vmatprep.subr.bf16.mxu1 %v5576_v34  ;;  %v5596_v39 = vld [vmem:[%s5566_s18 + $0x18] sm:$0xff]   ;;  %v5601_v40 = vld [vmem:[%s5566_s18 + $0x60] sm:$0xff]   ;;  %v5607_v42 = vld [vmem:[%s5566_s18 + $0x68] sm:$0xff]  }
  0x21   : > { %4760 = vmatprep.subr.msk.bf16.mxu0 %vm593_vm0, %v4841_v5  ;;  %v5604_v41 = vld [vmem:[%s5566_s18 + $0x20] sm:$0xff]   ;;  %v5612_v43 = vld [vmem:[%s5566_s18 + $0x28] sm:$0xff]   ;;  %v5616_v44 = vld [vmem:[%s5566_s18 + $0x70] sm:$0xff]  }
  0x22   : > { %1326 = vrot.lane.b32.xlu1 %v4843_v8, %s5351_s9  ;;  %v5620_v45 = vld [vmem:[%s5566_s18 + $0x30] sm:$0xff]   ;;  %v5624_v46 = vld [vmem:[%s5566_s18 + $0x78] sm:$0xff]  }
  0x23   : > { %1310 = vrot.lane.b32.xlu0 %v4844_v9, %s5351_s9  ;;  %4237 = vmatpush3.bf16.msra.mxu1 %v5580_v35  ;;  %v5628_v47 = vld [vmem:[%s5566_s18 + $0x38] sm:$0xff]  }
  0x24   : > { %4238 = vmatprep.subr.bf16.mxu1 %v5585_v36  ;;  %7399 = vst [vmem:[#allocation9_spill] sm:$0xff] %v5628_v47 }
  0x26   : > { %1312 = vrot.lane.b32.xlu1 %v4846_v10, %s5351_s9 }
  0x27   : > { %4239 = vmatpush3.bf16.msra.mxu1 %v5588_v37 }
  0x28   : > { %4207 = vmatpush3.bf16.xpose.msra.mxu0 %v625_v12  ;;  %4240 = vmatprep.subr.bf16.mxu1 %v5591_v38 }
  0x29   : > { %4761 = vmatprep.subr.msk.bf16.mxu0 %vm593_vm0, %v4843_v8 }
  0x2a   : > { %1328 = vrot.lane.b32.xlu1 %v5471_v13, %s5351_s9 }
  0x2b   : > { %4241 = vmatpush3.bf16.msra.mxu1 %v5596_v39 }
  0x2c   : > { %4242 = vmatprep.subr.bf16.mxu1 %v5601_v40 }
  0x2f   : > { %4243 = vmatpush3.bf16.msra.mxu1 %v5604_v41 }
  0x30   : > { %4209 = vmatpush3.bf16.xpose.msra.mxu0 %v628_v14  ;;  %4244 = vmatprep.subr.bf16.mxu1 %v5607_v42 }
  0x31   : > { %4762 = vmatprep.subr.msk.bf16.mxu0 %vm593_vm0, %v5471_v13 }
  0x33   : > { %4245 = vmatpush3.bf16.msra.mxu1 %v5612_v43 }
  0x34   : > { %4246 = vmatprep.subr.bf16.mxu1 %v5616_v44 }
  0x37   : > { %4247 = vmatpush3.bf16.msra.mxu1 %v5620_v45 }
  0x38   : > { %4211 = vmatpush3.bf16.xpose.msra.mxu0 %v631_v15  ;;  %4248 = vmatprep.subr.bf16.mxu1 %v5624_v46 }
  0x39   : > { %4763 = vmatprep.subr.msk.bf16.mxu0 %vm593_vm0, %v5481_v16 }
  0x3b   : > { %4249 = vmatpush3.bf16.msra.mxu1 %v5628_v47 }
  0x40   : > { %4213 = vmatpush3.bf16.xpose.msra.mxu0 %v634_v18 }
  0x41   : > { %4764 = vmatprep.subr.msk.bf16.mxu0 %vm593_vm0, %v5491_v19 }
  0x48   : > { %4215 = vmatpush3.bf16.xpose.msra.mxu0 %v637_v21 }
  0x49   : > { %4765 = vmatprep.subr.msk.bf16.mxu0 %vm593_vm0, %v5501_v22 }
  0x50   : > { %4217 = vmatpush3.bf16.xpose.msra.mxu0 %v640_v24 }
  0x57   : > { %4219 = vmatmul.mubr.msk.bf16.vlgmr.msra.gmra.mrb[0].mxu0 %vm593_vm0, %v5464_v11 }
  0x58   : > { %4220 = vmatprep.mubr.msk.bf16.mxu0 %vm593_vm0, %v5511_v25 }
  0x5f   : > { %4221 = vmatmul.mubr.msk.bf16.gmra.mrb[4].mxu0 %vm593_vm0, %v5511_v25 }
  0x60   : > { %4222 = vmatprep.mubr.msk.bf16.mxu0 %vm593_vm0, %v5518_v26 }
  0x67   : > { %4223 = vmatmul.mubr.msk.bf16.gmra.mrb[8].mxu0 %vm593_vm0, %v5518_v26 }
  0x68   : > { %4224 = vmatprep.mubr.msk.bf16.mxu0 %vm593_vm0, %v5525_v27 }
  0x6f   : > { %4225 = vmatmul.mubr.msk.bf16.gmra.mrb[12].mxu0 %vm593_vm0, %v5525_v27 }
  0x70   : > { %4226 = vmatprep.mubr.msk.bf16.mxu0 %vm593_vm0, %v5532_v28 }
  0x77   : > { %4227 = vmatmul.mubr.msk.bf16.gmra.mrb[16].mxu0 %vm593_vm0, %v5532_v28 }
  0x78   : > { %4228 = vmatprep.mubr.msk.bf16.mxu0 %vm593_vm0, %v5539_v29 }
  0x7f   : > { %4229 = vmatmul.mubr.msk.bf16.gmra.mrb[20].mxu0 %vm593_vm0, %v5539_v29 }
  0x80   : > { %4230 = vmatprep.mubr.msk.bf16.mxu0 %vm593_vm0, %v5546_v30 }
  0x87   : > { %4231 = vmatmul.mubr.msk.bf16.gmra.mrb[24].mxu0 %vm593_vm0, %v5546_v30 }
  0x88   : > { %4232 = vmatprep.mubr.msk.bf16.mxu0 %vm593_vm0, %v5553_v31  ;;  %v1321_v48 = vpop.permute.xlu1 %1320 }
  0x89   : > { %4766 = vmatprep.subr.msk.bf16.mxu1 %vm593_vm0, %v1321_v48 }
  0x8f   : > { %4233 = vmatmul.mubr.msk.bf16.gmra.mrb[28].mxu0 %vm593_vm0, %v5553_v31 }
 0x12a   : > { %v700_v52 = vpop.f32.mrb[0].mxu0 }
 0x12b   : > { %v702_v53 = vpop.f32.mrb[1].mxu0  ;;  %v5636_v56 = vmul.f32 0.35355338, %v700_v52 }
 0x12c   : > { %v780_v54 = vmul.f32 0.35355338, %v702_v53  ;;  %v704_v55 = vpop.f32.mrb[2].mxu0 }
 0x12d   : > { %v706_v57 = vpop.f32.mrb[3].mxu0  ;;  %v5648_v62 = vmul.f32 0.35355338, %v704_v55 }
 0x12e   : > { %v782_v58 = vmul.f32 0.35355338, %v706_v57  ;;  %v5640_v59 = vsel %vm472_vm1, %v780_v54, -1e+30 }
 0x12f   : > { %v847_v60 = vmax.f32 %v5636_v56, %v5640_v59 }
 0x130   : > { %v5646_v61 = vsel %vm472_vm1, %v782_v58, -1e+30 }
 0x131   : > { %848 = vmax.xlane.f32.xlu0 %v847_v60  ;;  %v850_v1 = vmax.f32 %v5648_v62, %v5646_v61 }
 0x132   : > { %v710_v63 = vpop.f32.mrb[4].mxu0 }
 0x133   : > { %v712_v0 = vpop.f32.mrb[5].mxu0  ;;  %v5652_v4 = vmul.f32 0.35355338, %v710_v63 }
 0x134   : > { %v784_v2 = vmul.f32 0.35355338, %v712_v0  ;;  %v714_v3 = vpop.f32.mrb[6].mxu0 }
 0x135   : > { %851 = vmax.xlane.f32.xlu0 %v850_v1  ;;  %v716_v5 = vpop.f32.mrb[7].mxu0  ;;  %v5664_v10 = vmul.f32 0.35355338, %v714_v3 }
 0x136   : > { %v786_v6 = vmul.f32 0.35355338, %v716_v5  ;;  %v5656_v7 = vsel %vm472_vm1, %v784_v2, -1e+30 }
 0x137   : > { %v853_v8 = vmax.f32 %v5652_v4, %v5656_v7 }
 0x138   : > { %v5662_v9 = vsel %vm472_vm1, %v786_v6, -1e+30 }
 0x139   : > { %854 = vmax.xlane.f32.xlu1 %v853_v8  ;;  %v856_v15 = vmax.f32 %v5664_v10, %v5662_v9 }
 0x13a   : > { %v720_v12 = vpop.f32.mrb[8].mxu0 }
 0x13b   : > { %v722_v14 = vpop.f32.mrb[9].mxu0  ;;  %v5668_v24 = vmul.f32 0.35355338, %v720_v12 }
 0x13c   : > { %v788_v18 = vmul.f32 0.35355338, %v722_v14  ;;  %v724_v21 = vpop.f32.mrb[10].mxu0 }
 0x13d   : > { %857 = vmax.xlane.f32.xlu1 %v856_v15  ;;  %v726_v48 = vpop.f32.mrb[11].mxu0  ;;  %v5674_v52 = vmul.f32 0.35355338, %v724_v21 }
 0x13e   : > { %v790_v49 = vmul.f32 0.35355338, %v726_v48  ;;  %v5672_v50 = vsel %vm472_vm1, %v788_v18, -1e+30 }
 0x13f   : > { %v859_v53 = vmax.f32 %v5668_v24, %v5672_v50 }
 0x140   : > { %v5680_v54 = vsel %vm472_vm1, %v790_v49, -1e+30 }
 0x141   : > { %860 = vmax.xlane.f32.xlu0 %v859_v53  ;;  %v862_v55 = vmax.f32 %v5674_v52, %v5680_v54 }
 0x142   : > { %v730_v57 = vpop.f32.mrb[12].mxu0 }
 0x143   : > { %863 = vmax.xlane.f32.xlu1 %v862_v55  ;;  %v732_v58 = vpop.f32.mrb[13].mxu0  ;;  %v5684_v0 = vmul.f32 0.35355338, %v730_v57 }
 0x144   : > { %v792_v60 = vmul.f32 0.35355338, %v732_v58  ;;  %v734_v63 = vpop.f32.mrb[14].mxu0 }
 0x145   : > { %v736_v1 = vpop.f32.mrb[15].mxu0  ;;  %v5690_v5 = vmul.f32 0.35355338, %v734_v63 }
 0x146   : > { %v794_v2 = vmul.f32 0.35355338, %v736_v1  ;;  %v5688_v3 = vsel %vm472_vm1, %v792_v60, -1e+30 }
 0x147   : > { %v865_v6 = vmax.f32 %v5684_v0, %v5688_v3 }
 0x148   : > { %v5696_v8 = vsel %vm472_vm1, %v794_v2, -1e+30 }
 0x149   : > { %866 = vmax.xlane.f32.xlu0 %v865_v6  ;;  %v868_v12 = vmax.f32 %v5690_v5, %v5696_v8 }
 0x14a   : > { %v740_v14 = vpop.f32.mrb[16].mxu0 }
 0x14b   : > { %869 = vmax.xlane.f32.xlu1 %v868_v12  ;;  %v742_v15 = vpop.f32.mrb[17].mxu0  ;;  %v5700_v48 = vmul.f32 0.35355338, %v740_v14 }
 0x14c   : > { %v796_v18 = vmul.f32 0.35355338, %v742_v15  ;;  %v744_v21 = vpop.f32.mrb[18].mxu0 }
 0x14d   : > { %v746_v49 = vpop.f32.mrb[19].mxu0  ;;  %v5706_v57 = vmul.f32 0.35355338, %v744_v21 }
 0x14e   : > { %v798_v53 = vmul.f32 0.35355338, %v746_v49  ;;  %v5704_v55 = vsel %vm472_vm1, %v796_v18, -1e+30 }
 0x14f   : > { %7401 = vst [vmem:[#allocation11_spill] sm:$0xff] %v5706_v57  ;;  %v871_v58 = vmax.f32 %v5700_v48, %v5704_v55 }
 0x150   : > { %v5712_v60 = vsel %vm472_vm1, %v798_v53, -1e+30 }
 0x151   : > { %7402 = vst [vmem:[#allocation12_spill] sm:$0xff] %v5712_v60  ;;  %872 = vmax.xlane.f32.xlu0 %v871_v58  ;;  %v874_v63 = vmax.f32 %v5706_v57, %v5712_v60 }
 0x152   : > { %v750_v1 = vpop.f32.mrb[20].mxu0 }
 0x153   : > { %875 = vmax.xlane.f32.xlu1 %v874_v63  ;;  %v752_v2 = vpop.f32.mrb[21].mxu0  ;;  %v5716_v14 = vmul.f32 0.35355338, %v750_v1 }
 0x154   : > { %v800_v6 = vmul.f32 0.35355338, %v752_v2  ;;  %v754_v12 = vpop.f32.mrb[22].mxu0 }
 0x155   : > { %7403 = vst [vmem:[#allocation13_spill] sm:$0xff] %v5716_v14  ;;  %v756_v15 = vpop.f32.mrb[23].mxu0  ;;  %v5722_v49 = vmul.f32 0.35355338, %v754_v12 }
 0x156   : > { %v802_v18 = vmul.f32 0.35355338, %v756_v15  ;;  %v5720_v21 = vsel %vm472_vm1, %v800_v6, -1e+30 }
 0x157   : > { %7404 = vst [vmem:[#allocation14_spill] sm:$0xff] %v5720_v21  ;;  %7405 = vst [vmem:[#allocation15_spill] sm:$0xff] %v5722_v49  ;;  %v877_v53 = vmax.f32 %v5716_v14, %v5720_v21 }
 0x158   : > { %v5728_v58 = vsel %vm472_vm1, %v802_v18, -1e+30 }
 0x159   : > { %7406 = vst [vmem:[#allocation16_spill] sm:$0xff] %v5728_v58  ;;  %878 = vmax.xlane.f32.xlu1 %v877_v53  ;;  %v880_v63 = vmax.f32 %v5722_v49, %v5728_v58 }
 0x15a   : > { %v760_v1 = vpop.f32.mrb[24].mxu0 }
 0x15b   : > { %881 = vmax.xlane.f32.xlu0 %v880_v63  ;;  %v762_v2 = vpop.f32.mrb[25].mxu0  ;;  %v5736_v14 = vmul.f32 0.35355338, %v760_v1 }
 0x15c   : > { %v764_v15 = vpop.f32.mrb[26].mxu0  ;;  %v804_v18 = vmul.f32 0.35355338, %v762_v2 }
 0x15d   : > { %v766_v13 = vpop.f32.mrb[27].mxu0  ;;  %v5742_v49 = vmul.f32 0.35355338, %v764_v15 }
 0x15e   : > { %v806_v53 = vmul.f32 0.35355338, %v766_v13  ;;  %v5740_v63 = vsel %vm472_vm1, %v804_v18, -1e+30 }
 0x162   : > { %v770_v6 = vpop.f32.mrb[28].mxu0 }
 0x163   : > { %v772_v47 = vpop.f32.mrb[29].mxu0  ;;  %v5744_v57 = vmul.f32 0.35355338, %v770_v6  ;;  %v5774_v6 = vpop.permute.xlu1 %1322 }
 0x164   : > { %v774_v12 = vpop.f32.mrb[30].mxu0  ;;  %v808_v21 = vmul.f32 0.35355338, %v772_v47  ;;  %v883_v47 = vmax.f32 %v5736_v14, %v5740_v63 }
 0x165   : > { %v776_v60 = vpop.f32.mrb[31].mxu0  ;;  %v5754_v13 = vmul.f32 0.35355338, %v774_v12 }
 0x166   : > { %v810_v58 = vmul.f32 0.35355338, %v776_v60  ;;  %v5752_v2 = vsel %vm472_vm1, %v808_v21, -1e+30 }
 0x167   : > { %v889_v15 = vmax.f32 %v5744_v57, %v5752_v2  ;;  %v5786_v18 = vpop.permute.xlu1 %1324 }
 0x168   : > { %v5760_v60 = vsel %vm472_vm1, %v810_v58, -1e+30  ;;  %v5772_v58 = vpop.permute.xlu0 %1304 }
 0x169   : > { %v892_v21 = vmax.f32 %v5754_v13, %v5760_v60 }
 0x16a   : > { %1330 = vrot.lane.b32.xlu1 %v5481_v16, %s5351_s9  ;;  %v5748_v16 = vsel %vm472_vm1, %v806_v53, -1e+30 }
 0x16b   : > { %v886_v1 = vmax.f32 %v5742_v49, %v5748_v16 }
 0x16c   : > { %v5780_v12 = vpop.permute.xlu0 %1306 }
 0x170   : > { %v5792_v53 = vpop.permute.xlu0 %1308 }
 0x171   : > { %1314 = vrot.lane.b32.xlu0 %v5486_v17, %s5351_s9 }
 0x18e   : > { %884 = vmax.xlane.f32.xlu1 %v883_v47  ;;  %v5794_v47 = vpop.permute.xlu1 %1326 }
 0x190   : > { %887 = vmax.xlane.f32.xlu0 %v886_v1  ;;  %v5800_v1 = vpop.permute.xlu0 %1310 }
 0x192   : > { %890 = vmax.xlane.f32.xlu1 %v889_v15 }
 0x194   : > { %893 = vmax.xlane.f32.xlu0 %v892_v21 }
 0x1a3   : > { %1332 = vrot.lane.b32.xlu1 %v5491_v19, %s5351_s9 }
 0x1a7   : > { %1334 = vrot.lane.b32.xlu1 %v5501_v22, %s5351_s9 }
 0x1aa   : > { %1316 = vrot.lane.b32.xlu0 %v5496_v20, %s5351_s9 }
 0x1ab   : > { %1290 = vrot.lane.b32.xlu1 %v5511_v25, %s5351_s9 }
 0x1ae   : > { %1318 = vrot.lane.b32.xlu0 %v5506_v23, %s5351_s9 }
 0x1af   : > { %1294 = vrot.lane.b32.xlu1 %v5525_v27, %s5351_s9 }
 0x1b2   : > { %1288 = vrot.lane.b32.xlu0 %v5464_v11, %s5351_s9  ;;  %v5806_v11 = vpop.permute.xlu1 %1312 }
 0x1b3   : > { %1298 = vrot.lane.b32.xlu1 %v5539_v29, %s5351_s9 }
 0x1b6   : > { %1292 = vrot.lane.b32.xlu0 %v5518_v26, %s5351_s9  ;;  %v5814_v26 = vpop.permute.xlu1 %1328 }
 0x1b7   : > { %1302 = vrot.lane.b32.xlu1 %v5553_v31, %s5351_s9 }
 0x1ba   : > { %1296 = vrot.lane.b32.xlu0 %v5532_v28, %s5351_s9 }
 0x1bb   : > { %1793 = vrot.lane.b32.xlu1 %v5572_v33, %s5351_s9 }
 0x1be   : > { %v849_v15 = vpop.xlane.xlu0 %848  ;;  %1300 = vrot.lane.b32.xlu0 %v5546_v30, %s5351_s9 }
 0x1bf   : > { %v895_v21 = vsub.f32 %v5636_v56, %v849_v15  ;;  %v896_v51 = vsub.f32 %v5640_v59, %v849_v15  ;;  %1813 = vrot.lane.b32.xlu1 %v5585_v36, %s5351_s9 }
 0x1c1   : > { %v927_v31 = vmul.f32 1.442695, %v895_v21  ;;  %v929_v29 = vmul.f32 1.442695, %v896_v51 }
 0x1c2   : > { %v852_v28 = vpop.xlane.xlu0 %851  ;;  %1809 = vrot.lane.b32.xlu0 %v5569_v32, %s5351_s9 }
 0x1c3   : > { %4877 = vpow2.f32 %v927_v31  ;;  %v897_v33 = vsub.f32 %v5648_v62, %v852_v28  ;;  %v898_v30 = vsub.f32 %v5646_v61, %v852_v28  ;;  %1797 = vrot.lane.b32.xlu1 %v5588_v37, %s5351_s9 }
 0x1c4   : > { %4879 = vpow2.f32 %v929_v29 }
 0x1c5   : > { %v931_v56 = vmul.f32 1.442695, %v897_v33  ;;  %v933_v59 = vmul.f32 1.442695, %v898_v30 }
 0x1c6   : > { %v855_v36 = vpop.xlane.xlu1 %854  ;;  %1811 = vrot.lane.b32.xlu0 %v5576_v34, %s5351_s9 }
 0x1c7   : > { %4881 = vpow2.f32 %v931_v56  ;;  %v899_v51 = vsub.f32 %v5652_v4, %v855_v36  ;;  %v900_v32 = vsub.f32 %v5656_v7, %v855_v36  ;;  %1817 = vrot.lane.b32.xlu1 %v5601_v40, %s5351_s9 }
 0x1c8   : > { %4883 = vpow2.f32 %v933_v59 }
 0x1c9   : > { %v935_v28 = vmul.f32 1.442695, %v899_v51  ;;  %v937_v31 = vmul.f32 1.442695, %v900_v32 }
 0x1ca   : > { %v858_v61 = vpop.xlane.xlu1 %857  ;;  %1795 = vrot.lane.b32.xlu0 %v5580_v35, %s5351_s9 }
 0x1cb   : > { %4885 = vpow2.f32 %v935_v28  ;;  %v901_v29 = vsub.f32 %v5664_v10, %v858_v61  ;;  %v902_v30 = vsub.f32 %v5662_v9, %v858_v61  ;;  %1801 = vrot.lane.b32.xlu1 %v5604_v41, %s5351_s9 }
 0x1cc   : > { %4887 = vpow2.f32 %v937_v31 }
 0x1cd   : > { %v4878_v34 = vpop.eup %4877  ;;  %v939_v37 = vmul.f32 1.442695, %v901_v29  ;;  %v941_v62 = vmul.f32 1.442695, %v902_v30 }
 0x1ce   : > { %v4880_v40 = vpop.eup %4879  ;;  %v861_v4 = vpop.xlane.xlu0 %860  ;;  %1815 = vrot.lane.b32.xlu0 %v5591_v38, %s5351_s9 }
 0x1cf   : > { %4889 = vpow2.f32 %v939_v37  ;;  %v903_v35 = vsub.f32 %v5668_v24, %v861_v4  ;;  %v904_v7 = vsub.f32 %v5672_v50, %v861_v4  ;;  %1821 = vrot.lane.b32.xlu1 %v5616_v44, %s5351_s9  ;;  %v5840_v9 = vadd.f32 %v4880_v40, %v4878_v34 }
 0x1d0   : > { %4891 = vpow2.f32 %v941_v62  ;;  %v864_v41 = vpop.xlane.xlu1 %863 }
 0x1d1   : > { %v4882_v10 = vpop.eup %4881  ;;  %v943_v15 = vmul.f32 1.442695, %v903_v35  ;;  %v945_v21 = vmul.f32 1.442695, %v904_v7  ;;  %v905_v33 = vsub.f32 %v5674_v52, %v864_v41  ;;  %v906_v56 = vsub.f32 %v5680_v54, %v864_v41 }
 0x1d2   : > { %v4884_v38 = vpop.eup %4883  ;;  %v1039_v59 = vpack.c.bf16 %v4882_v10, %v4878_v34  ;;  %1799 = vrot.lane.b32.xlu0 %v5596_v39, %s5351_s9  ;;  %v1361_v54 = vsel %vm593_vm0, %v5772_v58, 0 }
 0x1d3   : > { %4893 = vpow2.f32 %v943_v15  ;;  %v947_v24 = vmul.f32 1.442695, %v905_v33  ;;  %v949_v50 = vmul.f32 1.442695, %v906_v56  ;;  %v1040_v44 = vpack.c.bf16 %v4884_v38, %v4880_v40  ;;  %1805 = vrot.lane.b32.xlu1 %v5620_v45, %s5351_s9  ;;  %v7407_v33 = vld [vmem:[#allocation11_spill] sm:$0xff] }
 0x1d4   : > { %4895 = vpow2.f32 %v945_v21  ;;  %v5848_v36 = vadd.f32 %v4884_v38, %v4882_v10  ;;  %v7408_v38 = vld [vmem:[#allocation12_spill] sm:$0xff] }
 0x1d5   : > { %v4886_v51 = vpop.eup %4885  ;;  %4897 = vpow2.f32 %v947_v24  ;;  %1183 = vmatprep.mubr.bf16.mxu1 %v1040_v44  ;;  %v7409_v24 = vld [vmem:[#allocation9_spill] sm:$0xff] }
 0x1d6   : > { %v4888_v52 = vpop.eup %4887  ;;  %4899 = vpow2.f32 %v949_v50  ;;  %1184 = vmatmul.mubr.bf16.vlgmr.msra.gmra.mrb[0].mxu1 %v1039_v59  ;;  %v867_v39 = vpop.xlane.xlu0 %866  ;;  %1819 = vrot.lane.b32.xlu0 %v5607_v42, %s5351_s9 }
 0x1d7   : > { %4299 = vmatpush3.bf16.xpose.msra.mxu1 %v1361_v54  ;;  %v907_v32 = vsub.f32 %v5684_v0, %v867_v39  ;;  %v908_v45 = vsub.f32 %v5688_v3, %v867_v39  ;;  %v5856_v28 = vadd.f32 %v4888_v52, %v4886_v51 }
 0x1d8   : > { %4767 = vmatprep.subr.msk.bf16.mxu1 %vm593_vm0, %v5774_v6  ;;  %v870_v31 = vpop.xlane.xlu1 %869 }
 0x1d9   : > { %v4890_v61 = vpop.eup %4889  ;;  %v951_v29 = vmul.f32 1.442695, %v907_v32  ;;  %v953_v58 = vmul.f32 1.442695, %v908_v45  ;;  %v909_v30 = vsub.f32 %v5690_v5, %v870_v31  ;;  %v910_v34 = vsub.f32 %v5696_v8, %v870_v31  ;;  %v7410_v32 = vld [vmem:[#allocation13_spill] sm:$0xff]  ;;  %v7411_v31 = vld [vmem:[#allocation14_spill] sm:$0xff] }
 0x1da   : > { %v4892_v37 = vpop.eup %4891  ;;  %v1041_v42 = vpack.c.bf16 %v4890_v61, %v4886_v51  ;;  %1803 = vrot.lane.b32.xlu0 %v5612_v43, %s5351_s9  ;;  %v1364_v5 = vsel %vm593_vm0, %v5780_v12, 0 }
 0x1db   : > { %4901 = vpow2.f32 %v951_v29  ;;  %v955_v0 = vmul.f32 1.442695, %v909_v30  ;;  %v957_v3 = vmul.f32 1.442695, %v910_v34  ;;  %v1042_v62 = vpack.c.bf16 %v4892_v37, %v4888_v52 }
 0x1dc   : > { %4903 = vpow2.f32 %v953_v58  ;;  %v5864_v40 = vadd.f32 %v4892_v37, %v4890_v61  ;;  %v1367_v52 = vsel %vm593_vm0, %v5792_v53, 0 }
 0x1dd   : > { %v4894_v6 = vpop.eup %4893  ;;  %4905 = vpow2.f32 %v955_v0  ;;  %1191 = vmatprep.mubr.bf16.mxu1 %v1042_v62  ;;  %v7413_v0 = vld [vmem:[#allocation16_spill] sm:$0xff] }
 0x1de   : > { %v4896_v4 = vpop.eup %4895  ;;  %4907 = vpow2.f32 %v957_v3  ;;  %1192 = vmatmul.mubr.bf16.gmra.mrb[4].mxu1 %v1041_v42  ;;  %v873_v8 = vpop.xlane.xlu0 %872  ;;  %1823 = vrot.lane.b32.xlu0 %v5624_v46, %s5351_s9  ;;  %v7412_v42 = vld [vmem:[#allocation15_spill] sm:$0xff] }
 0x1df   : > { %v4898_v43 = vpop.eup %4897  ;;  %4301 = vmatpush3.bf16.xpose.msra.mxu1 %v1364_v5  ;;  %v911_v35 = vsub.f32 %v5700_v48, %v873_v8  ;;  %v912_v7 = vsub.f32 %v5704_v55, %v873_v8  ;;  %v5872_v41 = vadd.f32 %v4896_v4, %v4894_v6 }
 0x1e0   : > { %v4900_v10 = vpop.eup %4899  ;;  %4768 = vmatprep.subr.msk.bf16.mxu1 %vm593_vm0, %v5786_v18  ;;  %v876_v15 = vpop.xlane.xlu1 %875  ;;  %v1043_v44 = vpack.c.bf16 %v4898_v43, %v4894_v6 }
 0x1e1   : > { %v959_v12 = vmul.f32 1.442695, %v911_v35  ;;  %v961_v21 = vmul.f32 1.442695, %v912_v7  ;;  %v913_v56 = vsub.f32 %v7407_v33, %v876_v15  ;;  %v914_v59 = vsub.f32 %v7408_v38, %v876_v15 }
 0x1e2   : > { %v1044_v46 = vpack.c.bf16 %v4900_v10, %v4896_v4  ;;  %1807 = vrot.lane.b32.xlu0 %v7409_v24, %s5351_s9  ;;  %v5880_v48 = vadd.f32 %v4900_v10, %v4898_v43 }
 0x1e3   : > { %4909 = vpow2.f32 %v959_v12  ;;  %v963_v55 = vmul.f32 1.442695, %v913_v56  ;;  %v965_v50 = vmul.f32 1.442695, %v914_v59 }
 0x1e4   : > { %4911 = vpow2.f32 %v961_v21  ;;  %1199 = vmatprep.mubr.bf16.mxu1 %v1044_v46 }
 0x1e5   : > { %v4902_v18 = vpop.eup %4901  ;;  %4913 = vpow2.f32 %v963_v55 }
 0x1e6   : > { %v4904_v51 = vpop.eup %4903  ;;  %4915 = vpow2.f32 %v965_v50  ;;  %1200 = vmatmul.mubr.bf16.gmra.mrb[8].mxu1 %v1043_v44  ;;  %v879_v54 = vpop.xlane.xlu1 %878 }
 0x1e7   : > { %v4906_v39 = vpop.eup %4905  ;;  %4303 = vmatpush3.bf16.xpose.msra.mxu1 %v1367_v52  ;;  %v915_v45 = vsub.f32 %v7410_v32, %v879_v54  ;;  %v916_v61 = vsub.f32 %v7411_v31, %v879_v54  ;;  %v5886_v29 = vadd.f32 %v4904_v51, %v4902_v18 }
 0x1e8   : > { %v4908_v58 = vpop.eup %4907  ;;  %4769 = vmatprep.subr.msk.bf16.mxu1 %vm593_vm0, %v5794_v47  ;;  %v882_v30 = vpop.xlane.xlu0 %881  ;;  %v1045_v8 = vpack.c.bf16 %v4906_v39, %v4902_v18  ;;  %v1370_v47 = vsel %vm593_vm0, %v5800_v1, 0  ;;  %v1373_v1 = vsel %vm593_vm0, %v5806_v11, 0 }
 0x1e9   : > { %v967_v34 = vmul.f32 1.442695, %v915_v45  ;;  %v969_v37 = vmul.f32 1.442695, %v916_v61  ;;  %v917_v53 = vsub.f32 %v7412_v42, %v882_v30  ;;  %v918_v3 = vsub.f32 %v7413_v0, %v882_v30 }
 0x1ea   : > { %v1046_v62 = vpack.c.bf16 %v4908_v58, %v4904_v51  ;;  %v5892_v6 = vadd.f32 %v4908_v58, %v4906_v39  ;;  %v1331_v46 = vpop.permute.xlu1 %1330 }
 0x1eb   : > { %4917 = vpow2.f32 %v967_v34  ;;  %v971_v4 = vmul.f32 1.442695, %v917_v53  ;;  %v973_v5 = vmul.f32 1.442695, %v918_v3 }
 0x1ec   : > { %4919 = vpow2.f32 %v969_v37  ;;  %1207 = vmatprep.mubr.bf16.mxu1 %v1046_v62  ;;  %v1315_v44 = vpop.permute.xlu0 %1314 }
 0x1ed   : > { %v4910_v43 = vpop.eup %4909  ;;  %4921 = vpow2.f32 %v971_v4  ;;  %v1376_v51 = vsel %vm593_vm0, %v1315_v44, 0  ;;  %v5264_v44 = vld [vmem:[%s5430_s8 + $0x8] sm:$0xff]  }
 0x1ee   : > { %v4912_v35 = vpop.eup %4911  ;;  %4923 = vpow2.f32 %v973_v5  ;;  %1208 = vmatmul.mubr.bf16.gmra.mrb[12].mxu1 %v1045_v8 }
 0x1ef   : > { %v4914_v7 = vpop.eup %4913  ;;  %4305 = vmatpush3.bf16.xpose.msra.mxu1 %v1370_v47  ;;  %v5896_v10 = vadd.f32 %v4912_v35, %v4910_v43  ;;  %v5928_v47 = vld [vmem:[%s5430_s8 + $0x40] sm:$0xff]  }
 0x1f0   : > { %v4916_v15 = vpop.eup %4915  ;;  %4770 = vmatprep.subr.msk.bf16.mxu1 %vm593_vm0, %v5814_v26  ;;  %v1047_v33 = vpack.c.bf16 %v4914_v7, %v4910_v43  ;;  %2259 = vrot.lane.b32.xlu0 %v5928_v47, %s5352_s19 }
 0x1f1   : > { %v1048_v12 = vpack.c.bf16 %v4916_v15, %v4912_v35  ;;  %v5900_v21 = vadd.f32 %v4916_v15, %v4914_v7  ;;  %v5923_v35 = vld [vmem:[%s5430_s8] sm:$0xff]  }
 0x1f2   : > { %2243 = vrot.lane.b32.xlu1 %v5923_v35, %s5352_s19 }
 0x1f3   : > { %7414 = vst [vmem:[#allocation11_spill] sm:$0xff] %v5900_v21  ;;  %1215 = vmatprep.mubr.bf16.mxu1 %v1048_v12 }
 0x1f4   : > { %2245 = vrot.lane.b32.xlu0 %v5264_v44, %s5352_s19 }
 0x1f5   : > { %v4918_v56 = vpop.eup %4917 }
 0x1f6   : > { %v4920_v38 = vpop.eup %4919  ;;  %1216 = vmatmul.mubr.bf16.gmra.mrb[16].mxu1 %v1047_v33 }
 0x1f7   : > { %v4922_v59 = vpop.eup %4921  ;;  %4307 = vmatpush3.bf16.xpose.msra.mxu1 %v1373_v1  ;;  %v5904_v24 = vadd.f32 %v4920_v38, %v4918_v56 }
 0x1f8   : > { %v4924_v55 = vpop.eup %4923  ;;  %4771 = vmatprep.subr.msk.bf16.mxu1 %vm593_vm0, %v1331_v46  ;;  %v1049_v18 = vpack.c.bf16 %v4922_v59, %v4918_v56  ;;  %v5263_v46 = vld [vmem:[%s5430_s8 + $0x48] sm:$0xff]  }
 0x1f9   : > { %7415 = vst [vmem:[#allocation12_spill] sm:$0xff] %v5904_v24  ;;  %v1050_v26 = vpack.c.bf16 %v4924_v55, %v4920_v38  ;;  %v5907_v50 = vadd.f32 %v4924_v55, %v4922_v59  ;;  %2261 = vrot.lane.b32.xlu1 %v5263_v46, %s5352_s19 }
 0x1fb   : > { %7416 = vst [vmem:[#allocation9_spill] sm:$0xff] %v5907_v50  ;;  %1223 = vmatprep.mubr.bf16.mxu1 %v1050_v26 }
 0x1fe   : > { %1224 = vmatmul.mubr.bf16.gmra.mrb[20].mxu1 %v1049_v18 }
 0x1ff   : > { %4309 = vmatpush3.bf16.xpose.msra.mxu1 %v1376_v51 }
 0x21b   : > { %v885_v11 = vpop.xlane.xlu1 %884 }
 0x21c   : > { %v919_v52 = vsub.f32 %v5736_v14, %v885_v11  ;;  %v920_v54 = vsub.f32 %v5740_v63, %v885_v11  ;;  %v5265_v11 = vld [vmem:[%s5430_s8 + $0x50] sm:$0xff]  }
 0x21d   : > { %v888_v39 = vpop.xlane.xlu0 %887  ;;  %2263 = vrot.lane.b32.xlu1 %v5265_v11, %s5352_s19 }
 0x21e   : > { %v975_v32 = vmul.f32 1.442695, %v919_v52  ;;  %v977_v45 = vmul.f32 1.442695, %v920_v54  ;;  %v921_v31 = vsub.f32 %v5742_v49, %v888_v39  ;;  %v922_v61 = vsub.f32 %v5748_v16, %v888_v39  ;;  %v5266_v52 = vld [vmem:[%s5430_s8 + $0x10] sm:$0xff]  }
 0x21f   : > { %v891_v58 = vpop.xlane.xlu1 %890  ;;  %2247 = vrot.lane.b32.xlu0 %v5266_v52, %s5352_s19 }
 0x220   : > { %4925 = vpow2.f32 %v975_v32  ;;  %v979_v30 = vmul.f32 1.442695, %v921_v31  ;;  %v981_v34 = vmul.f32 1.442695, %v922_v61  ;;  %v923_v37 = vsub.f32 %v5744_v57, %v891_v58  ;;  %v5267_v32 = vld [vmem:[%s5430_s8 + $0x58] sm:$0xff]   ;;  %v7421_v31 = vld [vmem:[#allocation2_spill] sm:$0xff] }
 0x221   : > { %4927 = vpow2.f32 %v977_v45  ;;  %v924_v42 = vsub.f32 %v5752_v2, %v891_v58  ;;  %v894_v53 = vpop.xlane.xlu0 %893  ;;  %2265 = vrot.lane.b32.xlu1 %v5267_v32, %s5352_s19  ;;  %v5268_v45 = vld [vmem:[%s5430_s8 + $0x18] sm:$0xff]   ;;  %v5269_v61 = vld [vmem:[%s5430_s8 + $0x20] sm:$0xff]  }
 0x222   : > { %4929 = vpow2.f32 %v979_v30  ;;  %v983_v14 = vmul.f32 1.442695, %v923_v37  ;;  %v925_v63 = vsub.f32 %v5754_v13, %v894_v53  ;;  %v926_v0 = vsub.f32 %v5760_v60, %v894_v53  ;;  %v7422_v30 = vld [vmem:[#allocation3_spill] sm:$0xff]  ;;  %v7426_v37 = vld [vmem:[#allocation8_spill] sm:$0xff] }
 0x223   : > { %4931 = vpow2.f32 %v981_v34  ;;  %v985_v49 = vmul.f32 1.442695, %v924_v42  ;;  %v1333_v3 = vpop.permute.xlu1 %1332  ;;  %2249 = vrot.lane.b32.xlu0 %v5268_v45, %s5352_s19 }
 0x224   : > { %4933 = vpow2.f32 %v983_v14  ;;  %v987_v16 = vmul.f32 1.442695, %v925_v63  ;;  %v989_v62 = vmul.f32 1.442695, %v926_v0  ;;  %4772 = vmatprep.subr.msk.bf16.mxu1 %vm593_vm0, %v1333_v3  ;;  %v5271_v14 = vld [vmem:[%s5430_s8 + $0x60] sm:$0xff]   ;;  %v5272_v0 = vld [vmem:[%s5430_s8 + $0x68] sm:$0xff]  }
 0x225   : > { %4935 = vpow2.f32 %v985_v49  ;;  %v1317_v57 = vpop.permute.xlu0 %1316  ;;  %2267 = vrot.lane.b32.xlu1 %v7421_v31, %s5352_s19  ;;  %v5273_v49 = vld [vmem:[%s5430_s8 + $0x28] sm:$0xff]   ;;  %v5274_v3 = vld [vmem:[%s5430_s8 + $0x70] sm:$0xff]  }
 0x226   : > { %4937 = vpow2.f32 %v987_v16  ;;  %v1379_v2 = vsel %vm593_vm0, %v1317_v57, 0  ;;  %v5275_v16 = vld [vmem:[%s5430_s8 + $0x30] sm:$0xff]   ;;  %v5277_v57 = vld [vmem:[%s5430_s8 + $0x38] sm:$0xff]  }
 0x227   : > { %4939 = vpow2.f32 %v989_v62  ;;  %4311 = vmatpush3.bf16.xpose.msra.mxu1 %v1379_v2  ;;  %v1335_v13 = vpop.permute.xlu1 %1334  ;;  %2251 = vrot.lane.b32.xlu0 %v5269_v61, %s5352_s19  ;;  %v5276_v62 = vld [vmem:[%s5430_s8 + $0x78] sm:$0xff]  }
 0x228   : > { %4773 = vmatprep.subr.msk.bf16.mxu1 %vm593_vm0, %v1335_v13 }
 0x229   : > { %v1319_v60 = vpop.permute.xlu0 %1318  ;;  %2269 = vrot.lane.b32.xlu1 %v7422_v30, %s5352_s19 }
 0x22a   : > { %v4926_v4 = vpop.eup %4925  ;;  %v1382_v43 = vsel %vm593_vm0, %v1319_v60, 0 }
 0x22b   : > { %v4928_v5 = vpop.eup %4927  ;;  %v1291_v58 = vpop.permute.xlu1 %1290  ;;  %2253 = vrot.lane.b32.xlu0 %v5486_v17, %s5352_s19  ;;  %v5976_v17 = vld [vmem:[%s5458_s15] sm:$0xff]  }
 0x22c   : > { %v4930_v8 = vpop.eup %4929  ;;  %v5932_v7 = vadd.f32 %v4928_v5, %v4926_v4 }
 0x22d   : > { %v4932_v15 = vpop.eup %4931  ;;  %v1051_v12 = vpack.c.bf16 %v4930_v8, %v4926_v4  ;;  %v1289_v39 = vpop.permute.xlu0 %1288  ;;  %2271 = vrot.lane.b32.xlu1 %v5491_v19, %s5352_s19 }
 0x22e   : > { %7417 = vst [vmem:[#allocation13_spill] sm:$0xff] %v5932_v7  ;;  %v4934_v33 = vpop.eup %4933  ;;  %v1052_v56 = vpack.c.bf16 %v4932_v15, %v4928_v5  ;;  %v5934_v38 = vadd.f32 %v4932_v15, %v4930_v8 }
 0x22f   : > { %v4936_v1 = vpop.eup %4935  ;;  %4313 = vmatpush3.bf16.xpose.msra.mxu1 %v1382_v43  ;;  %2255 = vrot.lane.b32.xlu0 %v5496_v20, %s5352_s19  ;;  %v1295_v19 = vpop.permute.xlu1 %1294  ;;  %v7423_v20 = vld [vmem:[#allocation4_spill] sm:$0xff] }
 0x230   : > { %7418 = vst [vmem:[#allocation14_spill] sm:$0xff] %v5934_v38  ;;  %v4938_v59 = vpop.eup %4937  ;;  %1231 = vmatprep.mubr.bf16.mxu1 %v1052_v56  ;;  %v5938_v55 = vadd.f32 %v4936_v1, %v4934_v33 }
 0x231   : > { %v4940_v26 = vpop.eup %4939  ;;  %1232 = vmatmul.mubr.bf16.gmra.mrb[24].mxu1 %v1051_v12  ;;  %v1053_v54 = vpack.c.bf16 %v4938_v59, %v4934_v33  ;;  %v1293_v34 = vpop.permute.xlu0 %1292  ;;  %2273 = vrot.lane.b32.xlu1 %v5501_v22, %s5352_s19  ;;  %v7424_v22 = vld [vmem:[#allocation6_spill] sm:$0xff] }
 0x232   : > { %7419 = vst [vmem:[#allocation15_spill] sm:$0xff] %v5938_v55  ;;  %v1054_v18 = vpack.c.bf16 %v4940_v26, %v4936_v1  ;;  %v5942_v51 = vadd.f32 %v4940_v26, %v4938_v59 }
 0x233   : > { %2257 = vrot.lane.b32.xlu0 %v5506_v23, %s5352_s19  ;;  %v7425_v23 = vld [vmem:[#allocation5_spill] sm:$0xff]  ;;  %v1299_v42 = vpop.permute.xlu1 %1298 }
 0x234   : > { %7420 = vst [vmem:[#allocation16_spill] sm:$0xff] %v5942_v51  ;;  %1239 = vmatprep.mubr.bf16.mxu1 %v1054_v18 }
 0x235   : > { %2229 = vrot.lane.b32.xlu1 %v5511_v25, %s5352_s19  ;;  %v1297_v25 = vpop.permute.xlu0 %1296 }
 0x237   : > { %2227 = vrot.lane.b32.xlu0 %v5976_v17, %s5352_s19  ;;  %v1303_v63 = vpop.permute.xlu1 %1302 }
 0x239   : > { %1240 = vmatmul.mubr.bf16.gmra.mrb[28].mxu1 %v1053_v54  ;;  %2233 = vrot.lane.b32.xlu1 %v5525_v27, %s5352_s19  ;;  %v7427_v27 = vld [vmem:[#allocation7_spill] sm:$0xff]  ;;  %v1301_v53 = vpop.permute.xlu0 %1300 }
 0x23a   : > { %4314 = vmatprep.mubr.msk.bf16.mxu1 %vm593_vm0, %v1289_v39 }
 0x23b   : > { %2231 = vrot.lane.b32.xlu0 %v7423_v20, %s5352_s19  ;;  %v1794_v13 = vpop.permute.xlu1 %1793 }
 0x23d   : > { %2237 = vrot.lane.b32.xlu1 %v7424_v22, %s5352_s19  ;;  %v1810_v2 = vpop.permute.xlu0 %1809 }
 0x23e   : > { %4330 = vmatprep.subr.bf16.mxu0 %v1810_v2 }
 0x23f   : > { %2235 = vrot.lane.b32.xlu0 %v7425_v23, %s5352_s19  ;;  %4331 = vmatpush3.bf16.msra.mxu0 %v1794_v13  ;;  %v1814_v4 = vpop.permute.xlu1 %1813 }
 0x241   : > { %4315 = vmatmul.mubr.msk.bf16.vlgmr.msra.gmra.mrb[32].mxu1 %vm593_vm0, %v1289_v39  ;;  %2241 = vrot.lane.b32.xlu1 %v7426_v37, %s5352_s19  ;;  %v1812_v60 = vpop.permute.xlu0 %1811 }
 0x242   : > { %4316 = vmatprep.mubr.msk.bf16.mxu1 %vm593_vm0, %v1291_v58  ;;  %4332 = vmatprep.subr.bf16.mxu0 %v1812_v60 }
 0x243   : > { %2239 = vrot.lane.b32.xlu0 %v7427_v27, %s5352_s19  ;;  %v1798_v8 = vpop.permute.xlu1 %1797 }
 0x245   : > { %3089 = vrot.lane.b32.xlu1 %v5928_v47, %s5353_s20  ;;  %v1796_v5 = vpop.permute.xlu0 %1795 }
 0x246   : > { %4333 = vmatpush3.bf16.msra.mxu0 %v1796_v5 }
 0x247   : > { %3073 = vrot.lane.b32.xlu0 %v5923_v35, %s5353_s20  ;;  %4334 = vmatprep.subr.bf16.mxu0 %v1814_v4  ;;  %v1818_v35 = vpop.permute.xlu1 %1817 }
 0x249   : > { %4317 = vmatmul.mubr.msk.bf16.gmra.mrb[36].mxu1 %vm593_vm0, %v1291_v58  ;;  %3091 = vrot.lane.b32.xlu1 %v5263_v46, %s5353_s20  ;;  %v1816_v43 = vpop.permute.xlu0 %1815 }
 0x24a   : > { %4318 = vmatprep.mubr.msk.bf16.mxu1 %vm593_vm0, %v1293_v34  ;;  %4335 = vmatpush3.bf16.msra.mxu0 %v1798_v8 }
 0x24b   : > { %3075 = vrot.lane.b32.xlu0 %v5264_v44, %s5353_s20  ;;  %4336 = vmatprep.subr.bf16.mxu0 %v1816_v43  ;;  %v1802_v15 = vpop.permute.xlu1 %1801 }
 0x24d   : > { %3093 = vrot.lane.b32.xlu1 %v5265_v11, %s5353_s20  ;;  %v1800_v47 = vpop.permute.xlu0 %1799 }
 0x24e   : > { %4337 = vmatpush3.bf16.msra.mxu0 %v1800_v47 }
 0x24f   : > { %3077 = vrot.lane.b32.xlu0 %v5266_v52, %s5353_s20  ;;  %4338 = vmatprep.subr.bf16.mxu0 %v1818_v35  ;;  %v1822_v56 = vpop.permute.xlu1 %1821 }
 0x251   : > { %4319 = vmatmul.mubr.msk.bf16.gmra.mrb[40].mxu1 %vm593_vm0, %v1293_v34  ;;  %3095 = vrot.lane.b32.xlu1 %v5267_v32, %s5353_s20  ;;  %v1820_v12 = vpop.permute.xlu0 %1819 }
 0x252   : > { %4320 = vmatprep.mubr.msk.bf16.mxu1 %vm593_vm0, %v1295_v19  ;;  %4339 = vmatpush3.bf16.msra.mxu0 %v1802_v15 }
 0x253   : > { %3079 = vrot.lane.b32.xlu0 %v5268_v45, %s5353_s20  ;;  %4340 = vmatprep.subr.bf16.mxu0 %v1820_v12  ;;  %v1806_v1 = vpop.permute.xlu1 %1805 }
 0x255   : > { %3097 = vrot.lane.b32.xlu1 %v5271_v14, %s5353_s20  ;;  %v1804_v33 = vpop.permute.xlu0 %1803 }
 0x256   : > { %4341 = vmatpush3.bf16.msra.mxu0 %v1804_v33 }
 0x257   : > { %3081 = vrot.lane.b32.xlu0 %v5269_v61, %s5353_s20  ;;  %4342 = vmatprep.subr.bf16.mxu0 %v1822_v56 }
 0x259   : > { %4321 = vmatmul.mubr.msk.bf16.gmra.mrb[44].mxu1 %vm593_vm0, %v1295_v19  ;;  %3099 = vrot.lane.b32.xlu1 %v5272_v0, %s5353_s20  ;;  %v1824_v61 = vpop.permute.xlu0 %1823 }
 0x25a   : > { %4322 = vmatprep.mubr.msk.bf16.mxu1 %vm593_vm0, %v1297_v25  ;;  %4343 = vmatpush3.bf16.msra.mxu0 %v1806_v1 }
 0x25b   : > { %3083 = vrot.lane.b32.xlu0 %v5273_v49, %s5353_s20  ;;  %4344 = vmatprep.subr.bf16.mxu0 %v1824_v61 }
 0x25d   : > { %3101 = vrot.lane.b32.xlu1 %v5274_v3, %s5353_s20  ;;  %v1808_v30 = vpop.permute.xlu0 %1807 }
 0x25e   : > { %4345 = vmatpush3.bf16.msra.mxu0 %v1808_v30 }
 0x25f   : > { %3085 = vrot.lane.b32.xlu0 %v5275_v16, %s5353_s20 }
 0x261   : > { %4323 = vmatmul.mubr.msk.bf16.gmra.mrb[48].mxu1 %vm593_vm0, %v1297_v25  ;;  %3103 = vrot.lane.b32.xlu1 %v5276_v62, %s5353_s20 }
 0x262   : > { %4324 = vmatprep.mubr.msk.bf16.mxu1 %vm593_vm0, %v1299_v42  ;;  %v2260_v25 = vpop.permute.xlu0 %2259 }
 0x263   : > { %3087 = vrot.lane.b32.xlu0 %v5277_v57, %s5353_s20  ;;  %4776 = vmatprep.subr.msk.bf16.mxu0 %vm593_vm0, %v2260_v25 }
 0x269   : > { %4325 = vmatmul.mubr.msk.bf16.gmra.mrb[52].mxu1 %vm593_vm0, %v1299_v42 }
 0x26a   : > { %4326 = vmatprep.mubr.msk.bf16.mxu1 %vm593_vm0, %v1301_v53 }
 0x271   : > { %4327 = vmatmul.mubr.msk.bf16.gmra.mrb[56].mxu1 %vm593_vm0, %v1301_v53 }
 0x272   : > { %4328 = vmatprep.mubr.msk.bf16.mxu1 %vm593_vm0, %v1303_v63 }
 0x279   : > { %4329 = vmatmul.mubr.msk.bf16.gmra.mrb[60].mxu1 %vm593_vm0, %v1303_v63 }
 0x2a9   : > { %v4250_v59 = vpop.f32.mrb[0].mxu1 }
 0x2aa   : > { %v4251_v46 = vpop.f32.mrb[1].mxu1 }
 0x2ab   : > { %v6028_v26 = vadd.f32 %v4251_v46, %v4250_v59  ;;  %v4253_v44 = vpop.f32.mrb[2].mxu1 }
 0x2ac   : > { %v4254_v18 = vpop.f32.mrb[3].mxu1 }
 0x2ad   : > { %7428 = vst [vmem:[#allocation2_spill] sm:$0xff] %v6028_v26  ;;  %v6030_v11 = vadd.f32 %v4254_v18, %v4253_v44 }
 0x2af   : > { %7429 = vst [vmem:[#allocation3_spill] sm:$0xff] %v6030_v11 }
 0x2b1   : > { %v4256_v52 = vpop.f32.mrb[4].mxu1 }
 0x2b2   : > { %v4257_v54 = vpop.f32.mrb[5].mxu1 }
 0x2b3   : > { %v6032_v39 = vadd.f32 %v4257_v54, %v4256_v52  ;;  %v4259_v32 = vpop.f32.mrb[6].mxu1 }
 0x2b4   : > { %v4260_v45 = vpop.f32.mrb[7].mxu1 }
 0x2b5   : > { %7430 = vst [vmem:[#allocation4_spill] sm:$0xff] %v6032_v39  ;;  %v6034_v31 = vadd.f32 %v4260_v45, %v4259_v32 }
 0x2b7   : > { %7431 = vst [vmem:[#allocation6_spill] sm:$0xff] %v6034_v31 }
 0x2b9   : > { %v4262_v58 = vpop.f32.mrb[8].mxu1 }
 0x2ba   : > { %v4263_v34 = vpop.f32.mrb[9].mxu1 }
 0x2bb   : > { %v6036_v19 = vadd.f32 %v4263_v34, %v4262_v58  ;;  %v4265_v20 = vpop.f32.mrb[10].mxu1 }
 0x2bc   : > { %v4266_v22 = vpop.f32.mrb[11].mxu1 }
 0x2bd   : > { %7432 = vst [vmem:[#allocation5_spill] sm:$0xff] %v6036_v19  ;;  %v6038_v23 = vadd.f32 %v4266_v22, %v4265_v20 }
 0x2bf   : > { %7433 = vst [vmem:[#allocation8_spill] sm:$0xff] %v6038_v23 }
 0x2c1   : > { %v4268_v37 = vpop.f32.mrb[12].mxu1 }
 0x2c2   : > { %v4269_v27 = vpop.f32.mrb[13].mxu1 }
 0x2c3   : > { %v6041_v42 = vadd.f32 %v4269_v27, %v4268_v37  ;;  %v4271_v53 = vpop.f32.mrb[14].mxu1 }
 0x2c4   : > { %v4272_v14 = vpop.f32.mrb[15].mxu1 }
 0x2c5   : > { %7434 = vst [vmem:[#allocation7_spill] sm:$0xff] %v6041_v42  ;;  %v6043_v63 = vadd.f32 %v4272_v14, %v4271_v53 }
 0x2c7   : > { %7435 = vst [vmem:[#allocation17_spill] sm:$0xff] %v6043_v63 }
 0x2c9   : > { %v4274_v0 = vpop.f32.mrb[16].mxu1 }
 0x2ca   : > { %v4275_v49 = vpop.f32.mrb[17].mxu1 }
 0x2cb   : > { %v6045_v3 = vadd.f32 %v4275_v49, %v4274_v0  ;;  %v4277_v16 = vpop.f32.mrb[18].mxu1 }
 0x2cc   : > { %v4278_v62 = vpop.f32.mrb[19].mxu1 }
 0x2cd   : > { %7436 = vst [vmem:[#allocation18_spill] sm:$0xff] %v6045_v3  ;;  %v6047_v57 = vadd.f32 %v4278_v62, %v4277_v16 }
 0x2cf   : > { %7437 = vst [vmem:[#allocation19_spill] sm:$0xff] %v6047_v57 }
 0x2d1   : > { %v4280_v2 = vpop.f32.mrb[20].mxu1 }
 0x2d2   : > { %v4281_v13 = vpop.f32.mrb[21].mxu1 }
 0x2d3   : > { %v6049_v60 = vadd.f32 %v4281_v13, %v4280_v2  ;;  %v4283_v4 = vpop.f32.mrb[22].mxu1 }
 0x2d4   : > { %v4284_v5 = vpop.f32.mrb[23].mxu1 }
 0x2d5   : > { %7438 = vst [vmem:[#allocation20_spill] sm:$0xff] %v6049_v60  ;;  %v6051_v8 = vadd.f32 %v4284_v5, %v4283_v4 }
 0x2d7   : > { %7439 = vst [vmem:[#allocation21_spill] sm:$0xff] %v6051_v8 }
 0x304   : > { %v4286_v43 = vpop.f32.mrb[24].mxu1 }
 0x305   : > { %v4287_v35 = vpop.f32.mrb[25].mxu1 }
 0x306   : > { %v6053_v47 = vadd.f32 %v4287_v35, %v4286_v43  ;;  %v4289_v15 = vpop.f32.mrb[26].mxu1 }
 0x307   : > { %v4290_v12 = vpop.f32.mrb[27].mxu1 }
 0x308   : > { %7440 = vst [vmem:[#allocation22_spill] sm:$0xff] %v6053_v47  ;;  %v6055_v33 = vadd.f32 %v4290_v12, %v4289_v15 }
 0x30a   : > { %7441 = vst [vmem:[#allocation23_spill] sm:$0xff] %v6055_v33 }
 0x30c   : > { %v4292_v56 = vpop.f32.mrb[28].mxu1 }
 0x30d   : > { %v4293_v1 = vpop.f32.mrb[29].mxu1 }
 0x30e   : > { %v6057_v59 = vadd.f32 %v4293_v1, %v4292_v56  ;;  %v4295_v46 = vpop.f32.mrb[30].mxu1 }
 0x30f   : > { %v4296_v44 = vpop.f32.mrb[31].mxu1 }
 0x310   : > { %7442 = vst [vmem:[#allocation24_spill] sm:$0xff] %v6057_v59  ;;  %v6059_v18 = vadd.f32 %v4296_v44, %v4295_v46 }
 0x312   : > { %7443 = vst [vmem:[#allocation25_spill] sm:$0xff] %v6059_v18 }
 0x314   : > { %v1442_v52 = vpop.f32.mrb[32].mxu1 }
 0x315   : > { %v1444_v54 = vpop.f32.mrb[33].mxu1  ;;  %v6061_v61 = vmul.f32 0.35355338, %v1442_v52 }
 0x316   : > { %v1522_v32 = vmul.f32 0.35355338, %v1444_v54  ;;  %v1446_v45 = vpop.f32.mrb[34].mxu1 }
 0x317   : > { %v1448_v58 = vpop.f32.mrb[35].mxu1  ;;  %v6067_v22 = vmul.f32 0.35355338, %v1446_v45 }
 0x318   : > { %v1524_v30 = vmul.f32 0.35355338, %v1448_v58  ;;  %v6065_v20 = vsel %vm472_vm1, %v1522_v32, -1e+30 }
 0x319   : > { %v1585_v25 = vmax.f32 %v6061_v61, %v6065_v20 }
 0x31a   : > { %v6073_v37 = vsel %vm472_vm1, %v1524_v30, -1e+30 }
 0x31b   : > { %1586 = vmax.xlane.f32.xlu1 %v1585_v25  ;;  %v1588_v27 = vmax.f32 %v6067_v22, %v6073_v37 }
 0x31c   : > { %v1452_v53 = vpop.f32.mrb[36].mxu1 }
 0x31d   : > { %1589 = vmax.xlane.f32.xlu0 %v1588_v27  ;;  %v1454_v14 = vpop.f32.mrb[37].mxu1  ;;  %v6077_v16 = vmul.f32 0.35355338, %v1452_v53 }
 0x31e   : > { %v1526_v0 = vmul.f32 0.35355338, %v1454_v14  ;;  %v1456_v49 = vpop.f32.mrb[38].mxu1 }
 0x31f   : > { %v1458_v62 = vpop.f32.mrb[39].mxu1  ;;  %v6085_v5 = vmul.f32 0.35355338, %v1456_v49 }
 0x320   : > { %v6081_v2 = vsel %vm472_vm1, %v1526_v0, -1e+30  ;;  %v1528_v13 = vmul.f32 0.35355338, %v1458_v62 }
 0x321   : > { %v1591_v4 = vmax.f32 %v6077_v16, %v6081_v2 }
 0x322   : > { %v6089_v43 = vsel %vm472_vm1, %v1528_v13, -1e+30 }
 0x323   : > { %v1594_v35 = vmax.f32 %v6085_v5, %v6089_v43  ;;  %1592 = vmax.xlane.f32.xlu1 %v1591_v4 }
 0x324   : > { %v1462_v15 = vpop.f32.mrb[40].mxu1 }
 0x325   : > { %1595 = vmax.xlane.f32.xlu0 %v1594_v35  ;;  %v1464_v12 = vpop.f32.mrb[41].mxu1  ;;  %v6093_v46 = vmul.f32 0.35355338, %v1462_v15  ;;  %v6119_v15 = vpop.permute.xlu1 %2243 }
 0x326   : > { %v1530_v56 = vmul.f32 0.35355338, %v1464_v12  ;;  %v1466_v1 = vpop.f32.mrb[42].mxu1 }
 0x327   : > { %v1468_v44 = vpop.f32.mrb[43].mxu1  ;;  %v6101_v45 = vmul.f32 0.35355338, %v1466_v1 }
 0x328   : > { %v6097_v52 = vsel %vm472_vm1, %v1530_v56, -1e+30  ;;  %v1532_v54 = vmul.f32 0.35355338, %v1468_v44 }
 0x329   : > { %v1597_v32 = vmax.f32 %v6093_v46, %v6097_v52 }
 0x32a   : > { %v6105_v58 = vsel %vm472_vm1, %v1532_v54, -1e+30 }
 0x32b   : > { %v1600_v30 = vmax.f32 %v6101_v45, %v6105_v58  ;;  %1598 = vmax.xlane.f32.xlu1 %v1597_v32 }
 0x32c   : > { %v1472_v25 = vpop.f32.mrb[44].mxu1 }
 0x32d   : > { %1601 = vmax.xlane.f32.xlu0 %v1600_v30  ;;  %v1474_v27 = vpop.f32.mrb[45].mxu1  ;;  %v6109_v0 = vmul.f32 0.35355338, %v1472_v25  ;;  %v6127_v30 = vpop.permute.xlu1 %2261 }
 0x32e   : > { %v1534_v53 = vmul.f32 0.35355338, %v1474_v27  ;;  %v1476_v14 = vpop.f32.mrb[46].mxu1  ;;  %v6129_v25 = vpop.permute.xlu0 %2245 }
 0x32f   : > { %v1478_v49 = vpop.f32.mrb[47].mxu1  ;;  %v6117_v35 = vmul.f32 0.35355338, %v1476_v14 }
 0x330   : > { %v6113_v62 = vsel %vm472_vm1, %v1534_v53, -1e+30  ;;  %v1536_v13 = vmul.f32 0.35355338, %v1478_v49 }
 0x331   : > { %v1603_v4 = vmax.f32 %v6109_v0, %v6113_v62  ;;  %v6131_v14 = vpop.permute.xlu1 %2263 }
 0x332   : > { %v6123_v12 = vsel %vm472_vm1, %v1536_v13, -1e+30  ;;  %v6133_v47 = vpop.permute.xlu0 %2247 }
 0x333   : > { %v1606_v56 = vmax.f32 %v6117_v35, %v6123_v12  ;;  %1604 = vmax.xlane.f32.xlu1 %v1603_v4  ;;  %v5278_v4 = vld [vmem:[%s5458_s15 + $0x8] sm:$0xff]  }
 0x334   : > { %v1482_v1 = vpop.f32.mrb[48].mxu1 }
 0x335   : > { %1607 = vmax.xlane.f32.xlu0 %v1606_v56  ;;  %v1484_v44 = vpop.f32.mrb[49].mxu1  ;;  %v6135_v18 = vpop.permute.xlu1 %2265  ;;  %v6165_v24 = vmul.f32 0.35355338, %v1482_v1 }
 0x336   : > { %v1486_v54 = vpop.f32.mrb[50].mxu1  ;;  %v6139_v33 = vpop.permute.xlu0 %2249  ;;  %v1538_v31 = vmul.f32 0.35355338, %v1484_v44 }
 0x337   : > { %v1488_v32 = vpop.f32.mrb[51].mxu1  ;;  %v6182_v1 = vmul.f32 0.35355338, %v1486_v54 }
 0x338   : > { %v6169_v11 = vsel %vm472_vm1, %v1538_v31, -1e+30  ;;  %v1540_v26 = vmul.f32 0.35355338, %v1488_v32 }
 0x339   : > { %v6141_v8 = vpop.permute.xlu1 %2267  ;;  %v1609_v44 = vmax.f32 %v6165_v24, %v6169_v11 }
 0x33a   : > { %v6145_v60 = vpop.permute.xlu0 %2251  ;;  %v6189_v31 = vsel %vm472_vm1, %v1540_v26, -1e+30 }
 0x33b   : > { %v1612_v54 = vmax.f32 %v6182_v1, %v6189_v31 }
 0x33c   : > { %v1492_v27 = vpop.f32.mrb[52].mxu1 }
 0x33d   : > { %v1494_v53 = vpop.f32.mrb[53].mxu1  ;;  %v6149_v55 = vpop.permute.xlu1 %2269 }
 0x33e   : > { %v1496_v49 = vpop.f32.mrb[54].mxu1  ;;  %v1542_v50 = vmul.f32 0.35355338, %v1494_v53 }
 0x33f   : > { %v1498_v13 = vpop.f32.mrb[55].mxu1 }
 0x340   : > { %v1544_v32 = vmul.f32 0.35355338, %v1498_v13 }
 0x341   : > { %v6153_v38 = vpop.permute.xlu1 %2271 }
 0x342   : > { %7445 = vst [vmem:[#allocation26_spill] sm:$0xff] %v6153_v38 }
 0x344   : > { %3059 = vrot.lane.b32.xlu1 %v5278_v4, %s5353_s20  ;;  %v1502_v56 = vpop.f32.mrb[56].mxu1  ;;  %v6151_v4 = vpop.permute.xlu0 %2253 }
 0x345   : > { %v1504_v59 = vpop.f32.mrb[57].mxu1  ;;  %v6157_v19 = vpop.permute.xlu1 %2273 }
 0x346   : > { %v1506_v57 = vpop.f32.mrb[58].mxu1 }
 0x347   : > { %v1508_v3 = vpop.f32.mrb[59].mxu1 }
 0x348   : > { %v6155_v23 = vpop.permute.xlu0 %2255  ;;  %v1548_v26 = vmul.f32 0.35355338, %v1508_v3 }
 0x349   : > { %7446 = vst [vmem:[#allocation27_spill] sm:$0xff] %v6155_v23  ;;  %v6173_v23 = vmul.f32 0.35355338, %v1492_v27 }
 0x34b   : > { %3057 = vrot.lane.b32.xlu0 %v5976_v17, %s5353_s20  ;;  %v6161_v17 = vpop.permute.xlu1 %2229 }
 0x34c   : > { %v1512_v7 = vpop.f32.mrb[60].mxu1  ;;  %v6159_v21 = vpop.permute.xlu0 %2257  ;;  %7447 = vst [vmem:[#allocation28_spill] sm:$0xff] %v6161_v17  ;;  %v6178_v17 = vsel %vm472_vm1, %v1542_v50, -1e+30  ;;  %v1546_v50 = vmul.f32 0.35355338, %v1504_v59 }
 0x34d   : > { %v1514_v51 = vpop.f32.mrb[61].mxu1 }
 0x34e   : > { %v6147_v63 = vpop.f32.mrb[62].mxu1  ;;  %v6209_v59 = vsel %vm472_vm1, %v1546_v50, -1e+30  ;;  %v1550_v3 = vmul.f32 0.35355338, %v1514_v51 }
 0x34f   : > { %v1518_v42 = vpop.f32.mrb[63].mxu1  ;;  %v6171_v38 = vpop.permute.xlu1 %2233 }
 0x350   : > { %v6163_v39 = vpop.permute.xlu0 %2227  ;;  %7448 = vst [vmem:[#allocation29_spill] sm:$0xff] %v6171_v38  ;;  %v6197_v38 = vmul.f32 0.35355338, %v1496_v49  ;;  %v6213_v49 = vmul.f32 0.35355338, %v1506_v57 }
 0x351   : > { %v6228_v57 = vmul.f32 0.35355338, %v1512_v7 }
 0x353   : > { %v6193_v27 = vpop.permute.xlu1 %2237 }
 0x354   : > { %v6184_v53 = vpop.permute.xlu0 %2231  ;;  %7450 = vst [vmem:[#allocation31_spill] sm:$0xff] %v6193_v27 }
 0x355   : > { %7449 = vst [vmem:[#allocation30_spill] sm:$0xff] %v6184_v53  ;;  %v6203_v53 = vmul.f32 0.35355338, %v1502_v56 }
 0x357   : > { %v6220_v56 = vpop.permute.xlu1 %2241 }
 0x358   : > { %v6205_v13 = vpop.permute.xlu0 %2235  ;;  %7452 = vst [vmem:[#allocation33_spill] sm:$0xff] %v6220_v56 }
 0x359   : > { %7451 = vst [vmem:[#allocation32_spill] sm:$0xff] %v6205_v13 }
 0x35b   : > { %v6234_v51 = vpop.permute.xlu1 %3089 }
 0x368   : > { %995 = vadd.xlane.f32.xlu1 %v5848_v36  ;;  %v1615_v36 = vmax.f32 %v6173_v23, %v6178_v17 }
 0x36a   : > { %992 = vadd.xlane.f32.xlu0 %v5840_v9  ;;  %v6201_v9 = vsel %vm472_vm1, %v1544_v32, -1e+30  ;;  %v6218_v32 = vsel %vm472_vm1, %v1548_v26, -1e+30 }
 0x36b   : > { %v1624_v50 = vmax.f32 %v6213_v49, %v6218_v32 }
 0x36c   : > { %1610 = vmax.xlane.f32.xlu1 %v1609_v44  ;;  %v1618_v44 = vmax.f32 %v6197_v38, %v6201_v9 }
 0x36e   : > { %1616 = vmax.xlane.f32.xlu0 %v1615_v36  ;;  %v1621_v36 = vmax.f32 %v6203_v53, %v6209_v59 }
 0x370   : > { %1613 = vmax.xlane.f32.xlu1 %v1612_v54  ;;  %v6226_v54 = vpop.permute.xlu0 %2239 }
 0x371   : > { %7453 = vst [vmem:[#allocation34_spill] sm:$0xff] %v6226_v54 }
 0x372   : > { %998 = vadd.xlane.f32.xlu0 %v5856_v28  ;;  %v6232_v28 = vsel %vm472_vm1, %v1550_v3, -1e+30 }
 0x373   : > { %v1627_v26 = vmax.f32 %v6228_v57, %v6232_v28 }
 0x374   : > { %1619 = vmax.xlane.f32.xlu1 %v1618_v44  ;;  %v6239_v44 = vpop.permute.xlu0 %3073 }
 0x376   : > { %1622 = vmax.xlane.f32.xlu0 %v1621_v36  ;;  %v6242_v36 = vpop.permute.xlu1 %3091 }
 0x378   : > { %1625 = vmax.xlane.f32.xlu1 %v1624_v50  ;;  %v6245_v7 = vpop.permute.xlu0 %3075  ;;  %v1552_v50 = vmul.f32 0.35355338, %v1518_v42 }
 0x37a   : > { %1001 = vadd.xlane.f32.xlu0 %v5864_v40  ;;  %v6248_v3 = vpop.permute.xlu1 %3093  ;;  %v6254_v40 = vmul.f32 0.35355338, %v6147_v63  ;;  %v5279_v63 = vld [vmem:[%s5458_s15 + $0x10] sm:$0xff]  }
 0x37c   : > { %1004 = vadd.xlane.f32.xlu1 %v5872_v41  ;;  %v6250_v56 = vpop.permute.xlu0 %3077  ;;  %v6258_v41 = vsel %vm472_vm1, %v1552_v50, -1e+30  ;;  %v5280_v50 = vld [vmem:[%s5458_s15 + $0x18] sm:$0xff]  }
 0x37d   : > { %7454 = vst [vmem:[#allocation35_spill] sm:$0xff] %v6250_v56  ;;  %v1630_v42 = vmax.f32 %v6254_v40, %v6258_v41 }
 0x37e   : > { %1628 = vmax.xlane.f32.xlu0 %v1627_v26 }
 0x380   : > { %1007 = vadd.xlane.f32.xlu1 %v5880_v48  ;;  %v6260_v48 = vpop.permute.xlu1 %3095 }
 0x381   : > { %7455 = vst [vmem:[#allocation36_spill] sm:$0xff] %v6260_v48 }
 0x384   : > { %1010 = vadd.xlane.f32.xlu1 %v5886_v29  ;;  %v6263_v29 = vpop.permute.xlu0 %3079  ;;  %v6267_v26 = vpop.permute.xlu1 %3097 }
 0x385   : > { %7456 = vst [vmem:[#allocation37_spill] sm:$0xff] %v6263_v29  ;;  %7457 = vst [vmem:[#allocation38_spill] sm:$0xff] %v6267_v26 }
 0x388   : > { %1013 = vadd.xlane.f32.xlu1 %v5892_v6  ;;  %v6269_v6 = vpop.permute.xlu0 %3081  ;;  %v6273_v34 = vpop.permute.xlu1 %3099 }
 0x389   : > { %7458 = vst [vmem:[#allocation39_spill] sm:$0xff] %v6269_v6  ;;  %7459 = vst [vmem:[#allocation40_spill] sm:$0xff] %v6273_v34 }
 0x38c   : > { %1016 = vadd.xlane.f32.xlu1 %v5896_v10  ;;  %v6277_v54 = vpop.permute.xlu0 %3083  ;;  %v6279_v10 = vpop.permute.xlu1 %3101 }
 0x38d   : > { %7460 = vst [vmem:[#allocation41_spill] sm:$0xff] %v6277_v54  ;;  %7461 = vst [vmem:[#allocation42_spill] sm:$0xff] %v6279_v10 }
 0x390   : > { %1631 = vmax.xlane.f32.xlu1 %v1630_v42  ;;  %v6281_v27 = vpop.permute.xlu0 %3085  ;;  %v6283_v13 = vpop.permute.xlu1 %3103 }
 0x391   : > { %7462 = vst [vmem:[#allocation43_spill] sm:$0xff] %v6281_v27  ;;  %7463 = vst [vmem:[#allocation44_spill] sm:$0xff] %v6283_v13 }
 0x394   : > { %3061 = vrot.lane.b32.xlu0 %v5279_v63, %s5353_s20  ;;  %v6285_v42 = vpop.permute.xlu0 %3087 }
 0x395   : > { %7464 = vst [vmem:[#allocation45_spill] sm:$0xff] %v6285_v42 }
 0x398   : > { %3063 = vrot.lane.b32.xlu0 %v5280_v50, %s5353_s20 }
 0x3a8   : > { %v1587_v26 = vpop.xlane.xlu1 %1586 }
 0x3a9   : > { %v1633_v6 = vsub.f32 %v6061_v61, %v1587_v26  ;;  %v1634_v63 = vsub.f32 %v6065_v20, %v1587_v26 }
 0x3aa   : > { %v1590_v29 = vpop.xlane.xlu0 %1589 }
 0x3ab   : > { %v1665_v34 = vmul.f32 1.442695, %v1633_v6  ;;  %v1667_v48 = vmul.f32 1.442695, %v1634_v63  ;;  %v1635_v50 = vsub.f32 %v6067_v22, %v1590_v29  ;;  %v1636_v54 = vsub.f32 %v6073_v37, %v1590_v29 }
 0x3ad   : > { %4941 = vpow2.f32 %v1665_v34  ;;  %v1669_v10 = vmul.f32 1.442695, %v1635_v50  ;;  %v1671_v56 = vmul.f32 1.442695, %v1636_v54 }
 0x3ae   : > { %4943 = vpow2.f32 %v1667_v48 }
 0x3af   : > { %4945 = vpow2.f32 %v1669_v10 }
 0x3b0   : > { %4947 = vpow2.f32 %v1671_v56  ;;  %v1593_v13 = vpop.xlane.xlu1 %1592 }
 0x3b1   : > { %v1637_v42 = vsub.f32 %v6077_v16, %v1593_v13  ;;  %v1638_v61 = vsub.f32 %v6081_v2, %v1593_v13 }
 0x3b2   : > { %v1596_v27 = vpop.xlane.xlu0 %1595 }
 0x3b3   : > { %v1673_v20 = vmul.f32 1.442695, %v1637_v42  ;;  %v1675_v26 = vmul.f32 1.442695, %v1638_v61  ;;  %v1639_v6 = vsub.f32 %v6085_v5, %v1596_v27  ;;  %v1640_v22 = vsub.f32 %v6089_v43, %v1596_v27 }
 0x3b5   : > { %4949 = vpow2.f32 %v1673_v20  ;;  %v1677_v37 = vmul.f32 1.442695, %v1639_v6  ;;  %v1679_v34 = vmul.f32 1.442695, %v1640_v22 }
 0x3b6   : > { %4951 = vpow2.f32 %v1675_v26 }
 0x3b7   : > { %v4942_v54 = vpop.eup %4941  ;;  %4953 = vpow2.f32 %v1677_v37 }
 0x3b8   : > { %v4944_v48 = vpop.eup %4943  ;;  %4955 = vpow2.f32 %v1679_v34  ;;  %v1599_v56 = vpop.xlane.xlu1 %1598 }
 0x3b9   : > { %v4946_v29 = vpop.eup %4945  ;;  %v1641_v16 = vsub.f32 %v6093_v46, %v1599_v56  ;;  %v1642_v2 = vsub.f32 %v6097_v52, %v1599_v56  ;;  %v1729_v13 = vadd.f32 %v4944_v48, %v4942_v54  ;;  %v2300_v52 = vsel %vm593_vm0, %v6119_v15, 0 }
 0x3ba   : > { %v4948_v10 = vpop.eup %4947  ;;  %v1602_v42 = vpop.xlane.xlu0 %1601  ;;  %v1777_v5 = vpack.c.bf16 %v4946_v29, %v4942_v54 }
 0x3bb   : > { %v1681_v63 = vmul.f32 1.442695, %v1641_v16  ;;  %v1683_v43 = vmul.f32 1.442695, %v1642_v2  ;;  %1730 = vadd.xlane.f32.xlu0 %v1729_v13  ;;  %v1643_v27 = vsub.f32 %v6101_v45, %v1602_v42  ;;  %v1644_v50 = vsub.f32 %v6105_v58, %v1602_v42 }
 0x3bc   : > { %v1778_v61 = vpack.c.bf16 %v4948_v10, %v4944_v48  ;;  %v1732_v20 = vadd.f32 %v4948_v10, %v4946_v29 }
 0x3bd   : > { %4957 = vpow2.f32 %v1681_v63  ;;  %v1685_v26 = vmul.f32 1.442695, %v1643_v27  ;;  %v1687_v6 = vmul.f32 1.442695, %v1644_v50 }
 0x3be   : > { %4959 = vpow2.f32 %v1683_v43  ;;  %1873 = vmatprep.mubr.bf16.mxu0 %v1778_v61  ;;  %1733 = vadd.xlane.f32.xlu1 %v1732_v20 }
 0x3bf   : > { %v4950_v46 = vpop.eup %4949  ;;  %4961 = vpow2.f32 %v1685_v26  ;;  %1874 = vmatmul.mubr.bf16.vlgmr.msra.gmra.mrb[32].mxu0 %v1777_v5 }
 0x3c0   : > { %v4952_v22 = vpop.eup %4951  ;;  %4963 = vpow2.f32 %v1687_v6  ;;  %4413 = vmatpush3.bf16.xpose.msra.mxu0 %v2300_v52  ;;  %v1605_v45 = vpop.xlane.xlu1 %1604 }
 0x3c1   : > { %v4954_v37 = vpop.eup %4953  ;;  %4777 = vmatprep.subr.msk.bf16.mxu0 %vm593_vm0, %v6127_v30  ;;  %v1645_v58 = vsub.f32 %v6109_v0, %v1605_v45  ;;  %v1646_v34 = vsub.f32 %v6113_v62, %v1605_v45  ;;  %v1735_v54 = vadd.f32 %v4952_v22, %v4950_v46  ;;  %v2303_v62 = vsel %vm593_vm0, %v6129_v25, 0 }
 0x3c2   : > { %v4956_v48 = vpop.eup %4955  ;;  %v1608_v56 = vpop.xlane.xlu0 %1607  ;;  %v1779_v29 = vpack.c.bf16 %v4954_v37, %v4950_v46  ;;  %v2306_v25 = vsel %vm593_vm0, %v6133_v47, 0  ;;  %v2312_v47 = vsel %vm593_vm0, %v6145_v60, 0 }
 0x3c3   : > { %v1689_v16 = vmul.f32 1.442695, %v1645_v58  ;;  %v1691_v15 = vmul.f32 1.442695, %v1646_v34  ;;  %1736 = vadd.xlane.f32.xlu0 %v1735_v54  ;;  %v1647_v2 = vsub.f32 %v6117_v35, %v1608_v56  ;;  %v1648_v13 = vsub.f32 %v6123_v12, %v1608_v56  ;;  %v7465_v58 = vld [vmem:[#allocation26_spill] sm:$0xff] }
 0x3c4   : > { %v1780_v10 = vpack.c.bf16 %v4956_v48, %v4952_v22  ;;  %v1738_v30 = vadd.f32 %v4956_v48, %v4954_v37  ;;  %v2309_v37 = vsel %vm593_vm0, %v6139_v33, 0  ;;  %v7466_v33 = vld [vmem:[#allocation27_spill] sm:$0xff]  ;;  %v6329_v54 = vpop.permute.xlu1 %3059 }
 0x3c5   : > { %4965 = vpow2.f32 %v1689_v16  ;;  %v1693_v42 = vmul.f32 1.442695, %v1647_v2  ;;  %v1695_v5 = vmul.f32 1.442695, %v1648_v13  ;;  %v2318_v34 = vsel %vm593_vm0, %v7466_v33, 0 }
 0x3c6   : > { %4967 = vpow2.f32 %v1691_v15  ;;  %1881 = vmatprep.mubr.bf16.mxu0 %v1780_v10  ;;  %v6333_v60 = vpop.permute.xlu0 %3057 }
 0x3c7   : > { %v4958_v0 = vpop.eup %4957  ;;  %4969 = vpow2.f32 %v1693_v42  ;;  %1882 = vmatmul.mubr.bf16.gmra.mrb[36].mxu0 %v1779_v29  ;;  %1739 = vadd.xlane.f32.xlu0 %v1738_v30 }
 0x3c8   : > { %v4960_v63 = vpop.eup %4959  ;;  %4971 = vpow2.f32 %v1695_v5  ;;  %4415 = vmatpush3.bf16.xpose.msra.mxu0 %v2303_v62 }
 0x3c9   : > { %v4962_v35 = vpop.eup %4961  ;;  %4778 = vmatprep.subr.msk.bf16.mxu0 %vm593_vm0, %v6131_v14  ;;  %v1741_v12 = vadd.f32 %v4960_v63, %v4958_v0 }
 0x3ca   : > { %v4964_v43 = vpop.eup %4963  ;;  %v1781_v61 = vpack.c.bf16 %v4962_v35, %v4958_v0 }
 0x3cb   : > { %1742 = vadd.xlane.f32.xlu1 %v1741_v12  ;;  %v1782_v27 = vpack.c.bf16 %v4964_v43, %v4960_v63  ;;  %v1744_v50 = vadd.f32 %v4964_v43, %v4962_v35  ;;  %v7467_v12 = vld [vmem:[#allocation2_spill] sm:$0xff]  ;;  %v7468_v43 = vld [vmem:[#allocation3_spill] sm:$0xff] }
 0x3cd   : > { %1889 = vmatprep.mubr.bf16.mxu0 %v1782_v27  ;;  %1745 = vadd.xlane.f32.xlu0 %v1744_v50 }
 0x3cf   : > { %v4966_v20 = vpop.eup %4965  ;;  %1890 = vmatmul.mubr.bf16.gmra.mrb[40].mxu0 %v1781_v61 }
 0x3d0   : > { %v4968_v26 = vpop.eup %4967  ;;  %4417 = vmatpush3.bf16.xpose.msra.mxu0 %v2306_v25 }
 0x3d1   : > { %v4970_v6 = vpop.eup %4969  ;;  %4779 = vmatprep.subr.msk.bf16.mxu0 %vm593_vm0, %v6135_v18  ;;  %v1747_v14 = vadd.f32 %v4968_v26, %v4966_v20  ;;  %v2315_v18 = vsel %vm593_vm0, %v6151_v4, 0 }
 0x3d2   : > { %v4972_v46 = vpop.eup %4971  ;;  %v1783_v45 = vpack.c.bf16 %v4970_v6, %v4966_v20 }
 0x3d3   : > { %1748 = vadd.xlane.f32.xlu0 %v1747_v14  ;;  %v1784_v52 = vpack.c.bf16 %v4972_v46, %v4968_v26  ;;  %v1750_v22 = vadd.f32 %v4972_v46, %v4970_v6 }
 0x3d5   : > { %1897 = vmatprep.mubr.bf16.mxu0 %v1784_v52  ;;  %1751 = vadd.xlane.f32.xlu1 %v1750_v22 }
 0x3d7   : > { %1898 = vmatmul.mubr.bf16.gmra.mrb[44].mxu0 %v1783_v45 }
 0x3d8   : > { %4419 = vmatpush3.bf16.xpose.msra.mxu0 %v2309_v37 }
 0x3d9   : > { %4780 = vmatprep.subr.msk.bf16.mxu0 %vm593_vm0, %v6141_v8 }
 0x3e0   : > { %4421 = vmatpush3.bf16.xpose.msra.mxu0 %v2312_v47 }
 0x3e1   : > { %4781 = vmatprep.subr.msk.bf16.mxu0 %vm593_vm0, %v6149_v55  ;;  %v2321_v55 = vsel %vm593_vm0, %v6159_v21, 0 }
 0x3e8   : > { %4423 = vmatpush3.bf16.xpose.msra.mxu0 %v2315_v18 }
 0x3e9   : > { %4782 = vmatprep.subr.msk.bf16.mxu0 %vm593_vm0, %v7465_v58 }
 0x3f0   : > { %4425 = vmatpush3.bf16.xpose.msra.mxu0 %v2318_v34 }
 0x3f1   : > { %4783 = vmatprep.subr.msk.bf16.mxu0 %vm593_vm0, %v6157_v19 }
 0x3f5   : > { %v996_v8 = vpop.xlane.xlu1 %995 }
 0x3f6   : > { %4973 = vrcp.f32 %v996_v8 }
 0x3f7   : > { %v993_v4 = vpop.xlane.xlu0 %992 }
 0x3f8   : > { %4427 = vmatpush3.bf16.xpose.msra.mxu0 %v2321_v55  ;;  %4975 = vrcp.f32 %v993_v4  ;;  %v7469_v4 = vld [vmem:[#allocation12_spill] sm:$0xff] }
 0x3f9   : > { %4785 = vmatprep.subr.msk.bf16.mxu0 %vm593_vm0, %v6234_v51  ;;  %v1611_v48 = vpop.xlane.xlu1 %1610 }
 0x3fa   : > { %v1649_v56 = vsub.f32 %v6165_v24, %v1611_v48  ;;  %v1650_v29 = vsub.f32 %v6169_v11, %v1611_v48 }
 0x3fb   : > { %v1617_v16 = vpop.xlane.xlu0 %1616 }
 0x3fc   : > { %v1697_v19 = vmul.f32 1.442695, %v1649_v56  ;;  %v1699_v15 = vmul.f32 1.442695, %v1650_v29  ;;  %v1653_v2 = vsub.f32 %v6173_v23, %v1617_v16  ;;  %v1654_v21 = vsub.f32 %v6178_v17, %v1617_v16 }
 0x3fd   : > { %v1614_v13 = vpop.xlane.xlu1 %1613 }
 0x3fe   : > { %4977 = vpow2.f32 %v1697_v19  ;;  %v1651_v10 = vsub.f32 %v6182_v1, %v1614_v13  ;;  %v1652_v42 = vsub.f32 %v6189_v31, %v1614_v13  ;;  %v1705_v24 = vmul.f32 1.442695, %v1653_v2  ;;  %v7470_v2 = vld [vmem:[#allocation9_spill] sm:$0xff] }
 0x3ff   : > { %4979 = vpow2.f32 %v1699_v15  ;;  %v999_v51 = vpop.xlane.xlu0 %998  ;;  %v1707_v63 = vmul.f32 1.442695, %v1654_v21 }
 0x400   : > { %v4974_v5 = vpop.eup %4973  ;;  %v1701_v30 = vmul.f32 1.442695, %v1651_v10  ;;  %v1703_v0 = vmul.f32 1.442695, %v1652_v42 }
 0x401   : > { %v1620_v11 = vpop.xlane.xlu1 %1619  ;;  %v6351_v31 = vmul.f32 %v4974_v5, %v7468_v43  ;;  %v7471_v5 = vld [vmem:[#allocation4_spill] sm:$0xff] }
 0x402   : > { %v4976_v62 = vpop.eup %4975  ;;  %4981 = vpow2.f32 %v1701_v30  ;;  %v1655_v23 = vsub.f32 %v6197_v38, %v1620_v11  ;;  %v1656_v35 = vsub.f32 %v6201_v9, %v1620_v11 }
 0x403   : > { %4983 = vpow2.f32 %v1703_v0  ;;  %v1623_v17 = vpop.xlane.xlu0 %1622  ;;  %v6348_v1 = vmul.f32 %v4976_v62, %v7467_v12 }
 0x404   : > { %v1711_v27 = vmul.f32 1.442695, %v1656_v35  ;;  %4985 = vpow2.f32 %v1705_v24  ;;  %v1709_v50 = vmul.f32 1.442695, %v1655_v23  ;;  %v1658_v61 = vsub.f32 %v6209_v59, %v1623_v17  ;;  %v7472_v24 = vld [vmem:[#allocation6_spill] sm:$0xff] }
 0x405   : > { %v1626_v20 = vpop.xlane.xlu1 %1625  ;;  %v1280_v25 = vpack.c.bf16 %v6351_v31, %v6348_v1  ;;  %4987 = vpow2.f32 %v1707_v63 }
 0x406   : > { %v1660_v38 = vsub.f32 %v6218_v32, %v1626_v20  ;;  %4989 = vpow2.f32 %v1711_v27  ;;  %v1715_v9 = vmul.f32 1.442695, %v1658_v61  ;;  %v1659_v59 = vsub.f32 %v6213_v49, %v1626_v20  ;;  %v7474_v27 = vld [vmem:[#allocation5_spill] sm:$0xff]  ;;  %v7475_v61 = vld [vmem:[#allocation8_spill] sm:$0xff] }
 0x407   : > { %4991 = vrcp.f32 %v999_v51  ;;  %v1002_v46 = vpop.xlane.xlu0 %1001  ;;  %v1657_v32 = vsub.f32 %v6203_v53, %v1623_v17  ;;  %v7473_v17 = vld [vmem:[#allocation11_spill] sm:$0xff] }
 0x408   : > { %v4978_v26 = vpop.eup %4977  ;;  %v1719_v6 = vmul.f32 1.442695, %v1660_v38  ;;  %4993 = vpow2.f32 %v1709_v50  ;;  %v1717_v34 = vmul.f32 1.442695, %v1659_v59 }
 0x409   : > { %v4980_v14 = vpop.eup %4979  ;;  %v1005_v52 = vpop.xlane.xlu1 %1004  ;;  %4995 = vpow2.f32 %v1715_v9  ;;  %v1713_v48 = vmul.f32 1.442695, %v1657_v32 }
 0x40a   : > { %v1753_v22 = vadd.f32 %v4980_v14, %v4978_v26  ;;  %4997 = vpow2.f32 %v1719_v6 }
 0x40b   : > { %4999 = vrcp.f32 %v1002_v46  ;;  %v1629_v21 = vpop.xlane.xlu0 %1628 }
 0x40c   : > { %v4982_v45 = vpop.eup %4981  ;;  %1754 = vadd.xlane.f32.xlu1 %v1753_v22  ;;  %5001 = vrcp.f32 %v1005_v52  ;;  %v1661_v62 = vsub.f32 %v6228_v57, %v1629_v21  ;;  %v1662_v63 = vsub.f32 %v6232_v28, %v1629_v21  ;;  %v3130_v21 = vsel %vm593_vm0, %v6239_v44, 0 }
 0x40d   : > { %v4984_v37 = vpop.eup %4983  ;;  %v1008_v47 = vpop.xlane.xlu1 %1007  ;;  %v1785_v58 = vpack.c.bf16 %v4982_v45, %v4978_v26  ;;  %v7476_v26 = vld [vmem:[#allocation14_spill] sm:$0xff]  ;;  %v3133_v44 = vsel %vm593_vm0, %v6245_v7, 0 }
 0x40e   : > { %5003 = vrcp.f32 %v1008_v47  ;;  %v1756_v18 = vadd.f32 %v4984_v37, %v4982_v45  ;;  %v4986_v33 = vpop.eup %4985  ;;  %v1786_v8 = vpack.c.bf16 %v4984_v37, %v4980_v14  ;;  %v1721_v28 = vmul.f32 1.442695, %v1661_v62  ;;  %v7477_v47 = vld [vmem:[#allocation15_spill] sm:$0xff]  ;;  %v7485_v62 = vld [vmem:[#allocation36_spill] sm:$0xff] }
 0x40f   : > { %v4988_v55 = vpop.eup %4987  ;;  %5005 = vpow2.f32 %v1717_v34  ;;  %v1723_v9 = vmul.f32 1.442695, %v1662_v63 }
 0x410   : > { %1757 = vadd.xlane.f32.xlu0 %v1756_v18  ;;  %1022 = vadd.xlane.f32.xlu1 %v7469_v4  ;;  %v6360_v49 = vpop.eup %4989  ;;  %v1759_v19 = vadd.f32 %v4988_v55, %v4986_v33  ;;  %v465_v18 = vld [vmem:[%s7365_s4 + $0x4] sm:$0xf] }
 0x411   : > { %1905 = vmatprep.mubr.bf16.mxu0 %v1786_v8  ;;  %v1011_v56 = vpop.xlane.xlu1 %1010  ;;  %v4992_v29 = vpop.eup %4991  ;;  %v1788_v53 = vpack.c.bf16 %v6360_v49, %v4988_v55  ;;  %4774 = vmatprep.subr.msk.bf16.mxu1 %vm2002_vm2, %v465_v18  ;;  %v2004_v34 = vsel %vm2002_vm2, %v465_v18, 0  ;;  %v7480_v55 = vld [vmem:[#allocation16_spill] sm:$0xff]  ;;  %v5281_v4 = vld [vmem:[%s5458_s15 + $0x20] sm:$0xff]   ;;  %v7499_v18 = vld [vmem:[#allocation45_spill] sm:$0xff] }
 0x412   : > { %1906 = vmatmul.mubr.bf16.gmra.mrb[48].mxu0 %v1785_v58  ;;  %v6363_v16 = vpop.eup %4993  ;;  %5007 = vrcp.f32 %v1011_v56  ;;  %v6371_v30 = vmul.f32 %v4992_v29, %v7471_v5  ;;  %v7478_v58 = vld [vmem:[#allocation7_spill] sm:$0xff]  ;;  %4623 = vmatpush3.bf16.msra.mxu1 %v2004_v34  ;;  %v5285_v5 = vld [vmem:[%s5566_s18 + $0x20] sm:$0xff]  }
 0x413   : > { %v6365_v15 = vpop.eup %4995  ;;  %1913 = vmatprep.mubr.bf16.mxu0 %v1788_v53  ;;  %5009 = vpow2.f32 %v1713_v48  ;;  %v1787_v23 = vpack.c.bf16 %v6363_v16, %v4986_v33  ;;  %v1762_v7 = vadd.f32 %v6363_v16, %v6360_v49  ;;  %v5286_v49 = vld [vmem:[%s5566_s18 + $0x70] sm:$0xff]   ;;  %v6513_v34 = vld [vmem:[%s5566_s18 + $0x48] sm:$0xff]  }
 0x414   : > { %1025 = vadd.xlane.f32.xlu1 %v7470_v2  ;;  %v6368_v13 = vpop.eup %4997  ;;  %1760 = vadd.xlane.f32.xlu0 %v1759_v19 }
 0x415   : > { %v1014_v10 = vpop.xlane.xlu1 %1013  ;;  %v5000_v42 = vpop.eup %4999  ;;  %v1790_v43 = vpack.c.bf16 %v6368_v13, %v6365_v15 }
 0x416   : > { %5011 = vrcp.f32 %v1014_v10  ;;  %v5002_v51 = vpop.eup %5001  ;;  %v6374_v0 = vmul.f32 %v5000_v42, %v7472_v24  ;;  %v7481_v10 = vld [vmem:[#allocation28_spill] sm:$0xff]  ;;  %v5282_v42 = vld [vmem:[%s5458_s15 + $0x28] sm:$0xff]  }
 0x417   : > { %v6387_v50 = vmul.f32 %v5002_v51, %v7474_v27  ;;  %5013 = vpow2.f32 %v1721_v28  ;;  %v5283_v51 = vld [vmem:[%s5458_s15 + $0x30] sm:$0xff]   ;;  %v7483_v24 = vld [vmem:[#allocation35_spill] sm:$0xff] }
 0x418   : > { %v5004_v11 = vpop.eup %5003  ;;  %v1281_v35 = vpack.c.bf16 %v6374_v0, %v6371_v30  ;;  %1019 = vadd.xlane.f32.xlu0 %v7473_v17  ;;  %5015 = vpow2.f32 %v1723_v9  ;;  %v7486_v17 = vld [vmem:[#allocation37_spill] sm:$0xff]  ;;  %v7487_v27 = vld [vmem:[#allocation32_spill] sm:$0xff]  ;;  %v7489_v28 = vld [vmem:[#allocation39_spill] sm:$0xff] }
 0x419   : > { %v6382_v12 = vpop.xlane.xlu1 %1016  ;;  %v6390_v20 = vmul.f32 %v5004_v11, %v7475_v61  ;;  %v6394_v38 = vpop.eup %5005  ;;  %v3136_v11 = vsel %vm593_vm0, %v7483_v24, 0  ;;  %v7490_v9 = vld [vmem:[#allocation31_spill] sm:$0xff] }
 0x41a   : > { %1914 = vmatmul.mubr.bf16.gmra.mrb[52].mxu0 %v1787_v23  ;;  %v1768_v16 = vadd.f32 %v6394_v38, %v6368_v13  ;;  %v5287_v23 = vld [vmem:[%s5566_s18 + $0x38] sm:$0xff]  }
 0x41b   : > { %1921 = vmatprep.mubr.bf16.mxu0 %v1790_v43  ;;  %v1282_v57 = vpack.c.bf16 %v6390_v20, %v6387_v50  ;;  %v3139_v43 = vsel %vm593_vm0, %v7486_v17, 0 }
 0x41c   : > { %1031 = vadd.xlane.f32.xlu0 %v7476_v26  ;;  %v5008_v14 = vpop.eup %5007  ;;  %v7491_v26 = vld [vmem:[#allocation40_spill] sm:$0xff] }
 0x41d   : > { %v1632_v6 = vpop.xlane.xlu1 %1631  ;;  %v5010_v22 = vpop.eup %5009 }
 0x41e   : > { %v1663_v46 = vsub.f32 %v6254_v40, %v1632_v6  ;;  %v1664_v52 = vsub.f32 %v6258_v41, %v1632_v6  ;;  %v1789_v32 = vpack.c.bf16 %v6394_v38, %v5010_v22  ;;  %v6405_v40 = vmul.f32 %v5008_v14, %v7478_v58  ;;  %v7479_v41 = vld [vmem:[#allocation17_spill] sm:$0xff] }
 0x41f   : > { %v1765_v63 = vadd.f32 %v5010_v22, %v6365_v15  ;;  %v7488_v15 = vld [vmem:[#allocation38_spill] sm:$0xff]  ;;  %v3142_v38 = vsel %vm593_vm0, %v7489_v28, 0  ;;  %v7492_v6 = vld [vmem:[#allocation13_spill] sm:$0xff]  ;;  %v3151_v58 = vsel %vm593_vm0, %v7499_v18, 0 }
 0x420   : > { %v5012_v59 = vpop.eup %5011  ;;  %v1725_v45 = vmul.f32 1.442695, %v1663_v46  ;;  %v1727_v37 = vmul.f32 1.442695, %v1664_v52  ;;  %1034 = vadd.xlane.f32.xlu0 %v7477_v47  ;;  %v7493_v14 = vld [vmem:[#allocation41_spill] sm:$0xff]  ;;  %v7494_v52 = vld [vmem:[#allocation34_spill] sm:$0xff] }
 0x421   : > { %v6408_v33 = vmul.f32 %v5012_v59, %v7479_v41  ;;  %v5014_v48 = vpop.eup %5013  ;;  %v3145_v46 = vsel %vm593_vm0, %v7493_v14, 0  ;;  %v7495_v22 = vld [vmem:[#allocation42_spill] sm:$0xff]  ;;  %v7496_v59 = vld [vmem:[#allocation43_spill] sm:$0xff] }
 0x422   : > { %5017 = vpow2.f32 %v1725_v45  ;;  %1922 = vmatmul.mubr.bf16.gmra.mrb[56].mxu0 %v1789_v32  ;;  %v5016_v56 = vpop.eup %5015  ;;  %v3148_v45 = vsel %vm593_vm0, %v7496_v59, 0  ;;  %v7498_v32 = vld [vmem:[#allocation44_spill] sm:$0xff]  ;;  %v6497_v47 = vld [vmem:[%s5566_s18 + $0x40] sm:$0xff]  }
 0x423   : > { %5019 = vpow2.f32 %v1727_v37  ;;  %v1283_v8 = vpack.c.bf16 %v6408_v33, %v6405_v40  ;;  %v1771_v61 = vadd.f32 %v5016_v56, %v5014_v48  ;;  %v7497_v37 = vld [vmem:[#allocation33_spill] sm:$0xff]  ;;  %v6508_v41 = vld [vmem:[%s5566_s18] sm:$0xff]  }
 0x424   : > { %1037 = vadd.xlane.f32.xlu0 %v7480_v55  ;;  %v6522_v55 = vld [vmem:[%s5566_s18 + $0x8] sm:$0xff]  }
 0x425   : > { %3065 = vrot.lane.b32.xlu1 %v5281_v4, %s5353_s20  ;;  %v3062_v4 = vpop.permute.xlu0 %3061 }
 0x42c   : > { %v5018_v29 = vpop.eup %5017 }
 0x42d   : > { %v5020_v53 = vpop.eup %5019  ;;  %v1791_v19 = vpack.c.bf16 %v5018_v29, %v5014_v48  ;;  %v6527_v48 = vld [vmem:[%s5566_s18 + $0x50] sm:$0xff]  }
 0x42e   : > { %v1792_v2 = vpack.c.bf16 %v5020_v53, %v5016_v56  ;;  %v1774_v13 = vadd.f32 %v5020_v53, %v5018_v29  ;;  %v5293_v56 = vld [vmem:[%s5566_s18 + $0x58] sm:$0xff]  }
 0x42f   : > { %v5294_v29 = vld [vmem:[%s5566_s18 + $0x18] sm:$0xff]  }
 0x430   : > { %1929 = vmatprep.mubr.bf16.mxu0 %v1792_v2  ;;  %v5295_v2 = vld [vmem:[%s5458_s15 + $0x38] sm:$0xff]  }
 0x431   : > { %1930 = vmatmul.mubr.bf16.gmra.mrb[60].mxu0 %v1791_v19 }
 0x432   : > { %4428 = vmatprep.mubr.msk.bf16.mxu0 %vm593_vm0, %v6163_v39 }
 0x439   : > { %4429 = vmatmul.mubr.msk.bf16.vlgmr.msra.gmra.mrb[64].mxu0 %vm593_vm0, %v6163_v39  ;;  %v7482_v39 = vld [vmem:[#allocation30_spill] sm:$0xff] }
 0x43a   : > { %4518 = vmatpush3.bf16.xpose.msra.mxu0 %v3130_v21  ;;  %4430 = vmatprep.mubr.msk.bf16.mxu0 %vm593_vm0, %v7481_v10  ;;  %v5296_v21 = vld [vmem:[%s5566_s18 + $0x60] sm:$0xff]  }
 0x43b   : > { %4786 = vmatprep.subr.msk.bf16.mxu0 %vm593_vm0, %v6242_v36  ;;  %3067 = vrot.lane.b32.xlu0 %v5282_v42, %s5353_s20  ;;  %v6440_v36 = vld [vmem:[%s5566_s18 + $0x10] sm:$0xff]  }
 0x43f   : > { %3069 = vrot.lane.b32.xlu0 %v5283_v51, %s5353_s20 }
 0x441   : > { %4431 = vmatmul.mubr.msk.bf16.gmra.mrb[68].mxu0 %vm593_vm0, %v7481_v10 }
 0x442   : > { %4520 = vmatpush3.bf16.xpose.msra.mxu0 %v3133_v44  ;;  %4432 = vmatprep.mubr.msk.bf16.mxu0 %vm593_vm0, %v7482_v39 }
 0x443   : > { %4787 = vmatprep.subr.msk.bf16.mxu0 %vm593_vm0, %v6248_v3  ;;  %2736 = vrot.lane.b32.xlu0 %v6440_v36, %s5352_s19  ;;  %v7484_v3 = vld [vmem:[#allocation29_spill] sm:$0xff] }
 0x447   : > { %2740 = vrot.lane.b32.xlu0 %v5285_v5, %s5352_s19 }
 0x449   : > { %1763 = vadd.xlane.f32.xlu1 %v1762_v7  ;;  %4433 = vmatmul.mubr.msk.bf16.gmra.mrb[72].mxu0 %vm593_vm0, %v7482_v39  ;;  %v5297_v39 = vld [vmem:[%s5566_s18 + $0x68] sm:$0xff]   ;;  %v464_v7 = vld [vmem:[%s7365_s4] sm:$0xf] }
 0x44a   : > { %4522 = vmatpush3.bf16.xpose.msra.mxu0 %v3136_v11  ;;  %4434 = vmatprep.mubr.msk.bf16.mxu0 %vm593_vm0, %v7484_v3 }
 0x44b   : > { %4788 = vmatprep.subr.msk.bf16.mxu0 %vm593_vm0, %v7485_v62  ;;  %2760 = vrot.lane.b32.xlu0 %v5286_v49, %s5352_s19  ;;  %v1734_v19 = vpop.xlane.xlu1 %1733 }
 0x44c   : > { %4775 = vmatprep.subr.msk.bf16.mxu1 %vm2002_vm2, %v464_v7 }
 0x44d   : > { %1766 = vadd.xlane.f32.xlu1 %v1765_v63 }
 0x44f   : > { %2746 = vrot.lane.b32.xlu0 %v5287_v23, %s5352_s19  ;;  %v5298_v23 = vld [vmem:[%s5566_s18 + $0x28] sm:$0xff]  }
 0x451   : > { %1769 = vadd.xlane.f32.xlu1 %v1768_v16  ;;  %4435 = vmatmul.mubr.msk.bf16.gmra.mrb[76].mxu0 %vm593_vm0, %v7484_v3 }
 0x452   : > { %4524 = vmatpush3.bf16.xpose.msra.mxu0 %v3139_v43  ;;  %4436 = vmatprep.mubr.msk.bf16.mxu0 %vm593_vm0, %v7487_v27 }
 0x453   : > { %4789 = vmatprep.subr.msk.bf16.mxu0 %vm593_vm0, %v7488_v15 }
 0x455   : > { %1772 = vadd.xlane.f32.xlu1 %v1771_v61 }
 0x458   : > { %v1743_v10 = vpop.xlane.xlu1 %1742 }
 0x459   : > { %4437 = vmatmul.mubr.msk.bf16.gmra.mrb[80].mxu0 %vm593_vm0, %v7487_v27  ;;  %1775 = vadd.xlane.f32.xlu1 %v1774_v13 }
 0x45a   : > { %4526 = vmatpush3.bf16.xpose.msra.mxu0 %v3142_v38  ;;  %4438 = vmatprep.mubr.msk.bf16.mxu0 %vm593_vm0, %v7490_v9  ;;  %v5299_v38 = vld [vmem:[%s5566_s18 + $0x30] sm:$0xff]  }
 0x45b   : > { %4790 = vmatprep.subr.msk.bf16.mxu0 %vm593_vm0, %v7491_v26 }
 0x45d   : > { %1028 = vadd.xlane.f32.xlu1 %v7492_v6 }
 0x461   : > { %4439 = vmatmul.mubr.msk.bf16.gmra.mrb[84].mxu0 %vm593_vm0, %v7490_v9 }
 0x462   : > { %4528 = vmatpush3.bf16.xpose.msra.mxu0 %v3145_v46  ;;  %4440 = vmatprep.mubr.msk.bf16.mxu0 %vm593_vm0, %v7494_v52  ;;  %v1752_v11 = vpop.xlane.xlu1 %1751 }
 0x463   : > { %4791 = vmatprep.subr.msk.bf16.mxu0 %vm593_vm0, %v7495_v22 }
 0x469   : > { %4441 = vmatmul.mubr.msk.bf16.gmra.mrb[88].mxu0 %vm593_vm0, %v7494_v52 }
 0x46a   : > { %4530 = vmatpush3.bf16.xpose.msra.mxu0 %v3148_v45  ;;  %4442 = vmatprep.mubr.msk.bf16.mxu0 %vm593_vm0, %v7497_v37  ;;  %v5300_v45 = vld [vmem:[%s5566_s18 + $0x78] sm:$0xff]  }
 0x46b   : > { %4792 = vmatprep.subr.msk.bf16.mxu0 %vm593_vm0, %v7498_v32 }
 0x46e   : > { %2748 = vrot.lane.b32.xlu1 %v6497_v47, %s5352_s19 }
 0x471   : > { %4443 = vmatmul.mubr.msk.bf16.gmra.mrb[92].mxu0 %vm593_vm0, %v7497_v37 }
 0x472   : > { %4532 = vmatpush3.bf16.xpose.msra.mxu0 %v3151_v58  ;;  %4533 = vmatprep.mubr.msk.bf16.mxu0 %vm593_vm0, %v6333_v60 }
 0x473   : > { %2732 = vrot.lane.b32.xlu1 %v6508_v41, %s5352_s19 }
 0x477   : > { %2750 = vrot.lane.b32.xlu1 %v6513_v34, %s5352_s19 }
 0x479   : > { %4534 = vmatmul.mubr.msk.bf16.vlgmr.msra.gmra.mrb[96].mxu0 %vm593_vm0, %v6333_v60  ;;  %v3064_v60 = vpop.permute.xlu0 %3063 }
 0x47a   : > { %4535 = vmatprep.mubr.msk.bf16.mxu0 %vm593_vm0, %v6329_v54 }
 0x47b   : > { %2734 = vrot.lane.b32.xlu1 %v6522_v55, %s5352_s19 }
 0x47d   : > { %v1731_v53 = vpop.xlane.xlu0 %1730 }
 0x47e   : > { %5021 = vrcp.f32 %v1731_v53 }
 0x47f   : > { %2752 = vrot.lane.b32.xlu1 %v6527_v48, %s5352_s19  ;;  %5023 = vrcp.f32 %v1734_v19 }
 0x481   : > { %4536 = vmatmul.mubr.msk.bf16.gmra.mrb[100].mxu0 %vm593_vm0, %v6329_v54  ;;  %v1737_v54 = vpop.xlane.xlu0 %1736 }
 0x482   : > { %4537 = vmatprep.mubr.msk.bf16.mxu0 %vm593_vm0, %v3062_v4  ;;  %5025 = vrcp.f32 %v1737_v54 }
 0x483   : > { %2754 = vrot.lane.b32.xlu1 %v5293_v56, %s5352_s19  ;;  %v2128_v56 = vsel %vm2002_vm2, %v464_v7, 0 }
 0x485   : > { %v1740_v42 = vpop.xlane.xlu0 %1739 }
 0x486   : > { %5027 = vrcp.f32 %v1740_v42 }
 0x487   : > { %2738 = vrot.lane.b32.xlu1 %v5294_v29, %s5352_s19  ;;  %5029 = vrcp.f32 %v1743_v10 }
 0x488   : > { %v5022_v62 = vpop.eup %5021 }
 0x489   : > { %4538 = vmatmul.mubr.msk.bf16.gmra.mrb[104].mxu0 %vm593_vm0, %v3062_v4  ;;  %v1746_v63 = vpop.xlane.xlu0 %1745  ;;  %v5024_v16 = vpop.eup %5023 }
 0x48a   : > { %4539 = vmatprep.mubr.msk.bf16.mxu0 %vm593_vm0, %v3064_v60  ;;  %5031 = vrcp.f32 %v1746_v63 }
 0x48b   : > { %3071 = vrot.lane.b32.xlu1 %v5295_v2, %s5353_s20 }
 0x48c   : > { %v5026_v46 = vpop.eup %5025 }
 0x48d   : > { %v1749_v15 = vpop.xlane.xlu0 %1748 }
 0x48f   : > { %2756 = vrot.lane.b32.xlu1 %v5296_v21, %s5352_s19 }
 0x490   : > { %v5028_v59 = vpop.eup %5027 }
 0x491   : > { %4540 = vmatmul.mubr.msk.bf16.gmra.mrb[108].mxu0 %vm593_vm0, %v3064_v60  ;;  %v5030_v21 = vpop.eup %5029 }
 0x492   : > { %v4346_v51 = vpop.f32.mrb[32].mxu0 }
 0x493   : > { %v4347_v44 = vpop.f32.mrb[33].mxu0  ;;  %2758 = vrot.lane.b32.xlu1 %v5297_v39, %s5352_s19 }
 0x494   : > { %v4348_v5 = vadd.f32 %v4347_v44, %v4346_v51  ;;  %v4349_v24 = vpop.f32.mrb[34].mxu0  ;;  %v5032_v51 = vpop.eup %5031 }
 0x495   : > { %v4350_v3 = vpop.f32.mrb[35].mxu0 }
 0x496   : > { %v4351_v49 = vadd.f32 %v4350_v3, %v4349_v24  ;;  %v1954_v17 = vmul.f32 %v5022_v62, %v4348_v5 }
 0x497   : > { %2742 = vrot.lane.b32.xlu1 %v5298_v23, %s5352_s19  ;;  %v7500_v23 = vld [vmem:[#allocation20_spill] sm:$0xff] }
 0x498   : > { %v1955_v43 = vmul.f32 %v5024_v16, %v4351_v49 }
 0x499   : > { %v6553_v27 = vpop.xlane.xlu1 %1754 }
 0x49a   : > { %v1970_v61 = vpack.c.bf16 %v1955_v43, %v1954_v17  ;;  %v4352_v13 = vpop.f32.mrb[36].mxu0  ;;  %v7501_v43 = vld [vmem:[#allocation21_spill] sm:$0xff] }
 0x49b   : > { %v4353_v28 = vpop.f32.mrb[37].mxu0  ;;  %2744 = vrot.lane.b32.xlu1 %v5299_v38, %s5352_s19 }
 0x49c   : > { %v4354_v9 = vadd.f32 %v4353_v28, %v4352_v13  ;;  %v4355_v26 = vpop.f32.mrb[38].mxu0  ;;  %4624 = vmatprep.mubr.msk.bf16.mxu1 %vm593_vm0, %v1970_v61 }
 0x49d   : > { %v4356_v6 = vpop.f32.mrb[39].mxu0  ;;  %v1023_v14 = vpop.xlane.xlu1 %1022 }
 0x49e   : > { %v4357_v52 = vadd.f32 %v4356_v6, %v4355_v26  ;;  %v6558_v22 = vpop.xlane.xlu0 %1757  ;;  %v1956_v37 = vmul.f32 %v5026_v46, %v4354_v9  ;;  %5033 = vrcp.f32 %v1023_v14 }
 0x49f   : > { %2762 = vrot.lane.b32.xlu1 %v5300_v45, %s5352_s19 }
 0x4a0   : > { %v1957_v32 = vmul.f32 %v5028_v59, %v4357_v52  ;;  %v7502_v59 = vld [vmem:[#allocation18_spill] sm:$0xff] }
 0x4a1   : > { %v1026_v18 = vpop.xlane.xlu1 %1025 }
 0x4a2   : > { %v1971_v58 = vpack.c.bf16 %v1957_v32, %v1956_v37  ;;  %v4358_v4 = vpop.f32.mrb[40].mxu0  ;;  %5035 = vrcp.f32 %v1026_v18  ;;  %v6562_v60 = vpop.xlane.xlu0 %1760  ;;  %v7503_v37 = vld [vmem:[#allocation19_spill] sm:$0xff] }
 0x4a3   : > { %5037 = vrcp.f32 %v6382_v12  ;;  %v4359_v29 = vpop.f32.mrb[41].mxu0 }
 0x4a4   : > { %5039 = vrcp.f32 %v1749_v15  ;;  %v4360_v53 = vadd.f32 %v4359_v29, %v4358_v4  ;;  %v4361_v19 = vpop.f32.mrb[42].mxu0  ;;  %4625 = vmatmul.mubr.msk.bf16.vlgmr.msra.gmra.mrb[64].mxu1 %vm593_vm0, %v1971_v58  ;;  %v7504_v4 = vld [vmem:[#allocation23_spill] sm:$0xff] }
 0x4a5   : > { %5041 = vrcp.f32 %v1752_v11  ;;  %v4362_v2 = vpop.f32.mrb[43].mxu0  ;;  %v3066_v54 = vpop.permute.xlu1 %3065  ;;  %4641 = vmatpush3.bf16.msra.mxu1 %v2128_v56 }
 0x4a6   : > { %v4363_v10 = vadd.f32 %v4362_v2, %v4361_v19  ;;  %v1020_v42 = vpop.xlane.xlu0 %1019  ;;  %4541 = vmatprep.mubr.msk.bf16.mxu0 %vm593_vm0, %v3066_v54  ;;  %v1958_v12 = vmul.f32 %v5030_v21, %v4360_v53  ;;  %v7505_v53 = vld [vmem:[#allocation24_spill] sm:$0xff] }
 0x4a7   : > { %5043 = vrcp.f32 %v1020_v42  ;;  %4542 = vmatmul.mubr.msk.bf16.gmra.mrb[112].mxu0 %vm593_vm0, %v3066_v54  ;;  %v7506_v54 = vld [vmem:[#allocation25_spill] sm:$0xff] }
 0x4a8   : > { %v1959_v44 = vmul.f32 %v5032_v51, %v4363_v10  ;;  %v5034_v39 = vpop.eup %5033 }
 0x4a9   : > { %v6571_v17 = vmul.f32 %v5034_v39, %v7500_v23 }
 0x4aa   : > { %v1972_v7 = vpack.c.bf16 %v1959_v44, %v1958_v12  ;;  %v4364_v5 = vpop.f32.mrb[44].mxu0  ;;  %v1032_v24 = vpop.xlane.xlu0 %1031 }
 0x4ab   : > { %5045 = vrcp.f32 %v1032_v24  ;;  %v4365_v11 = vpop.f32.mrb[45].mxu0 }
 0x4ac   : > { %v5036_v3 = vpop.eup %5035  ;;  %v4366_v62 = vadd.f32 %v4365_v11, %v4364_v5  ;;  %v4367_v63 = vpop.f32.mrb[46].mxu0  ;;  %4628 = vmatprep.mubr.msk.bf16.mxu1 %vm593_vm0, %v1972_v7 }
 0x4ad   : > { %v5038_v49 = vpop.eup %5037  ;;  %v4368_v16 = vpop.f32.mrb[47].mxu0  ;;  %v6574_v15 = vmul.f32 %v5036_v3, %v7501_v43 }
 0x4ae   : > { %v5040_v61 = vpop.eup %5039  ;;  %v4369_v13 = vadd.f32 %v4368_v16, %v4367_v63  ;;  %v1035_v28 = vpop.xlane.xlu0 %1034  ;;  %v6579_v45 = vmul.f32 %v5038_v49, %v7502_v59 }
 0x4af   : > { %v5042_v38 = vpop.eup %5041  ;;  %5047 = vrcp.f32 %v1035_v28  ;;  %v1285_v9 = vpack.c.bf16 %v6574_v15, %v6571_v17  ;;  %v1960_v26 = vmul.f32 %v5040_v61, %v4366_v62 }
 0x4b0   : > { %v1961_v6 = vmul.f32 %v5042_v38, %v4369_v13 }
 0x4b1   : > { %v5044_v14 = vpop.eup %5043 }
 0x4b2   : > { %v1973_v46 = vpack.c.bf16 %v1961_v6, %v1960_v26  ;;  %v1038_v52 = vpop.xlane.xlu0 %1037  ;;  %v6582_v32 = vmul.f32 %v5044_v14, %v7503_v37 }
 0x4b3   : > { %5049 = vrcp.f32 %v1038_v52 }
 0x4b4   : > { %4629 = vmatmul.mubr.msk.bf16.gmra.mrb[68].mxu1 %vm593_vm0, %v1973_v46  ;;  %v1284_v18 = vpack.c.bf16 %v6582_v32, %v6579_v45  ;;  %5051 = vrcp.f32 %v6553_v27 }
 0x4b5   : > { %v5046_v58 = vpop.eup %5045  ;;  %5053 = vrcp.f32 %v6558_v22 }
 0x4b6   : > { %v6588_v56 = vmul.f32 %v5046_v58, %v7504_v4  ;;  %v3068_v42 = vpop.permute.xlu0 %3067  ;;  %5055 = vrcp.f32 %v6562_v60 }
 0x4b7   : > { %4543 = vmatprep.mubr.msk.bf16.mxu0 %vm593_vm0, %v3068_v42 }
 0x4b8   : > { %4544 = vmatmul.mubr.msk.bf16.gmra.mrb[116].mxu0 %vm593_vm0, %v3068_v42 }
 0x4b9   : > { %v5048_v29 = vpop.eup %5047 }
 0x4ba   : > { %v6591_v19 = vmul.f32 %v5048_v29, %v7505_v53  ;;  %v3070_v51 = vpop.permute.xlu0 %3069 }
 0x4bb   : > { %4545 = vmatprep.mubr.msk.bf16.mxu0 %vm593_vm0, %v3070_v51 }
 0x4bd   : > { %v5050_v2 = vpop.eup %5049 }
 0x4be   : > { %v6594_v21 = vmul.f32 %v5050_v2, %v7506_v54  ;;  %v5052_v49 = vpop.eup %5051  ;;  %v7507_v54 = vld [vmem:[#allocation22_spill] sm:$0xff] }
 0x4bf   : > { %v5054_v23 = vpop.eup %5053 }
 0x4c0   : > { %v1287_v10 = vpack.c.bf16 %v6594_v21, %v6591_v19  ;;  %4546 = vmatmul.mubr.msk.bf16.gmra.mrb[120].mxu0 %vm593_vm0, %v3070_v51  ;;  %v5056_v14 = vpop.eup %5055 }
 0x4d6   : > { %v1764_v12 = vpop.xlane.xlu1 %1763 }
 0x4d7   : > { %5057 = vrcp.f32 %v1764_v12 }
 0x4da   : > { %v1767_v44 = vpop.xlane.xlu1 %1766 }
 0x4de   : > { %v1770_v39 = vpop.xlane.xlu1 %1769 }
 0x4e1   : > { %v5058_v52 = vpop.eup %5057 }
 0x4e2   : > { %v1773_v7 = vpop.xlane.xlu1 %1772 }
 0x4e5   : > { %v4370_v5 = vpop.f32.mrb[48].mxu0 }
 0x4e6   : > { %v4371_v24 = vpop.f32.mrb[49].mxu0  ;;  %v1776_v11 = vpop.xlane.xlu1 %1775 }
 0x4e7   : > { %v4372_v3 = vadd.f32 %v4371_v24, %v4370_v5  ;;  %v4373_v62 = vpop.f32.mrb[50].mxu0 }
 0x4e8   : > { %v4374_v63 = vpop.f32.mrb[51].mxu0 }
 0x4e9   : > { %v4375_v16 = vadd.f32 %v4374_v63, %v4373_v62  ;;  %v1962_v61 = vmul.f32 %v5052_v49, %v4372_v3 }
 0x4ea   : > { %v1029_v43 = vpop.xlane.xlu1 %1028 }
 0x4eb   : > { %v1963_v13 = vmul.f32 %v5054_v23, %v4375_v16  ;;  %5059 = vrcp.f32 %v1029_v43 }
 0x4ec   : > { %5061 = vrcp.f32 %v1767_v44 }
 0x4ed   : > { %v1974_v27 = vpack.c.bf16 %v1963_v13, %v1962_v61  ;;  %v4376_v28 = vpop.f32.mrb[52].mxu0  ;;  %5063 = vrcp.f32 %v1770_v39 }
 0x4ee   : > { %v4377_v22 = vpop.f32.mrb[53].mxu0  ;;  %v2749_v38 = vpop.permute.xlu1 %2748  ;;  %5065 = vrcp.f32 %v1773_v7 }
 0x4ef   : > { %v4378_v26 = vadd.f32 %v4377_v22, %v4376_v28  ;;  %v4379_v6 = vpop.f32.mrb[54].mxu0  ;;  %4632 = vmatprep.mubr.msk.bf16.mxu1 %vm593_vm0, %v1974_v27  ;;  %4444 = vmatprep.subr.bf16.mxu1 %v2749_v38  ;;  %5067 = vrcp.f32 %v1776_v11 }
 0x4f0   : > { %v4380_v60 = vpop.f32.mrb[55].mxu0 }
 0x4f1   : > { %v4381_v46 = vadd.f32 %v4380_v60, %v4379_v6  ;;  %v1964_v37 = vmul.f32 %v5056_v14, %v4378_v26 }
 0x4f2   : > { %v6606_v59 = vpop.permute.xlu1 %2732 }
 0x4f3   : > { %v1965_v58 = vmul.f32 %v5058_v52, %v4381_v46 }
 0x4f5   : > { %v5060_v4 = vpop.eup %5059  ;;  %v1975_v29 = vpack.c.bf16 %v1965_v58, %v1964_v37  ;;  %v4382_v53 = vpop.f32.mrb[56].mxu0 }
 0x4f6   : > { %v4383_v2 = vpop.f32.mrb[57].mxu0  ;;  %v6609_v42 = vmul.f32 %v5060_v4, %v7507_v54  ;;  %v2751_v51 = vpop.permute.xlu1 %2750 }
 0x4f7   : > { %v4384_v12 = vadd.f32 %v4383_v2, %v4382_v53  ;;  %v4385_v44 = vpop.f32.mrb[58].mxu0  ;;  %4633 = vmatmul.mubr.msk.bf16.gmra.mrb[72].mxu1 %vm593_vm0, %v1975_v29  ;;  %v5062_v24 = vpop.eup %5061 }
 0x4f8   : > { %v4386_v39 = vpop.f32.mrb[59].mxu0  ;;  %v1286_v5 = vpack.c.bf16 %v6588_v56, %v6609_v42  ;;  %v5064_v62 = vpop.eup %5063 }
 0x4f9   : > { %v4387_v3 = vadd.f32 %v4386_v39, %v4385_v44  ;;  %v1966_v49 = vmul.f32 %v5062_v24, %v4384_v12  ;;  %v5066_v6 = vpop.eup %5065 }
 0x4fa   : > { %v2735_v63 = vpop.permute.xlu1 %2734  ;;  %v5068_v14 = vpop.eup %5067 }
 0x4fb   : > { %v1967_v16 = vmul.f32 %v5064_v62, %v4387_v3 }
 0x4fd   : > { %v1976_v23 = vpack.c.bf16 %v1967_v16, %v1966_v49 }
 0x4fe   : > { %v2753_v43 = vpop.permute.xlu1 %2752 }
 0x4ff   : > { %4636 = vmatprep.mubr.msk.bf16.mxu1 %vm593_vm0, %v1976_v23 }
 0x502   : > { %v6615_v61 = vpop.permute.xlu1 %2754 }
 0x504   : > { %v4388_v13 = vpop.f32.mrb[60].mxu0 }
 0x505   : > { %v4389_v27 = vpop.f32.mrb[61].mxu0 }
 0x506   : > { %v4390_v28 = vadd.f32 %v4389_v27, %v4388_v13  ;;  %v4391_v22 = vpop.f32.mrb[62].mxu0  ;;  %v6617_v38 = vpop.permute.xlu1 %2738 }
 0x507   : > { %v4392_v26 = vpop.f32.mrb[63].mxu0 }
 0x508   : > { %v4393_v60 = vadd.f32 %v4392_v26, %v4391_v22  ;;  %v1968_v46 = vmul.f32 %v5066_v6, %v4390_v28 }
 0x50a   : > { %v1969_v52 = vmul.f32 %v5068_v14, %v4393_v60  ;;  %v3072_v37 = vpop.permute.xlu1 %3071 }
 0x50b   : > { %4547 = vmatprep.mubr.msk.bf16.mxu0 %vm593_vm0, %v3072_v37 }
 0x50c   : > { %v1977_v7 = vpack.c.bf16 %v1969_v52, %v1968_v46  ;;  %v2381_v11 = vpop.f32.mrb[64].mxu0  ;;  %4548 = vmatmul.mubr.msk.bf16.gmra.mrb[124].mxu0 %vm593_vm0, %v3072_v37 }
 0x50d   : > { %v2383_v58 = vpop.f32.mrb[65].mxu0  ;;  %v6622_v53 = vmul.f32 0.35355338, %v2381_v11 }
 0x50e   : > { %v2461_v4 = vmul.f32 0.35355338, %v2383_v58  ;;  %4637 = vmatmul.mubr.msk.bf16.gmra.mrb[76].mxu1 %vm593_vm0, %v1977_v7  ;;  %v2385_v29 = vpop.f32.mrb[66].mxu0  ;;  %v2757_v62 = vpop.permute.xlu1 %2756 }
 0x50f   : > { %4642 = vmatprep.mubr.msk.bf16.mxu1 %vm593_vm0, %v1280_v25  ;;  %v2387_v2 = vpop.f32.mrb[67].mxu0  ;;  %v6634_v24 = vmul.f32 0.35355338, %v2385_v29 }
 0x510   : > { %v6630_v12 = vsel %vm472_vm1, %v2461_v4, -1e+30  ;;  %v2463_v44 = vmul.f32 0.35355338, %v2387_v2 }
 0x511   : > { %v2524_v39 = vmax.f32 %v6622_v53, %v6630_v12 }
 0x512   : > { %v6638_v3 = vsel %vm472_vm1, %v2463_v44, -1e+30  ;;  %v2759_v20 = vpop.permute.xlu1 %2758 }
 0x513   : > { %v2527_v1 = vmax.f32 %v6634_v24, %v6638_v3  ;;  %2525 = vmax.xlane.f32.xlu1 %v2524_v39 }
 0x514   : > { %v2391_v31 = vpop.f32.mrb[68].mxu0 }
 0x515   : > { %2528 = vmax.xlane.f32.xlu0 %v2527_v1  ;;  %v2393_v25 = vpop.f32.mrb[69].mxu0  ;;  %v6646_v23 = vmul.f32 0.35355338, %v2391_v31 }
 0x516   : > { %v2465_v49 = vmul.f32 0.35355338, %v2393_v25  ;;  %4643 = vmatmul.mubr.msk.bf16.vlgmr.msra.gmra.mrb[64].mxu1 %vm593_vm0, %v1281_v35  ;;  %v2395_v16 = vpop.f32.mrb[70].mxu0 }
 0x517   : > { %4646 = vmatprep.mubr.msk.bf16.mxu1 %vm593_vm0, %v1282_v57  ;;  %v2397_v13 = vpop.f32.mrb[71].mxu0  ;;  %4445 = vmatpush3.bf16.msra.mxu1 %v6606_v59  ;;  %v6659_v0 = vmul.f32 0.35355338, %v2395_v16  ;;  %v2737_v59 = vpop.permute.xlu0 %2736 }
 0x518   : > { %v6655_v27 = vsel %vm472_vm1, %v2465_v49, -1e+30  ;;  %v2467_v28 = vmul.f32 0.35355338, %v2397_v13  ;;  %4446 = vmatprep.subr.bf16.mxu1 %v2751_v51 }
 0x519   : > { %v2530_v30 = vmax.f32 %v6646_v23, %v6655_v27 }
 0x51a   : > { %v6663_v35 = vsel %vm472_vm1, %v2467_v28, -1e+30 }
 0x51b   : > { %v2533_v50 = vmax.f32 %v6659_v0, %v6663_v35  ;;  %2531 = vmax.xlane.f32.xlu1 %v2530_v30  ;;  %4447 = vmatpush3.bf16.msra.mxu1 %v2735_v63  ;;  %v2741_v14 = vpop.permute.xlu0 %2740 }
 0x51c   : > { %v2401_v57 = vpop.f32.mrb[72].mxu0  ;;  %4448 = vmatprep.subr.bf16.mxu1 %v2753_v43 }
 0x51d   : > { %2534 = vmax.xlane.f32.xlu0 %v2533_v50  ;;  %v2403_v51 = vpop.f32.mrb[73].mxu0  ;;  %v6671_v6 = vmul.f32 0.35355338, %v2401_v57 }
 0x51e   : > { %v2469_v22 = vmul.f32 0.35355338, %v2403_v51  ;;  %4647 = vmatmul.mubr.msk.bf16.gmra.mrb[68].mxu1 %vm593_vm0, %v1283_v8  ;;  %v2405_v26 = vpop.f32.mrb[74].mxu0  ;;  %v2743_v8 = vpop.permute.xlu1 %2742 }
 0x51f   : > { %4650 = vmatprep.mubr.msk.bf16.mxu1 %vm593_vm0, %v1284_v18  ;;  %v2407_v63 = vpop.f32.mrb[75].mxu0  ;;  %4449 = vmatpush3.bf16.msra.mxu1 %v2737_v59  ;;  %v6684_v33 = vmul.f32 0.35355338, %v2405_v26 }
 0x520   : > { %v6679_v43 = vsel %vm472_vm1, %v2469_v22, -1e+30  ;;  %v2471_v60 = vmul.f32 0.35355338, %v2407_v63  ;;  %4450 = vmatprep.subr.bf16.mxu1 %v6615_v61 }
 0x521   : > { %v2536_v40 = vmax.f32 %v6671_v6, %v6679_v43 }
 0x522   : > { %v6688_v45 = vsel %vm472_vm1, %v2471_v60, -1e+30  ;;  %v2745_v7 = vpop.permute.xlu1 %2744 }
 0x523   : > { %v2539_v32 = vmax.f32 %v6684_v33, %v6688_v45  ;;  %2537 = vmax.xlane.f32.xlu1 %v2536_v40  ;;  %4451 = vmatpush3.bf16.msra.mxu1 %v6617_v38 }
 0x524   : > { %v2411_v18 = vpop.f32.mrb[76].mxu0  ;;  %4452 = vmatprep.subr.bf16.mxu1 %v2757_v62 }
 0x525   : > { %2540 = vmax.xlane.f32.xlu0 %v2539_v32  ;;  %v2413_v61 = vpop.f32.mrb[77].mxu0  ;;  %v6697_v37 = vmul.f32 0.35355338, %v2411_v18 }
 0x526   : > { %v2473_v46 = vmul.f32 0.35355338, %v2413_v61  ;;  %4651 = vmatmul.mubr.msk.bf16.gmra.mrb[72].mxu1 %vm593_vm0, %v1285_v9  ;;  %v2415_v52 = vpop.f32.mrb[78].mxu0  ;;  %v2761_v9 = vpop.permute.xlu0 %2760 }
 0x527   : > { %4654 = vmatprep.mubr.msk.bf16.mxu1 %vm593_vm0, %v1286_v5  ;;  %v2417_v38 = vpop.f32.mrb[79].mxu0  ;;  %4453 = vmatpush3.bf16.msra.mxu1 %v2741_v14  ;;  %v6709_v15 = vmul.f32 0.35355338, %v2415_v52  ;;  %v2763_v29 = vpop.permute.xlu1 %2762 }
 0x528   : > { %v6705_v11 = vsel %vm472_vm1, %v2473_v46, -1e+30  ;;  %v2475_v58 = vmul.f32 0.35355338, %v2417_v38  ;;  %4454 = vmatprep.subr.bf16.mxu1 %v2759_v20 }
 0x529   : > { %v2542_v17 = vmax.f32 %v6697_v37, %v6705_v11 }
 0x52a   : > { %v6713_v56 = vsel %vm472_vm1, %v2475_v58, -1e+30  ;;  %v2747_v62 = vpop.permute.xlu0 %2746 }
 0x52b   : > { %v2545_v42 = vmax.f32 %v6709_v15, %v6713_v56  ;;  %2543 = vmax.xlane.f32.xlu1 %v2542_v17  ;;  %4455 = vmatpush3.bf16.msra.mxu1 %v2743_v8 }
 0x52c   : > { %v2421_v5 = vpop.f32.mrb[80].mxu0  ;;  %4456 = vmatprep.subr.bf16.mxu1 %v2761_v9 }
 0x52d   : > { %2546 = vmax.xlane.f32.xlu0 %v2545_v42  ;;  %v2423_v4 = vpop.f32.mrb[81].mxu0  ;;  %v6721_v39 = vmul.f32 0.35355338, %v2421_v5 }
 0x52e   : > { %v2477_v2 = vmul.f32 0.35355338, %v2423_v4  ;;  %4655 = vmatmul.mubr.msk.bf16.gmra.mrb[76].mxu1 %vm593_vm0, %v1287_v10  ;;  %v2425_v44 = vpop.f32.mrb[82].mxu0 }
 0x52f   : > { %v2427_v1 = vpop.f32.mrb[83].mxu0  ;;  %4457 = vmatpush3.bf16.msra.mxu1 %v2745_v7  ;;  %v6729_v16 = vmul.f32 0.35355338, %v2425_v44 }
 0x530   : > { %v6725_v31 = vsel %vm472_vm1, %v2477_v2, -1e+30  ;;  %v2479_v25 = vmul.f32 0.35355338, %v2427_v1  ;;  %4458 = vmatprep.subr.bf16.mxu1 %v2763_v29 }
 0x531   : > { %v2548_v49 = vmax.f32 %v6721_v39, %v6725_v31 }
 0x532   : > { %v6733_v19 = vsel %vm472_vm1, %v2479_v25, -1e+30 }
 0x533   : > { %v2551_v21 = vmax.f32 %v6729_v16, %v6733_v19  ;;  %2549 = vmax.xlane.f32.xlu1 %v2548_v49  ;;  %4459 = vmatpush3.bf16.msra.mxu1 %v2747_v62 }
 0x534   : > { %v2431_v10 = vpop.f32.mrb[84].mxu0 }
 0x535   : > { %2552 = vmax.xlane.f32.xlu0 %v2551_v21  ;;  %v2433_v13 = vpop.f32.mrb[85].mxu0  ;;  %v6737_v50 = vmul.f32 0.35355338, %v2431_v10 }
 0x536   : > { %v2481_v28 = vmul.f32 0.35355338, %v2433_v13  ;;  %v2435_v30 = vpop.f32.mrb[86].mxu0 }
 0x537   : > { %v2437_v20 = vpop.f32.mrb[87].mxu0  ;;  %v6745_v22 = vmul.f32 0.35355338, %v2435_v30 }
 0x538   : > { %v6741_v57 = vsel %vm472_vm1, %v2481_v28, -1e+30  ;;  %v2483_v59 = vmul.f32 0.35355338, %v2437_v20 }
 0x539   : > { %v2554_v51 = vmax.f32 %v6737_v50, %v6741_v57 }
 0x53a   : > { %v6749_v26 = vsel %vm472_vm1, %v2483_v59, -1e+30 }
 0x53b   : > { %v2557_v63 = vmax.f32 %v6745_v22, %v6749_v26  ;;  %2555 = vmax.xlane.f32.xlu0 %v2554_v51 }
 0x53c   : > { %v2441_v60 = vpop.f32.mrb[88].mxu0 }
 0x53d   : > { %v2443_v40 = vpop.f32.mrb[89].mxu0  ;;  %2558 = vmax.xlane.f32.xlu1 %v2557_v63  ;;  %v6753_v18 = vmul.f32 0.35355338, %v2441_v60 }
 0x53e   : > { %v2485_v8 = vmul.f32 0.35355338, %v2443_v40  ;;  %v2445_v32 = vpop.f32.mrb[90].mxu0 }
 0x53f   : > { %v2447_v14 = vpop.f32.mrb[91].mxu0  ;;  %v6761_v38 = vmul.f32 0.35355338, %v2445_v32 }
 0x540   : > { %v6757_v61 = vsel %vm472_vm1, %v2485_v8, -1e+30  ;;  %v2487_v46 = vmul.f32 0.35355338, %v2447_v14 }
 0x541   : > { %v2560_v52 = vmax.f32 %v6753_v18, %v6757_v61 }
 0x542   : > { %v6765_v7 = vsel %vm472_vm1, %v2487_v46, -1e+30 }
 0x543   : > { %v2563_v58 = vmax.f32 %v6761_v38, %v6765_v7  ;;  %2561 = vmax.xlane.f32.xlu0 %v2560_v52 }
 0x544   : > { %v2451_v17 = vpop.f32.mrb[92].mxu0 }
 0x545   : > { %v2453_v9 = vpop.f32.mrb[93].mxu0  ;;  %2564 = vmax.xlane.f32.xlu1 %v2563_v58  ;;  %v6769_v4 = vmul.f32 0.35355338, %v2451_v17 }
 0x546   : > { %v2489_v42 = vmul.f32 0.35355338, %v2453_v9  ;;  %v2455_v5 = vpop.f32.mrb[94].mxu0 }
 0x547   : > { %v2457_v29 = vpop.f32.mrb[95].mxu0  ;;  %v6777_v25 = vmul.f32 0.35355338, %v2455_v5 }
 0x548   : > { %v6773_v2 = vsel %vm472_vm1, %v2489_v42, -1e+30  ;;  %v2491_v44 = vmul.f32 0.35355338, %v2457_v29 }
 0x549   : > { %v2566_v1 = vmax.f32 %v6769_v4, %v6773_v2 }
 0x54a   : > { %v6781_v62 = vsel %vm472_vm1, %v2491_v44, -1e+30  ;;  %v6816_v44 = vld [vmem:[%s7365_s4 + $0x8] sm:$0xf] }
 0x54b   : > { %v2569_v49 = vmax.f32 %v6777_v25, %v6781_v62  ;;  %2567 = vmax.xlane.f32.xlu0 %v2566_v1  ;;  %4784 = vmatprep.subr.msk.bf16.mxu1 %vm2002_vm2, %v6816_v44 }
 0x54c   : > { %v3211_v21 = vpop.f32.mrb[96].mxu0 }
 0x54d   : > { %v3213_v10 = vpop.f32.mrb[97].mxu0  ;;  %2570 = vmax.xlane.f32.xlu1 %v2569_v49  ;;  %v6785_v30 = vmul.f32 0.35355338, %v3211_v21 }
 0x54e   : > { %v3291_v13 = vmul.f32 0.35355338, %v3213_v10  ;;  %v3215_v28 = vpop.f32.mrb[98].mxu0 }
 0x54f   : > { %v3217_v20 = vpop.f32.mrb[99].mxu0  ;;  %v6793_v60 = vmul.f32 0.35355338, %v3215_v28 }
 0x550   : > { %v6789_v59 = vsel %vm472_vm1, %v3291_v13, -1e+30  ;;  %v3293_v51 = vmul.f32 0.35355338, %v3217_v20 }
 0x551   : > { %v3354_v63 = vmax.f32 %v6785_v30, %v6789_v59 }
 0x552   : > { %v6797_v40 = vsel %vm472_vm1, %v3293_v51, -1e+30 }
 0x553   : > { %v3357_v8 = vmax.f32 %v6793_v60, %v6797_v40  ;;  %3355 = vmax.xlane.f32.xlu0 %v3354_v63 }
 0x554   : > { %v3221_v32 = vpop.f32.mrb[100].mxu0 }
 0x555   : > { %v3223_v14 = vpop.f32.mrb[101].mxu0  ;;  %3358 = vmax.xlane.f32.xlu1 %v3357_v8 }
 0x556   : > { %v3225_v46 = vpop.f32.mrb[102].mxu0  ;;  %v3295_v20 = vmul.f32 0.35355338, %v3223_v14 }
 0x557   : > { %v3227_v52 = vpop.f32.mrb[103].mxu0 }
 0x558   : > { %v3297_v28 = vmul.f32 0.35355338, %v3227_v52 }
 0x55a   : > { %v6842_v51 = vsel %vm472_vm1, %v3297_v28, -1e+30 }
 0x55c   : > { %v6801_v58 = vpop.f32.mrb[104].mxu0 }
 0x55d   : > { %v6803_v17 = vpop.f32.mrb[105].mxu0 }
 0x55e   : > { %v6805_v9 = vpop.f32.mrb[106].mxu0 }
 0x55f   : > { %v6807_v42 = vpop.f32.mrb[107].mxu0 }
 0x564   : > { %v6809_v5 = vpop.f32.mrb[108].mxu0 }
 0x565   : > { %v6811_v29 = vpop.f32.mrb[109].mxu0 }
 0x566   : > { %3562 = vrot.lane.b32.xlu1 %v6508_v41, %s5353_s20  ;;  %v6820_v1 = vpop.f32.mrb[110].mxu0 }
 0x567   : > { %v6824_v49 = vpop.f32.mrb[111].mxu0 }
 0x569   : > { %3578 = vrot.lane.b32.xlu0 %v6497_v47, %s5353_s20  ;;  %v6844_v47 = vmul.f32 0.35355338, %v3225_v46 }
 0x56a   : > { %3580 = vrot.lane.b32.xlu1 %v6513_v34, %s5353_s20  ;;  %v6848_v34 = vsel %vm472_vm1, %v3295_v20, -1e+30 }
 0x56b   : > { %v3363_v63 = vmax.f32 %v6844_v47, %v6842_v51 }
 0x56d   : > { %3564 = vrot.lane.b32.xlu0 %v6522_v55, %s5353_s20  ;;  %v6850_v55 = vmul.f32 0.35355338, %v3221_v32 }
 0x56f   : > { %v3360_v8 = vmax.f32 %v6850_v55, %v6848_v34 }
 0x57a   : > { %v6832_v21 = vpop.f32.mrb[112].mxu0 }
 0x57b   : > { %7509 = vst [vmem:[#allocation26_spill] sm:$0xff] %v6832_v21  ;;  %v6834_v10 = vpop.f32.mrb[113].mxu0 }
 0x57c   : > { %7510 = vst [vmem:[#allocation27_spill] sm:$0xff] %v6834_v10  ;;  %v6836_v41 = vpop.f32.mrb[114].mxu0 }
 0x57d   : > { %7511 = vst [vmem:[#allocation2_spill] sm:$0xff] %v6836_v41  ;;  %v6838_v13 = vpop.f32.mrb[115].mxu0 }
 0x58b   : > { %v6860_v28 = vpop.f32.mrb[116].mxu0 }
 0x58c   : > { %3364 = vmax.xlane.f32.xlu0 %v3363_v63  ;;  %7512 = vst [vmem:[#allocation3_spill] sm:$0xff] %v6860_v28  ;;  %v6864_v20 = vpop.f32.mrb[117].mxu0 }
 0x58d   : > { %v6868_v41 = vpop.f32.mrb[118].mxu0 }
 0x58e   : > { %3361 = vmax.xlane.f32.xlu1 %v3360_v8  ;;  %7513 = vst [vmem:[#allocation12_spill] sm:$0xff] %v6868_v41 }
 0x59f   : > { %3566 = vrot.lane.b32.xlu1 %v6440_v36, %s5353_s20  ;;  %v6870_v36 = vpop.f32.mrb[119].mxu0 }
 0x5a0   : > { %v2526_v14 = vpop.xlane.xlu1 %2525 }
 0x5a1   : > { %v2572_v46 = vsub.f32 %v6622_v53, %v2526_v14  ;;  %v2573_v52 = vsub.f32 %v6630_v12, %v2526_v14 }
 0x5a2   : > { %3582 = vrot.lane.b32.xlu0 %v6527_v48, %s5353_s20  ;;  %v2529_v32 = vpop.xlane.xlu0 %2528  ;;  %v6872_v48 = vpop.f32.mrb[120].mxu0 }
 0x5a3   : > { %v2604_v21 = vmul.f32 1.442695, %v2572_v46  ;;  %v2574_v63 = vsub.f32 %v6634_v24, %v2529_v32  ;;  %v2575_v8 = vsub.f32 %v6638_v3, %v2529_v32  ;;  %v2606_v53 = vmul.f32 1.442695, %v2573_v52  ;;  %7514 = vst [vmem:[#allocation9_spill] sm:$0xff] %v6872_v48  ;;  %v6876_v28 = vpop.f32.mrb[121].mxu0 }
 0x5a4   : > { %v6878_v32 = vpop.f32.mrb[122].mxu0 }
 0x5a5   : > { %v2608_v10 = vmul.f32 1.442695, %v2574_v63  ;;  %v2610_v12 = vmul.f32 1.442695, %v2575_v8  ;;  %5069 = vpow2.f32 %v2604_v21  ;;  %7515 = vst [vmem:[#allocation4_spill] sm:$0xff] %v6878_v32 }
 0x5a7   : > { %5071 = vpow2.f32 %v2608_v10  ;;  %v6882_v10 = vpop.f32.mrb[123].mxu0 }
 0x5a8   : > { %5073 = vpow2.f32 %v2610_v12  ;;  %v2532_v14 = vpop.xlane.xlu1 %2531  ;;  %7516 = vst [vmem:[#allocation6_spill] sm:$0xff] %v6882_v10 }
 0x5a9   : > { %5075 = vpow2.f32 %v2606_v53  ;;  %v2576_v46 = vsub.f32 %v6646_v23, %v2532_v14  ;;  %v2577_v24 = vsub.f32 %v6655_v27, %v2532_v14 }
 0x5aa   : > { %v2535_v3 = vpop.xlane.xlu0 %2534 }
 0x5ab   : > { %v2612_v41 = vmul.f32 1.442695, %v2576_v46  ;;  %v2578_v52 = vsub.f32 %v6659_v0, %v2535_v3  ;;  %v2579_v21 = vsub.f32 %v6663_v35, %v2535_v3  ;;  %v2614_v63 = vmul.f32 1.442695, %v2577_v24 }
 0x5ad   : > { %v2616_v8 = vmul.f32 1.442695, %v2578_v52  ;;  %v2618_v12 = vmul.f32 1.442695, %v2579_v21  ;;  %5077 = vpow2.f32 %v2612_v41 }
 0x5af   : > { %5079 = vpow2.f32 %v2616_v8  ;;  %v5070_v23 = vpop.eup %5069 }
 0x5b0   : > { %5081 = vpow2.f32 %v2618_v12  ;;  %v2538_v27 = vpop.xlane.xlu1 %2537 }
 0x5b1   : > { %v5072_v53 = vpop.eup %5071  ;;  %5083 = vpow2.f32 %v2614_v63  ;;  %v2580_v14 = vsub.f32 %v6671_v6, %v2538_v27  ;;  %v2581_v46 = vsub.f32 %v6679_v43, %v2538_v27  ;;  %v2942_v63 = vsel %vm2002_vm2, %v6816_v44, 0 }
 0x5b2   : > { %v5074_v32 = vpop.eup %5073  ;;  %v2541_v0 = vpop.xlane.xlu0 %2540  ;;  %v2716_v48 = vpack.c.bf16 %v5072_v53, %v5070_v23 }
 0x5b3   : > { %v5076_v35 = vpop.eup %5075  ;;  %v2620_v3 = vmul.f32 1.442695, %v2580_v14  ;;  %v2622_v10 = vmul.f32 1.442695, %v2581_v46  ;;  %v2582_v24 = vsub.f32 %v6684_v33, %v2541_v0  ;;  %v2583_v41 = vsub.f32 %v6688_v45, %v2541_v0 }
 0x5b4   : > { %v2717_v52 = vpack.c.bf16 %v5074_v32, %v5076_v35 }
 0x5b5   : > { %5085 = vpow2.f32 %v2620_v3  ;;  %v2624_v21 = vmul.f32 1.442695, %v2582_v24  ;;  %v2626_v8 = vmul.f32 1.442695, %v2583_v41 }
 0x5b6   : > { %5087 = vpow2.f32 %v2622_v10  ;;  %2812 = vmatprep.mubr.bf16.mxu1 %v2717_v52 }
 0x5b7   : > { %5089 = vpow2.f32 %v2624_v21  ;;  %2813 = vmatmul.mubr.bf16.vlgmr.msra.gmra.mrb[80].mxu1 %v2716_v48  ;;  %v5078_v6 = vpop.eup %5077 }
 0x5b8   : > { %5091 = vpow2.f32 %v2626_v8  ;;  %v2544_v43 = vpop.xlane.xlu1 %2543  ;;  %4659 = vmatpush3.bf16.msra.mxu1 %v2942_v63 }
 0x5b9   : > { %v5080_v12 = vpop.eup %5079  ;;  %v2584_v33 = vsub.f32 %v6697_v37, %v2544_v43  ;;  %v2585_v45 = vsub.f32 %v6705_v11, %v2544_v43  ;;  %v2671_v37 = vadd.f32 %v5074_v32, %v5072_v53 }
 0x5ba   : > { %v5082_v27 = vpop.eup %5081  ;;  %v2547_v14 = vpop.xlane.xlu0 %2546  ;;  %v2718_v46 = vpack.c.bf16 %v5080_v12, %v5078_v6 }
 0x5bb   : > { %v5084_v0 = vpop.eup %5083  ;;  %v2628_v3 = vmul.f32 1.442695, %v2584_v33  ;;  %v2630_v24 = vmul.f32 1.442695, %v2585_v45  ;;  %v2586_v44 = vsub.f32 %v6709_v15, %v2547_v14  ;;  %v2587_v10 = vsub.f32 %v6713_v56, %v2547_v14 }
 0x5bc   : > { %v2719_v48 = vpack.c.bf16 %v5082_v27, %v5084_v0  ;;  %v2668_v56 = vadd.f32 %v5076_v35, %v5070_v23  ;;  %v2677_v23 = vadd.f32 %v5082_v27, %v5080_v12 }
 0x5bd   : > { %5093 = vpow2.f32 %v2628_v3  ;;  %v2632_v41 = vmul.f32 1.442695, %v2586_v44  ;;  %v2634_v52 = vmul.f32 1.442695, %v2587_v10  ;;  %v2674_v3 = vadd.f32 %v5084_v0, %v5078_v6 }
 0x5be   : > { %5095 = vpow2.f32 %v2630_v24  ;;  %2820 = vmatprep.mubr.bf16.mxu1 %v2719_v48 }
 0x5bf   : > { %v5086_v21 = vpop.eup %5085  ;;  %5097 = vpow2.f32 %v2632_v41  ;;  %2821 = vmatmul.mubr.bf16.gmra.mrb[84].mxu1 %v2718_v46 }
 0x5c0   : > { %v5088_v11 = vpop.eup %5087  ;;  %5099 = vpow2.f32 %v2634_v52  ;;  %v2550_v8 = vpop.xlane.xlu1 %2549 }
 0x5c1   : > { %v5090_v63 = vpop.eup %5089  ;;  %v2588_v43 = vsub.f32 %v6721_v39, %v2550_v8  ;;  %v2589_v15 = vsub.f32 %v6725_v31, %v2550_v8  ;;  %2672 = vadd.xlane.f32.xlu0 %v2671_v37  ;;  %v6896_v33 = vadd.f32 %v5088_v11, %v5086_v21 }
 0x5c2   : > { %v5092_v45 = vpop.eup %5091  ;;  %v2553_v14 = vpop.xlane.xlu0 %2552  ;;  %v2720_v24 = vpack.c.bf16 %v5090_v63, %v5086_v21 }
 0x5c3   : > { %v2636_v44 = vmul.f32 1.442695, %v2588_v43  ;;  %v2638_v10 = vmul.f32 1.442695, %v2589_v15  ;;  %v2590_v32 = vsub.f32 %v6729_v16, %v2553_v14  ;;  %v2591_v53 = vsub.f32 %v6733_v19, %v2553_v14  ;;  %2669 = vadd.xlane.f32.xlu1 %v2668_v56 }
 0x5c4   : > { %v2721_v46 = vpack.c.bf16 %v5092_v45, %v5088_v11  ;;  %v6900_v48 = vadd.f32 %v5092_v45, %v5090_v63 }
 0x5c5   : > { %5101 = vpow2.f32 %v2636_v44  ;;  %v2640_v39 = vmul.f32 1.442695, %v2590_v32  ;;  %v2642_v31 = vmul.f32 1.442695, %v2591_v53  ;;  %2675 = vadd.xlane.f32.xlu0 %v2674_v3 }
 0x5c6   : > { %5103 = vpow2.f32 %v2638_v10  ;;  %2828 = vmatprep.mubr.bf16.mxu1 %v2721_v46 }
 0x5c7   : > { %v5094_v35 = vpop.eup %5093  ;;  %5105 = vpow2.f32 %v2640_v39  ;;  %2829 = vmatmul.mubr.bf16.gmra.mrb[88].mxu1 %v2720_v24  ;;  %2678 = vadd.xlane.f32.xlu1 %v2677_v23 }
 0x5c8   : > { %v5096_v6 = vpop.eup %5095  ;;  %5107 = vpow2.f32 %v2642_v31  ;;  %v2556_v16 = vpop.xlane.xlu0 %2555 }
 0x5c9   : > { %v5098_v0 = vpop.eup %5097  ;;  %v2592_v19 = vsub.f32 %v6737_v50, %v2556_v16  ;;  %v2593_v41 = vsub.f32 %v6741_v57, %v2556_v16  ;;  %v6904_v52 = vadd.f32 %v5096_v6, %v5094_v35 }
 0x5ca   : > { %v5100_v21 = vpop.eup %5099  ;;  %v2559_v37 = vpop.xlane.xlu1 %2558  ;;  %v2722_v11 = vpack.c.bf16 %v5098_v0, %v5094_v35 }
 0x5cb   : > { %v2644_v12 = vmul.f32 1.442695, %v2592_v19  ;;  %v2646_v27 = vmul.f32 1.442695, %v2593_v41  ;;  %v2594_v8 = vsub.f32 %v6745_v22, %v2559_v37  ;;  %v2595_v63 = vsub.f32 %v6749_v26, %v2559_v37 }
 0x5cc   : > { %v2723_v43 = vpack.c.bf16 %v5100_v21, %v5096_v6  ;;  %v6908_v15 = vadd.f32 %v5100_v21, %v5098_v0  ;;  %v5301_v0 = vld [vmem:[%s5566_s18 + $0x18] sm:$0xff]  }
 0x5cd   : > { %5109 = vpow2.f32 %v2644_v12  ;;  %v2648_v56 = vmul.f32 1.442695, %v2594_v8  ;;  %v2650_v45 = vmul.f32 1.442695, %v2595_v63 }
 0x5ce   : > { %5111 = vpow2.f32 %v2646_v27  ;;  %2836 = vmatprep.mubr.bf16.mxu1 %v2723_v43 }
 0x5cf   : > { %v5102_v50 = vpop.eup %5101  ;;  %5113 = vpow2.f32 %v2648_v56  ;;  %2837 = vmatmul.mubr.bf16.gmra.mrb[92].mxu1 %v2722_v11  ;;  %v5302_v56 = vld [vmem:[%s5566_s18 + $0x58] sm:$0xff]  }
 0x5d0   : > { %v5104_v57 = vpop.eup %5103  ;;  %5115 = vpow2.f32 %v2650_v45  ;;  %v2562_v14 = vpop.xlane.xlu0 %2561 }
 0x5d1   : > { %v5106_v3 = vpop.eup %5105  ;;  %v2596_v24 = vsub.f32 %v6753_v18, %v2562_v14  ;;  %v2597_v22 = vsub.f32 %v6757_v61, %v2562_v14  ;;  %v6912_v26 = vadd.f32 %v5104_v57, %v5102_v50 }
 0x5d2   : > { %v5108_v44 = vpop.eup %5107  ;;  %v2565_v10 = vpop.xlane.xlu1 %2564  ;;  %v2724_v32 = vpack.c.bf16 %v5106_v3, %v5102_v50 }
 0x5d3   : > { %v2652_v53 = vmul.f32 1.442695, %v2596_v24  ;;  %v2654_v46 = vmul.f32 1.442695, %v2597_v22  ;;  %v2598_v39 = vsub.f32 %v6761_v38, %v2565_v10  ;;  %v2599_v31 = vsub.f32 %v6765_v7, %v2565_v10 }
 0x5d4   : > { %v2725_v23 = vpack.c.bf16 %v5108_v44, %v5104_v57  ;;  %v6916_v35 = vadd.f32 %v5108_v44, %v5106_v3 }
 0x5d5   : > { %5117 = vpow2.f32 %v2652_v53  ;;  %v2656_v6 = vmul.f32 1.442695, %v2598_v39  ;;  %v2658_v18 = vmul.f32 1.442695, %v2599_v31 }
 0x5d6   : > { %5119 = vpow2.f32 %v2654_v46  ;;  %2844 = vmatprep.mubr.bf16.mxu1 %v2725_v23 }
 0x5d7   : > { %v5110_v61 = vpop.eup %5109  ;;  %5121 = vpow2.f32 %v2656_v6  ;;  %2845 = vmatmul.mubr.bf16.gmra.mrb[96].mxu1 %v2724_v32 }
 0x5d8   : > { %v5112_v16 = vpop.eup %5111  ;;  %5123 = vpow2.f32 %v2658_v18  ;;  %3568 = vrot.lane.b32.xlu1 %v5301_v0, %s5353_s20  ;;  %v2568_v38 = vpop.xlane.xlu0 %2567 }
 0x5d9   : > { %v5114_v19 = vpop.eup %5113  ;;  %v2600_v7 = vsub.f32 %v6769_v4, %v2568_v38  ;;  %v2601_v41 = vsub.f32 %v6773_v2, %v2568_v38  ;;  %v6922_v21 = vadd.f32 %v5112_v16, %v5110_v61 }
 0x5da   : > { %v5116_v37 = vpop.eup %5115  ;;  %v2571_v11 = vpop.xlane.xlu1 %2570  ;;  %v2726_v12 = vpack.c.bf16 %v5114_v19, %v5110_v61 }
 0x5db   : > { %v2660_v27 = vmul.f32 1.442695, %v2600_v7  ;;  %v2662_v8 = vmul.f32 1.442695, %v2601_v41  ;;  %v2602_v63 = vsub.f32 %v6777_v25, %v2571_v11  ;;  %v2603_v43 = vsub.f32 %v6781_v62, %v2571_v11  ;;  %3584 = vrot.lane.b32.xlu0 %v5302_v56, %s5353_s20 }
 0x5dc   : > { %v2727_v45 = vpack.c.bf16 %v5116_v37, %v5112_v16  ;;  %v6928_v50 = vadd.f32 %v5116_v37, %v5114_v19 }
 0x5dd   : > { %5125 = vpow2.f32 %v2660_v27  ;;  %v2664_v4 = vmul.f32 1.442695, %v2602_v63  ;;  %v2666_v2 = vmul.f32 1.442695, %v2603_v43 }
 0x5de   : > { %5127 = vpow2.f32 %v2662_v8  ;;  %2852 = vmatprep.mubr.bf16.mxu1 %v2727_v45 }
 0x5df   : > { %v5118_v57 = vpop.eup %5117  ;;  %5129 = vpow2.f32 %v2664_v4  ;;  %2853 = vmatmul.mubr.bf16.gmra.mrb[100].mxu1 %v2726_v12  ;;  %v6930_v14 = vpop.f32.mrb[124].mxu0  ;;  %v3301_v4 = vmul.f32 0.35355338, %v6807_v42 }
 0x5e0   : > { %v5120_v3 = vpop.eup %5119  ;;  %5131 = vpow2.f32 %v2666_v2  ;;  %v3356_v25 = vpop.xlane.xlu0 %3355 }
 0x5e1   : > { %v6932_v62 = vpop.f32.mrb[125].mxu0  ;;  %v5122_v24 = vpop.eup %5121  ;;  %v3402_v22 = vsub.f32 %v6785_v30, %v3356_v25  ;;  %v3403_v44 = vsub.f32 %v6789_v59, %v3356_v25  ;;  %v6938_v32 = vadd.f32 %v5120_v3, %v5118_v57  ;;  %v3299_v25 = vmul.f32 0.35355338, %v6803_v17 }
 0x5e2   : > { %v6936_v10 = vpop.f32.mrb[126].mxu0  ;;  %v5124_v53 = vpop.eup %5123  ;;  %v2728_v39 = vpack.c.bf16 %v5122_v24, %v5118_v57  ;;  %v6978_v42 = vsel %vm472_vm1, %v3301_v4, -1e+30  ;;  %v5306_v4 = vld [vmem:[%s5566_s18 + $0x68] sm:$0xff]  }
 0x5e3   : > { %v3359_v46 = vpop.xlane.xlu1 %3358  ;;  %v6940_v31 = vpop.f32.mrb[127].mxu0  ;;  %v3434_v23 = vmul.f32 1.442695, %v3402_v22  ;;  %v3436_v6 = vmul.f32 1.442695, %v3403_v44  ;;  %v2729_v16 = vpack.c.bf16 %v5124_v53, %v5120_v3  ;;  %v6944_v30 = vadd.f32 %v5124_v53, %v5122_v24 }
 0x5e4   : > { %v3404_v18 = vsub.f32 %v6793_v60, %v3359_v46  ;;  %v3405_v61 = vsub.f32 %v6797_v40, %v3359_v46  ;;  %v3579_v0 = vpop.permute.xlu0 %3578  ;;  %v6974_v44 = vmul.f32 0.35355338, %v6805_v9  ;;  %v6981_v53 = vmul.f32 0.35355338, %v6801_v58  ;;  %v5303_v9 = vld [vmem:[%s5566_s18 + $0x20] sm:$0xff]  }
 0x5e5   : > { %5133 = vpow2.f32 %v3434_v23  ;;  %4549 = vmatprep.subr.bf16.mxu0 %v3579_v0  ;;  %4694 = vmatprep.subr.bf16.mxu1 %v3579_v0  ;;  %v6985_v46 = vsel %vm472_vm1, %v3299_v25, -1e+30  ;;  %v5304_v23 = vld [vmem:[%s5566_s18 + $0x60] sm:$0xff]  }
 0x5e6   : > { %v3438_v59 = vmul.f32 1.442695, %v3404_v18  ;;  %v3440_v38 = vmul.f32 1.442695, %v3405_v61  ;;  %5135 = vpow2.f32 %v3436_v6  ;;  %2860 = vmatprep.mubr.bf16.mxu1 %v2729_v16  ;;  %v3369_v17 = vmax.f32 %v6974_v44, %v6978_v42 }
 0x5e7   : > { %v6946_v19 = vpop.permute.xlu1 %3562  ;;  %v5126_v7 = vpop.eup %5125  ;;  %2861 = vmatmul.mubr.bf16.gmra.mrb[104].mxu1 %v2728_v39  ;;  %v3366_v39 = vmax.f32 %v6981_v53, %v6985_v46 }
 0x5e8   : > { %5137 = vpow2.f32 %v3438_v59  ;;  %4550 = vmatpush3.bf16.msra.mxu0 %v6946_v19  ;;  %v5128_v60 = vpop.eup %5127  ;;  %v6953_v12 = vpop.permute.xlu0 %3564 }
 0x5e9   : > { %5139 = vpow2.f32 %v3440_v38  ;;  %v5130_v40 = vpop.eup %5129  ;;  %v6949_v41 = vadd.f32 %v5128_v60, %v5126_v7 }
 0x5ea   : > { %v5132_v37 = vpop.eup %5131  ;;  %v2730_v8 = vpack.c.bf16 %v5130_v40, %v5126_v7 }
 0x5eb   : > { %v6951_v11 = vpop.permute.xlu1 %3580  ;;  %v2731_v27 = vpack.c.bf16 %v5132_v37, %v5128_v60  ;;  %v6956_v63 = vadd.f32 %v5132_v37, %v5130_v40 }
 0x5ec   : > { %4551 = vmatprep.subr.bf16.mxu0 %v6951_v11 }
 0x5ed   : > { %4552 = vmatpush3.bf16.msra.mxu0 %v6953_v12  ;;  %2868 = vmatprep.mubr.bf16.mxu1 %v2731_v27 }
 0x5ef   : > { %v6959_v43 = vpop.eup %5133  ;;  %2869 = vmatmul.mubr.bf16.gmra.mrb[108].mxu1 %v2730_v8 }
 0x5f0   : > { %v5136_v56 = vpop.eup %5135 }
 0x5f1   : > { %v6965_v2 = vadd.f32 %v5136_v56, %v6959_v43 }
 0x5f2   : > { %v6961_v45 = vpop.eup %5137 }
 0x5f3   : > { %v5140_v57 = vpop.eup %5139  ;;  %v3546_v3 = vpack.c.bf16 %v6961_v45, %v6959_v43 }
 0x5f4   : > { %v3547_v24 = vpack.c.bf16 %v5140_v57, %v5136_v56  ;;  %v6971_v22 = vadd.f32 %v5140_v57, %v6961_v45  ;;  %v5305_v56 = vld [vmem:[%s5566_s18 + $0x28] sm:$0xff]  }
 0x5f6   : > { %3642 = vmatprep.mubr.bf16.mxu0 %v3547_v24 }
 0x5fa   : > { %3370 = vmax.xlane.f32.xlu0 %v3369_v17 }
 0x5fc   : > { %3367 = vmax.xlane.f32.xlu1 %v3366_v39 }
 0x60d   : > { %3570 = vrot.lane.b32.xlu1 %v5303_v9, %s5353_s20 }
 0x610   : > { %3586 = vrot.lane.b32.xlu0 %v5304_v23, %s5353_s20  ;;  %v7041_v23 = vmul.f32 0.35355338, %v6809_v5 }
 0x619   : > { %v3365_v58 = vpop.xlane.xlu0 %3364 }
 0x61a   : > { %v3408_v6 = vsub.f32 %v6844_v47, %v3365_v58  ;;  %v3409_v18 = vsub.f32 %v6842_v51, %v3365_v58 }
 0x61b   : > { %v3362_v61 = vpop.xlane.xlu1 %3361 }
 0x61c   : > { %v3446_v16 = vmul.f32 1.442695, %v3408_v6  ;;  %v3448_v0 = vmul.f32 1.442695, %v3409_v18  ;;  %v3406_v59 = vsub.f32 %v6850_v55, %v3362_v61  ;;  %v3407_v38 = vsub.f32 %v6848_v34, %v3362_v61 }
 0x61d   : > { %v6999_v7 = vpop.permute.xlu0 %3582 }
 0x61e   : > { %5141 = vpow2.f32 %v3446_v16  ;;  %v3442_v60 = vmul.f32 1.442695, %v3406_v59  ;;  %v3444_v40 = vmul.f32 1.442695, %v3407_v38  ;;  %4553 = vmatprep.subr.bf16.mxu0 %v6999_v7 }
 0x61f   : > { %5143 = vpow2.f32 %v3448_v0  ;;  %v7002_v37 = vpop.permute.xlu1 %3566 }
 0x620   : > { %5145 = vpow2.f32 %v3442_v60  ;;  %4554 = vmatpush3.bf16.msra.mxu0 %v7002_v37 }
 0x621   : > { %5147 = vpow2.f32 %v3444_v40 }
 0x628   : > { %v7005_v51 = vpop.eup %5141 }
 0x629   : > { %v7007_v47 = vpop.eup %5143 }
 0x62a   : > { %v7009_v34 = vpop.eup %5145  ;;  %v3507_v54 = vadd.f32 %v7007_v47, %v7005_v51 }
 0x62b   : > { %v7011_v55 = vpop.eup %5147  ;;  %v3548_v27 = vpack.c.bf16 %v7005_v51, %v7009_v34 }
 0x62c   : > { %v3549_v8 = vpack.c.bf16 %v7007_v47, %v7011_v55 }
 0x62f   : > { %2684 = vadd.xlane.f32.xlu0 %v6900_v48  ;;  %v3305_v48 = vmul.f32 0.35355338, %v6824_v49  ;;  %v5308_v49 = vld [vmem:[%s5566_s18 + $0x70] sm:$0xff]  }
 0x631   : > { %2681 = vadd.xlane.f32.xlu1 %v6896_v33  ;;  %v7038_v9 = vsel %vm472_vm1, %v3305_v48, -1e+30 }
 0x633   : > { %2687 = vadd.xlane.f32.xlu0 %v6904_v52  ;;  %v3303_v52 = vmul.f32 0.35355338, %v6811_v29 }
 0x635   : > { %2690 = vadd.xlane.f32.xlu1 %v6908_v15  ;;  %v7034_v15 = vmul.f32 0.35355338, %v6820_v1  ;;  %v7045_v58 = vsel %vm472_vm1, %v3303_v52, -1e+30  ;;  %v5307_v1 = vld [vmem:[%s5566_s18 + $0x30] sm:$0xff]  }
 0x636   : > { %v3372_v29 = vmax.f32 %v7041_v23, %v7045_v58 }
 0x637   : > { %v3375_v6 = vmax.f32 %v7034_v15, %v7038_v9 }
 0x646   : > { %3572 = vrot.lane.b32.xlu1 %v5305_v56, %s5353_s20 }
 0x649   : > { %3588 = vrot.lane.b32.xlu0 %v5306_v4, %s5353_s20 }
 0x64e   : > { %v2673_v57 = vpop.xlane.xlu0 %2672 }
 0x64f   : > { %5149 = vrcp.f32 %v2673_v57 }
 0x650   : > { %v2670_v25 = vpop.xlane.xlu1 %2669 }
 0x651   : > { %5151 = vrcp.f32 %v2670_v25 }
 0x652   : > { %v2676_v24 = vpop.xlane.xlu0 %2675 }
 0x653   : > { %5153 = vrcp.f32 %v2676_v24 }
 0x654   : > { %v2679_v17 = vpop.xlane.xlu1 %2678 }
 0x655   : > { %5155 = vrcp.f32 %v2679_v17 }
 0x656   : > { %v7025_v39 = vpop.permute.xlu0 %3584 }
 0x657   : > { %4555 = vmatprep.subr.bf16.mxu0 %v7025_v39 }
 0x658   : > { %v7028_v33 = vpop.permute.xlu1 %3568 }
 0x659   : > { %4556 = vmatpush3.bf16.msra.mxu0 %v7028_v33  ;;  %v5150_v24 = vpop.eup %5149 }
 0x668   : > { %3376 = vmax.xlane.f32.xlu0 %v3375_v6 }
 0x66a   : > { %3373 = vmax.xlane.f32.xlu1 %v3372_v29  ;;  %v5152_v29 = vpop.eup %5151 }
 0x67b   : > { %3574 = vrot.lane.b32.xlu1 %v5307_v1, %s5353_s20 }
 0x67e   : > { %3590 = vrot.lane.b32.xlu0 %v5308_v49, %s5353_s20  ;;  %v5154_v49 = vpop.eup %5153 }
 0x687   : > { %v3371_v5 = vpop.xlane.xlu0 %3370 }
 0x688   : > { %v3412_v18 = vsub.f32 %v6974_v44, %v3371_v5  ;;  %v3413_v61 = vsub.f32 %v6978_v42, %v3371_v5 }
 0x689   : > { %v3368_v16 = vpop.xlane.xlu1 %3367 }
 0x68a   : > { %v3454_v0 = vmul.f32 1.442695, %v3412_v18  ;;  %v3456_v59 = vmul.f32 1.442695, %v3413_v61  ;;  %v4460_v38 = vpop.f32.mrb[80].mxu1  ;;  %v3410_v60 = vsub.f32 %v6981_v53, %v3368_v16  ;;  %v3411_v40 = vsub.f32 %v6985_v46, %v3368_v16  ;;  %v5156_v16 = vpop.eup %5155 }
 0x68b   : > { %v4461_v56 = vpop.f32.mrb[81].mxu1  ;;  %v3587_v4 = vpop.permute.xlu0 %3586 }
 0x68c   : > { %5157 = vpow2.f32 %v3454_v0  ;;  %v4462_v57 = vadd.f32 %v4461_v56, %v4460_v38  ;;  %v3450_v25 = vmul.f32 1.442695, %v3410_v60  ;;  %v3452_v48 = vmul.f32 1.442695, %v3411_v40  ;;  %v4463_v52 = vpop.f32.mrb[82].mxu1  ;;  %4557 = vmatprep.subr.bf16.mxu0 %v3587_v4 }
 0x68d   : > { %5159 = vpow2.f32 %v3456_v59  ;;  %v4464_v44 = vpop.f32.mrb[83].mxu1  ;;  %v3571_v42 = vpop.permute.xlu1 %3570 }
 0x68e   : > { %5161 = vpow2.f32 %v3450_v25  ;;  %v4465_v6 = vadd.f32 %v4464_v44, %v4463_v52  ;;  %4558 = vmatpush3.bf16.msra.mxu0 %v3571_v42  ;;  %v2893_v53 = vmul.f32 %v5152_v29, %v4462_v57 }
 0x68f   : > { %5163 = vpow2.f32 %v3452_v48 }
 0x690   : > { %v2894_v46 = vmul.f32 %v5150_v24, %v4465_v6 }
 0x692   : > { %v2909_v17 = vpack.c.bf16 %v2894_v46, %v2893_v53  ;;  %v4466_v1 = vpop.f32.mrb[84].mxu1 }
 0x693   : > { %v4467_v5 = vpop.f32.mrb[85].mxu1 }
 0x694   : > { %v4468_v18 = vadd.f32 %v4467_v5, %v4466_v1  ;;  %v4469_v61 = vpop.f32.mrb[86].mxu1  ;;  %4660 = vmatprep.mubr.msk.bf16.mxu1 %vm593_vm0, %v2909_v17 }
 0x695   : > { %v4470_v0 = vpop.f32.mrb[87].mxu1 }
 0x696   : > { %v7060_v59 = vpop.eup %5157  ;;  %v4471_v38 = vadd.f32 %v4470_v0, %v4469_v61  ;;  %v2895_v56 = vmul.f32 %v5154_v49, %v4468_v18 }
 0x697   : > { %v7062_v60 = vpop.eup %5159 }
 0x698   : > { %v7064_v40 = vpop.eup %5161  ;;  %v2896_v57 = vmul.f32 %v5156_v16, %v4471_v38  ;;  %v5309_v38 = vld [vmem:[%s5566_s18 + $0x38] sm:$0xff]  }
 0x699   : > { %v7066_v25 = vpop.eup %5163  ;;  %v3550_v48 = vpack.c.bf16 %v7060_v59, %v7064_v40 }
 0x69a   : > { %v2910_v52 = vpack.c.bf16 %v2896_v57, %v2895_v56  ;;  %v4472_v44 = vpop.f32.mrb[88].mxu1  ;;  %v3551_v24 = vpack.c.bf16 %v7062_v60, %v7066_v25 }
 0x69b   : > { %v4473_v6 = vpop.f32.mrb[89].mxu1 }
 0x69c   : > { %v7072_v29 = vadd.f32 %v4473_v6, %v4472_v44  ;;  %v4475_v53 = vpop.f32.mrb[90].mxu1  ;;  %4661 = vmatmul.mubr.msk.bf16.vlgmr.msra.gmra.mrb[64].mxu1 %vm593_vm0, %v2910_v52 }
 0x69d   : > { %4702 = vmatpush3.bf16.msra.mxu1 %v6946_v19  ;;  %v4476_v46 = vpop.f32.mrb[91].mxu1  ;;  %2696 = vadd.xlane.f32.xlu0 %v6916_v35 }
 0x69e   : > { %v7077_v17 = vadd.f32 %v4476_v46, %v4475_v53  ;;  %4695 = vmatprep.subr.bf16.mxu1 %v6951_v11 }
 0x69f   : > { %2693 = vadd.xlane.f32.xlu1 %v6912_v26 }
 0x6a1   : > { %4703 = vmatpush3.bf16.msra.mxu1 %v6953_v12  ;;  %2699 = vadd.xlane.f32.xlu0 %v6922_v21 }
 0x6a2   : > { %4696 = vmatprep.subr.bf16.mxu1 %v6999_v7  ;;  %v4478_v1 = vpop.f32.mrb[92].mxu1 }
 0x6a3   : > { %v4479_v49 = vpop.f32.mrb[93].mxu1  ;;  %2702 = vadd.xlane.f32.xlu1 %v6928_v50 }
 0x6a4   : > { %v4480_v19 = vadd.f32 %v4479_v49, %v4478_v1  ;;  %v4481_v5 = vpop.f32.mrb[94].mxu1 }
 0x6a5   : > { %4704 = vmatpush3.bf16.msra.mxu1 %v7002_v37  ;;  %v4482_v35 = vpop.f32.mrb[95].mxu1 }
 0x6a6   : > { %v4483_v18 = vadd.f32 %v4482_v35, %v4481_v5  ;;  %4697 = vmatprep.subr.bf16.mxu1 %v7025_v39 }
 0x6a9   : > { %4705 = vmatpush3.bf16.msra.mxu1 %v7028_v33 }
 0x6aa   : > { %4698 = vmatprep.subr.bf16.mxu1 %v3587_v4  ;;  %v4484_v26 = vpop.f32.mrb[96].mxu1  ;;  %v5310_v4 = vld [vmem:[%s5566_s18 + $0x78] sm:$0xff]   ;;  %s7284_s18 = scalar_lea.vmem %s7367_s6, %s4082_s10 }
 0x6ab   : > { %v4485_v21 = vpop.f32.mrb[97].mxu1 }
 0x6ac   : > { %v7088_v11 = vadd.f32 %v4485_v21, %v4484_v26  ;;  %v4487_v12 = vpop.f32.mrb[98].mxu1 }
 0x6ad   : > { %4706 = vmatpush3.bf16.msra.mxu1 %v3571_v42  ;;  %v4488_v50 = vpop.f32.mrb[99].mxu1 }
 0x6ae   : > { %v7090_v7 = vadd.f32 %v4488_v50, %v4487_v12 }
 0x6b2   : > { %v4490_v61 = vpop.f32.mrb[100].mxu1 }
 0x6b3   : > { %v4491_v37 = vpop.f32.mrb[101].mxu1 }
 0x6b4   : > { %v7092_v16 = vadd.f32 %v4491_v37, %v4490_v61  ;;  %v4493_v0 = vpop.f32.mrb[102].mxu1  ;;  %3576 = vrot.lane.b32.xlu1 %v5309_v38, %s5353_s20 }
 0x6b5   : > { %v4494_v39 = vpop.f32.mrb[103].mxu1 }
 0x6b6   : > { %v7096_v33 = vadd.f32 %v4494_v39, %v4493_v0 }
 0x6b7   : > { %3592 = vrot.lane.b32.xlu0 %v5310_v4, %s5353_s20 }
 0x6ba   : > { %v4496_v56 = vpop.f32.mrb[104].mxu1 }
 0x6bb   : > { %v4497_v57 = vpop.f32.mrb[105].mxu1 }
 0x6bc   : > { %v7100_v42 = vadd.f32 %v4497_v57, %v4496_v56  ;;  %v4499_v52 = vpop.f32.mrb[106].mxu1  ;;  %v2685_v44 = vpop.xlane.xlu0 %2684 }
 0x6bd   : > { %v4500_v6 = vpop.f32.mrb[107].mxu1  ;;  %5165 = vrcp.f32 %v2685_v44  ;;  %v3309_v44 = vmul.f32 0.35355338, %v6838_v13 }
 0x6be   : > { %v7102_v53 = vadd.f32 %v4500_v6, %v4499_v52  ;;  %v2682_v46 = vpop.xlane.xlu1 %2681 }
 0x6bf   : > { %5167 = vrcp.f32 %v2682_v46 }
 0x6c0   : > { %v2688_v1 = vpop.xlane.xlu0 %2687 }
 0x6c1   : > { %5169 = vrcp.f32 %v2688_v1  ;;  %v7517_v1 = vld [vmem:[#allocation27_spill] sm:$0xff] }
 0x6c2   : > { %v4502_v49 = vpop.f32.mrb[108].mxu1  ;;  %v2691_v5 = vpop.xlane.xlu1 %2690 }
 0x6c3   : > { %v4503_v35 = vpop.f32.mrb[109].mxu1  ;;  %5171 = vrcp.f32 %v2691_v5  ;;  %v7518_v5 = vld [vmem:[#allocation2_spill] sm:$0xff] }
 0x6c4   : > { %v7104_v26 = vadd.f32 %v4503_v35, %v4502_v49  ;;  %v4505_v21 = vpop.f32.mrb[110].mxu1  ;;  %v3589_v12 = vpop.permute.xlu0 %3588  ;;  %v3307_v49 = vmul.f32 0.35355338, %v7517_v1  ;;  %v7114_v35 = vmul.f32 0.35355338, %v7518_v5 }
 0x6c5   : > { %v4506_v50 = vpop.f32.mrb[111].mxu1  ;;  %4559 = vmatprep.subr.bf16.mxu0 %v3589_v12  ;;  %4699 = vmatprep.subr.bf16.mxu1 %v3589_v12  ;;  %v3321_v5 = vmul.f32 0.35355338, %v6940_v31 }
 0x6c6   : > { %v7106_v61 = vadd.f32 %v4506_v50, %v4505_v21  ;;  %v3573_v37 = vpop.permute.xlu1 %3572  ;;  %v7126_v13 = vsel %vm472_vm1, %v3307_v49, -1e+30  ;;  %v3311_v50 = vmul.f32 0.35355338, %v6864_v20 }
 0x6c7   : > { %v5166_v0 = vpop.eup %5165  ;;  %4560 = vmatpush3.bf16.msra.mxu0 %v3573_v37  ;;  %4707 = vmatpush3.bf16.msra.mxu1 %v3573_v37  ;;  %v3313_v37 = vmul.f32 0.35355338, %v6870_v36  ;;  %v7522_v36 = vld [vmem:[#allocation6_spill] sm:$0xff]  ;;  %v7190_v31 = vsel %vm472_vm1, %v3321_v5, -1e+30 }
 0x6c8   : > { %v2898_v4 = vmul.f32 %v5166_v0, %v7077_v17  ;;  %v7519_v17 = vld [vmem:[#allocation26_spill] sm:$0xff]  ;;  %v7520_v0 = vld [vmem:[#allocation3_spill] sm:$0xff] }
 0x6c9   : > { %v5168_v38 = vpop.eup %5167  ;;  %v7121_v12 = vmul.f32 0.35355338, %v7519_v17  ;;  %v7150_v20 = vsel %vm472_vm1, %v3313_v37, -1e+30 }
 0x6ca   : > { %v2897_v39 = vmul.f32 %v5168_v38, %v7072_v29  ;;  %v7118_v29 = vsel %vm472_vm1, %v3309_v44, -1e+30  ;;  %v7136_v38 = vmul.f32 0.35355338, %v7520_v0 }
 0x6cb   : > { %v5170_v56 = vpop.eup %5169 }
 0x6cc   : > { %v2911_v57 = vpack.c.bf16 %v2898_v4, %v2897_v39  ;;  %v2899_v6 = vmul.f32 %v5170_v56, %v4480_v19  ;;  %v3381_v19 = vmax.f32 %v7114_v35, %v7118_v29  ;;  %v7141_v39 = vsel %vm472_vm1, %v3311_v50, -1e+30  ;;  %v7521_v56 = vld [vmem:[#allocation12_spill] sm:$0xff] }
 0x6cd   : > { %v5172_v52 = vpop.eup %5171  ;;  %v3315_v4 = vmul.f32 0.35355338, %v6876_v28  ;;  %v3510_v50 = vadd.f32 %v7066_v25, %v7064_v40 }
 0x6ce   : > { %4664 = vmatprep.mubr.msk.bf16.mxu1 %vm593_vm0, %v2911_v57  ;;  %v2900_v46 = vmul.f32 %v5172_v52, %v4483_v18  ;;  %v3378_v18 = vmax.f32 %v7121_v12, %v7126_v13  ;;  %v7145_v57 = vmul.f32 0.35355338, %v7521_v56  ;;  %v7523_v52 = vld [vmem:[#allocation9_spill] sm:$0xff] }
 0x6cf   : > { %v7156_v44 = vmul.f32 0.35355338, %v7523_v52  ;;  %v7161_v28 = vsel %vm472_vm1, %v3315_v4, -1e+30 }
 0x6d0   : > { %v2912_v21 = vpack.c.bf16 %v2900_v46, %v2899_v6  ;;  %v3387_v6 = vmax.f32 %v7145_v57, %v7150_v20  ;;  %v7524_v46 = vld [vmem:[#allocation4_spill] sm:$0xff] }
 0x6d1   : > { %v7167_v1 = vmul.f32 0.35355338, %v7524_v46 }
 0x6d2   : > { %4665 = vmatmul.mubr.msk.bf16.gmra.mrb[68].mxu1 %vm593_vm0, %v2912_v21  ;;  %v7177_v21 = vmul.f32 0.35355338, %v6930_v14 }
 0x6d6   : > { %3382 = vmax.xlane.f32.xlu0 %v3381_v19  ;;  %v7186_v19 = vmul.f32 0.35355338, %v6936_v10  ;;  %v3504_v10 = vadd.f32 %v7011_v55, %v7009_v34 }
 0x6d8   : > { %3379 = vmax.xlane.f32.xlu1 %v3378_v18  ;;  %v3399_v18 = vmax.f32 %v7186_v19, %v7190_v31 }
 0x6da   : > { %2705 = vadd.xlane.f32.xlu0 %v6938_v32  ;;  %v3317_v32 = vmul.f32 0.35355338, %v7522_v36 }
 0x6dc   : > { %2708 = vadd.xlane.f32.xlu1 %v6944_v30  ;;  %v3384_v30 = vmax.f32 %v7136_v38, %v7141_v39  ;;  %v7171_v49 = vsel %vm472_vm1, %v3317_v32, -1e+30 }
 0x6dd   : > { %v3393_v17 = vmax.f32 %v7167_v1, %v7171_v49 }
 0x6de   : > { %2711 = vadd.xlane.f32.xlu0 %v6949_v41  ;;  %v3319_v41 = vmul.f32 0.35355338, %v6932_v62 }
 0x6e0   : > { %2714 = vadd.xlane.f32.xlu1 %v6956_v63  ;;  %v3390_v63 = vmax.f32 %v7156_v44, %v7161_v28  ;;  %v7181_v62 = vsel %vm472_vm1, %v3319_v41, -1e+30 }
 0x6e1   : > { %v3396_v14 = vmax.f32 %v7177_v21, %v7181_v62 }
 0x6e2   : > { %3385 = vmax.xlane.f32.xlu0 %v3384_v30 }
 0x6e4   : > { %3388 = vmax.xlane.f32.xlu1 %v3387_v6 }
 0x6e6   : > { %3391 = vmax.xlane.f32.xlu0 %v3390_v63 }
 0x6e8   : > { %3394 = vmax.xlane.f32.xlu1 %v3393_v17 }
 0x6ea   : > { %3397 = vmax.xlane.f32.xlu0 %v3396_v14 }
 0x6ec   : > { %3400 = vmax.xlane.f32.xlu1 %v3399_v18 }
 0x6ee   : > { %3499 = vadd.xlane.f32.xlu0 %v6965_v2  ;;  %v3513_v2 = vadd.f32 %v7062_v60, %v7060_v59 }
 0x6f0   : > { %3502 = vadd.xlane.f32.xlu1 %v6971_v22 }
 0x6f2   : > { %3505 = vadd.xlane.f32.xlu0 %v3504_v10 }
 0x6f4   : > { %3508 = vadd.xlane.f32.xlu1 %v3507_v54 }
 0x6f5   : > { %v3377_v37 = vpop.xlane.xlu0 %3376 }
 0x6f6   : > { %v3416_v0 = vsub.f32 %v7034_v15, %v3377_v37  ;;  %v3417_v4 = vsub.f32 %v7038_v9, %v3377_v37  ;;  %3511 = vadd.xlane.f32.xlu0 %v3510_v50 }
 0x6f7   : > { %v3374_v22 = vpop.xlane.xlu1 %3373 }
 0x6f8   : > { %v3462_v56 = vmul.f32 1.442695, %v3416_v0  ;;  %v3464_v36 = vmul.f32 1.442695, %v3417_v4  ;;  %v3414_v32 = vsub.f32 %v7041_v23, %v3374_v22  ;;  %v3415_v30 = vsub.f32 %v7045_v58, %v3374_v22  ;;  %3514 = vadd.xlane.f32.xlu1 %v3513_v2 }
 0x6f9   : > { %v3591_v52 = vpop.permute.xlu0 %3590 }
 0x6fa   : > { %5173 = vpow2.f32 %v3462_v56  ;;  %v3458_v41 = vmul.f32 1.442695, %v3414_v32  ;;  %v3460_v6 = vmul.f32 1.442695, %v3415_v30  ;;  %4561 = vmatprep.subr.bf16.mxu0 %v3591_v52  ;;  %4700 = vmatprep.subr.bf16.mxu1 %v3591_v52 }
 0x6fb   : > { %5175 = vpow2.f32 %v3464_v36  ;;  %v3575_v15 = vpop.permute.xlu1 %3574 }
 0x6fc   : > { %5177 = vpow2.f32 %v3458_v41  ;;  %4562 = vmatpush3.bf16.msra.mxu0 %v3575_v15  ;;  %4708 = vmatpush3.bf16.msra.mxu1 %v3575_v15 }
 0x6fd   : > { %5179 = vpow2.f32 %v3460_v6 }
 0x704   : > { %v5174_v9 = vpop.eup %5173 }
 0x705   : > { %v5176_v46 = vpop.eup %5175 }
 0x706   : > { %v5178_v5 = vpop.eup %5177  ;;  %v3519_v63 = vadd.f32 %v5176_v46, %v5174_v9 }
 0x707   : > { %v5180_v23 = vpop.eup %5179  ;;  %v3552_v17 = vpack.c.bf16 %v5174_v9, %v5178_v5 }
 0x708   : > { %3520 = vadd.xlane.f32.xlu1 %v3519_v63  ;;  %v3516_v58 = vadd.f32 %v5180_v23, %v5178_v5  ;;  %v3553_v14 = vpack.c.bf16 %v5176_v46, %v5180_v23 }
 0x70a   : > { %3517 = vadd.xlane.f32.xlu0 %v3516_v58 }
 0x72a   : > { %v2697_v18 = vpop.xlane.xlu0 %2696 }
 0x72b   : > { %5181 = vrcp.f32 %v2697_v18 }
 0x72c   : > { %v2694_v10 = vpop.xlane.xlu1 %2693 }
 0x72d   : > { %5183 = vrcp.f32 %v2694_v10 }
 0x72e   : > { %v2700_v54 = vpop.xlane.xlu0 %2699 }
 0x72f   : > { %5185 = vrcp.f32 %v2700_v54 }
 0x730   : > { %v2703_v50 = vpop.xlane.xlu1 %2702 }
 0x731   : > { %5187 = vrcp.f32 %v2703_v50 }
 0x732   : > { %v3593_v37 = vpop.permute.xlu0 %3592 }
 0x733   : > { %4563 = vmatprep.subr.bf16.mxu0 %v3593_v37  ;;  %4701 = vmatprep.subr.bf16.mxu1 %v3593_v37 }
 0x734   : > { %v3577_v0 = vpop.permute.xlu1 %3576 }
 0x735   : > { %v5182_v4 = vpop.eup %5181  ;;  %4564 = vmatpush3.bf16.msra.mxu0 %v3577_v0  ;;  %4709 = vmatpush3.bf16.msra.mxu1 %v3577_v0 }
 0x736   : > { %v2902_v56 = vmul.f32 %v5182_v4, %v7090_v7 }
 0x737   : > { %v5184_v2 = vpop.eup %5183 }
 0x738   : > { %3643 = vmatmul.mubr.bf16.vlgmr.msra.gmra.mrb[128].mxu0 %v3546_v3  ;;  %v2901_v22 = vmul.f32 %v5184_v2, %v7088_v11 }
 0x739   : > { %v5186_v36 = vpop.eup %5185  ;;  %3650 = vmatprep.mubr.bf16.mxu0 %v3549_v8 }
 0x73a   : > { %v2913_v32 = vpack.c.bf16 %v2902_v56, %v2901_v22  ;;  %v2903_v52 = vmul.f32 %v5186_v36, %v7092_v16 }
 0x73b   : > { %v5188_v30 = vpop.eup %5187 }
 0x73c   : > { %4668 = vmatprep.mubr.msk.bf16.mxu1 %vm593_vm0, %v2913_v32  ;;  %v2904_v41 = vmul.f32 %v5188_v30, %v7096_v33 }
 0x73e   : > { %v2914_v6 = vpack.c.bf16 %v2904_v41, %v2903_v52 }
 0x740   : > { %4669 = vmatmul.mubr.msk.bf16.gmra.mrb[72].mxu1 %vm593_vm0, %v2914_v6  ;;  %3651 = vmatmul.mubr.bf16.gmra.mrb[132].mxu0 %v3548_v27 }
 0x741   : > { %3658 = vmatprep.mubr.bf16.mxu0 %v3551_v24 }
 0x748   : > { %3659 = vmatmul.mubr.bf16.gmra.mrb[136].mxu0 %v3550_v48 }
 0x749   : > { %3666 = vmatprep.mubr.bf16.mxu0 %v3553_v14 }
 0x750   : > { %3667 = vmatmul.mubr.bf16.gmra.mrb[140].mxu0 %v3552_v17 }
 0x763   : > { %v3383_v43 = vpop.xlane.xlu0 %3382 }
 0x764   : > { %v3420_v45 = vsub.f32 %v7114_v35, %v3383_v43  ;;  %v3421_v3 = vsub.f32 %v7118_v29, %v3383_v43 }
 0x765   : > { %v3380_v47 = vpop.xlane.xlu1 %3379 }
 0x766   : > { %v3470_v55 = vmul.f32 1.442695, %v3420_v45  ;;  %v3472_v8 = vmul.f32 1.442695, %v3421_v3  ;;  %v3418_v51 = vsub.f32 %v7121_v12, %v3380_v47  ;;  %v3419_v34 = vsub.f32 %v7126_v13, %v3380_v47 }
 0x767   : > { %v2706_v27 = vpop.xlane.xlu0 %2705 }
 0x768   : > { %5189 = vpow2.f32 %v3470_v55  ;;  %v3466_v60 = vmul.f32 1.442695, %v3418_v51  ;;  %v3468_v25 = vmul.f32 1.442695, %v3419_v34 }
 0x769   : > { %5191 = vpow2.f32 %v3472_v8  ;;  %v2709_v59 = vpop.xlane.xlu1 %2708 }
 0x76a   : > { %5193 = vpow2.f32 %v3466_v60 }
 0x76b   : > { %5195 = vpow2.f32 %v3468_v25  ;;  %v2712_v40 = vpop.xlane.xlu0 %2711 }
 0x76c   : > { %5197 = vrcp.f32 %v2706_v27 }
 0x76d   : > { %5199 = vrcp.f32 %v2709_v59  ;;  %v2715_v48 = vpop.xlane.xlu1 %2714 }
 0x76e   : > { %5201 = vrcp.f32 %v2712_v40 }
 0x76f   : > { %5203 = vrcp.f32 %v2715_v48  ;;  %v3386_v24 = vpop.xlane.xlu0 %3385 }
 0x770   : > { %v3422_v11 = vsub.f32 %v7136_v38, %v3386_v24  ;;  %v3423_v7 = vsub.f32 %v7141_v39, %v3386_v24 }
 0x771   : > { %v3389_v16 = vpop.xlane.xlu1 %3388 }
 0x772   : > { %v5190_v33 = vpop.eup %5189  ;;  %v3474_v35 = vmul.f32 1.442695, %v3422_v11  ;;  %v3476_v29 = vmul.f32 1.442695, %v3423_v7  ;;  %v3424_v12 = vsub.f32 %v7145_v57, %v3389_v16  ;;  %v3425_v13 = vsub.f32 %v7150_v20, %v3389_v16 }
 0x773   : > { %v5192_v15 = vpop.eup %5191  ;;  %v3392_v9 = vpop.xlane.xlu0 %3391 }
 0x774   : > { %v5194_v46 = vpop.eup %5193  ;;  %5205 = vpow2.f32 %v3474_v35  ;;  %v3478_v5 = vmul.f32 1.442695, %v3424_v12  ;;  %v3480_v63 = vmul.f32 1.442695, %v3425_v13  ;;  %v3426_v23 = vsub.f32 %v7156_v44, %v3392_v9  ;;  %v467_v13 = vld [vmem:[%s7365_s4 + $0xc] sm:$0xf] }
 0x775   : > { %v5196_v17 = vpop.eup %5195  ;;  %5207 = vpow2.f32 %v3476_v29  ;;  %v3427_v38 = vsub.f32 %v7161_v28, %v3392_v9  ;;  %v3395_v39 = vpop.xlane.xlu1 %3394  ;;  %v3525_v58 = vadd.f32 %v5192_v15, %v5190_v33  ;;  %v3554_v14 = vpack.c.bf16 %v5190_v33, %v5194_v46  ;;  %4793 = vmatprep.subr.msk.bf16.mxu1 %vm2002_vm2, %v467_v13 }
 0x776   : > { %v5198_v18 = vpop.eup %5197  ;;  %5209 = vpow2.f32 %v3478_v5  ;;  %v3482_v57 = vmul.f32 1.442695, %v3426_v23  ;;  %v3428_v20 = vsub.f32 %v7167_v1, %v3395_v39  ;;  %v3429_v10 = vsub.f32 %v7171_v49, %v3395_v39 }
 0x777   : > { %v5200_v54 = vpop.eup %5199  ;;  %5211 = vpow2.f32 %v3480_v63  ;;  %v3484_v50 = vmul.f32 1.442695, %v3427_v38  ;;  %3526 = vadd.xlane.f32.xlu1 %v3525_v58  ;;  %v3522_v37 = vadd.f32 %v5196_v17, %v5194_v46  ;;  %v3555_v44 = vpack.c.bf16 %v5192_v15, %v5196_v17  ;;  %v3398_v0 = vpop.xlane.xlu0 %3397 }
 0x778   : > { %v5202_v4 = vpop.eup %5201  ;;  %5213 = vpow2.f32 %v3482_v57  ;;  %v3486_v28 = vmul.f32 1.442695, %v3428_v20  ;;  %v3488_v2 = vmul.f32 1.442695, %v3429_v10  ;;  %v3430_v22 = vsub.f32 %v7177_v21, %v3398_v0 }
 0x779   : > { %v5204_v56 = vpop.eup %5203  ;;  %5215 = vpow2.f32 %v3484_v50  ;;  %3523 = vadd.xlane.f32.xlu0 %v3522_v37  ;;  %3674 = vmatprep.mubr.bf16.mxu0 %v3555_v44  ;;  %v3431_v1 = vsub.f32 %v7181_v62, %v3398_v0  ;;  %v3401_v49 = vpop.xlane.xlu1 %3400  ;;  %v2905_v36 = vmul.f32 %v5198_v18, %v7100_v42  ;;  %v2906_v32 = vmul.f32 %v5200_v54, %v7102_v53 }
 0x77a   : > { %5217 = vpow2.f32 %v3486_v28  ;;  %v3490_v30 = vmul.f32 1.442695, %v3430_v22  ;;  %3675 = vmatmul.mubr.bf16.gmra.mrb[144].mxu0 %v3554_v14  ;;  %v3432_v52 = vsub.f32 %v7186_v19, %v3401_v49  ;;  %v3433_v41 = vsub.f32 %v7190_v31, %v3401_v49 }
 0x77b   : > { %5219 = vpow2.f32 %v3488_v2  ;;  %v3492_v21 = vmul.f32 1.442695, %v3431_v1  ;;  %v2915_v6 = vpack.c.bf16 %v2906_v32, %v2905_v36  ;;  %v2907_v43 = vmul.f32 %v5202_v4, %v7104_v26  ;;  %v3500_v9 = vpop.xlane.xlu0 %3499 }
 0x77c   : > { %5221 = vpow2.f32 %v3490_v30  ;;  %v3494_v45 = vmul.f32 1.442695, %v3432_v52  ;;  %v3496_v62 = vmul.f32 1.442695, %v3433_v41  ;;  %v2908_v3 = vmul.f32 %v5204_v56, %v7106_v61 }
 0x77d   : > { %5223 = vpow2.f32 %v3492_v21  ;;  %4672 = vmatprep.mubr.msk.bf16.mxu1 %vm593_vm0, %v2915_v6  ;;  %v3772_v15 = vsel %vm2002_vm2, %v467_v13, 0  ;;  %v3503_v46 = vpop.xlane.xlu1 %3502 }
 0x77e   : > { %v5206_v42 = vpop.eup %5205  ;;  %5225 = vpow2.f32 %v3494_v45  ;;  %v2916_v53 = vpack.c.bf16 %v2908_v3, %v2907_v43 }
 0x77f   : > { %v5208_v47 = vpop.eup %5207  ;;  %5227 = vpow2.f32 %v3496_v62  ;;  %v3506_v5 = vpop.xlane.xlu0 %3505 }
 0x780   : > { %v5210_v19 = vpop.eup %5209  ;;  %4673 = vmatmul.mubr.msk.bf16.gmra.mrb[76].mxu1 %vm593_vm0, %v2916_v53  ;;  %v3528_v31 = vadd.f32 %v5208_v47, %v5206_v42  ;;  %5229 = vrcp.f32 %v3500_v9 }
 0x781   : > { %v5212_v55 = vpop.eup %5211  ;;  %v3556_v8 = vpack.c.bf16 %v5210_v19, %v5206_v42  ;;  %5231 = vrcp.f32 %v3503_v46  ;;  %v3509_v63 = vpop.xlane.xlu1 %3508 }
 0x782   : > { %v5214_v26 = vpop.eup %5213  ;;  %3529 = vadd.xlane.f32.xlu0 %v3528_v31  ;;  %v3531_v51 = vadd.f32 %v5212_v55, %v5210_v19  ;;  %v3557_v34 = vpack.c.bf16 %v5212_v55, %v5208_v47  ;;  %5233 = vrcp.f32 %v3506_v5 }
 0x783   : > { %v5216_v27 = vpop.eup %5215  ;;  %5235 = vrcp.f32 %v3509_v63  ;;  %v3512_v54 = vpop.xlane.xlu0 %3511 }
 0x784   : > { %v5218_v61 = vpop.eup %5217  ;;  %3532 = vadd.xlane.f32.xlu1 %v3531_v51  ;;  %3682 = vmatprep.mubr.bf16.mxu0 %v3557_v34  ;;  %v3534_v60 = vadd.f32 %v5216_v27, %v5214_v26  ;;  %5237 = vrcp.f32 %v3512_v54 }
 0x785   : > { %v5220_v25 = vpop.eup %5219  ;;  %3683 = vmatmul.mubr.bf16.gmra.mrb[148].mxu0 %v3556_v8  ;;  %v3558_v59 = vpack.c.bf16 %v5218_v61, %v5214_v26  ;;  %v3515_v50 = vpop.xlane.xlu1 %3514 }
 0x786   : > { %v5222_v40 = vpop.eup %5221  ;;  %3535 = vadd.xlane.f32.xlu0 %v3534_v60  ;;  %v3537_v48 = vadd.f32 %v5220_v25, %v5218_v61  ;;  %v3559_v24 = vpack.c.bf16 %v5220_v25, %v5216_v27  ;;  %5239 = vrcp.f32 %v3515_v50 }
 0x787   : > { %v5224_v11 = vpop.eup %5223 }
 0x788   : > { %v5226_v7 = vpop.eup %5225  ;;  %3538 = vadd.xlane.f32.xlu1 %v3537_v48  ;;  %3690 = vmatprep.mubr.bf16.mxu1 %v3559_v24  ;;  %v3540_v16 = vadd.f32 %v5224_v11, %v5222_v40 }
 0x789   : > { %v5228_v33 = vpop.eup %5227  ;;  %3691 = vmatmul.mubr.bf16.vlgmr.msra.gmra.mrb[112].mxu1 %v3558_v59  ;;  %v3560_v12 = vpack.c.bf16 %v5226_v7, %v5222_v40 }
 0x78a   : > { %3541 = vadd.xlane.f32.xlu0 %v3540_v16  ;;  %v3543_v35 = vadd.f32 %v5228_v33, %v5226_v7  ;;  %v3561_v29 = vpack.c.bf16 %v5228_v33, %v5224_v11  ;;  %4677 = vmatpush3.bf16.msra.mxu1 %v3772_v15  ;;  %v5230_v14 = vpop.eup %5229 }
 0x78b   : > { %v5232_v57 = vpop.eup %5231 }
 0x78c   : > { %3544 = vadd.xlane.f32.xlu1 %v3543_v35  ;;  %3698 = vmatprep.mubr.bf16.mxu1 %v3561_v29  ;;  %v5234_v22 = vpop.eup %5233 }
 0x78d   : > { %v5236_v1 = vpop.eup %5235 }
 0x78e   : > { %v5238_v62 = vpop.eup %5237 }
 0x790   : > { %v5240_v42 = vpop.eup %5239 }
 0x791   : > { %3699 = vmatmul.mubr.bf16.gmra.mrb[116].mxu1 %v3560_v12 }
 0x795   : > { %v3521_v32 = vpop.xlane.xlu1 %3520 }
 0x796   : > { %5241 = vrcp.f32 %v3521_v32 }
 0x797   : > { %v3518_v30 = vpop.xlane.xlu0 %3517 }
 0x798   : > { %5243 = vrcp.f32 %v3518_v30 }
 0x7a0   : > { %v5242_v34 = vpop.eup %5241 }
 0x7a2   : > { %v5244_v61 = vpop.eup %5243 }
 0x804   : > { %v3527_v40 = vpop.xlane.xlu1 %3526 }
 0x805   : > { %5245 = vrcp.f32 %v3527_v40 }
 0x806   : > { %v3524_v48 = vpop.xlane.xlu0 %3523 }
 0x807   : > { %5247 = vrcp.f32 %v3524_v48 }
 0x80b   : > { %v4565_v23 = vpop.f32.mrb[128].mxu0 }
 0x80c   : > { %v4566_v17 = vpop.f32.mrb[129].mxu0 }
 0x80d   : > { %v4567_v38 = vadd.f32 %v4566_v17, %v4565_v23  ;;  %v4568_v39 = vpop.f32.mrb[130].mxu0 }
 0x80e   : > { %v4569_v58 = vpop.f32.mrb[131].mxu0 }
 0x80f   : > { %v4570_v18 = vadd.f32 %v4569_v58, %v4568_v39  ;;  %v3723_v20 = vmul.f32 %v5230_v14, %v4567_v38  ;;  %v3530_v24 = vpop.xlane.xlu0 %3529  ;;  %v5246_v12 = vpop.eup %5245 }
 0x810   : > { %5249 = vrcp.f32 %v3530_v24 }
 0x811   : > { %v3724_v10 = vmul.f32 %v5232_v57, %v4570_v18  ;;  %v3533_v7 = vpop.xlane.xlu1 %3532  ;;  %v5248_v15 = vpop.eup %5247 }
 0x812   : > { %5251 = vrcp.f32 %v3533_v7 }
 0x813   : > { %v3739_v37 = vpack.c.bf16 %v3724_v10, %v3723_v20  ;;  %v4571_v44 = vpop.f32.mrb[132].mxu0  ;;  %v3536_v9 = vpop.xlane.xlu0 %3535 }
 0x814   : > { %v4572_v0 = vpop.f32.mrb[133].mxu0  ;;  %5253 = vrcp.f32 %v3536_v9 }
 0x815   : > { %v4573_v4 = vadd.f32 %v4572_v0, %v4571_v44  ;;  %v4574_v28 = vpop.f32.mrb[134].mxu0  ;;  %4678 = vmatprep.mubr.msk.bf16.mxu1 %vm593_vm0, %v3739_v37  ;;  %v3539_v63 = vpop.xlane.xlu1 %3538 }
 0x816   : > { %v4575_v2 = vpop.f32.mrb[135].mxu0  ;;  %5255 = vrcp.f32 %v3539_v63 }
 0x817   : > { %v4576_v56 = vadd.f32 %v4575_v2, %v4574_v28  ;;  %v3725_v49 = vmul.f32 %v5234_v22, %v4573_v4  ;;  %v3542_v14 = vpop.xlane.xlu0 %3541 }
 0x818   : > { %5257 = vrcp.f32 %v3542_v14  ;;  %v458_v14 = vld [vmem:[%s7270_s14 + $0x50] sm:$0xff] }
 0x819   : > { %v3726_v36 = vmul.f32 %v5236_v1, %v4576_v56  ;;  %v3545_v20 = vpop.xlane.xlu1 %3544 }
 0x81a   : > { %v5250_v57 = vpop.eup %5249  ;;  %5259 = vrcp.f32 %v3545_v20  ;;  %v459_v20 = vld [vmem:[%s7270_s14 + $0x58] sm:$0xff] }
 0x81b   : > { %v3740_v52 = vpack.c.bf16 %v3726_v36, %v3725_v49  ;;  %v4577_v41 = vpop.f32.mrb[136].mxu0 }
 0x81c   : > { %v4578_v21 = vpop.f32.mrb[137].mxu0  ;;  %v5252_v50 = vpop.eup %5251 }
 0x81d   : > { %v4579_v6 = vadd.f32 %v4578_v21, %v4577_v41  ;;  %v4580_v43 = vpop.f32.mrb[138].mxu0  ;;  %4679 = vmatmul.mubr.msk.bf16.vlgmr.msra.gmra.mrb[64].mxu1 %vm593_vm0, %v3740_v52 }
 0x81e   : > { %v4581_v45 = vpop.f32.mrb[139].mxu0  ;;  %v5254_v22 = vpop.eup %5253 }
 0x81f   : > { %v4582_v3 = vadd.f32 %v4581_v45, %v4580_v43  ;;  %v3727_v53 = vmul.f32 %v5238_v62, %v4579_v6 }
 0x820   : > { %v5256_v49 = vpop.eup %5255 }
 0x821   : > { %v3728_v47 = vmul.f32 %v5240_v42, %v4582_v3 }
 0x822   : > { %v5258_v45 = vpop.eup %5257 }
 0x823   : > { %v3741_v19 = vpack.c.bf16 %v3728_v47, %v3727_v53  ;;  %v4583_v31 = vpop.f32.mrb[140].mxu0 }
 0x824   : > { %v4584_v55 = vpop.f32.mrb[141].mxu0  ;;  %v5260_v3 = vpop.eup %5259 }
 0x825   : > { %v4585_v8 = vadd.f32 %v4584_v55, %v4583_v31  ;;  %v4586_v26 = vpop.f32.mrb[142].mxu0  ;;  %4682 = vmatprep.mubr.msk.bf16.mxu1 %vm593_vm0, %v3741_v19  ;;  %v450_v19 = vld [vmem:[%s7270_s14 + $0x10] sm:$0xff]  ;;  %v448_v31 = vld [vmem:[%s7270_s14] sm:$0xff] }
 0x826   : > { %v4587_v51 = vpop.f32.mrb[143].mxu0 }
 0x827   : > { %v4588_v27 = vadd.f32 %v4587_v51, %v4586_v26  ;;  %v3729_v60 = vmul.f32 %v5244_v61, %v4585_v8  ;;  %v7277_v8 = vld [vmem:[%s7366_s5] ss:$0 sm:$0xff]  ;;  %v451_v26 = vld [vmem:[%s7270_s14 + $0x18] sm:$0xff] }
 0x829   : > { %v3730_v25 = vmul.f32 %v5242_v34, %v4588_v27  ;;  %v449_v27 = vld [vmem:[%s7270_s14 + $0x8] sm:$0xff] }
 0x82b   : > { %v3742_v59 = vpack.c.bf16 %v3730_v25, %v3729_v60 }
 0x82d   : > { %4683 = vmatmul.mubr.msk.bf16.gmra.mrb[68].mxu1 %vm593_vm0, %v3742_v59 }
 0x84d   : > { %v4589_v11 = vpop.f32.mrb[144].mxu0 }
 0x84e   : > { %v4590_v16 = vpop.f32.mrb[145].mxu0 }
 0x84f   : > { %v4591_v33 = vadd.f32 %v4590_v16, %v4589_v11  ;;  %v4592_v35 = vpop.f32.mrb[146].mxu0  ;;  %v454_v16 = vld [vmem:[%s7270_s14 + $0x30] sm:$0xff] }
 0x850   : > { %v4593_v29 = vpop.f32.mrb[147].mxu0 }
 0x851   : > { %v4594_v13 = vadd.f32 %v4593_v29, %v4592_v35  ;;  %v3731_v46 = vmul.f32 %v5248_v15, %v4591_v33  ;;  %v452_v33 = vld [vmem:[%s7270_s14 + $0x20] sm:$0xff]  ;;  %v455_v29 = vld [vmem:[%s7270_s14 + $0x38] sm:$0xff]  ;;  %v453_v15 = vld [vmem:[%s7270_s14 + $0x28] sm:$0xff] }
 0x853   : > { %v3732_v5 = vmul.f32 %v5246_v12, %v4594_v13 }
 0x855   : > { %v3743_v23 = vpack.c.bf16 %v3732_v5, %v3731_v46 }
 0x857   : > { %4686 = vmatprep.mubr.msk.bf16.mxu1 %vm593_vm0, %v3743_v23 }
 0x858   : > { %v4595_v17 = vpop.f32.mrb[148].mxu0 }
 0x859   : > { %v4596_v38 = vpop.f32.mrb[149].mxu0 }
 0x85a   : > { %v4597_v39 = vadd.f32 %v4596_v38, %v4595_v17  ;;  %v4598_v58 = vpop.f32.mrb[150].mxu0 }
 0x85b   : > { %v4599_v18 = vpop.f32.mrb[151].mxu0 }
 0x85c   : > { %v4600_v10 = vadd.f32 %v4599_v18, %v4598_v58  ;;  %v4601_v54 = vpop.f32.mrb[112].mxu1  ;;  %v3733_v44 = vmul.f32 %v5250_v57, %v4597_v39  ;;  %v456_v18 = vld [vmem:[%s7270_s14 + $0x40] sm:$0xff] }
 0x85d   : > { %v4602_v37 = vpop.f32.mrb[113].mxu1 }
 0x85e   : > { %v3734_v0 = vmul.f32 %v5252_v50, %v4600_v10  ;;  %v4603_v4 = vadd.f32 %v4602_v37, %v4601_v54  ;;  %v4604_v28 = vpop.f32.mrb[114].mxu1  ;;  %v457_v50 = vld [vmem:[%s7270_s14 + $0x48] sm:$0xff] }
 0x85f   : > { %v4605_v2 = vpop.f32.mrb[115].mxu1 }
 0x860   : > { %v3744_v56 = vpack.c.bf16 %v3734_v0, %v3733_v44  ;;  %v4606_v1 = vadd.f32 %v4605_v2, %v4604_v28  ;;  %v3735_v36 = vmul.f32 %v5254_v22, %v4603_v4 }
 0x862   : > { %v3736_v32 = vmul.f32 %v5256_v49, %v4606_v1  ;;  %4687 = vmatmul.mubr.msk.bf16.gmra.mrb[72].mxu1 %vm593_vm0, %v3744_v56  ;;  %v462_v49 = vld [vmem:[%s7270_s14 + $0x70] sm:$0xff] }
 0x864   : > { %v3745_v30 = vpack.c.bf16 %v3736_v32, %v3735_v36  ;;  %v4607_v52 = vpop.f32.mrb[116].mxu1  ;;  %v460_v36 = vld [vmem:[%s7270_s14 + $0x60] sm:$0xff] }
 0x865   : > { %v4608_v41 = vpop.f32.mrb[117].mxu1 }
 0x866   : > { %v4609_v21 = vadd.f32 %v4608_v41, %v4607_v52  ;;  %v4610_v6 = vpop.f32.mrb[118].mxu1  ;;  %4690 = vmatprep.mubr.msk.bf16.mxu1 %vm593_vm0, %v3745_v30  ;;  %v463_v30 = vld [vmem:[%s7270_s14 + $0x78] sm:$0xff] }
 0x867   : > { %v4611_v43 = vpop.f32.mrb[119].mxu1 }
 0x868   : > { %v4612_v62 = vadd.f32 %v4611_v43, %v4610_v6  ;;  %v3737_v42 = vmul.f32 %v5258_v45, %v4609_v21  ;;  %v461_v21 = vld [vmem:[%s7270_s14 + $0x68] sm:$0xff] }
 0x86a   : > { %v3738_v53 = vmul.f32 %v5260_v3, %v4612_v62 }
 0x86c   : > { %v3746_v47 = vpack.c.bf16 %v3738_v53, %v3737_v42 }
 0x86e   : > { %4691 = vmatmul.mubr.msk.bf16.gmra.mrb[76].mxu1 %vm593_vm0, %v3746_v47 }
 0x8f0   : > { %v4680_v55 = vpop.f32.mrb[64].mxu1 }
 0x8f1   : > { %v3889_v51 = vadd.f32 %v4680_v55, %v450_v19  ;;  %v3808_v34 = vpop.f32.mrb[65].mxu1 }
 0x8f2   : > { %v3887_v61 = vadd.f32 %v3808_v34, %v448_v31  ;;  %v4681_v60 = vpop.f32.mrb[66].mxu1 }
 0x8f3   : > { %v3912_v25 = vadd.f32 %v7277_v8, %v3889_v51  ;;  %v3890_v59 = vadd.f32 %v4681_v60, %v451_v26  ;;  %v3811_v40 = vpop.f32.mrb[67].mxu1 }
 0x8f4   : > { %v3910_v48 = vadd.f32 %v7277_v8, %v3887_v61  ;;  %v3888_v24 = vadd.f32 %v3811_v40, %v449_v27 }
 0x8f5   : > { %3929 = vst.msk [vmem:[%s7284_s18 + $0x10] sm:$0xff] %vm3926_vm3, %v3912_v25  ;;  %v3913_v11 = vadd.f32 %v7277_v8, %v3890_v59 }
 0x8f6   : > { %3927 = vst.msk [vmem:[%s7284_s18] sm:$0xff] %vm3926_vm3, %v3910_v48  ;;  %v3911_v7 = vadd.f32 %v7277_v8, %v3888_v24 }
 0x8f7   : > { %3930 = vst.msk [vmem:[%s7284_s18 + $0x18] sm:$0xff] %vm3926_vm3, %v3913_v11 }
 0x8f8   : > { %3928 = vst.msk [vmem:[%s7284_s18 + $0x8] sm:$0xff] %vm3926_vm3, %v3911_v7 }
 0x900   : > { %v4684_v35 = vpop.f32.mrb[68].mxu1 }
 0x901   : > { %v3893_v12 = vadd.f32 %v4684_v35, %v454_v16  ;;  %v3824_v13 = vpop.f32.mrb[69].mxu1 }
 0x902   : > { %v3891_v9 = vadd.f32 %v3824_v13, %v452_v33  ;;  %v4685_v46 = vpop.f32.mrb[70].mxu1 }
 0x903   : > { %v3916_v5 = vadd.f32 %v7277_v8, %v3893_v12  ;;  %v3894_v63 = vadd.f32 %v4685_v46, %v455_v29  ;;  %v3827_v23 = vpop.f32.mrb[71].mxu1 }
 0x904   : > { %v3914_v17 = vadd.f32 %v7277_v8, %v3891_v9  ;;  %v3892_v38 = vadd.f32 %v3827_v23, %v453_v15 }
 0x905   : > { %3933 = vst.msk [vmem:[%s7284_s18 + $0x30] sm:$0xff] %vm3926_vm3, %v3916_v5  ;;  %v3917_v39 = vadd.f32 %v7277_v8, %v3894_v63 }
 0x906   : > { %3931 = vst.msk [vmem:[%s7284_s18 + $0x20] sm:$0xff] %vm3926_vm3, %v3914_v17  ;;  %v3915_v58 = vadd.f32 %v7277_v8, %v3892_v38 }
 0x907   : > { %3934 = vst.msk [vmem:[%s7284_s18 + $0x38] sm:$0xff] %vm3926_vm3, %v3917_v39 }
 0x908   : > { %3932 = vst.msk [vmem:[%s7284_s18 + $0x28] sm:$0xff] %vm3926_vm3, %v3915_v58 }
 0x935   : > { %v4688_v57 = vpop.f32.mrb[72].mxu1 }
 0x936   : > { %v3897_v10 = vadd.f32 %v4688_v57, %v458_v14  ;;  %v3840_v54 = vpop.f32.mrb[73].mxu1 }
 0x937   : > { %v3895_v37 = vadd.f32 %v3840_v54, %v456_v18  ;;  %v4689_v44 = vpop.f32.mrb[74].mxu1 }
 0x938   : > { %v3920_v0 = vadd.f32 %v7277_v8, %v3897_v10  ;;  %v3898_v4 = vadd.f32 %v4689_v44, %v459_v20  ;;  %v3843_v28 = vpop.f32.mrb[75].mxu1 }
 0x939   : > { %v3918_v2 = vadd.f32 %v7277_v8, %v3895_v37  ;;  %v3896_v22 = vadd.f32 %v3843_v28, %v457_v50 }
 0x93a   : > { %3937 = vst.msk [vmem:[%s7284_s18 + $0x50] sm:$0xff] %vm3926_vm3, %v3920_v0  ;;  %v3921_v56 = vadd.f32 %v7277_v8, %v3898_v4 }
 0x93b   : > { %3935 = vst.msk [vmem:[%s7284_s18 + $0x40] sm:$0xff] %vm3926_vm3, %v3918_v2  ;;  %v3919_v1 = vadd.f32 %v7277_v8, %v3896_v22 }
 0x93c   : > { %3938 = vst.msk [vmem:[%s7284_s18 + $0x58] sm:$0xff] %vm3926_vm3, %v3921_v56 }
 0x93d   : > { %3936 = vst.msk [vmem:[%s7284_s18 + $0x48] sm:$0xff] %vm3926_vm3, %v3919_v1 }
 0x941   : > { %v4692_v32 = vpop.f32.mrb[76].mxu1 }
 0x942   : > { %v3901_v52 = vadd.f32 %v4692_v32, %v462_v49  ;;  %v3856_v41 = vpop.f32.mrb[77].mxu1 }
 0x943   : > { %v3899_v6 = vadd.f32 %v3856_v41, %v460_v36  ;;  %v4693_v43 = vpop.f32.mrb[78].mxu1 }
 0x944   : > { %v3924_v45 = vadd.f32 %v7277_v8, %v3901_v52  ;;  %v3902_v62 = vadd.f32 %v4693_v43, %v463_v30  ;;  %v3859_v3 = vpop.f32.mrb[79].mxu1 }
 0x945   : > { %v3922_v42 = vadd.f32 %v7277_v8, %v3899_v6  ;;  %v3900_v53 = vadd.f32 %v3859_v3, %v461_v21 }
 0x946   : > { %3941 = vst.msk [vmem:[%s7284_s18 + $0x70] sm:$0xff] %vm3926_vm3, %v3924_v45  ;;  %v3925_v47 = vadd.f32 %v7277_v8, %v3902_v62 }
 0x947   : > { %3939 = vst.msk [vmem:[%s7284_s18 + $0x60] sm:$0xff] %vm3926_vm3, %v3922_v42  ;;  %v3923_v19 = vadd.f32 %v7277_v8, %v3900_v53 }
 0x948   : > { %3942 = vst.msk [vmem:[%s7284_s18 + $0x78] sm:$0xff] %vm3926_vm3, %v3925_v47 }
 0x949   : > { %3940 = vst.msk [vmem:[%s7284_s18 + $0x68] sm:$0xff] %vm3926_vm3, %v3923_v19 }
 0x94a PF: > { %s16_s25 = sadd.s32 1, %s5349_s25   ;;  %s7525_s21 = smov %s5341_s23 }
 0x94b   : > { %p13_p7 = scmp.ge.s32.totalorder %s16_s25, 6   ;;  %s7526_s22 = smov %s5345_s24 }
 0x94c   : > { %s7527_s23 = smov %s7530_s26  ;;  %s7528_s24 = smov %s7534_s27 }
 0x94d   :  { %15 = sbr.rel (!%p13_p7) target bundleno = 3 (0x3), region = 83 }

// kernel: block_forward.8
= control target key start
LH: loop header
LB: loop body
LE: loop exit
PB: predicated region body
PF: predicated region fallthrough
CT: control target
= control target key end

     0   :  { %s1519_s18 = smov 0   ;;  %s1521_s19 = smov 0   ;;  %s2110_s0 = inlined_call_operand.vmem [shape: bf16[2,14,16,128], index: 0, kind: input, shape index: {}, may-alias: {0,1,2}]   ;;  %s2111_s1 = inlined_call_operand.vmem [shape: bf16[2,14,16,128], index: 1, kind: input, shape index: {}, may-alias: {0,1,2}]   ;;  %s2112_s2 = inlined_call_operand.vmem [shape: bf16[2,14,16,128], index: 2, kind: input, shape index: {}, may-alias: {0,1,2}]   ;;  %s2113_s3 = inlined_call_operand.vmem [shape: f32[3,3,128], index: 3, kind: input, shape index: {}]   ;;  %s2114_s4 = inlined_call_operand.vmem [shape: f32[1,1,128], index: 4, kind: input, shape index: {}]   ;;  %s2115_s5 = inlined_call_operand.vmem [shape: bf16[2,14,14,128], index: 5, kind: output, shape index: {}]  }
   0x1   :  { %s1523_s20 = smov 0   ;;  %s1525_s21 = smov 0  }
   0x2   :  { %s1527_s22 = smov 0  }
   0x3 LB: > { %s24_s23 = sadd.s32 1, %s1479_s20  ;;  %s27_s24 = sadd.s32 1, %s1483_s21  ;;  %s1487_s22 = sphi %s1527_s22, %s15_s22   ;;  %s1483_s21 = sphi %s1525_s21, %s2121_s21   ;;  %s1479_s20 = sphi %s1523_s20, %s2120_s20   ;;  %s1475_s19 = sphi %s1521_s19, %s2119_s19   ;;  %s1471_s18 = sphi %s1519_s18, %s2118_s18  }
   0x4   : > { %p25_p0 = scmp.ge.s32.totalorder %s24_s23, 2  ;;  %p1341_p1 = scmp.ge.s32.totalorder %s1487_s22, 1 }
   0x5   : > { %p273_p2 = scmp.lt.s32.totalorder %s1487_s22, 5 }
   0x6   : > { %s2123_s23 = smov (%p25_p0, %s24_s23), 0  ;;  %s2125_s24 = smov (!%p25_p0, %s27_s24), %s1483_s21 }
   0x7   : > { %p274_p3 = pnand %p1341_p1, %p273_p2  ;;  %p29_p4 = scmp.ge.s32.totalorder %s2125_s24, 2 }
   0x8   : > { %s337_s25 = smul.u32 (!%p274_p3), 7, %s1471_s18  ;;  %p338_p5 = scmp.lt.s32.totalorder (!%p274_p3), %s1475_s19, 1  ;;  %v515_v0 = vlaneseq (!%p274_p3)  ;;  %v499_v2 = vld [vmem:[%s2113_s3 + $0x4] sm:$0x7] (!%p274_p3)  ;;  %v498_v4 = vld [vmem:[%s2113_s3] sm:$0x7] (!%p274_p3) }
   0x9   : > { %s2127_s24 = smov (%p29_p4, %s2125_s24), 0  ;;  %277 = sbr.rel (%p274_p3) target bundleno = 144 (0x90), region = 40 }
   0xa   : > { %p340_p6 = scmp.lt.s32.totalorder (!%p274_p3), %s337_s25, 13  ;;  %s1344_s26 = sadd.s32 (!%p274_p3), 4294967295, %s337_s25  ;;  %v516_v1 = vshrl.u32 (!%p274_p3), %v515_v0, 7  ;;  %v500_v5 = vld [vmem:[%s2113_s3 + $0x8] sm:$0x7] (!%p274_p3)  ;;  %vm579_vm0 = vcmask (!%p274_p3), 1046528  }
   0xb   : > { %p350_p7 = scmp.gt.s32.totalorder (!%p274_p3), %s1344_s26, 0  ;;  %p1345_p8 = scmp.lt.s32.totalorder (!%p274_p3), %s1344_s26, 13  ;;  %vm661_vm1 = vcmask (!%p274_p3), 1045504  }
   0xc   : > { %p394_p9 = scmp.gt.s32.totalorder (!%p274_p3), %s1471_s18, 0  ;;  %v517_v3 = vsub.s32 (!%p274_p3), 0, %v516_v1  ;;  %v549_v6 = vsub.s32 (!%p274_p3), 1, %v516_v1  ;;  %v631_v7 = vsub.s32 (!%p274_p3), 2, %v516_v1  ;;  %p473_p11 = scmp.lt.s32.totalorder (!%p274_p3), %s1471_s18, 1 }
   0xe   : > { %v1576_v9 = vrot.slane (!%p274_p3), %v499_v2, %v517_v3  ;;  %v1578_v10 = vrot.slane (!%p274_p3), %v498_v4, %v517_v3  ;;  %v1580_v11 = vrot.slane (!%p274_p3), %v499_v2, %v549_v6  ;;  %v1582_v12 = vrot.slane (!%p274_p3), %v499_v2, %v631_v7 }
   0xf   : > { %v1585_v15 = vrot.slane (!%p274_p3), %v500_v5, %v517_v3  ;;  %v1587_v16 = vrot.slane (!%p274_p3), %v500_v5, %v549_v6  ;;  %v1589_v17 = vrot.slane (!%p274_p3), %v500_v5, %v631_v7  ;;  %v1594_v20 = vrot.slane (!%p274_p3), %v498_v4, %v549_v6 }
  0x10   : > { %s2129_s19 = smov (!%p338_p5, %s1475_s19), 1  ;;  %s2131_s25 = smov (!%p340_p6, %s337_s25), 13  ;;  %v1596_v21 = vrot.slane %v498_v4, %v631_v7 }
  0x11   : > { %s1552_s27 = smul.u32 28, %s2129_s19  ;;  %s1342_s29 = sshll.u32 %s2131_s25, 1 }
  0x12   : > { %s351_s28 = scalar_select %p350_p7, %s1344_s26, 0 }
  0x13   : > { %s1555_s30 = sadd.s32 %s1552_s27, %s1342_s29 }
  0x14   : > { %s1343_s8 = sshll.u32 %s1555_s30, 2  ;;  %s2133_s28 = smov (!%p1345_p8, %s351_s28), 13 }
  0x15   : > { %s1567_s11 = scalar_lea.vmem %s2110_s0, %s1343_s8  ;;  %s1350_s17 = sshll.u32 %s2133_s28, 1 }
  0x16   : > { %v1442_v8 = vld [vmem:[%s1567_s11] sm:$0xff]   ;;  %s397_s16 = scalar_select %p394_p9, 1, 0  ;;  %v1443_v13 = vld [vmem:[%s1567_s11 + $0x8] sm:$0xff]   ;;  %v1444_v36 = vld [vmem:[%s1567_s11 + $0x10] sm:$0xff]  }
  0x17   : > { %v503_v14 = vunpack.c.l.bf16 %v1442_v8  ;;  %s358_s19 = sadd.s32 %s1552_s27, %s1350_s17  ;;  %v1592_v19 = vunpack.c.h.bf16 %v1442_v8  ;;  %v1602_v23 = vunpack.c.l.bf16 %v1443_v13  ;;  %v1604_v24 = vunpack.c.h.bf16 %v1443_v13  ;;  %s1766_s12 = scalar_lea.vmem %s2115_s5, %s1343_s8 }
  0x18   : > { %v398_v18 = vstv %s397_s16  ;;  %s1351_s25 = sshll.u32 %s358_s19, 2  ;;  %v1658_v56 = vunpack.c.l.bf16 %v1444_v36  ;;  %v1671_v0 = vunpack.c.h.bf16 %v1444_v36  ;;  %s365_s30 = sadd.s32 1, %s1471_s18 }
  0x19   : > { %vm1598_vm2 = vcmp.eq.s32.totalorder %v398_v18, 1  ;;  %v1607_v25 = vmul.f32 %v1576_v9, %v503_v14  ;;  %s360_s29 = scalar_lea.vmem %s2111_s1, %s1351_s25  ;;  %v749_v26 = vmul.f32 %v1580_v11, %v503_v14  ;;  %v1615_v27 = vmul.f32 %v1580_v11, %v1592_v19  ;;  %s1891_s8 = smul.u32 7, %s365_s30 }
  0x1a   : > { %v830_v28 = vmul.f32 %v1582_v12, %v503_v14  ;;  %v1620_v29 = vmul.f32 %v1582_v12, %v1592_v19  ;;  %v395_v30 = vld [vmem:[%s360_s29] sm:$0xf]  ;;  %v396_v31 = vld [vmem:[%s360_s29 + $0x4] sm:$0xf]  ;;  %v1624_v32 = vmul.f32 %v1585_v15, %v1602_v23  ;;  %v945_v33 = vmul.f32 %v1587_v16, %v1602_v23  ;;  %s476_s15 = scalar_select %p473_p11, 1, 0 }
  0x1b   : > { %v1630_v34 = vmul.f32 %v1587_v16, %v1604_v24  ;;  %v1026_v35 = vmul.f32 %v1589_v17, %v1602_v23  ;;  %v400_v37 = vsel %vm1598_vm2, %v395_v30, 0  ;;  %v401_v38 = vsel %vm1598_vm2, %v396_v31, 0  ;;  %p367_p10 = scmp.lt.s32.totalorder %s1891_s8, 13 }
  0x1c   : > { %v777_v39 = vrot.slane %v749_v26, 1  ;;  %v778_v40 = vrot.slane %v1615_v27, 1  ;;  %v1359_v41 = vcombine.low %v400_v37, %v401_v38  ;;  %v858_v42 = vrot.slane %v830_v28, 2 }
  0x1d   : > { %v859_v43 = vrot.slane %v1620_v29, 2  ;;  %v973_v44 = vrot.slane %v945_v33, 1  ;;  %v974_v46 = vrot.slane %v1630_v34, 1  ;;  %v1645_v47 = vmul.f32 %v1589_v17, %v1604_v24  ;;  %s368_s13 = scalar_select %p367_p10, %s1891_s8, 13 }
  0x1e   : > { %v779_v45 = vsel %vm579_vm0, %v777_v39, %v778_v40  ;;  %v1054_v48 = vrot.slane %v1026_v35, 2  ;;  %v501_v49 = vunpack.c.l.bf16 %v1359_v41  ;;  %v502_v50 = vunpack.c.h.bf16 %v1359_v41 }
  0x1f   : > { %v860_v51 = vsel %vm661_vm1, %v858_v42, %v859_v43  ;;  %v718_v52 = vmul.f32 %v1576_v9, %v1592_v19  ;;  %v1653_v53 = vsel %vm579_vm0, %v973_v44, %v974_v46  ;;  %v1055_v54 = vrot.slane %v1645_v47, 2  ;;  %s2135_s13 = smov (!%p367_p10, %s368_s13), 13 }
  0x20   : > { %v914_v55 = vmul.f32 %v1585_v15, %v1604_v24  ;;  %v519_v57 = vmul.f32 %v1578_v10, %v501_v49  ;;  %v551_v58 = vmul.f32 %v1594_v20, %v501_v49  ;;  %v552_v59 = vmul.f32 %v1594_v20, %v502_v50 }
  0x21   : > { %v633_v60 = vmul.f32 %v1596_v21, %v501_v49  ;;  %v634_v61 = vmul.f32 %v1596_v21, %v502_v50  ;;  %v1668_v62 = vsel %vm661_vm1, %v1054_v48, %v1055_v54  ;;  %v520_v63 = vmul.f32 %v1578_v10, %v502_v50 }
  0x22   : > { %v580_v1 = vrot.slane %v551_v58, 1  ;;  %v581_v2 = vrot.slane %v552_v59, 1  ;;  %v521_v4 = vmul.f32 %v1578_v10, %v503_v14  ;;  %v553_v6 = vmul.f32 %v1594_v20, %v503_v14 }
  0x23   : > { %v662_v3 = vrot.slane %v633_v60, 2  ;;  %v663_v5 = vrot.slane %v634_v61, 2  ;;  %v554_v7 = vmul.f32 %v1594_v20, %v1592_v19  ;;  %v635_v8 = vmul.f32 %v1596_v21, %v503_v14 }
  0x24   : > { %v582_v13 = vsel %vm579_vm0, %v580_v1, %v581_v2  ;;  %v616_v18 = vadd.f32 %v581_v2, %v520_v63  ;;  %v636_v22 = vmul.f32 %v1596_v21, %v1592_v19  ;;  %v719_v26 = vmul.f32 %v1576_v9, %v1602_v23 }
  0x25   : > { %v615_v27 = vadd.f32 %v582_v13, %v519_v57  ;;  %v664_v28 = vsel %vm661_vm1, %v662_v3, %v663_v5  ;;  %v583_v29 = vrot.slane %v553_v6, 1  ;;  %v584_v30 = vrot.slane %v554_v7, 1  ;;  %v1445_v13 = vld [vmem:[%s1567_s11 + $0x18] sm:$0xff]  }
  0x26   : > { %v698_v31 = vadd.f32 %v663_v5, %v616_v18  ;;  %v665_v33 = vrot.slane %v635_v8, 2  ;;  %v666_v35 = vrot.slane %v636_v22, 2  ;;  %v751_v14 = vmul.f32 %v1580_v11, %v1602_v23 }
  0x27   : > { %v697_v36 = vadd.f32 %v664_v28, %v615_v27  ;;  %v585_v37 = vsel %vm579_vm0, %v583_v29, %v584_v30  ;;  %v1689_v38 = vmul.f32 %v1580_v11, %v1604_v24  ;;  %v832_v39 = vmul.f32 %v1582_v12, %v1602_v23 }
  0x28   : > { %v732_v41 = vadd.f32 %v718_v52, %v698_v31  ;;  %v617_v42 = vadd.f32 %v585_v37, %v521_v4  ;;  %v667_v44 = vsel %vm661_vm1, %v665_v33, %v666_v35  ;;  %v780_v48 = vrot.slane %v751_v14, 1 }
  0x29   : > { %v731_v49 = vadd.f32 %v1607_v25, %v697_v36  ;;  %v781_v50 = vrot.slane %v1689_v38, 1  ;;  %v1698_v57 = vmul.f32 %v1582_v12, %v1604_v24  ;;  %v861_v58 = vrot.slane %v832_v39, 2 }
  0x2a   : > { %v813_v59 = vadd.f32 %v778_v40, %v732_v41  ;;  %v699_v60 = vadd.f32 %v667_v44, %v617_v42  ;;  %v915_v61 = vmul.f32 %v1585_v15, %v1658_v56  ;;  %v947_v52 = vmul.f32 %v1587_v16, %v1658_v56 }
  0x2b   : > { %v812_v63 = vadd.f32 %v779_v45, %v731_v49  ;;  %v782_v1 = vsel %vm579_vm0, %v780_v48, %v781_v50  ;;  %v862_v25 = vrot.slane %v1698_v57, 2  ;;  %v1708_v2 = vmul.f32 %v1587_v16, %v1671_v0 }
  0x2c   : > { %v894_v3 = vadd.f32 %v859_v43, %v813_v59  ;;  %v733_v4 = vadd.f32 %v719_v26, %v699_v60  ;;  %v976_v40 = vrot.slane %v947_v52, 1  ;;  %v1028_v5 = vmul.f32 %v1589_v17, %v1658_v56 }
  0x2d   : > { %v893_v6 = vadd.f32 %v860_v51, %v812_v63  ;;  %v863_v7 = vsel %vm661_vm1, %v861_v58, %v862_v25  ;;  %v977_v8 = vrot.slane %v1708_v2, 1  ;;  %v1716_v45 = vmul.f32 %v1589_v17, %v1671_v0 }
  0x2e   : > { %v928_v18 = vadd.f32 %v914_v55, %v894_v3  ;;  %v814_v22 = vadd.f32 %v782_v1, %v733_v4  ;;  %v1057_v27 = vrot.slane %v1028_v5, 2  ;;  %v522_v43 = vmul.f32 %v1578_v10, %v1592_v19 }
  0x2f   : > { %v927_v26 = vadd.f32 %v1624_v32, %v893_v6  ;;  %v978_v51 = vsel %vm579_vm0, %v976_v40, %v977_v8  ;;  %v1058_v28 = vrot.slane %v1716_v45, 2  ;;  %v720_v29 = vmul.f32 %v1576_v9, %v1604_v24  ;;  %v1736_v32 = vld [vmem:[%s2114_s4] ss:$0 sm:$0xff] }
  0x30   : > { %v1009_v31 = vadd.f32 %v974_v46, %v928_v18  ;;  %v895_v55 = vadd.f32 %v863_v7, %v814_v22  ;;  %v618_v33 = vadd.f32 %v584_v30, %v522_v43  ;;  %v916_v14 = vmul.f32 %v1585_v15, %v1671_v0 }
  0x31   : > { %v1008_v19 = vadd.f32 %v1653_v53, %v927_v26  ;;  %v1059_v36 = vsel %vm661_vm1, %v1057_v27, %v1058_v28  ;;  %v1741_v37 = vunpack.c.l.bf16 %v1445_v13  ;;  %v1743_v34 = vunpack.c.h.bf16 %v1445_v13 }
  0x32   : > { %v1090_v46 = vadd.f32 %v1055_v54, %v1009_v31  ;;  %v929_v30 = vadd.f32 %v915_v61, %v895_v55  ;;  %v700_v38 = vadd.f32 %v666_v35, %v618_v33  ;;  %v523_v53 = vmul.f32 %v1578_v10, %v1602_v23 }
  0x33   : > { %v1089_v39 = vadd.f32 %v1668_v62, %v1008_v19  ;;  %v555_v41 = vmul.f32 %v1594_v20, %v1602_v23  ;;  %v556_v42 = vmul.f32 %v1594_v20, %v1604_v24  ;;  %v637_v44 = vmul.f32 %v1596_v21, %v1602_v23 }
  0x34   : > { %v1111_v48 = vadd.f32 %v1736_v32, %v1090_v46  ;;  %v1010_v47 = vadd.f32 %v978_v51, %v929_v30  ;;  %v734_v54 = vadd.f32 %v720_v29, %v700_v38  ;;  %v1759_v35 = vmul.f32 %v1596_v21, %v1604_v24 }
  0x35   : > { %v1110_v62 = vadd.f32 %v1736_v32, %v1089_v39  ;;  %v586_v49 = vrot.slane %v555_v41, 1  ;;  %v587_v23 = vrot.slane %v556_v42, 1  ;;  %v668_v57 = vrot.slane %v637_v44, 2 }
  0x36   : > { %v1388_v58 = vpack.c.bf16 %v1111_v48, %v1111_v48  ;;  %v1091_v59 = vadd.f32 %v1059_v36, %v1010_v47  ;;  %v815_v60 = vadd.f32 %v781_v50, %v734_v54  ;;  %v669_v61 = vrot.slane %v1759_v35, 2  ;;  %v1446_v36 = vld [vmem:[%s1567_s11 + $0x20] sm:$0xff]  }
  0x37   : > { %v1387_v52 = vpack.c.bf16 %v1110_v62, %v1110_v62  ;;  %v588_v63 = vsel %vm579_vm0, %v586_v49, %v587_v23  ;;  %v721_v1 = vmul.f32 %v1576_v9, %v1658_v56  ;;  %v753_v3 = vmul.f32 %v1580_v11, %v1658_v56 }
  0x38   : > { %1181 = vst [vmem:[%s1766_s12 + $0x4] sm:$0x7] %v1388_v58  ;;  %v1112_v4 = vadd.f32 %v1736_v32, %v1091_v59  ;;  %v896_v40 = vadd.f32 %v862_v25, %v815_v60  ;;  %v619_v5 = vadd.f32 %v588_v63, %v523_v53  ;;  %v670_v6 = vsel %vm661_vm1, %v668_v57, %v669_v61 }
  0x39   : > { %1180 = vst [vmem:[%s1766_s12] sm:$0xf] %v1387_v52  ;;  %v754_v50 = vmul.f32 %v1580_v11, %v1671_v0  ;;  %v783_v7 = vrot.slane %v753_v3, 1  ;;  %v834_v13 = vmul.f32 %v1582_v12, %v1658_v56  ;;  %v1785_v18 = vmul.f32 %v1582_v12, %v1671_v0 }
  0x3a   : > { %v1389_v22 = vpack.c.bf16 %v1112_v4, %v1112_v4  ;;  %v930_v27 = vadd.f32 %v916_v14, %v896_v40  ;;  %v701_v25 = vadd.f32 %v670_v6, %v619_v5  ;;  %v917_v43 = vmul.f32 %v1585_v15, %v1741_v37 }
  0x3b   : > { %v784_v26 = vrot.slane %v754_v50, 1  ;;  %v864_v51 = vrot.slane %v834_v13, 2  ;;  %v865_v29 = vrot.slane %v1785_v18, 2  ;;  %v949_v31 = vmul.f32 %v1587_v16, %v1741_v37 }
  0x3c   : > { %1182 = vst [vmem:[%s1766_s12 + $0x8] sm:$0xf] %v1389_v22  ;;  %v1011_v55 = vadd.f32 %v977_v8, %v930_v27  ;;  %v735_v33 = vadd.f32 %v721_v1, %v701_v25  ;;  %v1797_v19 = vmul.f32 %v1587_v16, %v1743_v34  ;;  %v1030_v14 = vmul.f32 %v1589_v17, %v1741_v37 }
  0x3d   : > { %v785_v46 = vsel %vm579_vm0, %v783_v7, %v784_v26  ;;  %v866_v30 = vsel %vm661_vm1, %v864_v51, %v865_v29  ;;  %v979_v38 = vrot.slane %v949_v31, 1  ;;  %v1806_v53 = vmul.f32 %v1589_v17, %v1743_v34 }
  0x3e   : > { %v1092_v2 = vadd.f32 %v1058_v28, %v1011_v55  ;;  %v816_v8 = vadd.f32 %v785_v46, %v735_v33  ;;  %v980_v39 = vrot.slane %v1797_v19, 1  ;;  %v1060_v41 = vrot.slane %v1030_v14, 2 }
  0x3f   : > { %v1061_v42 = vrot.slane %v1806_v53, 2  ;;  %v524_v44 = vmul.f32 %v1578_v10, %v1604_v24  ;;  %v722_v48 = vmul.f32 %v1576_v9, %v1671_v0  ;;  %v918_v47 = vmul.f32 %v1585_v15, %v1743_v34 }
  0x40   : > { %v1113_v54 = vadd.f32 %v1736_v32, %v1092_v2  ;;  %v897_v45 = vadd.f32 %v866_v30, %v816_v8  ;;  %v981_v28 = vsel %vm579_vm0, %v979_v38, %v980_v39  ;;  %v1820_v35 = vunpack.c.l.bf16 %v1446_v36 }
  0x41   : > { %v1062_v62 = vsel %vm661_vm1, %v1060_v41, %v1061_v42  ;;  %v620_v49 = vadd.f32 %v587_v23, %v524_v44  ;;  %v1825_v24 = vunpack.c.h.bf16 %v1446_v36  ;;  %v525_v57 = vmul.f32 %v1578_v10, %v1658_v56  ;;  %v1447_v44 = vld [vmem:[%s1567_s11 + $0x28] sm:$0xff]  }
  0x42   : > { %v1390_v58 = vpack.c.bf16 %v1113_v54, %v1113_v54  ;;  %v931_v59 = vadd.f32 %v917_v43, %v897_v45  ;;  %v557_v60 = vmul.f32 %v1594_v20, %v1658_v56  ;;  %v558_v52 = vmul.f32 %v1594_v20, %v1671_v0 }
  0x43   : > { %v702_v63 = vadd.f32 %v669_v61, %v620_v49  ;;  %v639_v1 = vmul.f32 %v1596_v21, %v1658_v56  ;;  %v640_v23 = vmul.f32 %v1596_v21, %v1671_v0  ;;  %v723_v3 = vmul.f32 %v1576_v9, %v1741_v37 }
  0x44   : > { %1183 = vst [vmem:[%s1766_s12 + $0xc] sm:$0x7] %v1390_v58  ;;  %v1012_v4 = vadd.f32 %v981_v28, %v931_v59  ;;  %v589_v40 = vrot.slane %v557_v60, 1  ;;  %v590_v5 = vrot.slane %v558_v52, 1  ;;  %v755_v6 = vmul.f32 %v1580_v11, %v1741_v37 }
  0x45   : > { %v736_v50 = vadd.f32 %v722_v48, %v702_v63  ;;  %v671_v7 = vrot.slane %v639_v1, 2  ;;  %v672_v13 = vrot.slane %v640_v23, 2  ;;  %v1844_v61 = vmul.f32 %v1580_v11, %v1743_v34 }
  0x46   : > { %v1093_v56 = vadd.f32 %v1062_v62, %v1012_v4  ;;  %v591_v18 = vsel %vm579_vm0, %v589_v40, %v590_v5  ;;  %v786_v22 = vrot.slane %v755_v6, 1  ;;  %v836_v27 = vmul.f32 %v1582_v12, %v1741_v37 }
  0x47   : > { %v817_v25 = vadd.f32 %v784_v26, %v736_v50  ;;  %v621_v43 = vadd.f32 %v591_v18, %v525_v57  ;;  %v673_v51 = vsel %vm661_vm1, %v671_v7, %v672_v13  ;;  %v787_v31 = vrot.slane %v1844_v61, 1 }
  0x48   : > { %v1114_v55 = vadd.f32 %v1736_v32, %v1093_v56  ;;  %v837_v33 = vmul.f32 %v1582_v12, %v1743_v34  ;;  %v867_v19 = vrot.slane %v836_v27, 2  ;;  %v919_v14 = vmul.f32 %v1585_v15, %v1820_v35 }
  0x49   : > { %v898_v36 = vadd.f32 %v865_v29, %v817_v25  ;;  %v703_v46 = vadd.f32 %v673_v51, %v621_v43  ;;  %v788_v26 = vsel %vm579_vm0, %v786_v22, %v787_v31  ;;  %v951_v30 = vmul.f32 %v1587_v16, %v1820_v35 }
  0x4a   : > { %v1391_v38 = vpack.c.bf16 %v1114_v55, %v1114_v55  ;;  %v868_v2 = vrot.slane %v837_v33, 2  ;;  %v1861_v8 = vmul.f32 %v1587_v16, %v1825_v24  ;;  %v1032_v41 = vmul.f32 %v1589_v17, %v1820_v35 }
  0x4b   : > { %v932_v48 = vadd.f32 %v918_v47, %v898_v36  ;;  %v737_v54 = vadd.f32 %v723_v3, %v703_v46  ;;  %v982_v29 = vrot.slane %v951_v30, 1  ;;  %v1868_v45 = vmul.f32 %v1589_v17, %v1825_v24 }
  0x4c   : > { %1184 = vst [vmem:[%s1766_s12 + $0x10] sm:$0xf] %v1391_v38  ;;  %v869_v28 = vsel %vm661_vm1, %v867_v19, %v868_v2  ;;  %v983_v62 = vrot.slane %v1861_v8, 1  ;;  %v1063_v49 = vrot.slane %v1032_v41, 2  ;;  %v526_v57 = vmul.f32 %v1578_v10, %v1671_v0 }
  0x4d   : > { %v1013_v58 = vadd.f32 %v980_v39, %v932_v48  ;;  %v818_v59 = vadd.f32 %v788_v26, %v737_v54  ;;  %v1064_v47 = vrot.slane %v1868_v45, 2  ;;  %v724_v60 = vmul.f32 %v1576_v9, %v1743_v34 }
  0x4e   : > { %v984_v52 = vsel %vm579_vm0, %v982_v29, %v983_v62  ;;  %v622_v63 = vadd.f32 %v590_v5, %v526_v57  ;;  %v920_v1 = vmul.f32 %v1585_v15, %v1825_v24  ;;  %v1882_v23 = vunpack.c.l.bf16 %v1447_v44 }
  0x4f   : > { %v1094_v3 = vadd.f32 %v1061_v42, %v1013_v58  ;;  %v899_v0 = vadd.f32 %v869_v28, %v818_v59  ;;  %v1065_v39 = vsel %vm661_vm1, %v1063_v49, %v1064_v47  ;;  %v1889_v4 = vunpack.c.h.bf16 %v1447_v44 }
  0x50   : > { %v704_v40 = vadd.f32 %v672_v13, %v622_v63  ;;  %v527_v5 = vmul.f32 %v1578_v10, %v1741_v37  ;;  %v559_v6 = vmul.f32 %v1594_v20, %v1741_v37  ;;  %v560_v53 = vmul.f32 %v1594_v20, %v1743_v34 }
  0x51   : > { %v1115_v42 = vadd.f32 %v1736_v32, %v1094_v3  ;;  %v933_v50 = vadd.f32 %v919_v14, %v899_v0  ;;  %v641_v7 = vmul.f32 %v1596_v21, %v1741_v37  ;;  %v642_v13 = vmul.f32 %v1596_v21, %v1743_v34 }
  0x52   : > { %v738_v61 = vadd.f32 %v724_v60, %v704_v40  ;;  %v592_v56 = vrot.slane %v559_v6, 1  ;;  %v593_v18 = vrot.slane %v560_v53, 1  ;;  %v725_v22 = vmul.f32 %v1576_v9, %v1820_v35 }
  0x53   : > { %v1392_v27 = vpack.c.bf16 %v1115_v42, %v1115_v42  ;;  %v1014_v25 = vadd.f32 %v984_v52, %v933_v50  ;;  %v674_v43 = vrot.slane %v641_v7, 2  ;;  %v675_v51 = vrot.slane %v642_v13, 2  ;;  %v1448_v50 = vld [vmem:[%s1567_s11 + $0x30] sm:$0xff]   ;;  %s1355_s11 = sshll.u32 %s2135_s13, 1 }
  0x54   : > { %v819_v55 = vadd.f32 %v787_v31, %v738_v61  ;;  %v594_v33 = vsel %vm579_vm0, %v592_v56, %v593_v18  ;;  %v757_v37 = vmul.f32 %v1580_v11, %v1820_v35  ;;  %v1912_v19 = vmul.f32 %v1580_v11, %v1825_v24  ;;  %s1995_s14 = sadd.s32 %s1552_s27, %s1355_s11 }
  0x55   : > { %1185 = vst [vmem:[%s1766_s12 + $0x14] sm:$0x7] %v1392_v27  ;;  %v1095_v14 = vadd.f32 %v1065_v39, %v1014_v25  ;;  %v623_v36 = vadd.f32 %v594_v33, %v527_v5  ;;  %v676_v46 = vsel %vm661_vm1, %v674_v43, %v675_v51  ;;  %v838_v26 = vmul.f32 %v1582_v12, %v1820_v35  ;;  %s1356_s27 = sshll.u32 %s1995_s14, 2 }
  0x56   : > { %v900_v31 = vadd.f32 %v868_v2, %v819_v55  ;;  %v789_v30 = vrot.slane %v757_v37, 1  ;;  %v790_v38 = vrot.slane %v1912_v19, 1  ;;  %v1921_v8 = vmul.f32 %v1582_v12, %v1825_v24  ;;  %s377_s19 = scalar_lea.vmem %s2112_s2, %s1356_s27 }
  0x57   : > { %v1116_v41 = vadd.f32 %v1736_v32, %v1095_v14  ;;  %v705_v44 = vadd.f32 %v676_v46, %v623_v36  ;;  %v870_v48 = vrot.slane %v838_v26, 2  ;;  %v921_v54 = vmul.f32 %v1585_v15, %v1882_v23 }
  0x58   : > { %v934_v29 = vadd.f32 %v920_v1, %v900_v31  ;;  %v791_v2 = vsel %vm579_vm0, %v789_v30, %v790_v38  ;;  %v871_v28 = vrot.slane %v1921_v8, 2  ;;  %v953_v49 = vmul.f32 %v1587_v16, %v1882_v23 }
  0x59   : > { %v1393_v57 = vpack.c.bf16 %v1116_v41, %v1116_v41  ;;  %v739_v58 = vadd.f32 %v725_v22, %v705_v44  ;;  %v1935_v59 = vmul.f32 %v1587_v16, %v1889_v4  ;;  %v1034_v60 = vmul.f32 %v1589_v17, %v1882_v23 }
  0x5a   : > { %v1015_v52 = vadd.f32 %v983_v62, %v934_v29  ;;  %v872_v63 = vsel %vm661_vm1, %v870_v48, %v871_v28  ;;  %v985_v1 = vrot.slane %v953_v49, 1  ;;  %v1942_v3 = vmul.f32 %v1589_v17, %v1889_v4 }
  0x5b   : > { %1186 = vst [vmem:[%s1766_s12 + $0x18] sm:$0xf] %v1393_v57  ;;  %v820_v0 = vadd.f32 %v791_v2, %v739_v58  ;;  %v986_v39 = vrot.slane %v1935_v59, 1  ;;  %v1066_v40 = vrot.slane %v1034_v60, 2  ;;  %v528_v5 = vmul.f32 %v1578_v10, %v1743_v34 }
  0x5c   : > { %v1096_v62 = vadd.f32 %v1064_v47, %v1015_v52  ;;  %v1067_v6 = vrot.slane %v1942_v3, 2  ;;  %v726_v53 = vmul.f32 %v1576_v9, %v1825_v24  ;;  %v922_v42 = vmul.f32 %v1585_v15, %v1889_v4 }
  0x5d   : > { %v901_v7 = vadd.f32 %v872_v63, %v820_v0  ;;  %v987_v34 = vsel %vm579_vm0, %v985_v1, %v986_v39  ;;  %v624_v13 = vadd.f32 %v593_v18, %v528_v5  ;;  %v529_v45 = vmul.f32 %v1578_v10, %v1820_v35 }
  0x5e   : > { %v1117_v47 = vadd.f32 %v1736_v32, %v1096_v62  ;;  %v1068_v61 = vsel %vm661_vm1, %v1066_v40, %v1067_v6  ;;  %v561_v56 = vmul.f32 %v1594_v20, %v1820_v35  ;;  %v1973_v22 = vmul.f32 %v1594_v20, %v1825_v24 }
  0x5f   : > { %v935_v27 = vadd.f32 %v921_v54, %v901_v7  ;;  %v706_v25 = vadd.f32 %v675_v51, %v624_v13  ;;  %v643_v18 = vmul.f32 %v1596_v21, %v1820_v35  ;;  %v1979_v43 = vmul.f32 %v1596_v21, %v1825_v24 }
  0x60   : > { %v1394_v55 = vpack.c.bf16 %v1117_v47, %v1117_v47  ;;  %v595_v33 = vrot.slane %v561_v56, 1  ;;  %v596_v37 = vrot.slane %v1973_v22, 1  ;;  %v1983_v19 = vunpack.c.l.bf16 %v1448_v50 }
  0x61   : > { %v1016_v14 = vadd.f32 %v987_v34, %v935_v27  ;;  %v740_v36 = vadd.f32 %v726_v53, %v706_v25  ;;  %v677_v46 = vrot.slane %v643_v18, 2  ;;  %v678_v51 = vrot.slane %v1979_v43, 2  ;;  %v474_v43 = vld [vmem:[%s377_s19] sm:$0xf] }
  0x62   : > { %1187 = vst [vmem:[%s1766_s12 + $0x1c] sm:$0x7] %v1394_v55  ;;  %v597_v35 = vsel %vm579_vm0, %v595_v33, %v596_v37  ;;  %v1988_v26 = vunpack.c.h.bf16 %v1448_v50  ;;  %v727_v31 = vmul.f32 %v1576_v9, %v1882_v23  ;;  %v759_v30 = vmul.f32 %v1580_v11, %v1882_v23  ;;  %v475_v55 = vld [vmem:[%s377_s19 + $0x4] sm:$0xf] }
  0x63   : > { %v1097_v8 = vadd.f32 %v1068_v61, %v1016_v14  ;;  %v821_v41 = vadd.f32 %v790_v38, %v740_v36  ;;  %v625_v44 = vadd.f32 %v597_v35, %v529_v45  ;;  %v679_v48 = vsel %vm661_vm1, %v677_v46, %v678_v51 }
  0x64   : > { %v2001_v54 = vmul.f32 %v1580_v11, %v1889_v4  ;;  %v792_v29 = vrot.slane %v759_v30, 1  ;;  %v840_v2 = vmul.f32 %v1582_v12, %v1882_v23  ;;  %v2007_v49 = vmul.f32 %v1582_v12, %v1889_v4 }
  0x65   : > { %v1118_v57 = vadd.f32 %v1736_v32, %v1097_v8  ;;  %v902_v38 = vadd.f32 %v871_v28, %v821_v41  ;;  %v707_v58 = vadd.f32 %v679_v48, %v625_v44  ;;  %v923_v60 = vmul.f32 %v1585_v15, %v1983_v19 }
  0x66   : > { %v793_v52 = vrot.slane %v2001_v54, 1  ;;  %v873_v63 = vrot.slane %v840_v2, 2  ;;  %v874_v1 = vrot.slane %v2007_v49, 2  ;;  %v955_v0 = vmul.f32 %v1587_v16, %v1983_v19 }
  0x67   : > { %v1395_v40 = vpack.c.bf16 %v1118_v57, %v1118_v57  ;;  %v936_v5 = vadd.f32 %v922_v42, %v902_v38  ;;  %v741_v62 = vadd.f32 %v727_v31, %v707_v58  ;;  %v2019_v28 = vmul.f32 %v1587_v16, %v1988_v26 }
  0x68   : > { %v794_v53 = vsel %vm579_vm0, %v792_v29, %v793_v52  ;;  %v875_v50 = vsel %vm661_vm1, %v873_v63, %v874_v1  ;;  %v988_v7 = vrot.slane %v955_v0, 1  ;;  %v1036_v34 = vmul.f32 %v1589_v17, %v1983_v19 }
  0x69   : > { %1188 = vst [vmem:[%s1766_s12 + $0x20] sm:$0xf] %v1395_v40  ;;  %v1017_v42 = vadd.f32 %v986_v39, %v936_v5  ;;  %v822_v13 = vadd.f32 %v794_v53, %v741_v62  ;;  %v989_v45 = vrot.slane %v2019_v28, 1  ;;  %v2036_v47 = vmul.f32 %v1589_v17, %v1988_v26 }
  0x6a   : > { %v1069_v61 = vrot.slane %v1036_v34, 2  ;;  %v530_v56 = vmul.f32 %v1578_v10, %v1825_v24  ;;  %v728_v22 = vmul.f32 %v1576_v9, %v1889_v4  ;;  %v924_v27 = vmul.f32 %v1585_v15, %v1988_v26 }
  0x6b   : > { %v1098_v59 = vadd.f32 %v1067_v6, %v1017_v42  ;;  %v903_v39 = vadd.f32 %v875_v50, %v822_v13  ;;  %v990_v25 = vsel %vm579_vm0, %v988_v7, %v989_v45  ;;  %v1070_v18 = vrot.slane %v2036_v47, 2 }
  0x6c   : > { %v626_v33 = vadd.f32 %v596_v37, %v530_v56  ;;  %v477_v14 = vstv %s476_s15  ;;  %v531_v24 = vmul.f32 %v1578_v10, %v1882_v23  ;;  %v563_v36 = vmul.f32 %v1594_v20, %v1882_v23 }
  0x6d   : > { %v1119_v46 = vadd.f32 %v1736_v32, %v1098_v59  ;;  %v937_v3 = vadd.f32 %v923_v60, %v903_v39  ;;  %v1071_v6 = vsel %vm661_vm1, %v1069_v61, %v1070_v18  ;;  %vm478_vm3 = vcmp.eq.s32.totalorder %v477_v14, 1 }
  0x6e   : > { %v708_v35 = vadd.f32 %v678_v51, %v626_v33  ;;  %v479_v31 = vsel %vm478_vm3, %v474_v43, 0  ;;  %v480_v30 = vsel %vm478_vm3, %v475_v55, 0  ;;  %v564_v37 = vmul.f32 %v1594_v20, %v1889_v4 }
  0x6f   : > { %v1396_v8 = vpack.c.bf16 %v1119_v46, %v1119_v46  ;;  %v1018_v41 = vadd.f32 %v990_v25, %v937_v3  ;;  %v1367_v44 = vcombine.low %v479_v31, %v480_v30  ;;  %v598_v48 = vrot.slane %v563_v36, 1 }
  0x70   : > { %v742_v54 = vadd.f32 %v728_v22, %v708_v35  ;;  %v599_v29 = vrot.slane %v564_v37, 1  ;;  %v645_v2 = vmul.f32 %v1596_v21, %v1882_v23  ;;  %v646_v49 = vmul.f32 %v1596_v21, %v1889_v4 }
  0x71   : > { %1189 = vst [vmem:[%s1766_s12 + $0x24] sm:$0x7] %v1396_v8  ;;  %v1099_v57 = vadd.f32 %v1071_v6, %v1018_v41  ;;  %v729_v51 = vmul.f32 %v1576_v9, %v1983_v19  ;;  %v761_v20 = vmul.f32 %v1580_v11, %v1983_v19  ;;  %v762_v38 = vmul.f32 %v1580_v11, %v1988_v26 }
  0x72   : > { %v823_v58 = vadd.f32 %v793_v52, %v742_v54  ;;  %v600_v60 = vsel %vm579_vm0, %v598_v48, %v599_v29  ;;  %v680_v63 = vrot.slane %v645_v2, 2  ;;  %v681_v0 = vrot.slane %v646_v49, 2 }
  0x73   : > { %v1120_v23 = vadd.f32 %v1736_v32, %v1099_v57  ;;  %v627_v21 = vadd.f32 %v600_v60, %v531_v24  ;;  %v795_v40 = vrot.slane %v761_v20, 1  ;;  %v796_v5 = vrot.slane %v762_v38, 1 }
  0x74   : > { %v904_v62 = vadd.f32 %v874_v1, %v823_v58  ;;  %v682_v28 = vsel %vm661_vm1, %v680_v63, %v681_v0  ;;  %v842_v53 = vmul.f32 %v1582_v12, %v1983_v19  ;;  %v843_v11 = vmul.f32 %v1582_v12, %v1988_v26 }
  0x75   : > { %v1397_v52 = vpack.c.bf16 %v1120_v23, %v1120_v23  ;;  %v709_v50 = vadd.f32 %v682_v28, %v627_v21  ;;  %v797_v7 = vsel %vm579_vm0, %v795_v40, %v796_v5  ;;  %v907_v34 = vunpack.c.l.bf16 %v1367_v44 }
  0x76   : > { %v938_v42 = vadd.f32 %v924_v27, %v904_v62  ;;  %v876_v13 = vrot.slane %v842_v53, 2  ;;  %v877_v47 = vrot.slane %v843_v11, 2  ;;  %v908_v61 = vunpack.c.h.bf16 %v1367_v44 }
  0x77   : > { %1190 = vst [vmem:[%s1766_s12 + $0x28] sm:$0xf] %v1397_v52  ;;  %v743_v56 = vadd.f32 %v729_v51, %v709_v50  ;;  %v957_v1 = vmul.f32 %v1587_v16, %v907_v34  ;;  %v1038_v22 = vmul.f32 %v1589_v17, %v907_v34  ;;  %v925_v43 = vmul.f32 %v1585_v15, %v907_v34 }
  0x78   : > { %v1019_v59 = vadd.f32 %v989_v45, %v938_v42  ;;  %v878_v19 = vsel %vm661_vm1, %v876_v13, %v877_v47  ;;  %v958_v12 = vmul.f32 %v1587_v16, %v908_v61  ;;  %v1039_v39 = vmul.f32 %v1589_v17, %v908_v61 }
  0x79   : > { %v824_v25 = vadd.f32 %v797_v7, %v743_v56  ;;  %v991_v27 = vrot.slane %v957_v1, 1  ;;  %v532_v55 = vmul.f32 %v1578_v10, %v1889_v4  ;;  %v1072_v24 = vrot.slane %v1038_v22, 2 }
  0x7a   : > { %v1100_v33 = vadd.f32 %v1070_v18, %v1019_v59  ;;  %v992_v14 = vrot.slane %v958_v12, 1  ;;  %v1073_v36 = vrot.slane %v1039_v39, 2  ;;  %v730_v3 = vmul.f32 %v1576_v9, %v1988_v26 }
  0x7b   : > { %v905_v46 = vadd.f32 %v878_v19, %v824_v25  ;;  %v628_v45 = vadd.f32 %v599_v29, %v532_v55  ;;  %v926_v8 = vmul.f32 %v1585_v15, %v908_v61 }
  0x7c   : > { %v1121_v16 = vadd.f32 %v1736_v32, %v1100_v33  ;;  %v993_v17 = vsel %vm579_vm0, %v991_v27, %v992_v14  ;;  %v1074_v10 = vsel %vm661_vm1, %v1072_v24, %v1073_v36 }
  0x7d   : > { %v939_v6 = vadd.f32 %v925_v43, %v905_v46  ;;  %v710_v35 = vadd.f32 %v681_v0, %v628_v45 }
  0x7e   : > { %v1398_v31 = vpack.c.bf16 %v1121_v16, %v1121_v16 }
  0x7f   : > { %v1020_v4 = vadd.f32 %v993_v17, %v939_v6  ;;  %v744_v18 = vadd.f32 %v730_v3, %v710_v35 }
  0x80   : > { %1191 = vst [vmem:[%s1766_s12 + $0x2c] sm:$0x7] %v1398_v31 }
  0x81   : > { %v1101_v30 = vadd.f32 %v1074_v10, %v1020_v4  ;;  %v825_v37 = vadd.f32 %v796_v5, %v744_v18 }
  0x83   : > { %v1122_v9 = vadd.f32 %v1736_v32, %v1101_v30  ;;  %v906_v26 = vadd.f32 %v877_v47, %v825_v37 }
  0x85   : > { %v1399_v41 = vpack.c.bf16 %v1122_v9, %v1122_v9  ;;  %v940_v44 = vadd.f32 %v926_v8, %v906_v26 }
  0x87   : > { %1192 = vst [vmem:[%s1766_s12 + $0x30] sm:$0xf] %v1399_v41  ;;  %v1021_v48 = vadd.f32 %v992_v14, %v940_v44 }
  0x89   : > { %v1102_v54 = vadd.f32 %v1073_v36, %v1021_v48 }
  0x8b   : > { %v1123_v29 = vadd.f32 %v1736_v32, %v1102_v54 }
  0x8d   : > { %v1400_v2 = vpack.c.bf16 %v1123_v29, %v1123_v29 }
  0x8f   : > { %1193 = vst [vmem:[%s1766_s12 + $0x34] sm:$0x7] %v1400_v2 }
  0x90 PF: > { %s15_s22 = sadd.s32 1, %s1487_s22   ;;  %s2118_s18 = smov %s1479_s20 }
  0x91   : > { %p12_p12 = scmp.ge.s32.totalorder %s15_s22, 6   ;;  %s2119_s19 = smov %s1483_s21 }
  0x92   : > { %s2120_s20 = smov %s2123_s23  ;;  %s2121_s21 = smov %s2127_s24 }
  0x93   :  { %14 = sbr.rel (!%p12_p12) target bundleno = 3 (0x3), region = 78 }

// kernel: block_forward.9
= control target key start
LH: loop header
LB: loop body
LE: loop exit
PB: predicated region body
PF: predicated region fallthrough
CT: control target
= control target key end

     0   :  { %s1376_s15 = smov 0   ;;  %s1378_s16 = smov 0   ;;  %s1855_s0 = inlined_call_operand.vmem [shape: bf16[2,256,128], index: 0, kind: input, shape index: {}]   ;;  %s1856_s1 = inlined_call_operand.vmem [shape: f32[2,256,32], index: 1, kind: input, shape index: {}]   ;;  %s1857_s2 = inlined_call_operand.vmem [shape: bf16[128,32], index: 2, kind: input, shape index: {}]   ;;  %s1858_s3 = inlined_call_operand.vmem [shape: f32[1,32], index: 3, kind: input, shape index: {}]   ;;  %s1859_s4 = inlined_call_operand.vmem [shape: f32[2,256,32], index: 4, kind: output, shape index: {}]  }
   0x1   :  { %s1380_s17 = smov 0   ;;  %s1382_s18 = smov 0  }
   0x2   :  { %s1384_s19 = smov 0  }
   0x3 LB: > { %s23_s20 = sadd.s32 1, %s1341_s17  ;;  %s26_s21 = sadd.s32 1, %s1345_s18  ;;  %s1349_s19 = sphi %s1384_s19, %s14_s19   ;;  %s1345_s18 = sphi %s1382_s18, %s1863_s18   ;;  %s1341_s17 = sphi %s1380_s17, %s1862_s17   ;;  %s1337_s16 = sphi %s1378_s16, %s1861_s16   ;;  %s1333_s15 = sphi %s1376_s15, %s1860_s15  }
   0x4   : > { %p24_p0 = scmp.ge.s32.totalorder %s23_s20, 2  ;;  %p1075_p1 = scmp.ge.s32.totalorder %s1349_s19, 1 }
   0x5   : > { %p200_p2 = scmp.lt.s32.totalorder %s1349_s19, 5 }
   0x6   : > { %s1865_s20 = smov (%p24_p0, %s23_s20), 0  ;;  %s1867_s21 = smov (!%p24_p0, %s26_s21), %s1345_s18 }
   0x7   : > { %p201_p3 = pnand %p1075_p1, %p200_p2  ;;  %p28_p4 = scmp.ge.s32.totalorder %s1867_s21, 2 }
   0x8   : > { %v1239_v0 = vld [vmem:[%s1857_s2] sm:$0xff] (!%p201_p3)   ;;  %s1076_s24 = sshll.u32 (!%p201_p3), %s1333_s15, 4  ;;  %v1240_v1 = vld [vmem:[%s1857_s2 + $0x8] sm:$0xff] (!%p201_p3)   ;;  %p244_p5 = scmp.lt.s32.totalorder (!%p201_p3), %s1337_s16, 1  ;;  %v1241_v2 = vld [vmem:[%s1857_s2 + $0x10] sm:$0xff] (!%p201_p3)  }
   0x9   : > { %s1869_s21 = smov (%p28_p4, %s1867_s21), 0  ;;  %204 = sbr.rel (%p201_p3) target bundleno = 363 (0x16b), region = 36 }
   0xa   : > { %1151 = vmatprep.subr.bf16.mxu0 (!%p201_p3), %v1239_v0  ;;  %1183 = vmatprep.subr.bf16.mxu1 (!%p201_p3), %v1239_v0  ;;  %p246_p6 = scmp.lt.s32.totalorder (!%p201_p3), %s1076_s24, 31  ;;  %v1242_v3 = vld [vmem:[%s1857_s2 + $0x18] sm:$0xff] (!%p201_p3)   ;;  %v1243_v10 = vld [vmem:[%s1857_s2 + $0x20] sm:$0xff] (!%p201_p3)   ;;  %v1244_v18 = vld [vmem:[%s1857_s2 + $0x28] sm:$0xff] (!%p201_p3)  }
   0xb   : > { %1152 = vmatpush3.bf16.msra.mxu0 (!%p201_p3), %v1239_v0  ;;  %1191 = vmatpush3.bf16.msra.mxu1 (!%p201_p3), %v1239_v0  ;;  %v1245_v35 = vld [vmem:[%s1857_s2 + $0x30] sm:$0xff] (!%p201_p3)   ;;  %v1246_v49 = vld [vmem:[%s1857_s2 + $0x38] sm:$0xff] (!%p201_p3)  }
   0xc   : > { %1153 = vmatprep.subr.bf16.mxu0 (!%p201_p3), %v1240_v1  ;;  %1184 = vmatprep.subr.bf16.mxu1 (!%p201_p3), %v1240_v1 }
   0xf   : > { %1154 = vmatpush3.bf16.msra.mxu0 (!%p201_p3), %v1240_v1  ;;  %1192 = vmatpush3.bf16.msra.mxu1 (!%p201_p3), %v1240_v1 }
  0x10   : > { %s1871_s16 = smov (!%p244_p5, %s1337_s16), 1  ;;  %s1873_s24 = smov (!%p246_p6, %s1076_s24), 31  ;;  %1155 = vmatprep.subr.bf16.mxu0 %v1241_v2  ;;  %1185 = vmatprep.subr.bf16.mxu1 %v1241_v2 }
  0x11   : > { %s1077_s29 = sshll.u32 %s1871_s16, 5 }
  0x12   : > { %s1418_s30 = sadd.s32 %s1077_s29, %s1873_s24 }
  0x13   : > { %s1078_s5 = sshll.u32 %s1418_s30, 2  ;;  %1156 = vmatpush3.bf16.msra.mxu0 %v1241_v2  ;;  %1193 = vmatpush3.bf16.msra.mxu1 %v1241_v2  ;;  %s1081_s24 = sshll.u32 %s1418_s30, 3 }
  0x14   : > { %s1427_s10 = scalar_lea.vmem %s1855_s0, %s1078_s5  ;;  %1157 = vmatprep.subr.bf16.mxu0 %v1242_v3  ;;  %1186 = vmatprep.subr.bf16.mxu1 %v1242_v3  ;;  %s1764_s27 = scalar_lea.vmem %s1856_s1, %s1081_s24 }
  0x15   : > { %v1097_v4 = vld [vmem:[%s1427_s10] sm:$0xff]   ;;  %v1449_v15 = vld [vmem:[%s1427_s10 + $0x8] sm:$0xff]   ;;  %s1778_s6 = scalar_lea.vmem %s1859_s4, %s1081_s24 }
  0x16   : > { %v1431_v5 = vld [vmem:[%s1427_s10 + $0x20] sm:$0xff]   ;;  %v1098_v6 = vunpack.c.l.bf16 %v1097_v4  ;;  %v1099_v7 = vunpack.c.h.bf16 %v1097_v4  ;;  %v1102_v24 = vunpack.c.l.bf16 %v1449_v15  ;;  %v1460_v25 = vld [vmem:[%s1427_s10 + $0x28] sm:$0xff]   ;;  %v1103_v29 = vunpack.c.h.bf16 %v1449_v15 }
  0x17   : > { %v1114_v8 = vunpack.c.l.bf16 %v1431_v5  ;;  %v1115_v9 = vunpack.c.h.bf16 %v1431_v5  ;;  %1158 = vmatpush3.bf16.msra.mxu0 %v1242_v3  ;;  %1194 = vmatpush3.bf16.msra.mxu1 %v1242_v3  ;;  %v1118_v34 = vunpack.c.l.bf16 %v1460_v25  ;;  %v1119_v38 = vunpack.c.h.bf16 %v1460_v25 }
  0x18   : > { %v1438_v11 = vmul.f32 0.70710677, %v1098_v6  ;;  %v1440_v12 = vmul.f32 0.70710677, %v1099_v7  ;;  %1159 = vmatprep.subr.bf16.mxu0 %v1243_v10  ;;  %1187 = vmatprep.subr.bf16.mxu1 %v1243_v10  ;;  %v1469_v37 = vmul.f32 0.70710677, %v1102_v24 }
  0x19   : > { %v1442_v13 = vmul.f32 0.70710677, %v1114_v8  ;;  %v1446_v14 = vmul.f32 0.70710677, %v1115_v9  ;;  %v1474_v41 = vmul.f32 0.70710677, %v1103_v29 }
  0x1a   : > { %v322_v16 = vand.u32 2147483647, %v1438_v11  ;;  %v323_v17 = vand.u32 2147483647, %v1440_v12  ;;  %v1476_v42 = vmul.f32 0.5, %v1098_v6  ;;  %v1478_v43 = vmul.f32 0.5, %v1099_v7 }
  0x1b   : > { %v330_v19 = vand.u32 2147483647, %v1442_v13  ;;  %v331_v20 = vand.u32 2147483647, %v1446_v14  ;;  %1160 = vmatpush3.bf16.msra.mxu0 %v1243_v10  ;;  %1195 = vmatpush3.bf16.msra.mxu1 %v1243_v10  ;;  %v324_v44 = vand.u32 2147483647, %v1469_v37 }
  0x1c   : > { %v338_v21 = vmul.f32 0.3275911, %v322_v16  ;;  %v339_v22 = vmul.f32 0.3275911, %v323_v17  ;;  %v530_v23 = vsub.f32 0.0, %v322_v16  ;;  %v531_v26 = vsub.f32 0.0, %v323_v17  ;;  %1161 = vmatprep.subr.bf16.mxu0 %v1244_v18  ;;  %1188 = vmatprep.subr.bf16.mxu1 %v1244_v18 }
  0x1d   : > { %v346_v27 = vmul.f32 0.3275911, %v330_v19  ;;  %v347_v28 = vmul.f32 0.3275911, %v331_v20  ;;  %v538_v33 = vsub.f32 0.0, %v330_v19  ;;  %v1481_v47 = vmul.f32 0.5, %v1114_v8 }
  0x1e   : > { %v354_v30 = vadd.f32 1.0, %v338_v21  ;;  %v355_v31 = vadd.f32 1.0, %v339_v22  ;;  %v546_v32 = vmul.f32 %v530_v23, %v322_v16  ;;  %v547_v39 = vmul.f32 %v531_v26, %v323_v17 }
  0x1f   : > { %v362_v36 = vadd.f32 1.0, %v346_v27  ;;  %v363_v40 = vadd.f32 1.0, %v347_v28  ;;  %1162 = vmatpush3.bf16.msra.mxu0 %v1244_v18  ;;  %1196 = vmatpush3.bf16.msra.mxu1 %v1244_v18  ;;  %v554_v46 = vmul.f32 %v538_v33, %v330_v19  ;;  %v325_v48 = vand.u32 2147483647, %v1474_v41  ;;  %v1507_v18 = vld [vmem:[%s1427_s10 + $0x10] sm:$0xff]  }
  0x20   : > { %1247 = vrcp.f32 %v354_v30  ;;  %v562_v45 = vmul.f32 1.442695, %v546_v32  ;;  %1163 = vmatprep.subr.bf16.mxu0 %v1245_v35  ;;  %1189 = vmatprep.subr.bf16.mxu1 %v1245_v35  ;;  %v539_v50 = vsub.f32 0.0, %v331_v20  ;;  %v340_v51 = vmul.f32 0.3275911, %v324_v44 }
  0x21   : > { %1249 = vrcp.f32 %v355_v31  ;;  %v1489_v52 = vmul.f32 0.70710677, %v1118_v34  ;;  %v564_v53 = vmul.f32 1.442695, %v547_v39  ;;  %v341_v54 = vmul.f32 0.3275911, %v325_v48 }
  0x22   : > { %1251 = vrcp.f32 %v362_v36  ;;  %v1493_v55 = vmul.f32 0.70710677, %v1119_v38  ;;  %v356_v56 = vadd.f32 1.0, %v340_v51  ;;  %v532_v57 = vsub.f32 0.0, %v324_v44 }
  0x23   : > { %1253 = vrcp.f32 %v363_v40  ;;  %v533_v58 = vsub.f32 0.0, %v325_v48  ;;  %v332_v59 = vand.u32 2147483647, %v1489_v52  ;;  %1164 = vmatpush3.bf16.msra.mxu0 %v1245_v35  ;;  %1197 = vmatpush3.bf16.msra.mxu1 %v1245_v35  ;;  %v578_v60 = vmul.f32 1.442695, %v554_v46 }
  0x24   : > { %1255 = vpow2.f32 %v562_v45  ;;  %v357_v61 = vadd.f32 1.0, %v341_v54  ;;  %v333_v62 = vand.u32 2147483647, %v1493_v55  ;;  %1165 = vmatprep.subr.bf16.mxu0 %v1246_v49  ;;  %1190 = vmatprep.subr.bf16.mxu1 %v1246_v49  ;;  %v555_v63 = vmul.f32 %v539_v50, %v331_v20 }
  0x25   : > { %1257 = vrcp.f32 %v356_v56  ;;  %v348_v0 = vmul.f32 0.3275911, %v332_v59  ;;  %v540_v1 = vsub.f32 0.0, %v332_v59  ;;  %v1499_v2 = vmul.f32 0.5, %v1115_v9 }
  0x26   : > { %1259 = vrcp.f32 %v357_v61  ;;  %v349_v3 = vmul.f32 0.3275911, %v333_v62  ;;  %v541_v4 = vsub.f32 0.0, %v333_v62  ;;  %v548_v7 = vmul.f32 %v532_v57, %v324_v44 }
  0x27   : > { %1261 = vpow2.f32 %v564_v53  ;;  %v549_v8 = vmul.f32 %v533_v58, %v325_v48  ;;  %v364_v10 = vadd.f32 1.0, %v348_v0  ;;  %1166 = vmatpush3.bf16.msra.mxu0 %v1246_v49  ;;  %1198 = vmatpush3.bf16.msra.mxu1 %v1246_v49  ;;  %v556_v9 = vmul.f32 %v540_v1, %v332_v59 }
  0x28   : > { %1263 = vpow2.f32 %v578_v60  ;;  %v365_v5 = vadd.f32 1.0, %v349_v3  ;;  %v580_v20 = vmul.f32 1.442695, %v555_v63  ;;  %v557_v21 = vmul.f32 %v541_v4, %v333_v62 }
  0x29   : > { %1265 = vrcp.f32 %v364_v10  ;;  %v1512_v23 = vmul.f32 0.5, %v1102_v24  ;;  %v1516_v26 = vmul.f32 0.5, %v1103_v29  ;;  %v566_v30 = vmul.f32 1.442695, %v548_v7 }
  0x2a   : > { %v1501_v6 = vpop.eup %1247  ;;  %1267 = vrcp.f32 %v365_v5  ;;  %v568_v31 = vmul.f32 1.442695, %v549_v8  ;;  %v1106_v32 = vunpack.c.l.bf16 %v1507_v18  ;;  %v582_v24 = vmul.f32 1.442695, %v556_v9 }
  0x2b   : > { %v1503_v16 = vpop.eup %1249  ;;  %v386_v17 = vmul.f32 1.0614054, %v1501_v6  ;;  %v1107_v39 = vunpack.c.h.bf16 %v1507_v18  ;;  %v584_v40 = vmul.f32 1.442695, %v557_v21  ;;  %1269 = vpow2.f32 %v580_v20 }
  0x2c   : > { %v387_v19 = vmul.f32 1.0614054, %v1503_v16  ;;  %v1518_v27 = vpop.eup %1251  ;;  %v1530_v44 = vmul.f32 0.70710677, %v1106_v32  ;;  %1271 = vpow2.f32 %v566_v30  ;;  %v1564_v30 = vld [vmem:[%s1427_s10 + $0x30] sm:$0xff]   ;;  %vm626_vm0 = vcmp.ge.f32.partialorder %v1438_v11, 0.0 }
  0x2d   : > { %v402_v22 = vadd.f32 -1.4531521, %v386_v17  ;;  %v1521_v33 = vpop.eup %1253  ;;  %v394_v36 = vmul.f32 1.0614054, %v1518_v27  ;;  %v1534_v49 = vmul.f32 0.70710677, %v1107_v39  ;;  %1273 = vpow2.f32 %v568_v31 }
  0x2e   : > { %v403_v28 = vadd.f32 -1.4531521, %v387_v19  ;;  %v395_v29 = vmul.f32 1.0614054, %v1521_v33  ;;  %v1256_v45 = vpop.eup %1255  ;;  %v1539_v54 = vand.u32 2147483647, %v1530_v44  ;;  %1275 = vpow2.f32 %v582_v24 }
  0x2f   : > { %v418_v35 = vmul.f32 %v1501_v6, %v402_v22  ;;  %v410_v48 = vadd.f32 -1.4531521, %v394_v36  ;;  %v1536_v50 = vpop.eup %1257  ;;  %v1547_v60 = vand.u32 2147483647, %v1534_v49  ;;  %vm627_vm1 = vcmp.ge.f32.partialorder %v1440_v12, 0.0 }
  0x30   : > { %v419_v15 = vmul.f32 %v1503_v16, %v403_v28  ;;  %v411_v53 = vadd.f32 -1.4531521, %v395_v29  ;;  %v1541_v56 = vpop.eup %1259  ;;  %v388_v59 = vmul.f32 1.0614054, %v1536_v50  ;;  %v1553_v1 = vmul.f32 0.3275911, %v1539_v54 }
  0x31   : > { %v434_v46 = vadd.f32 1.4214138, %v418_v35  ;;  %v426_v58 = vmul.f32 %v1518_v27, %v410_v48  ;;  %v1262_v61 = vpop.eup %1261  ;;  %v389_v0 = vmul.f32 1.0614054, %v1541_v56  ;;  %1277 = vpow2.f32 %v584_v40 }
  0x32   : > { %v435_v51 = vadd.f32 1.4214138, %v419_v15  ;;  %v427_v63 = vmul.f32 %v1521_v33, %v411_v53  ;;  %v1264_v3 = vpop.eup %1263  ;;  %v404_v8 = vadd.f32 -1.4531521, %v388_v59  ;;  %vm634_vm2 = vcmp.ge.f32.partialorder %v1442_v13, 0.0 }
  0x33   : > { %v450_v57 = vmul.f32 %v1501_v6, %v434_v46  ;;  %v442_v7 = vadd.f32 1.4214138, %v426_v58  ;;  %v1555_v10 = vpop.eup %1265  ;;  %v405_v9 = vadd.f32 -1.4531521, %v389_v0  ;;  %vm635_vm3 = vcmp.ge.f32.partialorder %v1446_v14, 0.0 }
  0x34   : > { %v451_v62 = vmul.f32 %v1503_v16, %v435_v51  ;;  %v443_v5 = vadd.f32 1.4214138, %v427_v63  ;;  %v1557_v19 = vpop.eup %1267  ;;  %v420_v22 = vmul.f32 %v1536_v50, %v404_v8  ;;  %v396_v28 = vmul.f32 1.0614054, %v1555_v10 }
  0x35   : > { %v466_v4 = vadd.f32 -0.28449672, %v450_v57  ;;  %v458_v21 = vmul.f32 %v1518_v27, %v442_v7  ;;  %v421_v36 = vmul.f32 %v1541_v56, %v405_v9  ;;  %v397_v24 = vmul.f32 1.0614054, %v1557_v19  ;;  %v1270_v58 = vpop.eup %1269 }
  0x36   : > { %v467_v17 = vadd.f32 -0.28449672, %v451_v62  ;;  %v459_v35 = vmul.f32 %v1521_v33, %v443_v5  ;;  %v436_v46 = vadd.f32 1.4214138, %v420_v22  ;;  %v1122_v57 = vunpack.c.l.bf16 %v1564_v30 }
  0x37   : > { %v482_v20 = vmul.f32 %v1501_v6, %v466_v4  ;;  %v474_v29 = vadd.f32 -0.28449672, %v458_v21  ;;  %v437_v53 = vadd.f32 1.4214138, %v421_v36  ;;  %v412_v0 = vadd.f32 -1.4531521, %v396_v28  ;;  %v1272_v4 = vpop.eup %1271 }
  0x38   : > { %v483_v31 = vmul.f32 %v1503_v16, %v467_v17  ;;  %v475_v51 = vadd.f32 -0.28449672, %v459_v35  ;;  %v452_v63 = vmul.f32 %v1536_v50, %v436_v46  ;;  %v413_v17 = vadd.f32 -1.4531521, %v397_v24 }
  0x39   : > { %v498_v15 = vadd.f32 0.2548296, %v482_v20  ;;  %v490_v62 = vmul.f32 %v1518_v27, %v474_v29  ;;  %v453_v40 = vmul.f32 %v1541_v56, %v437_v53  ;;  %v428_v20 = vmul.f32 %v1555_v10, %v412_v0 }
  0x3a   : > { %v499_v48 = vadd.f32 0.2548296, %v483_v31  ;;  %v491_v8 = vmul.f32 %v1521_v33, %v475_v51  ;;  %v429_v31 = vmul.f32 %v1557_v19, %v413_v17  ;;  %vm628_vm4 = vcmp.ge.f32.partialorder %v1469_v37, 0.0 }
  0x3b   : > { %v514_v59 = vmul.f32 %v1501_v6, %v498_v15  ;;  %v506_v9 = vadd.f32 0.2548296, %v490_v62  ;;  %v468_v6 = vadd.f32 -0.28449672, %v452_v63  ;;  %v469_v28 = vadd.f32 -0.28449672, %v453_v40 }
  0x3c   : > { %v515_v7 = vmul.f32 %v1503_v16, %v499_v48  ;;  %v507_v22 = vadd.f32 0.2548296, %v491_v8  ;;  %v1274_v16 = vpop.eup %1273  ;;  %v444_v29 = vadd.f32 1.4214138, %v428_v20  ;;  %vm629_vm5 = vcmp.ge.f32.partialorder %v1474_v41, 0.0 }
  0x3d   : > { %v594_v5 = vmul.f32 %v1256_v45, %v514_v59  ;;  %v522_v36 = vmul.f32 %v1518_v27, %v506_v9  ;;  %v484_v15 = vmul.f32 %v1536_v50, %v468_v6  ;;  %v1276_v24 = vpop.eup %1275  ;;  %v485_v48 = vmul.f32 %v1541_v56, %v469_v28 }
  0x3e   : > { %v595_v21 = vmul.f32 %v1262_v61, %v515_v7  ;;  %v523_v46 = vmul.f32 %v1521_v33, %v507_v22  ;;  %v445_v61 = vadd.f32 1.4214138, %v429_v31  ;;  %v460_v62 = vmul.f32 %v1555_v10, %v444_v29  ;;  %v1278_v8 = vpop.eup %1277 }
  0x3f   : > { %v610_v35 = vsub.f32 1.0, %v594_v5  ;;  %v602_v53 = vmul.f32 %v1264_v3, %v522_v36  ;;  %v500_v59 = vadd.f32 0.2548296, %v484_v15  ;;  %v501_v0 = vadd.f32 0.2548296, %v485_v48 }
  0x40   : > { %v611_v45 = vsub.f32 1.0, %v595_v21  ;;  %v603_v63 = vmul.f32 %v1270_v58, %v523_v46  ;;  %v461_v7 = vmul.f32 %v1557_v19, %v445_v61  ;;  %v476_v5 = vadd.f32 -0.28449672, %v460_v62 }
  0x41   : > { %v642_v51 = vsub.f32 0.0, %v610_v35  ;;  %v618_v40 = vsub.f32 1.0, %v602_v53  ;;  %v516_v17 = vmul.f32 %v1536_v50, %v500_v59  ;;  %v517_v20 = vmul.f32 %v1541_v56, %v501_v0 }
  0x42   : > { %v643_v27 = vsub.f32 0.0, %v611_v45  ;;  %v619_v6 = vsub.f32 1.0, %v603_v63  ;;  %v477_v28 = vadd.f32 -0.28449672, %v461_v7  ;;  %v343_v13 = vmul.f32 0.3275911, %v1547_v60 }
  0x43   : > { %v658_v33 = vsel %vm626_vm0, %v610_v35, %v642_v51  ;;  %v650_v58 = vsub.f32 0.0, %v618_v40  ;;  %v596_v22 = vmul.f32 %v1272_v4, %v516_v17  ;;  %v597_v11 = vmul.f32 %v1274_v16, %v517_v20 }
  0x44   : > { %v659_v3 = vsel %vm627_vm1, %v611_v45, %v643_v27  ;;  %v690_v9 = vadd.f32 1.0, %v658_v33  ;;  %v651_v36 = vsub.f32 0.0, %v619_v6  ;;  %v492_v35 = vmul.f32 %v1555_v10, %v476_v5 }
  0x45   : > { %v691_v21 = vadd.f32 1.0, %v659_v3  ;;  %v666_v12 = vsel %vm634_vm2, %v618_v40, %v650_v58  ;;  %v612_v15 = vsub.f32 1.0, %v596_v22  ;;  %v493_v29 = vmul.f32 %v1557_v19, %v477_v28 }
  0x46   : > { %v706_v31 = vmul.f32 %v690_v9, %v1476_v42  ;;  %v667_v56 = vsel %vm635_vm3, %v619_v6, %v651_v36  ;;  %v698_v45 = vadd.f32 1.0, %v666_v12  ;;  %v613_v4 = vsub.f32 1.0, %v597_v11 }
  0x47   : > { %v707_v50 = vmul.f32 %v691_v21, %v1478_v43  ;;  %v508_v46 = vadd.f32 0.2548296, %v492_v35  ;;  %v699_v42 = vadd.f32 1.0, %v667_v56  ;;  %v644_v61 = vsub.f32 0.0, %v612_v15 }
  0x48   : > { %v509_v16 = vadd.f32 0.2548296, %v493_v29  ;;  %v714_v51 = vmul.f32 %v698_v45, %v1481_v47  ;;  %v645_v53 = vsub.f32 0.0, %v613_v4  ;;  %v358_v27 = vadd.f32 1.0, %v1553_v1 }
  0x49   : > { %v722_v48 = vpack.c.bf16 %v707_v50, %v706_v31  ;;  %v524_v43 = vmul.f32 %v1555_v10, %v508_v46  ;;  %v715_v59 = vmul.f32 %v699_v42, %v1499_v2  ;;  %v660_v14 = vsel %vm628_vm4, %v612_v15, %v644_v61  ;;  %v1653_v46 = vld [vmem:[%s1427_s10 + $0x38] sm:$0xff]  }
  0x4a   : > { %v525_v62 = vmul.f32 %v1557_v19, %v509_v16  ;;  %v661_v63 = vsel %vm629_vm5, %v613_v4, %v645_v53  ;;  %v692_v0 = vadd.f32 1.0, %v660_v14  ;;  %v359_v7 = vadd.f32 1.0, %v343_v13 }
  0x4b   : > { %1167 = vmatprep.mubr.bf16.mxu0 %v722_v48  ;;  %v604_v47 = vmul.f32 %v1276_v24, %v524_v43  ;;  %v726_v10 = vpack.c.bf16 %v715_v59, %v714_v51  ;;  %v693_v33 = vadd.f32 1.0, %v661_v63  ;;  %1279 = vrcp.f32 %v358_v27 }
  0x4c   : > { %v605_v40 = vmul.f32 %v1278_v8, %v525_v62  ;;  %v708_v2 = vmul.f32 %v692_v0, %v1512_v23  ;;  %1281 = vrcp.f32 %v359_v7  ;;  %v1123_v37 = vunpack.c.h.bf16 %v1564_v30  ;;  %v1623_v8 = vld [vmem:[%s1427_s10 + $0x18] sm:$0xff]  }
  0x4d   : > { %v620_v17 = vsub.f32 1.0, %v604_v47  ;;  %1175 = vmatprep.mubr.bf16.mxu1 %v726_v10  ;;  %v709_v1 = vmul.f32 %v693_v33, %v1516_v26  ;;  %vm636_vm6 = vcmp.ge.f32.partialorder %v1489_v52, 0.0  ;;  %vm637_vm7 = vcmp.ge.f32.partialorder %v1493_v55, 0.0 }
  0x4e   : > { %v621_v19 = vsub.f32 1.0, %v605_v40  ;;  %v684_v24 = vmul.f32 0.5, %v1118_v34  ;;  %v534_v3 = vsub.f32 0.0, %v1539_v54  ;;  %v1628_v9 = vmul.f32 0.70710677, %v1122_v57 }
  0x4f   : > { %v652_v41 = vsub.f32 0.0, %v620_v17  ;;  %v723_v5 = vpack.c.bf16 %v709_v1, %v708_v2  ;;  %v685_v52 = vmul.f32 0.5, %v1119_v38  ;;  %v535_v55 = vsub.f32 0.0, %v1547_v60 }
  0x50   : > { %v653_v23 = vsub.f32 0.0, %v621_v19  ;;  %v1635_v6 = vmul.f32 0.70710677, %v1123_v37  ;;  %v334_v21 = vand.u32 2147483647, %v1628_v9  ;;  %v1110_v58 = vunpack.c.l.bf16 %v1623_v8 }
  0x51   : > { %v668_v26 = vsel %vm636_vm6, %v620_v17, %v652_v41  ;;  %1168 = vmatmul.mubr.bf16.vlgmr.msra.gmra.mrb[0].mxu0 %v723_v5  ;;  %v550_v25 = vmul.f32 %v534_v3, %v1539_v54  ;;  %v1111_v36 = vunpack.c.h.bf16 %v1623_v8  ;;  %v551_v35 = vmul.f32 %v535_v55, %v1547_v60 }
  0x52   : > { %v669_v34 = vsel %vm637_vm7, %v621_v19, %v653_v23  ;;  %v700_v20 = vadd.f32 1.0, %v668_v26  ;;  %v335_v28 = vand.u32 2147483647, %v1635_v6  ;;  %v350_v38 = vmul.f32 0.3275911, %v334_v21 }
  0x53   : > { %v701_v22 = vadd.f32 1.0, %v669_v34  ;;  %v1647_v29 = vmul.f32 0.70710677, %v1110_v58  ;;  %v570_v42 = vmul.f32 1.442695, %v550_v25  ;;  %v542_v43 = vsub.f32 0.0, %v334_v21 }
  0x54   : > { %v716_v31 = vmul.f32 %v700_v20, %v684_v24  ;;  %v351_v50 = vmul.f32 0.3275911, %v335_v28  ;;  %v366_v15 = vadd.f32 1.0, %v350_v38  ;;  %v1658_v60 = vmul.f32 0.70710677, %v1111_v36 }
  0x55   : > { %v717_v11 = vmul.f32 %v701_v22, %v685_v52  ;;  %v1643_v12 = vpop.eup %1279  ;;  %v572_v16 = vmul.f32 1.442695, %v551_v35  ;;  %v328_v51 = vand.u32 2147483647, %v1647_v29  ;;  %v543_v14 = vsub.f32 0.0, %v335_v28 }
  0x56   : > { %v1649_v56 = vpop.eup %1281  ;;  %v390_v4 = vmul.f32 1.0614054, %v1643_v12  ;;  %v367_v54 = vadd.f32 1.0, %v351_v50  ;;  %1283 = vrcp.f32 %v366_v15  ;;  %v329_v13 = vand.u32 2147483647, %v1658_v60 }
  0x57   : > { %v727_v45 = vpack.c.bf16 %v717_v11, %v716_v31  ;;  %v391_v48 = vmul.f32 1.0614054, %v1649_v56  ;;  %v344_v62 = vmul.f32 0.3275911, %v328_v51  ;;  %v1126_v27 = vunpack.c.l.bf16 %v1653_v46 }
  0x58   : > { %v406_v61 = vadd.f32 -1.4531521, %v390_v4  ;;  %1285 = vrcp.f32 %v367_v54  ;;  %v345_v0 = vmul.f32 0.3275911, %v329_v13  ;;  %v1127_v47 = vunpack.c.h.bf16 %v1653_v46  ;;  %v730_v46 = vld [vmem:[%s1764_s27] sm:$0xff] }
  0x59   : > { %1176 = vmatmul.mubr.bf16.vlgmr.msra.gmra.mrb[0].mxu1 %v727_v45  ;;  %v407_v53 = vadd.f32 -1.4531521, %v391_v48  ;;  %1287 = vpow2.f32 %v570_v42  ;;  %v360_v10 = vadd.f32 1.0, %v344_v62  ;;  %v1668_v40 = vmul.f32 0.5, %v1106_v32 }
  0x5a   : > { %v422_v59 = vmul.f32 %v1643_v12, %v406_v61  ;;  %1289 = vpow2.f32 %v572_v16  ;;  %v558_v2 = vmul.f32 %v542_v43, %v334_v21  ;;  %v361_v17 = vadd.f32 1.0, %v345_v0 }
  0x5b   : > { %v423_v63 = vmul.f32 %v1649_v56, %v407_v53  ;;  %v559_v19 = vmul.f32 %v543_v14, %v335_v28  ;;  %1291 = vrcp.f32 %v360_v10  ;;  %v1673_v41 = vmul.f32 0.70710677, %v1126_v27 }
  0x5c   : > { %v438_v7 = vadd.f32 1.4214138, %v422_v59  ;;  %1293 = vrcp.f32 %v361_v17  ;;  %v536_v5 = vsub.f32 0.0, %v328_v51  ;;  %v1678_v23 = vmul.f32 0.70710677, %v1127_v47 }
  0x5d   : > { %v439_v33 = vadd.f32 1.4214138, %v423_v63  ;;  %v1682_v3 = vmul.f32 0.5, %v1107_v39  ;;  %v537_v26 = vsub.f32 0.0, %v329_v13  ;;  %v336_v52 = vand.u32 2147483647, %v1673_v41 }
  0x5e   : > { %v454_v1 = vmul.f32 %v1643_v12, %v438_v7  ;;  %v586_v20 = vmul.f32 1.442695, %v558_v2  ;;  %v337_v21 = vand.u32 2147483647, %v1678_v23  ;;  %v588_v25 = vmul.f32 1.442695, %v559_v19 }
  0x5f   : > { %v455_v24 = vmul.f32 %v1649_v56, %v439_v33  ;;  %v352_v38 = vmul.f32 0.3275911, %v336_v52  ;;  %vm630_vm8 = vcmp.ge.f32.partialorder %v1530_v44, 0.0  ;;  %v552_v11 = vmul.f32 %v536_v5, %v328_v51 }
  0x60   : > { %v470_v32 = vadd.f32 -0.28449672, %v454_v1  ;;  %v1685_v55 = vpop.eup %1283  ;;  %v353_v35 = vmul.f32 0.3275911, %v337_v21  ;;  %vm631_vm9 = vcmp.ge.f32.partialorder %v1534_v49, 0.0  ;;  %v553_v45 = vmul.f32 %v537_v26, %v329_v13 }
  0x61   : > { %v471_v34 = vadd.f32 -0.28449672, %v455_v24  ;;  %v398_v31 = vmul.f32 1.0614054, %v1685_v55  ;;  %v368_v4 = vadd.f32 1.0, %v352_v38  ;;  %1295 = vpow2.f32 %v586_v20 }
  0x62   : > { %v1688_v22 = vpop.eup %1285  ;;  %v486_v28 = vmul.f32 %v1643_v12, %v470_v32  ;;  %v369_v61 = vadd.f32 1.0, %v353_v35  ;;  %v544_v59 = vsub.f32 0.0, %v336_v52  ;;  %v574_v62 = vmul.f32 1.442695, %v552_v11 }
  0x63   : > { %v487_v18 = vmul.f32 %v1649_v56, %v471_v34  ;;  %v399_v39 = vmul.f32 1.0614054, %v1688_v22  ;;  %v414_v15 = vadd.f32 -1.4531521, %v398_v31  ;;  %v1288_v54 = vpop.eup %1287  ;;  %1297 = vrcp.f32 %v368_v4 }
  0x64   : > { %v502_v50 = vadd.f32 0.2548296, %v486_v28  ;;  %v1290_v16 = vpop.eup %1289  ;;  %1299 = vrcp.f32 %v369_v61  ;;  %v576_v7 = vmul.f32 1.442695, %v553_v45  ;;  %v545_v17 = vsub.f32 0.0, %v337_v21 }
  0x65   : > { %v503_v48 = vadd.f32 0.2548296, %v487_v18  ;;  %v415_v42 = vadd.f32 -1.4531521, %v399_v39  ;;  %v430_v43 = vmul.f32 %v1685_v55, %v414_v15  ;;  %v1700_v13 = vpop.eup %1291  ;;  %1301 = vpow2.f32 %v588_v25 }
  0x66   : > { %v518_v53 = vmul.f32 %v1643_v12, %v502_v50  ;;  %v1702_v10 = vpop.eup %1293  ;;  %v392_v2 = vmul.f32 1.0614054, %v1700_v13  ;;  %v560_v24 = vmul.f32 %v544_v59, %v336_v52  ;;  %1303 = vpow2.f32 %v574_v62 }
  0x67   : > { %v519_v51 = vmul.f32 %v1649_v56, %v503_v48  ;;  %v431_v14 = vmul.f32 %v1688_v22, %v415_v42  ;;  %v446_v0 = vadd.f32 1.4214138, %v430_v43  ;;  %v393_v19 = vmul.f32 1.0614054, %v1702_v10 }
  0x68   : > { %v598_v63 = vmul.f32 %v1288_v54, %v518_v53  ;;  %v408_v26 = vadd.f32 -1.4531521, %v392_v2  ;;  %1305 = vpow2.f32 %v576_v7  ;;  %v561_v18 = vmul.f32 %v545_v17, %v337_v21 }
  0x69   : > { %v599_v33 = vmul.f32 %v1290_v16, %v519_v51  ;;  %v447_v12 = vadd.f32 1.4214138, %v431_v14  ;;  %v462_v56 = vmul.f32 %v1685_v55, %v446_v0  ;;  %v409_v28 = vadd.f32 -1.4531521, %v393_v19 }
  0x6a   : > { %v614_v1 = vsub.f32 1.0, %v598_v63  ;;  %v424_v38 = vmul.f32 %v1700_v13, %v408_v26  ;;  %v590_v35 = vmul.f32 1.442695, %v560_v24  ;;  %vm638_vm10 = vcmp.ge.f32.partialorder %v1628_v9, 0.0 }
  0x6b   : > { %v615_v5 = vsub.f32 1.0, %v599_v33  ;;  %v463_v32 = vmul.f32 %v1688_v22, %v447_v12  ;;  %v478_v20 = vadd.f32 -0.28449672, %v462_v56  ;;  %v425_v52 = vmul.f32 %v1702_v10, %v409_v28  ;;  %v1296_v50 = vpop.eup %1295 }
  0x6c   : > { %v646_v34 = vsub.f32 0.0, %v614_v1  ;;  %v440_v54 = vadd.f32 1.4214138, %v424_v38  ;;  %v592_v12 = vmul.f32 1.442695, %v561_v18  ;;  %1307 = vpow2.f32 %v590_v35 }
  0x6d   : > { %v647_v31 = vsub.f32 0.0, %v615_v5  ;;  %v479_v25 = vadd.f32 -0.28449672, %v463_v32  ;;  %v494_v11 = vmul.f32 %v1685_v55, %v478_v20  ;;  %v1716_v48 = vpop.eup %1297  ;;  %v441_v61 = vadd.f32 1.4214138, %v425_v52 }
  0x6e   : > { %v662_v39 = vsel %vm630_vm8, %v614_v1, %v646_v34  ;;  %v1718_v44 = vpop.eup %1299  ;;  %v456_v43 = vmul.f32 %v1700_v13, %v440_v54  ;;  %v400_v59 = vmul.f32 1.0614054, %v1716_v48  ;;  %1309 = vpow2.f32 %v592_v12 }
  0x6f   : > { %v663_v15 = vsel %vm631_vm9, %v615_v5, %v647_v31  ;;  %v694_v45 = vadd.f32 1.0, %v662_v39  ;;  %v495_v4 = vmul.f32 %v1688_v22, %v479_v25  ;;  %v510_v21 = vadd.f32 0.2548296, %v494_v11  ;;  %v1302_v49 = vpop.eup %1301 }
  0x70   : > { %v695_v42 = vadd.f32 1.0, %v663_v15  ;;  %v457_v62 = vmul.f32 %v1702_v10, %v441_v61  ;;  %v401_v63 = vmul.f32 1.0614054, %v1718_v44  ;;  %v472_v7 = vadd.f32 -0.28449672, %v456_v43  ;;  %v1304_v56 = vpop.eup %1303 }
  0x71   : > { %v710_v16 = vmul.f32 %v694_v45, %v1668_v40  ;;  %v511_v53 = vadd.f32 0.2548296, %v495_v4  ;;  %v526_v14 = vmul.f32 %v1685_v55, %v510_v21  ;;  %v416_v33 = vadd.f32 -1.4531521, %v400_v59 }
  0x72   : > { %v711_v51 = vmul.f32 %v695_v42, %v1682_v3  ;;  %v473_v17 = vadd.f32 -0.28449672, %v457_v62  ;;  %v417_v1 = vadd.f32 -1.4531521, %v401_v63  ;;  %v488_v3 = vmul.f32 %v1700_v13, %v472_v7  ;;  %v1306_v24 = vpop.eup %1305 }
  0x73   : > { %v527_v0 = vmul.f32 %v1688_v22, %v511_v53  ;;  %v606_v2 = vmul.f32 %v1296_v50, %v526_v14  ;;  %v432_v55 = vmul.f32 %v1716_v48, %v416_v33  ;;  %vm639_vm11 = vcmp.ge.f32.partialorder %v1635_v6, 0.0 }
  0x74   : > { %v724_v40 = vpack.c.bf16 %v711_v51, %v710_v16  ;;  %v489_v22 = vmul.f32 %v1702_v10, %v473_v17  ;;  %v433_v32 = vmul.f32 %v1718_v44, %v417_v1  ;;  %v504_v34 = vadd.f32 0.2548296, %v488_v3 }
  0x75   : > { %v607_v19 = vmul.f32 %v1302_v49, %v527_v0  ;;  %v622_v5 = vsub.f32 1.0, %v606_v2  ;;  %v448_v20 = vadd.f32 1.4214138, %v432_v55  ;;  %v686_v18 = vmul.f32 0.5, %v1122_v57 }
  0x76   : > { %1171 = vmatprep.mubr.bf16.mxu0 %v724_v40  ;;  %v505_v31 = vadd.f32 0.2548296, %v489_v22  ;;  %v449_v25 = vadd.f32 1.4214138, %v433_v32  ;;  %v520_v39 = vmul.f32 %v1700_v13, %v504_v34  ;;  %v687_v35 = vmul.f32 0.5, %v1123_v37  ;;  %v1308_v43 = vpop.eup %1307 }
  0x77   : > { %v623_v26 = vsub.f32 1.0, %v607_v19  ;;  %v654_v28 = vsub.f32 0.0, %v622_v5  ;;  %v464_v11 = vmul.f32 %v1716_v48, %v448_v20  ;;  %vm632_vm12 = vcmp.ge.f32.partialorder %v1647_v29, 0.0 }
  0x78   : > { %v521_v50 = vmul.f32 %v1702_v10, %v505_v31  ;;  %v465_v6 = vmul.f32 %v1718_v44, %v449_v25  ;;  %v600_v4 = vmul.f32 %v1304_v56, %v520_v39  ;;  %vm633_vm13 = vcmp.ge.f32.partialorder %v1658_v60, 0.0  ;;  %v1310_v62 = vpop.eup %1309 }
  0x79   : > { %v655_v38 = vsub.f32 0.0, %v623_v26  ;;  %v670_v52 = vsel %vm638_vm10, %v622_v5, %v654_v28  ;;  %v480_v54 = vadd.f32 -0.28449672, %v464_v11  ;;  %v680_v51 = vmul.f32 0.5, %v1110_v58  ;;  %v731_v28 = vld [vmem:[%s1764_s27 + $0x8] sm:$0xff] }
  0x7a   : > { %v702_v45 = vadd.f32 1.0, %v670_v52  ;;  %v601_v57 = vmul.f32 %v1306_v24, %v521_v50  ;;  %v481_v21 = vadd.f32 -0.28449672, %v465_v6  ;;  %v616_v61 = vsub.f32 1.0, %v600_v4  ;;  %v738_v6 = vld [vmem:[%s1764_s27 + $0x40] sm:$0xff]  ;;  %v741_v4 = vld [vmem:[%s1764_s27 + $0x58] sm:$0xff] }
  0x7b   : > { %v671_v15 = vsel %vm639_vm11, %v623_v26, %v655_v38  ;;  %v496_v16 = vmul.f32 %v1716_v48, %v480_v54  ;;  %v681_v0 = vmul.f32 0.5, %v1111_v36  ;;  %vm640_vm14 = vcmp.ge.f32.partialorder %v1673_v41, 0.0  ;;  %v733_v26 = vld [vmem:[%s1764_s27 + $0x18] sm:$0xff] }
  0x7c   : > { %v703_v42 = vadd.f32 1.0, %v671_v15  ;;  %v718_v13 = vmul.f32 %v702_v45, %v686_v18  ;;  %v617_v53 = vsub.f32 1.0, %v601_v57  ;;  %v497_v30 = vmul.f32 %v1718_v44, %v481_v21  ;;  %v739_v57 = vld [vmem:[%s1764_s27 + $0x48] sm:$0xff] }
  0x7d   : > { %v648_v37 = vsub.f32 0.0, %v616_v61  ;;  %v512_v10 = vadd.f32 0.2548296, %v496_v16  ;;  %vm641_vm15 = vcmp.ge.f32.partialorder %v1678_v23, 0.0  ;;  %v689_v3 = vmul.f32 0.5, %v1127_v47 }
  0x7e   : > { %v719_v9 = vmul.f32 %v703_v42, %v687_v35  ;;  %v649_v49 = vsub.f32 0.0, %v617_v53  ;;  %v513_v14 = vadd.f32 0.2548296, %v497_v30  ;;  %v1771_v23 = vld [vmem:[%s1858_s3] ss:$0 sm:$0xff]  ;;  %vm946_vm0 = vcmask 261120  }
  0x7f   : > { %v664_v63 = vsel %vm632_vm12, %v616_v61, %v648_v37  ;;  %v528_v29 = vmul.f32 %v1716_v48, %v512_v10  ;;  %v688_v48 = vmul.f32 0.5, %v1126_v27  ;;  %v732_v27 = vld [vmem:[%s1764_s27 + $0x10] sm:$0xff] }
  0x80   : > { %v728_v59 = vpack.c.bf16 %v719_v9, %v718_v13  ;;  %v665_v7 = vsel %vm633_vm13, %v617_v53, %v649_v49  ;;  %v696_v33 = vadd.f32 1.0, %v664_v63  ;;  %v529_v60 = vmul.f32 %v1718_v44, %v513_v14  ;;  %v740_v35 = vld [vmem:[%s1764_s27 + $0x50] sm:$0xff]  ;;  %v735_v63 = vld [vmem:[%s1764_s27 + $0x28] sm:$0xff] }
  0x81   : > { %v697_v12 = vadd.f32 1.0, %v665_v7  ;;  %v608_v40 = vmul.f32 %v1308_v43, %v528_v29  ;;  %v736_v43 = vld [vmem:[%s1764_s27 + $0x30] sm:$0xff] }
  0x82   : > { %1179 = vmatprep.mubr.bf16.mxu1 %v728_v59  ;;  %v712_v2 = vmul.f32 %v696_v33, %v680_v51  ;;  %v609_v17 = vmul.f32 %v1310_v62, %v529_v60  ;;  %v734_v59 = vld [vmem:[%s1764_s27 + $0x20] sm:$0xff]  ;;  %v737_v51 = vld [vmem:[%s1764_s27 + $0x38] sm:$0xff] }
  0x83   : > { %v713_v1 = vmul.f32 %v697_v12, %v681_v0  ;;  %v624_v56 = vsub.f32 1.0, %v608_v40 }
  0x84   : > { %v625_v58 = vsub.f32 1.0, %v609_v17  ;;  %v744_v17 = vld [vmem:[%s1764_s27 + $0x70] sm:$0xff] }
  0x85   : > { %v725_v19 = vpack.c.bf16 %v713_v1, %v712_v2  ;;  %v656_v8 = vsub.f32 0.0, %v624_v56 }
  0x86   : > { %v657_v36 = vsub.f32 0.0, %v625_v58 }
  0x87   : > { %1172 = vmatmul.mubr.bf16.gmra.mrb[4].mxu0 %v725_v19  ;;  %v672_v44 = vsel %vm640_vm14, %v624_v56, %v656_v8  ;;  %v742_v56 = vld [vmem:[%s1764_s27 + $0x60] sm:$0xff]  ;;  %v745_v19 = vld [vmem:[%s1764_s27 + $0x78] sm:$0xff] }
  0x88   : > { %v673_v55 = vsel %vm641_vm15, %v625_v58, %v657_v36  ;;  %v704_v24 = vadd.f32 1.0, %v672_v44 }
  0x89   : > { %v705_v5 = vadd.f32 1.0, %v673_v55 }
  0x8a   : > { %v720_v22 = vmul.f32 %v704_v24, %v688_v48  ;;  %v743_v48 = vld [vmem:[%s1764_s27 + $0x68] sm:$0xff] }
  0x8b   : > { %v721_v32 = vmul.f32 %v705_v5, %v689_v3 }
  0x8d   : > { %v729_v41 = vpack.c.bf16 %v721_v32, %v720_v22 }
  0x8f   : > { %1180 = vmatmul.mubr.bf16.gmra.mrb[4].mxu1 %v729_v41 }
 0x124   : > { %v1169_v47 = vpop.f32.mrb[0].mxu0 }
 0x125   : > { %v909_v34 = vadd.f32 %v1169_v47, %v732_v27  ;;  %v844_v20 = vpop.f32.mrb[1].mxu0 }
 0x126   : > { %v907_v31 = vadd.f32 %v844_v20, %v730_v46  ;;  %v1170_v25 = vpop.f32.mrb[2].mxu0 }
 0x127   : > { %v932_v38 = vadd.f32 %v1771_v23, %v909_v34  ;;  %v910_v18 = vadd.f32 %v1170_v25, %v733_v26  ;;  %v847_v39 = vpop.f32.mrb[3].mxu0 }
 0x128   : > { %v930_v11 = vadd.f32 %v1771_v23, %v907_v31  ;;  %v908_v52 = vadd.f32 %v847_v39, %v731_v28 }
 0x129   : > { %949 = vst.msk [vmem:[%s1778_s6 + $0x10] sm:$0xff] %vm946_vm0, %v932_v38  ;;  %v933_v50 = vadd.f32 %v1771_v23, %v910_v18 }
 0x12a   : > { %947 = vst.msk [vmem:[%s1778_s6] sm:$0xff] %vm946_vm0, %v930_v11  ;;  %v931_v15 = vadd.f32 %v1771_v23, %v908_v52 }
 0x12b   : > { %950 = vst.msk [vmem:[%s1778_s6 + $0x18] sm:$0xff] %vm946_vm0, %v933_v50 }
 0x12c   : > { %v1177_v45 = vpop.f32.mrb[0].mxu1  ;;  %948 = vst.msk [vmem:[%s1778_s6 + $0x8] sm:$0xff] %vm946_vm0, %v931_v15 }
 0x12d   : > { %v917_v54 = vadd.f32 %v1177_v45, %v740_v35  ;;  %v876_v42 = vpop.f32.mrb[1].mxu1 }
 0x12e   : > { %v915_v21 = vadd.f32 %v876_v42, %v738_v6  ;;  %v1178_v13 = vpop.f32.mrb[2].mxu1 }
 0x12f   : > { %v940_v61 = vadd.f32 %v1771_v23, %v917_v54  ;;  %v918_v16 = vadd.f32 %v1178_v13, %v741_v4  ;;  %v879_v9 = vpop.f32.mrb[3].mxu1 }
 0x130   : > { %v938_v53 = vadd.f32 %v1771_v23, %v915_v21  ;;  %v916_v30 = vadd.f32 %v879_v9, %v739_v57 }
 0x131   : > { %957 = vst.msk [vmem:[%s1778_s6 + $0x50] sm:$0xff] %vm946_vm0, %v940_v61  ;;  %v941_v37 = vadd.f32 %v1771_v23, %v918_v16 }
 0x132   : > { %955 = vst.msk [vmem:[%s1778_s6 + $0x40] sm:$0xff] %vm946_vm0, %v938_v53  ;;  %v939_v10 = vadd.f32 %v1771_v23, %v916_v30 }
 0x133   : > { %958 = vst.msk [vmem:[%s1778_s6 + $0x58] sm:$0xff] %vm946_vm0, %v941_v37 }
 0x134   : > { %956 = vst.msk [vmem:[%s1778_s6 + $0x48] sm:$0xff] %vm946_vm0, %v939_v10 }
 0x15a   : > { %v1173_v49 = vpop.f32.mrb[4].mxu0 }
 0x15b   : > { %v913_v14 = vadd.f32 %v1173_v49, %v736_v43  ;;  %v860_v62 = vpop.f32.mrb[5].mxu0 }
 0x15c   : > { %v911_v0 = vadd.f32 %v860_v62, %v734_v59  ;;  %v1174_v29 = vpop.f32.mrb[6].mxu0 }
 0x15d   : > { %v936_v7 = vadd.f32 %v1771_v23, %v913_v14  ;;  %v914_v33 = vadd.f32 %v1174_v29, %v737_v51  ;;  %v863_v60 = vpop.f32.mrb[7].mxu0 }
 0x15e   : > { %v934_v12 = vadd.f32 %v1771_v23, %v911_v0  ;;  %v912_v40 = vadd.f32 %v863_v60, %v735_v63 }
 0x15f   : > { %953 = vst.msk [vmem:[%s1778_s6 + $0x30] sm:$0xff] %vm946_vm0, %v936_v7  ;;  %v937_v2 = vadd.f32 %v1771_v23, %v914_v33 }
 0x160   : > { %951 = vst.msk [vmem:[%s1778_s6 + $0x20] sm:$0xff] %vm946_vm0, %v934_v12  ;;  %v935_v1 = vadd.f32 %v1771_v23, %v912_v40 }
 0x161   : > { %954 = vst.msk [vmem:[%s1778_s6 + $0x38] sm:$0xff] %vm946_vm0, %v937_v2 }
 0x162   : > { %v1181_v58 = vpop.f32.mrb[4].mxu1  ;;  %952 = vst.msk [vmem:[%s1778_s6 + $0x28] sm:$0xff] %vm946_vm0, %v935_v1 }
 0x163   : > { %v921_v8 = vadd.f32 %v1181_v58, %v744_v17  ;;  %v892_v36 = vpop.f32.mrb[5].mxu1 }
 0x164   : > { %v919_v44 = vadd.f32 %v892_v36, %v742_v56  ;;  %v1182_v3 = vpop.f32.mrb[6].mxu1 }
 0x165   : > { %v944_v55 = vadd.f32 %v1771_v23, %v921_v8  ;;  %v922_v24 = vadd.f32 %v1182_v3, %v745_v19  ;;  %v895_v5 = vpop.f32.mrb[7].mxu1 }
 0x166   : > { %v942_v22 = vadd.f32 %v1771_v23, %v919_v44  ;;  %v920_v32 = vadd.f32 %v895_v5, %v743_v48 }
 0x167   : > { %961 = vst.msk [vmem:[%s1778_s6 + $0x70] sm:$0xff] %vm946_vm0, %v944_v55  ;;  %v945_v41 = vadd.f32 %v1771_v23, %v922_v24 }
 0x168   : > { %959 = vst.msk [vmem:[%s1778_s6 + $0x60] sm:$0xff] %vm946_vm0, %v942_v22  ;;  %v943_v27 = vadd.f32 %v1771_v23, %v920_v32 }
 0x169   : > { %962 = vst.msk [vmem:[%s1778_s6 + $0x78] sm:$0xff] %vm946_vm0, %v945_v41 }
 0x16a   : > { %960 = vst.msk [vmem:[%s1778_s6 + $0x68] sm:$0xff] %vm946_vm0, %v943_v27 }
 0x16b PF: > { %s14_s19 = sadd.s32 1, %s1349_s19   ;;  %s1860_s15 = smov %s1341_s17 }
 0x16c   : > { %p11_p7 = scmp.ge.s32.totalorder %s14_s19, 6   ;;  %s1861_s16 = smov %s1345_s18 }
 0x16d   : > { %s1862_s17 = smov %s1865_s20  ;;  %s1863_s18 = smov %s1869_s21 }
 0x16e   :  { %13 = sbr.rel (!%p11_p7) target bundleno = 3 (0x3), region = 69 }

</bundles_post_ra>
